<compile_context>
chip_gen: v7x
topology: tpu7x:2x2x1
jax: 0.10.0
libtpu: 0.0.40
codegen_flags: <defaults>
</compile_context>

<pallas_src>
import functools

import jax
import jax.numpy as jnp
from jax.experimental import pallas as pl
from jax.experimental.pallas import tpu as pltpu

_TM = 512                      # pixel rows per matmul tile
_TR = 1024                     # rows per scale/shift tile
_VMEM_LIMIT = 48 * 1024 * 1024


# ----------------------------------------------------------------------------
# Pallas kernels
# ----------------------------------------------------------------------------
def _conv_kernel(x_ref, w_ref, b_ref, o_ref, *rest, relu, with_stats):
    """Fused matmul + bias (+ReLU) (+per-tile BN partial statistics).

    x_ref: (tm, K) bf16   w_ref: (K, N) bf16   b_ref: (1, N) f32
    o_ref: (tm, N) out dtype
    rest : optionally (stats_ref,) of shape (2, N) f32:
           row 0 = column sums, row 1 = column sums of squares of the
           post-ReLU, pre-cast f32 activations of this tile.
    """
    acc = jnp.dot(x_ref[...], w_ref[...], preferred_element_type=jnp.float32)
    acc = acc + b_ref[...]
    if relu:
        acc = jnp.maximum(acc, 0.0)
    o_ref[...] = acc.astype(o_ref.dtype)
    if with_stats:
        stats_ref = rest[0]
        stats_ref[0:1, :] = jnp.sum(acc, axis=0)[None, :]
        stats_ref[1:2, :] = jnp.sum(acc * acc, axis=0)[None, :]


def conv_matmul(x2d, w2d, bias, *, relu, with_stats, out_dtype):
    """(M,K)@(K,N) + bias[N], optional ReLU, optional fused BN partial stats.

    Operands are cast to bf16 (f32 accumulation). Returns
    (out[M_pad, N], stats[G, 2, N] or None, n_pad).
    """
    M, K = x2d.shape
    K2, N = w2d.shape
    assert K == K2
    if M <= _TM:
        tm, G = M, 1
    else:
        tm = _TM
        G = pl.cdiv(M, tm)
    Mp = G * tm
    n_pad = Mp - M

    x_bf = x2d.astype(jnp.bfloat16)
    if n_pad:
        x_bf = jnp.pad(x_bf, ((0, n_pad), (0, 0)))
    w_bf = w2d.astype(jnp.bfloat16)
    b2 = bias.reshape(1, N).astype(jnp.float32)

    out_shape = [jax.ShapeDtypeStruct((Mp, N), out_dtype)]
    out_specs = [pl.BlockSpec((tm, N), lambda i: (i, 0))]
    if with_stats:
        out_shape.append(jax.ShapeDtypeStruct((G, 2, N), jnp.float32))
        out_specs.append(pl.BlockSpec((None, 2, N), lambda i: (i, 0, 0)))

    out_bytes = Mp * N * jnp.dtype(out_dtype).itemsize
    cost = pl.CostEstimate(
        flops=2 * Mp * K * N,
        transcendentals=0,
        bytes_accessed=Mp * K * 2 + K * N * 2 + Mp * N * 4 // 2 + out_bytes,
    )

    kernel = functools.partial(_conv_kernel, relu=relu, with_stats=with_stats)
    res = pl.pallas_call(
        kernel,
        out_shape=tuple(out_shape) if with_stats else out_shape[0],
        grid_spec=pltpu.PrefetchScalarGridSpec(
            num_scalar_prefetch=0,
            grid=(G,),
            in_specs=[
                pl.BlockSpec((tm, K), lambda i: (i, 0)),
                pl.BlockSpec((K, N), lambda i: (0, 0)),
                pl.BlockSpec((1, N), lambda i: (0, 0)),
            ],
            out_specs=tuple(out_specs) if with_stats else out_specs[0],
        ),
        compiler_params=pltpu.CompilerParams(
            dimension_semantics=("parallel",),
            vmem_limit_bytes=_VMEM_LIMIT),
        cost_estimate=cost,
    )(x_bf, w_bf, b2)

    if with_stats:
        out, stats = res
    else:
        out, stats = res, None
    return out, stats, n_pad


def _scale_shift_kernel(x_ref, a_ref, d_ref, o_ref):
    o_ref[...] = (x_ref[...].astype(jnp.float32) * a_ref[...]
                  + d_ref[...]).astype(o_ref.dtype)


def scale_shift(y2d, a, d, out_dtype=jnp.bfloat16):
    """Per-channel affine y*a + d on a (M, C) tensor, tiled and lane-dense.

    The flat (M*C,) stream is reshaped to (R, L) with L a multiple of both C
    and 128 when possible, so stores are full-width vst instead of masked.
    """
    M, C = y2d.shape
    total = M * C
    L = C
    if C % 128 != 0:
        for cand in (1024, 512, 256, 128):
            if cand % C == 0 and total % cand == 0:
                L = cand
                break
    R = total // L
    reps = L // C
    a_row = jnp.tile(a.astype(jnp.float32), reps).reshape(1, L)
    d_row = jnp.tile(d.astype(jnp.float32), reps).reshape(1, L)
    y2 = y2d.reshape(R, L)

    tr = R if R <= _TR else _TR
    G = pl.cdiv(R, tr)
    Rp = G * tr
    if Rp != R:
        y2 = jnp.pad(y2, ((0, Rp - R), (0, 0)))

    out = pl.pallas_call(
        _scale_shift_kernel,
        out_shape=jax.ShapeDtypeStruct((Rp, L), out_dtype),
        grid_spec=pltpu.PrefetchScalarGridSpec(
            num_scalar_prefetch=0,
            grid=(G,),
            in_specs=[
                pl.BlockSpec((tr, L), lambda i: (i, 0)),
                pl.BlockSpec((1, L), lambda i: (0, 0)),
                pl.BlockSpec((1, L), lambda i: (0, 0)),
            ],
            out_specs=pl.BlockSpec((tr, L), lambda i: (i, 0)),
        ),
        compiler_params=pltpu.CompilerParams(
            dimension_semantics=("parallel",),
            vmem_limit_bytes=_VMEM_LIMIT),
    )(y2, a_row, d_row)
    if Rp != R:
        out = out[:R]
    return out.reshape(M, C)


# ----------------------------------------------------------------------------
# BatchNorm bookkeeping (training-mode batch statistics)
# ----------------------------------------------------------------------------
def _finish_stats(stats, n_pad, bias, relu, count, gamma, beta):
    """Reduce per-tile partial stats -> per-channel affine (a, d): y*a + d."""
    s = jnp.sum(stats[:, 0, :], axis=0)
    ss = jnp.sum(stats[:, 1, :], axis=0)
    if n_pad:
        # Padded (zero) patch rows contribute exactly relu(bias) per channel.
        v = jnp.maximum(bias, 0.0) if relu else bias
        s = s - n_pad * v
        ss = ss - n_pad * v * v
    mean = s / count
    var = jnp.maximum(ss / count - mean * mean, 0.0)   # biased batch variance
    inv = jax.lax.rsqrt(var + 1e-5)
    a = gamma * inv
    d = beta - mean * a
    return a, d


def batchnorm_apply(y, a, d):
    N, H, W, C = y.shape
    out = scale_shift(y.reshape(-1, C), a, d, out_dtype=jnp.bfloat16)
    return out.reshape(N, H, W, C)


# ----------------------------------------------------------------------------
# Conv / pool / up building blocks (glue in JAX, matmuls in Pallas)
# ----------------------------------------------------------------------------
def _im2col3x3(x):
    """x: (N,H,W,C) bf16, padding=1 -> (N*H*W, 9*C) patches, (ky,kx,c) order."""
    N, H, W, C = x.shape
    xp = jnp.pad(x, ((0, 0), (1, 1), (1, 1), (0, 0)))
    cols = [xp[:, ky:ky + H, kx:kx + W, :] for ky in range(3) for kx in range(3)]
    return jnp.concatenate(cols, axis=-1).reshape(N * H * W, 9 * C)


def conv3x3_stats(x, w, b, gamma, beta):
    """Conv2d(3x3, pad=1) + ReLU; returns (pre-BN activation, BN affine a, d)."""
    N, H, W, Cin = x.shape
    Cout = w.shape[0]
    M = N * H * W
    patches = _im2col3x3(x.astype(jnp.bfloat16))
    w_flat = jnp.transpose(w, (2, 3, 1, 0)).reshape(9 * Cin, Cout)
    out, stats, n_pad = conv_matmul(patches, w_flat, b, relu=True,
                                    with_stats=True, out_dtype=jnp.bfloat16)
    a, d = _finish_stats(stats, n_pad, b.astype(jnp.float32), True, M,
                         gamma, beta)
    y = out[:M].reshape(N, H, W, Cout)
    return y, a, d


def upconv2x2(x, w, b, bn_affine):
    """ConvTranspose2d(k=2, s=2) with the previous BN folded into its weights.

    x is the pre-BN activation; (a, d) is the BN affine of that activation.
    Fold is exact because the transposed conv has no zero padding.
    """
    N, H, W, Cin = x.shape
    Cout = w.shape[1]
    a, d = bn_affine
    w_flat = jnp.transpose(w, (0, 2, 3, 1)).reshape(Cin, 4 * Cout)  # (cin; dy,dx,co)
    w_fold = w_flat * a[:, None]
    b_fold = jnp.tile(b, 4) + d @ w_flat
    out, _, _ = conv_matmul(x.reshape(N * H * W, Cin), w_fold, b_fold,
                            relu=False, with_stats=False,
                            out_dtype=jnp.bfloat16)
    out = out[:N * H * W].reshape(N, H, W, 2, 2, Cout)
    # Sub-pixel interleave (fuses into the following concat/pad/im2col copy).
    out = jnp.transpose(out, (0, 1, 3, 2, 4, 5)).reshape(N, 2 * H, 2 * W, Cout)
    return out


def conv1x1(x, w, b, bn_affine):
    """Final Conv2d(1x1) with the previous BN folded into its weights (exact)."""
    N, H, W, Cin = x.shape
    Cout = w.shape[0]
    a, d = bn_affine
    w2 = w.reshape(Cout, Cin).T
    w_fold = w2 * a[:, None]
    b_fold = b + d @ w2
    out, _, _ = conv_matmul(x.reshape(N * H * W, Cin), w_fold, b_fold,
                            relu=False, with_stats=False,
                            out_dtype=jnp.float32)
    return out[:N * H * W].reshape(N, H, W, Cout)


def maxpool2(x):
    # 2x2 max pool, stride 2 (tiny elementwise reduction; kept as JAX glue).
    N, H, W, C = x.shape
    return x.reshape(N, H // 2, 2, W // 2, 2, C).max(axis=(2, 4))


def conv_block(x, p):
    # Conv -> ReLU -> BN -> Conv -> ReLU -> BN (UNetConvBlock, batch_norm=True).
    # Returns the *pre-BN2* activation plus the BN2 affine so callers can fold
    # it into the next linear op when that op has no zero padding.
    y1, a1, d1 = conv3x3_stats(x, p["w1"], p["b1"], p["g1"], p["be1"])
    x1 = batchnorm_apply(y1, a1, d1)          # explicit: feeds a padded 3x3 conv
    y2, a2, d2 = conv3x3_stats(x1, p["w2"], p["b2"], p["g2"], p["be2"])
    return y2, a2, d2


def up_block(y_prev, bn_prev, bridge, p):
    up = upconv2x2(y_prev, p["up_w"], p["up_b"], bn_prev)
    _, Hu, Wu, _ = up.shape
    _, Hb, Wb, _ = bridge.shape
    dy = (Hb - Hu) // 2
    dx = (Wb - Wu) // 2
    crop = bridge[:, dy:dy + Hu, dx:dx + Wu, :]
    out = jnp.concatenate([up, crop.astype(up.dtype)], axis=-1)
    return conv_block(out, p["conv"])


# ----------------------------------------------------------------------------
# UNet parameters + forward
# ----------------------------------------------------------------------------
def init_params(key, in_channels=3, n_classes=3, depth=3, wf=3):
    scale = 0.1
    keys = iter(jax.random.split(key, 256))

    def conv_w(cout, cin, k):
        return jax.random.normal(next(keys), (cout, cin, k, k), jnp.float32) * scale

    def convblock_params(cin, cout):
        return {
            "w1": conv_w(cout, cin, 3), "b1": jnp.zeros((cout,), jnp.float32),
            "g1": jnp.ones((cout,), jnp.float32), "be1": jnp.zeros((cout,), jnp.float32),
            "w2": conv_w(cout, cout, 3), "b2": jnp.zeros((cout,), jnp.float32),
            "g2": jnp.ones((cout,), jnp.float32), "be2": jnp.zeros((cout,), jnp.float32),
        }

    params = {"down": [], "up": []}
    prev = in_channels
    for i in range(depth):
        cout = 2 ** (wf + i)
        params["down"].append(convblock_params(prev, cout))
        prev = cout
    for i in reversed(range(depth - 1)):
        cout = 2 ** (wf + i)
        params["up"].append({
            "up_w": jax.random.normal(next(keys), (prev, cout, 2, 2), jnp.float32) * scale,
            "up_b": jnp.zeros((cout,), jnp.float32),
            "conv": convblock_params(prev, cout),
        })
        prev = cout
    params["last_w"] = conv_w(n_classes, prev, 1)
    params["last_b"] = jnp.zeros((n_classes,), jnp.float32)
    return params


def unet_forward(params, x_nchw):
    # layout: NCHW in -> NHWC internal (bf16 activations) -> NCHW f32 out
    x = jnp.transpose(x_nchw, (0, 2, 3, 1)).astype(jnp.float32)
    blocks = []
    n_down = len(params["down"])
    y, bn = None, None
    for i, blk in enumerate(params["down"]):
        y, a, d = conv_block(x, blk)
        if i != n_down - 1:
            xn = batchnorm_apply(y, a, d)     # needed explicitly: bridge + pool
            blocks.append(xn)
            x = maxpool2(xn)
        else:
            bn = (a, d)                       # bottom BN2: folded into first upconv
    for i, up_p in enumerate(params["up"]):
        y, a, d = up_block(y, bn, blocks[-i - 1], up_p)
        bn = (a, d)                           # folded into next upconv / last conv
    out = conv1x1(y, params["last_w"], params["last_b"], bn)
    return jnp.transpose(out, (0, 3, 1, 2))


if __name__ == "__main__":
    key = jax.random.PRNGKey(0)
    kp, kx = jax.random.split(key)

    # Small config consistent with the module: depth=3, wf=3 -> channels 8/16/32.
    params = init_params(kp, in_channels=3, n_classes=3, depth=3, wf=3)
    x = jax.random.normal(kx, (2, 3, 16, 16), jnp.float32)   # NCHW like PyTorch

    fwd = jax.jit(unet_forward)
    out = fwd(params, x)
    jax.block_until_ready(out)

    assert out.shape == (2, 3, 16, 16), out.shape
    assert bool(jnp.all(jnp.isfinite(out)))
    print("KERNEL_OK")
</pallas_src>

<mosaic_0001>
module attributes {stable_mosaic.version = 11 : i64} {
  func.func @_conv_kernel(%arg0: i32, %arg1: memref<512x27xbf16, #tpu.memory_space<vmem>>, %arg2: memref<27x8xbf16, #tpu.memory_space<vmem>>, %arg3: memref<1x8xf32, #tpu.memory_space<vmem>>, %arg4: memref<512x8xbf16, #tpu.memory_space<vmem>>, %arg5: memref<1x2x8xf32, #tpu.memory_space<vmem>>) attributes {dimension_semantics = [#tpu.dimension_semantics<parallel>], iteration_bounds = array<i64: 1>, scalar_prefetch = 0 : i64, scratch_operands = 0 : i64, tpu.core_type = #tpu.core_type<tc>, window_params = [{transform_indices = @transform_0, window_bounds = array<i64: 512, 27>}, {pipeline_mode = #tpu.pipeline_mode<synchronous>, transform_indices = @transform_1, window_bounds = array<i64: 27, 8>}, {pipeline_mode = #tpu.pipeline_mode<synchronous>, transform_indices = @transform_2, window_bounds = array<i64: 1, 8>}, {transform_indices = @transform_3, window_bounds = array<i64: 512, 8>}, {transform_indices = @transform_4, window_bounds = array<i64: 1, 2, 8>}]} {
    %c0 = arith.constant 0 : index
    %c0_0 = arith.constant 0 : index
    %0 = vector.load %arg1[%c0, %c0_0] : memref<512x27xbf16, #tpu.memory_space<vmem>>, vector<512x27xbf16>
    %c0_1 = arith.constant 0 : index
    %c0_2 = arith.constant 0 : index
    %1 = vector.load %arg2[%c0_1, %c0_2] : memref<27x8xbf16, #tpu.memory_space<vmem>>, vector<27x8xbf16>
    %cst = arith.constant dense<0.000000e+00> : vector<512x8xf32>
    %2 = tpu.matmul %0, %1, %cst {dimension_numbers = #tpu.dot_dimension_numbers<[1], [0], [0], [1], [0, 0, 1, 1], [], []>} : vector<512x27xbf16>, vector<27x8xbf16>, vector<512x8xf32> -> vector<512x8xf32>
    %c0_3 = arith.constant 0 : index
    %c0_4 = arith.constant 0 : index
    %3 = vector.load %arg3[%c0_3, %c0_4] : memref<1x8xf32, #tpu.memory_space<vmem>>, vector<1x8xf32>
    %4 = vector.broadcast %3 : vector<1x8xf32> to vector<512x8xf32>
    %5 = arith.addf %2, %4 : vector<512x8xf32>
    %cst_5 = arith.constant 0.000000e+00 : f32
    %6 = vector.broadcast %cst_5 : f32 to vector<512x8xf32>
    %7 = arith.maximumf %5, %6 : vector<512x8xf32>
    %8 = arith.truncf %7 : vector<512x8xf32> to vector<512x8xbf16>
    %c0_6 = arith.constant 0 : index
    %c0_7 = arith.constant 0 : index
    %9 = vector.load %arg4[%c0_6, %c0_7] : memref<512x8xbf16, #tpu.memory_space<vmem>>, vector<512x8xbf16>
    tpu.vector_store %arg4[%c0_6, %c0_7], %8 {strides = array<i32>} : memref<512x8xbf16, #tpu.memory_space<vmem>>, vector<512x8xbf16>,
    %cst_8 = arith.constant dense<0.000000e+00> : vector<8xf32>
    %10 = vector.multi_reduction <add>, %7, %cst_8 [0] : vector<512x8xf32> to vector<8xf32>
    %11 = vector.shape_cast %10 : vector<8xf32> to vector<1x8xf32>
    %c0_9 = arith.constant 0 : index
    %c0_10 = arith.constant 0 : index
    %c0_11 = arith.constant 0 : index
    %12 = vector.load %arg5[%c0_9, %c0_10, %c0_11] : memref<1x2x8xf32, #tpu.memory_space<vmem>>, vector<1x1x8xf32>
    %13 = vector.shape_cast %12 : vector<1x1x8xf32> to vector<1x8xf32>
    %14 = vector.shape_cast %11 : vector<1x8xf32> to vector<1x1x8xf32>
    tpu.vector_store %arg5[%c0_9, %c0_10, %c0_11], %14 {strides = array<i32>} : memref<1x2x8xf32, #tpu.memory_space<vmem>>, vector<1x1x8xf32>,
    %15 = arith.mulf %7, %7 : vector<512x8xf32>
    %cst_12 = arith.constant dense<0.000000e+00> : vector<8xf32>
    %16 = vector.multi_reduction <add>, %15, %cst_12 [0] : vector<512x8xf32> to vector<8xf32>
    %17 = vector.shape_cast %16 : vector<8xf32> to vector<1x8xf32>
    %c0_13 = arith.constant 0 : index
    %c1 = arith.constant 1 : index
    %c0_14 = arith.constant 0 : index
    %18 = vector.load %arg5[%c0_13, %c1, %c0_14] : memref<1x2x8xf32, #tpu.memory_space<vmem>>, vector<1x1x8xf32>
    %19 = vector.shape_cast %18 : vector<1x1x8xf32> to vector<1x8xf32>
    %20 = vector.shape_cast %17 : vector<1x8xf32> to vector<1x1x8xf32>
    tpu.vector_store %arg5[%c0_13, %c1, %c0_14], %20 {strides = array<i32>} : memref<1x2x8xf32, #tpu.memory_space<vmem>>, vector<1x1x8xf32>,
    return
  }
  func.func @transform_0(%arg0: i32) -> (i32, i32) {
    %c0_i32 = arith.constant 0 : i32
    %c0_i32_0 = arith.constant 0 : i32
    return %arg0, %c0_i32 : i32, i32
  }
  func.func @transform_1(%arg0: i32) -> (i32, i32) {
    %c0_i32 = arith.constant 0 : i32
    %c0_i32_0 = arith.constant 0 : i32
    %c0_i32_1 = arith.constant 0 : i32
    return %c0_i32, %c0_i32_0 : i32, i32
  }
  func.func @transform_2(%arg0: i32) -> (i32, i32) {
    %c0_i32 = arith.constant 0 : i32
    %c0_i32_0 = arith.constant 0 : i32
    %c0_i32_1 = arith.constant 0 : i32
    return %c0_i32, %c0_i32_0 : i32, i32
  }
  func.func @transform_3(%arg0: i32) -> (i32, i32) {
    %c0_i32 = arith.constant 0 : i32
    %c0_i32_0 = arith.constant 0 : i32
    return %arg0, %c0_i32 : i32, i32
  }
  func.func @transform_4(%arg0: i32) -> (i32, i32, i32) {
    %c0_i32 = arith.constant 0 : i32
    %c0_i32_0 = arith.constant 0 : i32
    %c0_i32_1 = arith.constant 0 : i32
    return %arg0, %c0_i32, %c0_i32_0 : i32, i32, i32
  }
}

module attributes {stable_mosaic.version = 11 : i64} {
  func.func @_scale_shift_kernel(%arg0: i32, %arg1: memref<4x1024xbf16, #tpu.memory_space<vmem>>, %arg2: memref<1x1024xf32, #tpu.memory_space<vmem>>, %arg3: memref<1x1024xf32, #tpu.memory_space<vmem>>, %arg4: memref<4x1024xbf16, #tpu.memory_space<vmem>>) attributes {dimension_semantics = [#tpu.dimension_semantics<parallel>], iteration_bounds = array<i64: 1>, scalar_prefetch = 0 : i64, scratch_operands = 0 : i64, tpu.core_type = #tpu.core_type<tc>, window_params = [{transform_indices = @transform_0, window_bounds = array<i64: 4, 1024>}, {pipeline_mode = #tpu.pipeline_mode<synchronous>, transform_indices = @transform_1, window_bounds = array<i64: 1, 1024>}, {pipeline_mode = #tpu.pipeline_mode<synchronous>, transform_indices = @transform_2, window_bounds = array<i64: 1, 1024>}, {transform_indices = @transform_3, window_bounds = array<i64: 4, 1024>}]} {
    %c0 = arith.constant 0 : index
    %c0_0 = arith.constant 0 : index
    %0 = vector.load %arg1[%c0, %c0_0] : memref<4x1024xbf16, #tpu.memory_space<vmem>>, vector<4x1024xbf16>
    %1 = arith.extf %0 : vector<4x1024xbf16> to vector<4x1024xf32>
    %c0_1 = arith.constant 0 : index
    %c0_2 = arith.constant 0 : index
    %2 = vector.load %arg2[%c0_1, %c0_2] : memref<1x1024xf32, #tpu.memory_space<vmem>>, vector<1x1024xf32>
    %3 = vector.broadcast %2 : vector<1x1024xf32> to vector<4x1024xf32>
    %4 = arith.mulf %1, %3 : vector<4x1024xf32>
    %c0_3 = arith.constant 0 : index
    %c0_4 = arith.constant 0 : index
    %5 = vector.load %arg3[%c0_3, %c0_4] : memref<1x1024xf32, #tpu.memory_space<vmem>>, vector<1x1024xf32>
    %6 = vector.broadcast %5 : vector<1x1024xf32> to vector<4x1024xf32>
    %7 = arith.addf %4, %6 : vector<4x1024xf32>
    %8 = arith.truncf %7 : vector<4x1024xf32> to vector<4x1024xbf16>
    %c0_5 = arith.constant 0 : index
    %c0_6 = arith.constant 0 : index
    %9 = vector.load %arg4[%c0_5, %c0_6] : memref<4x1024xbf16, #tpu.memory_space<vmem>>, vector<4x1024xbf16>
    tpu.vector_store %arg4[%c0_5, %c0_6], %8 {strides = array<i32>} : memref<4x1024xbf16, #tpu.memory_space<vmem>>, vector<4x1024xbf16>,
    return
  }
  func.func @transform_0(%arg0: i32) -> (i32, i32) {
    %c0_i32 = arith.constant 0 : i32
    %c0_i32_0 = arith.constant 0 : i32
    return %arg0, %c0_i32 : i32, i32
  }
  func.func @transform_1(%arg0: i32) -> (i32, i32) {
    %c0_i32 = arith.constant 0 : i32
    %c0_i32_0 = arith.constant 0 : i32
    %c0_i32_1 = arith.constant 0 : i32
    return %c0_i32, %c0_i32_0 : i32, i32
  }
  func.func @transform_2(%arg0: i32) -> (i32, i32) {
    %c0_i32 = arith.constant 0 : i32
    %c0_i32_0 = arith.constant 0 : i32
    %c0_i32_1 = arith.constant 0 : i32
    return %c0_i32, %c0_i32_0 : i32, i32
  }
  func.func @transform_3(%arg0: i32) -> (i32, i32) {
    %c0_i32 = arith.constant 0 : i32
    %c0_i32_0 = arith.constant 0 : i32
    return %arg0, %c0_i32 : i32, i32
  }
}

module attributes {stable_mosaic.version = 11 : i64} {
  func.func @_conv_kernel(%arg0: i32, %arg1: memref<512x72xbf16, #tpu.memory_space<vmem>>, %arg2: memref<72x8xbf16, #tpu.memory_space<vmem>>, %arg3: memref<1x8xf32, #tpu.memory_space<vmem>>, %arg4: memref<512x8xbf16, #tpu.memory_space<vmem>>, %arg5: memref<1x2x8xf32, #tpu.memory_space<vmem>>) attributes {dimension_semantics = [#tpu.dimension_semantics<parallel>], iteration_bounds = array<i64: 1>, scalar_prefetch = 0 : i64, scratch_operands = 0 : i64, tpu.core_type = #tpu.core_type<tc>, window_params = [{transform_indices = @transform_0, window_bounds = array<i64: 512, 72>}, {pipeline_mode = #tpu.pipeline_mode<synchronous>, transform_indices = @transform_1, window_bounds = array<i64: 72, 8>}, {pipeline_mode = #tpu.pipeline_mode<synchronous>, transform_indices = @transform_2, window_bounds = array<i64: 1, 8>}, {transform_indices = @transform_3, window_bounds = array<i64: 512, 8>}, {transform_indices = @transform_4, window_bounds = array<i64: 1, 2, 8>}]} {
    %c0 = arith.constant 0 : index
    %c0_0 = arith.constant 0 : index
    %0 = vector.load %arg1[%c0, %c0_0] : memref<512x72xbf16, #tpu.memory_space<vmem>>, vector<512x72xbf16>
    %c0_1 = arith.constant 0 : index
    %c0_2 = arith.constant 0 : index
    %1 = vector.load %arg2[%c0_1, %c0_2] : memref<72x8xbf16, #tpu.memory_space<vmem>>, vector<72x8xbf16>
    %cst = arith.constant dense<0.000000e+00> : vector<512x8xf32>
    %2 = tpu.matmul %0, %1, %cst {dimension_numbers = #tpu.dot_dimension_numbers<[1], [0], [0], [1], [0, 0, 1, 1], [], []>} : vector<512x72xbf16>, vector<72x8xbf16>, vector<512x8xf32> -> vector<512x8xf32>
    %c0_3 = arith.constant 0 : index
    %c0_4 = arith.constant 0 : index
    %3 = vector.load %arg3[%c0_3, %c0_4] : memref<1x8xf32, #tpu.memory_space<vmem>>, vector<1x8xf32>
    %4 = vector.broadcast %3 : vector<1x8xf32> to vector<512x8xf32>
    %5 = arith.addf %2, %4 : vector<512x8xf32>
    %cst_5 = arith.constant 0.000000e+00 : f32
    %6 = vector.broadcast %cst_5 : f32 to vector<512x8xf32>
    %7 = arith.maximumf %5, %6 : vector<512x8xf32>
    %8 = arith.truncf %7 : vector<512x8xf32> to vector<512x8xbf16>
    %c0_6 = arith.constant 0 : index
    %c0_7 = arith.constant 0 : index
    %9 = vector.load %arg4[%c0_6, %c0_7] : memref<512x8xbf16, #tpu.memory_space<vmem>>, vector<512x8xbf16>
    tpu.vector_store %arg4[%c0_6, %c0_7], %8 {strides = array<i32>} : memref<512x8xbf16, #tpu.memory_space<vmem>>, vector<512x8xbf16>,
    %cst_8 = arith.constant dense<0.000000e+00> : vector<8xf32>
    %10 = vector.multi_reduction <add>, %7, %cst_8 [0] : vector<512x8xf32> to vector<8xf32>
    %11 = vector.shape_cast %10 : vector<8xf32> to vector<1x8xf32>
    %c0_9 = arith.constant 0 : index
    %c0_10 = arith.constant 0 : index
    %c0_11 = arith.constant 0 : index
    %12 = vector.load %arg5[%c0_9, %c0_10, %c0_11] : memref<1x2x8xf32, #tpu.memory_space<vmem>>, vector<1x1x8xf32>
    %13 = vector.shape_cast %12 : vector<1x1x8xf32> to vector<1x8xf32>
    %14 = vector.shape_cast %11 : vector<1x8xf32> to vector<1x1x8xf32>
    tpu.vector_store %arg5[%c0_9, %c0_10, %c0_11], %14 {strides = array<i32>} : memref<1x2x8xf32, #tpu.memory_space<vmem>>, vector<1x1x8xf32>,
    %15 = arith.mulf %7, %7 : vector<512x8xf32>
    %cst_12 = arith.constant dense<0.000000e+00> : vector<8xf32>
    %16 = vector.multi_reduction <add>, %15, %cst_12 [0] : vector<512x8xf32> to vector<8xf32>
    %17 = vector.shape_cast %16 : vector<8xf32> to vector<1x8xf32>
    %c0_13 = arith.constant 0 : index
    %c1 = arith.constant 1 : index
    %c0_14 = arith.constant 0 : index
    %18 = vector.load %arg5[%c0_13, %c1, %c0_14] : memref<1x2x8xf32, #tpu.memory_space<vmem>>, vector<1x1x8xf32>
    %19 = vector.shape_cast %18 : vector<1x1x8xf32> to vector<1x8xf32>
    %20 = vector.shape_cast %17 : vector<1x8xf32> to vector<1x1x8xf32>
    tpu.vector_store %arg5[%c0_13, %c1, %c0_14], %20 {strides = array<i32>} : memref<1x2x8xf32, #tpu.memory_space<vmem>>, vector<1x1x8xf32>,
    return
  }
  func.func @transform_0(%arg0: i32) -> (i32, i32) {
    %c0_i32 = arith.constant 0 : i32
    %c0_i32_0 = arith.constant 0 : i32
    return %arg0, %c0_i32 : i32, i32
  }
  func.func @transform_1(%arg0: i32) -> (i32, i32) {
    %c0_i32 = arith.constant 0 : i32
    %c0_i32_0 = arith.constant 0 : i32
    %c0_i32_1 = arith.constant 0 : i32
    return %c0_i32, %c0_i32_0 : i32, i32
  }
  func.func @transform_2(%arg0: i32) -> (i32, i32) {
    %c0_i32 = arith.constant 0 : i32
    %c0_i32_0 = arith.constant 0 : i32
    %c0_i32_1 = arith.constant 0 : i32
    return %c0_i32, %c0_i32_0 : i32, i32
  }
  func.func @transform_3(%arg0: i32) -> (i32, i32) {
    %c0_i32 = arith.constant 0 : i32
    %c0_i32_0 = arith.constant 0 : i32
    return %arg0, %c0_i32 : i32, i32
  }
  func.func @transform_4(%arg0: i32) -> (i32, i32, i32) {
    %c0_i32 = arith.constant 0 : i32
    %c0_i32_0 = arith.constant 0 : i32
    %c0_i32_1 = arith.constant 0 : i32
    return %arg0, %c0_i32, %c0_i32_0 : i32, i32, i32
  }
}

module attributes {stable_mosaic.version = 11 : i64} {
  func.func @_conv_kernel(%arg0: i32, %arg1: memref<128x72xbf16, #tpu.memory_space<vmem>>, %arg2: memref<72x16xbf16, #tpu.memory_space<vmem>>, %arg3: memref<1x16xf32, #tpu.memory_space<vmem>>, %arg4: memref<128x16xbf16, #tpu.memory_space<vmem>>, %arg5: memref<1x2x16xf32, #tpu.memory_space<vmem>>) attributes {dimension_semantics = [#tpu.dimension_semantics<parallel>], iteration_bounds = array<i64: 1>, scalar_prefetch = 0 : i64, scratch_operands = 0 : i64, tpu.core_type = #tpu.core_type<tc>, window_params = [{transform_indices = @transform_0, window_bounds = array<i64: 128, 72>}, {pipeline_mode = #tpu.pipeline_mode<synchronous>, transform_indices = @transform_1, window_bounds = array<i64: 72, 16>}, {pipeline_mode = #tpu.pipeline_mode<synchronous>, transform_indices = @transform_2, window_bounds = array<i64: 1, 16>}, {transform_indices = @transform_3, window_bounds = array<i64: 128, 16>}, {transform_indices = @transform_4, window_bounds = array<i64: 1, 2, 16>}]} {
    %c0 = arith.constant 0 : index
    %c0_0 = arith.constant 0 : index
    %0 = vector.load %arg1[%c0, %c0_0] : memref<128x72xbf16, #tpu.memory_space<vmem>>, vector<128x72xbf16>
    %c0_1 = arith.constant 0 : index
    %c0_2 = arith.constant 0 : index
    %1 = vector.load %arg2[%c0_1, %c0_2] : memref<72x16xbf16, #tpu.memory_space<vmem>>, vector<72x16xbf16>
    %cst = arith.constant dense<0.000000e+00> : vector<128x16xf32>
    %2 = tpu.matmul %0, %1, %cst {dimension_numbers = #tpu.dot_dimension_numbers<[1], [0], [0], [1], [0, 0, 1, 1], [], []>} : vector<128x72xbf16>, vector<72x16xbf16>, vector<128x16xf32> -> vector<128x16xf32>
    %c0_3 = arith.constant 0 : index
    %c0_4 = arith.constant 0 : index
    %3 = vector.load %arg3[%c0_3, %c0_4] : memref<1x16xf32, #tpu.memory_space<vmem>>, vector<1x16xf32>
    %4 = vector.broadcast %3 : vector<1x16xf32> to vector<128x16xf32>
    %5 = arith.addf %2, %4 : vector<128x16xf32>
    %cst_5 = arith.constant 0.000000e+00 : f32
    %6 = vector.broadcast %cst_5 : f32 to vector<128x16xf32>
    %7 = arith.maximumf %5, %6 : vector<128x16xf32>
    %8 = arith.truncf %7 : vector<128x16xf32> to vector<128x16xbf16>
    %c0_6 = arith.constant 0 : index
    %c0_7 = arith.constant 0 : index
    %9 = vector.load %arg4[%c0_6, %c0_7] : memref<128x16xbf16, #tpu.memory_space<vmem>>, vector<128x16xbf16>
    tpu.vector_store %arg4[%c0_6, %c0_7], %8 {strides = array<i32>} : memref<128x16xbf16, #tpu.memory_space<vmem>>, vector<128x16xbf16>,
    %cst_8 = arith.constant dense<0.000000e+00> : vector<16xf32>
    %10 = vector.multi_reduction <add>, %7, %cst_8 [0] : vector<128x16xf32> to vector<16xf32>
    %11 = vector.shape_cast %10 : vector<16xf32> to vector<1x16xf32>
    %c0_9 = arith.constant 0 : index
    %c0_10 = arith.constant 0 : index
    %c0_11 = arith.constant 0 : index
    %12 = vector.load %arg5[%c0_9, %c0_10, %c0_11] : memref<1x2x16xf32, #tpu.memory_space<vmem>>, vector<1x1x16xf32>
    %13 = vector.shape_cast %12 : vector<1x1x16xf32> to vector<1x16xf32>
    %14 = vector.shape_cast %11 : vector<1x16xf32> to vector<1x1x16xf32>
    tpu.vector_store %arg5[%c0_9, %c0_10, %c0_11], %14 {strides = array<i32>} : memref<1x2x16xf32, #tpu.memory_space<vmem>>, vector<1x1x16xf32>,
    %15 = arith.mulf %7, %7 : vector<128x16xf32>
    %cst_12 = arith.constant dense<0.000000e+00> : vector<16xf32>
    %16 = vector.multi_reduction <add>, %15, %cst_12 [0] : vector<128x16xf32> to vector<16xf32>
    %17 = vector.shape_cast %16 : vector<16xf32> to vector<1x16xf32>
    %c0_13 = arith.constant 0 : index
    %c1 = arith.constant 1 : index
    %c0_14 = arith.constant 0 : index
    %18 = vector.load %arg5[%c0_13, %c1, %c0_14] : memref<1x2x16xf32, #tpu.memory_space<vmem>>, vector<1x1x16xf32>
    %19 = vector.shape_cast %18 : vector<1x1x16xf32> to vector<1x16xf32>
    %20 = vector.shape_cast %17 : vector<1x16xf32> to vector<1x1x16xf32>
    tpu.vector_store %arg5[%c0_13, %c1, %c0_14], %20 {strides = array<i32>} : memref<1x2x16xf32, #tpu.memory_space<vmem>>, vector<1x1x16xf32>,
    return
  }
  func.func @transform_0(%arg0: i32) -> (i32, i32) {
    %c0_i32 = arith.constant 0 : i32
    %c0_i32_0 = arith.constant 0 : i32
    return %arg0, %c0_i32 : i32, i32
  }
  func.func @transform_1(%arg0: i32) -> (i32, i32) {
    %c0_i32 = arith.constant 0 : i32
    %c0_i32_0 = arith.constant 0 : i32
    %c0_i32_1 = arith.constant 0 : i32
    return %c0_i32, %c0_i32_0 : i32, i32
  }
  func.func @transform_2(%arg0: i32) -> (i32, i32) {
    %c0_i32 = arith.constant 0 : i32
    %c0_i32_0 = arith.constant 0 : i32
    %c0_i32_1 = arith.constant 0 : i32
    return %c0_i32, %c0_i32_0 : i32, i32
  }
  func.func @transform_3(%arg0: i32) -> (i32, i32) {
    %c0_i32 = arith.constant 0 : i32
    %c0_i32_0 = arith.constant 0 : i32
    return %arg0, %c0_i32 : i32, i32
  }
  func.func @transform_4(%arg0: i32) -> (i32, i32, i32) {
    %c0_i32 = arith.constant 0 : i32
    %c0_i32_0 = arith.constant 0 : i32
    %c0_i32_1 = arith.constant 0 : i32
    return %arg0, %c0_i32, %c0_i32_0 : i32, i32, i32
  }
}

module attributes {stable_mosaic.version = 11 : i64} {
  func.func @_scale_shift_kernel(%arg0: i32, %arg1: memref<2x1024xbf16, #tpu.memory_space<vmem>>, %arg2: memref<1x1024xf32, #tpu.memory_space<vmem>>, %arg3: memref<1x1024xf32, #tpu.memory_space<vmem>>, %arg4: memref<2x1024xbf16, #tpu.memory_space<vmem>>) attributes {dimension_semantics = [#tpu.dimension_semantics<parallel>], iteration_bounds = array<i64: 1>, scalar_prefetch = 0 : i64, scratch_operands = 0 : i64, tpu.core_type = #tpu.core_type<tc>, window_params = [{transform_indices = @transform_0, window_bounds = array<i64: 2, 1024>}, {pipeline_mode = #tpu.pipeline_mode<synchronous>, transform_indices = @transform_1, window_bounds = array<i64: 1, 1024>}, {pipeline_mode = #tpu.pipeline_mode<synchronous>, transform_indices = @transform_2, window_bounds = array<i64: 1, 1024>}, {transform_indices = @transform_3, window_bounds = array<i64: 2, 1024>}]} {
    %c0 = arith.constant 0 : index
    %c0_0 = arith.constant 0 : index
    %0 = vector.load %arg1[%c0, %c0_0] : memref<2x1024xbf16, #tpu.memory_space<vmem>>, vector<2x1024xbf16>
    %1 = arith.extf %0 : vector<2x1024xbf16> to vector<2x1024xf32>
    %c0_1 = arith.constant 0 : index
    %c0_2 = arith.constant 0 : index
    %2 = vector.load %arg2[%c0_1, %c0_2] : memref<1x1024xf32, #tpu.memory_space<vmem>>, vector<1x1024xf32>
    %3 = vector.broadcast %2 : vector<1x1024xf32> to vector<2x1024xf32>
    %4 = arith.mulf %1, %3 : vector<2x1024xf32>
    %c0_3 = arith.constant 0 : index
    %c0_4 = arith.constant 0 : index
    %5 = vector.load %arg3[%c0_3, %c0_4] : memref<1x1024xf32, #tpu.memory_space<vmem>>, vector<1x1024xf32>
    %6 = vector.broadcast %5 : vector<1x1024xf32> to vector<2x1024xf32>
    %7 = arith.addf %4, %6 : vector<2x1024xf32>
    %8 = arith.truncf %7 : vector<2x1024xf32> to vector<2x1024xbf16>
    %c0_5 = arith.constant 0 : index
    %c0_6 = arith.constant 0 : index
    %9 = vector.load %arg4[%c0_5, %c0_6] : memref<2x1024xbf16, #tpu.memory_space<vmem>>, vector<2x1024xbf16>
    tpu.vector_store %arg4[%c0_5, %c0_6], %8 {strides = array<i32>} : memref<2x1024xbf16, #tpu.memory_space<vmem>>, vector<2x1024xbf16>,
    return
  }
  func.func @transform_0(%arg0: i32) -> (i32, i32) {
    %c0_i32 = arith.constant 0 : i32
    %c0_i32_0 = arith.constant 0 : i32
    return %arg0, %c0_i32 : i32, i32
  }
  func.func @transform_1(%arg0: i32) -> (i32, i32) {
    %c0_i32 = arith.constant 0 : i32
    %c0_i32_0 = arith.constant 0 : i32
    %c0_i32_1 = arith.constant 0 : i32
    return %c0_i32, %c0_i32_0 : i32, i32
  }
  func.func @transform_2(%arg0: i32) -> (i32, i32) {
    %c0_i32 = arith.constant 0 : i32
    %c0_i32_0 = arith.constant 0 : i32
    %c0_i32_1 = arith.constant 0 : i32
    return %c0_i32, %c0_i32_0 : i32, i32
  }
  func.func @transform_3(%arg0: i32) -> (i32, i32) {
    %c0_i32 = arith.constant 0 : i32
    %c0_i32_0 = arith.constant 0 : i32
    return %arg0, %c0_i32 : i32, i32
  }
}

module attributes {stable_mosaic.version = 11 : i64} {
  func.func @_conv_kernel(%arg0: i32, %arg1: memref<128x144xbf16, #tpu.memory_space<vmem>>, %arg2: memref<144x16xbf16, #tpu.memory_space<vmem>>, %arg3: memref<1x16xf32, #tpu.memory_space<vmem>>, %arg4: memref<128x16xbf16, #tpu.memory_space<vmem>>, %arg5: memref<1x2x16xf32, #tpu.memory_space<vmem>>) attributes {dimension_semantics = [#tpu.dimension_semantics<parallel>], iteration_bounds = array<i64: 1>, scalar_prefetch = 0 : i64, scratch_operands = 0 : i64, tpu.core_type = #tpu.core_type<tc>, window_params = [{transform_indices = @transform_0, window_bounds = array<i64: 128, 144>}, {pipeline_mode = #tpu.pipeline_mode<synchronous>, transform_indices = @transform_1, window_bounds = array<i64: 144, 16>}, {pipeline_mode = #tpu.pipeline_mode<synchronous>, transform_indices = @transform_2, window_bounds = array<i64: 1, 16>}, {transform_indices = @transform_3, window_bounds = array<i64: 128, 16>}, {transform_indices = @transform_4, window_bounds = array<i64: 1, 2, 16>}]} {
    %c0 = arith.constant 0 : index
    %c0_0 = arith.constant 0 : index
    %0 = vector.load %arg1[%c0, %c0_0] : memref<128x144xbf16, #tpu.memory_space<vmem>>, vector<128x144xbf16>
    %c0_1 = arith.constant 0 : index
    %c0_2 = arith.constant 0 : index
    %1 = vector.load %arg2[%c0_1, %c0_2] : memref<144x16xbf16, #tpu.memory_space<vmem>>, vector<144x16xbf16>
    %cst = arith.constant dense<0.000000e+00> : vector<128x16xf32>
    %2 = tpu.matmul %0, %1, %cst {dimension_numbers = #tpu.dot_dimension_numbers<[1], [0], [0], [1], [0, 0, 1, 1], [], []>} : vector<128x144xbf16>, vector<144x16xbf16>, vector<128x16xf32> -> vector<128x16xf32>
    %c0_3 = arith.constant 0 : index
    %c0_4 = arith.constant 0 : index
    %3 = vector.load %arg3[%c0_3, %c0_4] : memref<1x16xf32, #tpu.memory_space<vmem>>, vector<1x16xf32>
    %4 = vector.broadcast %3 : vector<1x16xf32> to vector<128x16xf32>
    %5 = arith.addf %2, %4 : vector<128x16xf32>
    %cst_5 = arith.constant 0.000000e+00 : f32
    %6 = vector.broadcast %cst_5 : f32 to vector<128x16xf32>
    %7 = arith.maximumf %5, %6 : vector<128x16xf32>
    %8 = arith.truncf %7 : vector<128x16xf32> to vector<128x16xbf16>
    %c0_6 = arith.constant 0 : index
    %c0_7 = arith.constant 0 : index
    %9 = vector.load %arg4[%c0_6, %c0_7] : memref<128x16xbf16, #tpu.memory_space<vmem>>, vector<128x16xbf16>
    tpu.vector_store %arg4[%c0_6, %c0_7], %8 {strides = array<i32>} : memref<128x16xbf16, #tpu.memory_space<vmem>>, vector<128x16xbf16>,
    %cst_8 = arith.constant dense<0.000000e+00> : vector<16xf32>
    %10 = vector.multi_reduction <add>, %7, %cst_8 [0] : vector<128x16xf32> to vector<16xf32>
    %11 = vector.shape_cast %10 : vector<16xf32> to vector<1x16xf32>
    %c0_9 = arith.constant 0 : index
    %c0_10 = arith.constant 0 : index
    %c0_11 = arith.constant 0 : index
    %12 = vector.load %arg5[%c0_9, %c0_10, %c0_11] : memref<1x2x16xf32, #tpu.memory_space<vmem>>, vector<1x1x16xf32>
    %13 = vector.shape_cast %12 : vector<1x1x16xf32> to vector<1x16xf32>
    %14 = vector.shape_cast %11 : vector<1x16xf32> to vector<1x1x16xf32>
    tpu.vector_store %arg5[%c0_9, %c0_10, %c0_11], %14 {strides = array<i32>} : memref<1x2x16xf32, #tpu.memory_space<vmem>>, vector<1x1x16xf32>,
    %15 = arith.mulf %7, %7 : vector<128x16xf32>
    %cst_12 = arith.constant dense<0.000000e+00> : vector<16xf32>
    %16 = vector.multi_reduction <add>, %15, %cst_12 [0] : vector<128x16xf32> to vector<16xf32>
    %17 = vector.shape_cast %16 : vector<16xf32> to vector<1x16xf32>
    %c0_13 = arith.constant 0 : index
    %c1 = arith.constant 1 : index
    %c0_14 = arith.constant 0 : index
    %18 = vector.load %arg5[%c0_13, %c1, %c0_14] : memref<1x2x16xf32, #tpu.memory_space<vmem>>, vector<1x1x16xf32>
    %19 = vector.shape_cast %18 : vector<1x1x16xf32> to vector<1x16xf32>
    %20 = vector.shape_cast %17 : vector<1x16xf32> to vector<1x1x16xf32>
    tpu.vector_store %arg5[%c0_13, %c1, %c0_14], %20 {strides = array<i32>} : memref<1x2x16xf32, #tpu.memory_space<vmem>>, vector<1x1x16xf32>,
    return
  }
  func.func @transform_0(%arg0: i32) -> (i32, i32) {
    %c0_i32 = arith.constant 0 : i32
    %c0_i32_0 = arith.constant 0 : i32
    return %arg0, %c0_i32 : i32, i32
  }
  func.func @transform_1(%arg0: i32) -> (i32, i32) {
    %c0_i32 = arith.constant 0 : i32
    %c0_i32_0 = arith.constant 0 : i32
    %c0_i32_1 = arith.constant 0 : i32
    return %c0_i32, %c0_i32_0 : i32, i32
  }
  func.func @transform_2(%arg0: i32) -> (i32, i32) {
    %c0_i32 = arith.constant 0 : i32
    %c0_i32_0 = arith.constant 0 : i32
    %c0_i32_1 = arith.constant 0 : i32
    return %c0_i32, %c0_i32_0 : i32, i32
  }
  func.func @transform_3(%arg0: i32) -> (i32, i32) {
    %c0_i32 = arith.constant 0 : i32
    %c0_i32_0 = arith.constant 0 : i32
    return %arg0, %c0_i32 : i32, i32
  }
  func.func @transform_4(%arg0: i32) -> (i32, i32, i32) {
    %c0_i32 = arith.constant 0 : i32
    %c0_i32_0 = arith.constant 0 : i32
    %c0_i32_1 = arith.constant 0 : i32
    return %arg0, %c0_i32, %c0_i32_0 : i32, i32, i32
  }
}

module attributes {stable_mosaic.version = 11 : i64} {
  func.func @_conv_kernel(%arg0: i32, %arg1: memref<32x144xbf16, #tpu.memory_space<vmem>>, %arg2: memref<144x32xbf16, #tpu.memory_space<vmem>>, %arg3: memref<1x32xf32, #tpu.memory_space<vmem>>, %arg4: memref<32x32xbf16, #tpu.memory_space<vmem>>, %arg5: memref<1x2x32xf32, #tpu.memory_space<vmem>>) attributes {dimension_semantics = [#tpu.dimension_semantics<parallel>], iteration_bounds = array<i64: 1>, scalar_prefetch = 0 : i64, scratch_operands = 0 : i64, tpu.core_type = #tpu.core_type<tc>, window_params = [{transform_indices = @transform_0, window_bounds = array<i64: 32, 144>}, {pipeline_mode = #tpu.pipeline_mode<synchronous>, transform_indices = @transform_1, window_bounds = array<i64: 144, 32>}, {pipeline_mode = #tpu.pipeline_mode<synchronous>, transform_indices = @transform_2, window_bounds = array<i64: 1, 32>}, {transform_indices = @transform_3, window_bounds = array<i64: 32, 32>}, {transform_indices = @transform_4, window_bounds = array<i64: 1, 2, 32>}]} {
    %c0 = arith.constant 0 : index
    %c0_0 = arith.constant 0 : index
    %0 = vector.load %arg1[%c0, %c0_0] : memref<32x144xbf16, #tpu.memory_space<vmem>>, vector<32x144xbf16>
    %c0_1 = arith.constant 0 : index
    %c0_2 = arith.constant 0 : index
    %1 = vector.load %arg2[%c0_1, %c0_2] : memref<144x32xbf16, #tpu.memory_space<vmem>>, vector<144x32xbf16>
    %cst = arith.constant dense<0.000000e+00> : vector<32x32xf32>
    %2 = tpu.matmul %0, %1, %cst {dimension_numbers = #tpu.dot_dimension_numbers<[1], [0], [0], [1], [0, 0, 1, 1], [], []>} : vector<32x144xbf16>, vector<144x32xbf16>, vector<32x32xf32> -> vector<32x32xf32>
    %c0_3 = arith.constant 0 : index
    %c0_4 = arith.constant 0 : index
    %3 = vector.load %arg3[%c0_3, %c0_4] : memref<1x32xf32, #tpu.memory_space<vmem>>, vector<1x32xf32>
    %4 = vector.broadcast %3 : vector<1x32xf32> to vector<32x32xf32>
    %5 = arith.addf %2, %4 : vector<32x32xf32>
    %cst_5 = arith.constant 0.000000e+00 : f32
    %6 = vector.broadcast %cst_5 : f32 to vector<32x32xf32>
    %7 = arith.maximumf %5, %6 : vector<32x32xf32>
    %8 = arith.truncf %7 : vector<32x32xf32> to vector<32x32xbf16>
    %c0_6 = arith.constant 0 : index
    %c0_7 = arith.constant 0 : index
    %9 = vector.load %arg4[%c0_6, %c0_7] : memref<32x32xbf16, #tpu.memory_space<vmem>>, vector<32x32xbf16>
    tpu.vector_store %arg4[%c0_6, %c0_7], %8 {strides = array<i32>} : memref<32x32xbf16, #tpu.memory_space<vmem>>, vector<32x32xbf16>,
    %cst_8 = arith.constant dense<0.000000e+00> : vector<32xf32>
    %10 = vector.multi_reduction <add>, %7, %cst_8 [0] : vector<32x32xf32> to vector<32xf32>
    %11 = vector.shape_cast %10 : vector<32xf32> to vector<1x32xf32>
    %c0_9 = arith.constant 0 : index
    %c0_10 = arith.constant 0 : index
    %c0_11 = arith.constant 0 : index
    %12 = vector.load %arg5[%c0_9, %c0_10, %c0_11] : memref<1x2x32xf32, #tpu.memory_space<vmem>>, vector<1x1x32xf32>
    %13 = vector.shape_cast %12 : vector<1x1x32xf32> to vector<1x32xf32>
    %14 = vector.shape_cast %11 : vector<1x32xf32> to vector<1x1x32xf32>
    tpu.vector_store %arg5[%c0_9, %c0_10, %c0_11], %14 {strides = array<i32>} : memref<1x2x32xf32, #tpu.memory_space<vmem>>, vector<1x1x32xf32>,
    %15 = arith.mulf %7, %7 : vector<32x32xf32>
    %cst_12 = arith.constant dense<0.000000e+00> : vector<32xf32>
    %16 = vector.multi_reduction <add>, %15, %cst_12 [0] : vector<32x32xf32> to vector<32xf32>
    %17 = vector.shape_cast %16 : vector<32xf32> to vector<1x32xf32>
    %c0_13 = arith.constant 0 : index
    %c1 = arith.constant 1 : index
    %c0_14 = arith.constant 0 : index
    %18 = vector.load %arg5[%c0_13, %c1, %c0_14] : memref<1x2x32xf32, #tpu.memory_space<vmem>>, vector<1x1x32xf32>
    %19 = vector.shape_cast %18 : vector<1x1x32xf32> to vector<1x32xf32>
    %20 = vector.shape_cast %17 : vector<1x32xf32> to vector<1x1x32xf32>
    tpu.vector_store %arg5[%c0_13, %c1, %c0_14], %20 {strides = array<i32>} : memref<1x2x32xf32, #tpu.memory_space<vmem>>, vector<1x1x32xf32>,
    return
  }
  func.func @transform_0(%arg0: i32) -> (i32, i32) {
    %c0_i32 = arith.constant 0 : i32
    %c0_i32_0 = arith.constant 0 : i32
    return %arg0, %c0_i32 : i32, i32
  }
  func.func @transform_1(%arg0: i32) -> (i32, i32) {
    %c0_i32 = arith.constant 0 : i32
    %c0_i32_0 = arith.constant 0 : i32
    %c0_i32_1 = arith.constant 0 : i32
    return %c0_i32, %c0_i32_0 : i32, i32
  }
  func.func @transform_2(%arg0: i32) -> (i32, i32) {
    %c0_i32 = arith.constant 0 : i32
    %c0_i32_0 = arith.constant 0 : i32
    %c0_i32_1 = arith.constant 0 : i32
    return %c0_i32, %c0_i32_0 : i32, i32
  }
  func.func @transform_3(%arg0: i32) -> (i32, i32) {
    %c0_i32 = arith.constant 0 : i32
    %c0_i32_0 = arith.constant 0 : i32
    return %arg0, %c0_i32 : i32, i32
  }
  func.func @transform_4(%arg0: i32) -> (i32, i32, i32) {
    %c0_i32 = arith.constant 0 : i32
    %c0_i32_0 = arith.constant 0 : i32
    %c0_i32_1 = arith.constant 0 : i32
    return %arg0, %c0_i32, %c0_i32_0 : i32, i32, i32
  }
}

module attributes {stable_mosaic.version = 11 : i64} {
  func.func @_scale_shift_kernel(%arg0: i32, %arg1: memref<1x1024xbf16, #tpu.memory_space<vmem>>, %arg2: memref<1x1024xf32, #tpu.memory_space<vmem>>, %arg3: memref<1x1024xf32, #tpu.memory_space<vmem>>, %arg4: memref<1x1024xbf16, #tpu.memory_space<vmem>>) attributes {dimension_semantics = [#tpu.dimension_semantics<parallel>], iteration_bounds = array<i64: 1>, scalar_prefetch = 0 : i64, scratch_operands = 0 : i64, tpu.core_type = #tpu.core_type<tc>, window_params = [{transform_indices = @transform_0, window_bounds = array<i64: 1, 1024>}, {pipeline_mode = #tpu.pipeline_mode<synchronous>, transform_indices = @transform_1, window_bounds = array<i64: 1, 1024>}, {pipeline_mode = #tpu.pipeline_mode<synchronous>, transform_indices = @transform_2, window_bounds = array<i64: 1, 1024>}, {transform_indices = @transform_3, window_bounds = array<i64: 1, 1024>}]} {
    %c0 = arith.constant 0 : index
    %c0_0 = arith.constant 0 : index
    %0 = vector.load %arg1[%c0, %c0_0] : memref<1x1024xbf16, #tpu.memory_space<vmem>>, vector<1x1024xbf16>
    %1 = arith.extf %0 : vector<1x1024xbf16> to vector<1x1024xf32>
    %c0_1 = arith.constant 0 : index
    %c0_2 = arith.constant 0 : index
    %2 = vector.load %arg2[%c0_1, %c0_2] : memref<1x1024xf32, #tpu.memory_space<vmem>>, vector<1x1024xf32>
    %3 = arith.mulf %1, %2 : vector<1x1024xf32>
    %c0_3 = arith.constant 0 : index
    %c0_4 = arith.constant 0 : index
    %4 = vector.load %arg3[%c0_3, %c0_4] : memref<1x1024xf32, #tpu.memory_space<vmem>>, vector<1x1024xf32>
    %5 = arith.addf %3, %4 : vector<1x1024xf32>
    %6 = arith.truncf %5 : vector<1x1024xf32> to vector<1x1024xbf16>
    %c0_5 = arith.constant 0 : index
    %c0_6 = arith.constant 0 : index
    %7 = vector.load %arg4[%c0_5, %c0_6] : memref<1x1024xbf16, #tpu.memory_space<vmem>>, vector<1x1024xbf16>
    tpu.vector_store %arg4[%c0_5, %c0_6], %6 {strides = array<i32>} : memref<1x1024xbf16, #tpu.memory_space<vmem>>, vector<1x1024xbf16>,
    return
  }
  func.func @transform_0(%arg0: i32) -> (i32, i32) {
    %c0_i32 = arith.constant 0 : i32
    %c0_i32_0 = arith.constant 0 : i32
    return %arg0, %c0_i32 : i32, i32
  }
  func.func @transform_1(%arg0: i32) -> (i32, i32) {
    %c0_i32 = arith.constant 0 : i32
    %c0_i32_0 = arith.constant 0 : i32
    %c0_i32_1 = arith.constant 0 : i32
    return %c0_i32, %c0_i32_0 : i32, i32
  }
  func.func @transform_2(%arg0: i32) -> (i32, i32) {
    %c0_i32 = arith.constant 0 : i32
    %c0_i32_0 = arith.constant 0 : i32
    %c0_i32_1 = arith.constant 0 : i32
    return %c0_i32, %c0_i32_0 : i32, i32
  }
  func.func @transform_3(%arg0: i32) -> (i32, i32) {
    %c0_i32 = arith.constant 0 : i32
    %c0_i32_0 = arith.constant 0 : i32
    return %arg0, %c0_i32 : i32, i32
  }
}

module attributes {stable_mosaic.version = 11 : i64} {
  func.func @_conv_kernel(%arg0: i32, %arg1: memref<32x288xbf16, #tpu.memory_space<vmem>>, %arg2: memref<288x32xbf16, #tpu.memory_space<vmem>>, %arg3: memref<1x32xf32, #tpu.memory_space<vmem>>, %arg4: memref<32x32xbf16, #tpu.memory_space<vmem>>, %arg5: memref<1x2x32xf32, #tpu.memory_space<vmem>>) attributes {dimension_semantics = [#tpu.dimension_semantics<parallel>], iteration_bounds = array<i64: 1>, scalar_prefetch = 0 : i64, scratch_operands = 0 : i64, tpu.core_type = #tpu.core_type<tc>, window_params = [{transform_indices = @transform_0, window_bounds = array<i64: 32, 288>}, {pipeline_mode = #tpu.pipeline_mode<synchronous>, transform_indices = @transform_1, window_bounds = array<i64: 288, 32>}, {pipeline_mode = #tpu.pipeline_mode<synchronous>, transform_indices = @transform_2, window_bounds = array<i64: 1, 32>}, {transform_indices = @transform_3, window_bounds = array<i64: 32, 32>}, {transform_indices = @transform_4, window_bounds = array<i64: 1, 2, 32>}]} {
    %c0 = arith.constant 0 : index
    %c0_0 = arith.constant 0 : index
    %0 = vector.load %arg1[%c0, %c0_0] : memref<32x288xbf16, #tpu.memory_space<vmem>>, vector<32x288xbf16>
    %c0_1 = arith.constant 0 : index
    %c0_2 = arith.constant 0 : index
    %1 = vector.load %arg2[%c0_1, %c0_2] : memref<288x32xbf16, #tpu.memory_space<vmem>>, vector<288x32xbf16>
    %cst = arith.constant dense<0.000000e+00> : vector<32x32xf32>
    %2 = tpu.matmul %0, %1, %cst {dimension_numbers = #tpu.dot_dimension_numbers<[1], [0], [0], [1], [0, 0, 1, 1], [], []>} : vector<32x288xbf16>, vector<288x32xbf16>, vector<32x32xf32> -> vector<32x32xf32>
    %c0_3 = arith.constant 0 : index
    %c0_4 = arith.constant 0 : index
    %3 = vector.load %arg3[%c0_3, %c0_4] : memref<1x32xf32, #tpu.memory_space<vmem>>, vector<1x32xf32>
    %4 = vector.broadcast %3 : vector<1x32xf32> to vector<32x32xf32>
    %5 = arith.addf %2, %4 : vector<32x32xf32>
    %cst_5 = arith.constant 0.000000e+00 : f32
    %6 = vector.broadcast %cst_5 : f32 to vector<32x32xf32>
    %7 = arith.maximumf %5, %6 : vector<32x32xf32>
    %8 = arith.truncf %7 : vector<32x32xf32> to vector<32x32xbf16>
    %c0_6 = arith.constant 0 : index
    %c0_7 = arith.constant 0 : index
    %9 = vector.load %arg4[%c0_6, %c0_7] : memref<32x32xbf16, #tpu.memory_space<vmem>>, vector<32x32xbf16>
    tpu.vector_store %arg4[%c0_6, %c0_7], %8 {strides = array<i32>} : memref<32x32xbf16, #tpu.memory_space<vmem>>, vector<32x32xbf16>,
    %cst_8 = arith.constant dense<0.000000e+00> : vector<32xf32>
    %10 = vector.multi_reduction <add>, %7, %cst_8 [0] : vector<32x32xf32> to vector<32xf32>
    %11 = vector.shape_cast %10 : vector<32xf32> to vector<1x32xf32>
    %c0_9 = arith.constant 0 : index
    %c0_10 = arith.constant 0 : index
    %c0_11 = arith.constant 0 : index
    %12 = vector.load %arg5[%c0_9, %c0_10, %c0_11] : memref<1x2x32xf32, #tpu.memory_space<vmem>>, vector<1x1x32xf32>
    %13 = vector.shape_cast %12 : vector<1x1x32xf32> to vector<1x32xf32>
    %14 = vector.shape_cast %11 : vector<1x32xf32> to vector<1x1x32xf32>
    tpu.vector_store %arg5[%c0_9, %c0_10, %c0_11], %14 {strides = array<i32>} : memref<1x2x32xf32, #tpu.memory_space<vmem>>, vector<1x1x32xf32>,
    %15 = arith.mulf %7, %7 : vector<32x32xf32>
    %cst_12 = arith.constant dense<0.000000e+00> : vector<32xf32>
    %16 = vector.multi_reduction <add>, %15, %cst_12 [0] : vector<32x32xf32> to vector<32xf32>
    %17 = vector.shape_cast %16 : vector<32xf32> to vector<1x32xf32>
    %c0_13 = arith.constant 0 : index
    %c1 = arith.constant 1 : index
    %c0_14 = arith.constant 0 : index
    %18 = vector.load %arg5[%c0_13, %c1, %c0_14] : memref<1x2x32xf32, #tpu.memory_space<vmem>>, vector<1x1x32xf32>
    %19 = vector.shape_cast %18 : vector<1x1x32xf32> to vector<1x32xf32>
    %20 = vector.shape_cast %17 : vector<1x32xf32> to vector<1x1x32xf32>
    tpu.vector_store %arg5[%c0_13, %c1, %c0_14], %20 {strides = array<i32>} : memref<1x2x32xf32, #tpu.memory_space<vmem>>, vector<1x1x32xf32>,
    return
  }
  func.func @transform_0(%arg0: i32) -> (i32, i32) {
    %c0_i32 = arith.constant 0 : i32
    %c0_i32_0 = arith.constant 0 : i32
    return %arg0, %c0_i32 : i32, i32
  }
  func.func @transform_1(%arg0: i32) -> (i32, i32) {
    %c0_i32 = arith.constant 0 : i32
    %c0_i32_0 = arith.constant 0 : i32
    %c0_i32_1 = arith.constant 0 : i32
    return %c0_i32, %c0_i32_0 : i32, i32
  }
  func.func @transform_2(%arg0: i32) -> (i32, i32) {
    %c0_i32 = arith.constant 0 : i32
    %c0_i32_0 = arith.constant 0 : i32
    %c0_i32_1 = arith.constant 0 : i32
    return %c0_i32, %c0_i32_0 : i32, i32
  }
  func.func @transform_3(%arg0: i32) -> (i32, i32) {
    %c0_i32 = arith.constant 0 : i32
    %c0_i32_0 = arith.constant 0 : i32
    return %arg0, %c0_i32 : i32, i32
  }
  func.func @transform_4(%arg0: i32) -> (i32, i32, i32) {
    %c0_i32 = arith.constant 0 : i32
    %c0_i32_0 = arith.constant 0 : i32
    %c0_i32_1 = arith.constant 0 : i32
    return %arg0, %c0_i32, %c0_i32_0 : i32, i32, i32
  }
}

module attributes {stable_mosaic.version = 11 : i64} {
  func.func @_conv_kernel(%arg0: i32, %arg1: memref<32x32xbf16, #tpu.memory_space<vmem>>, %arg2: memref<32x64xbf16, #tpu.memory_space<vmem>>, %arg3: memref<1x64xf32, #tpu.memory_space<vmem>>, %arg4: memref<32x64xbf16, #tpu.memory_space<vmem>>) attributes {dimension_semantics = [#tpu.dimension_semantics<parallel>], iteration_bounds = array<i64: 1>, scalar_prefetch = 0 : i64, scratch_operands = 0 : i64, tpu.core_type = #tpu.core_type<tc>, window_params = [{transform_indices = @transform_0, window_bounds = array<i64: 32, 32>}, {pipeline_mode = #tpu.pipeline_mode<synchronous>, transform_indices = @transform_1, window_bounds = array<i64: 32, 64>}, {pipeline_mode = #tpu.pipeline_mode<synchronous>, transform_indices = @transform_2, window_bounds = array<i64: 1, 64>}, {transform_indices = @transform_3, window_bounds = array<i64: 32, 64>}]} {
    %c0 = arith.constant 0 : index
    %c0_0 = arith.constant 0 : index
    %0 = vector.load %arg1[%c0, %c0_0] : memref<32x32xbf16, #tpu.memory_space<vmem>>, vector<32x32xbf16>
    %c0_1 = arith.constant 0 : index
    %c0_2 = arith.constant 0 : index
    %1 = vector.load %arg2[%c0_1, %c0_2] : memref<32x64xbf16, #tpu.memory_space<vmem>>, vector<32x64xbf16>
    %cst = arith.constant dense<0.000000e+00> : vector<32x64xf32>
    %2 = tpu.matmul %0, %1, %cst {dimension_numbers = #tpu.dot_dimension_numbers<[1], [0], [0], [1], [0, 0, 1, 1], [], []>} : vector<32x32xbf16>, vector<32x64xbf16>, vector<32x64xf32> -> vector<32x64xf32>
    %c0_3 = arith.constant 0 : index
    %c0_4 = arith.constant 0 : index
    %3 = vector.load %arg3[%c0_3, %c0_4] : memref<1x64xf32, #tpu.memory_space<vmem>>, vector<1x64xf32>
    %4 = vector.broadcast %3 : vector<1x64xf32> to vector<32x64xf32>
    %5 = arith.addf %2, %4 : vector<32x64xf32>
    %6 = arith.truncf %5 : vector<32x64xf32> to vector<32x64xbf16>
    %c0_5 = arith.constant 0 : index
    %c0_6 = arith.constant 0 : index
    %7 = vector.load %arg4[%c0_5, %c0_6] : memref<32x64xbf16, #tpu.memory_space<vmem>>, vector<32x64xbf16>
    tpu.vector_store %arg4[%c0_5, %c0_6], %6 {strides = array<i32>} : memref<32x64xbf16, #tpu.memory_space<vmem>>, vector<32x64xbf16>,
    return
  }
  func.func @transform_0(%arg0: i32) -> (i32, i32) {
    %c0_i32 = arith.constant 0 : i32
    %c0_i32_0 = arith.constant 0 : i32
    return %arg0, %c0_i32 : i32, i32
  }
  func.func @transform_1(%arg0: i32) -> (i32, i32) {
    %c0_i32 = arith.constant 0 : i32
    %c0_i32_0 = arith.constant 0 : i32
    %c0_i32_1 = arith.constant 0 : i32
    return %c0_i32, %c0_i32_0 : i32, i32
  }
  func.func @transform_2(%arg0: i32) -> (i32, i32) {
    %c0_i32 = arith.constant 0 : i32
    %c0_i32_0 = arith.constant 0 : i32
    %c0_i32_1 = arith.constant 0 : i32
    return %c0_i32, %c0_i32_0 : i32, i32
  }
  func.func @transform_3(%arg0: i32) -> (i32, i32) {
    %c0_i32 = arith.constant 0 : i32
    %c0_i32_0 = arith.constant 0 : i32
    return %arg0, %c0_i32 : i32, i32
  }
}

module attributes {stable_mosaic.version = 11 : i64} {
  func.func @_conv_kernel(%arg0: i32, %arg1: memref<128x288xbf16, #tpu.memory_space<vmem>>, %arg2: memref<288x16xbf16, #tpu.memory_space<vmem>>, %arg3: memref<1x16xf32, #tpu.memory_space<vmem>>, %arg4: memref<128x16xbf16, #tpu.memory_space<vmem>>, %arg5: memref<1x2x16xf32, #tpu.memory_space<vmem>>) attributes {dimension_semantics = [#tpu.dimension_semantics<parallel>], iteration_bounds = array<i64: 1>, scalar_prefetch = 0 : i64, scratch_operands = 0 : i64, tpu.core_type = #tpu.core_type<tc>, window_params = [{transform_indices = @transform_0, window_bounds = array<i64: 128, 288>}, {pipeline_mode = #tpu.pipeline_mode<synchronous>, transform_indices = @transform_1, window_bounds = array<i64: 288, 16>}, {pipeline_mode = #tpu.pipeline_mode<synchronous>, transform_indices = @transform_2, window_bounds = array<i64: 1, 16>}, {transform_indices = @transform_3, window_bounds = array<i64: 128, 16>}, {transform_indices = @transform_4, window_bounds = array<i64: 1, 2, 16>}]} {
    %c0 = arith.constant 0 : index
    %c0_0 = arith.constant 0 : index
    %0 = vector.load %arg1[%c0, %c0_0] : memref<128x288xbf16, #tpu.memory_space<vmem>>, vector<128x288xbf16>
    %c0_1 = arith.constant 0 : index
    %c0_2 = arith.constant 0 : index
    %1 = vector.load %arg2[%c0_1, %c0_2] : memref<288x16xbf16, #tpu.memory_space<vmem>>, vector<288x16xbf16>
    %cst = arith.constant dense<0.000000e+00> : vector<128x16xf32>
    %2 = tpu.matmul %0, %1, %cst {dimension_numbers = #tpu.dot_dimension_numbers<[1], [0], [0], [1], [0, 0, 1, 1], [], []>} : vector<128x288xbf16>, vector<288x16xbf16>, vector<128x16xf32> -> vector<128x16xf32>
    %c0_3 = arith.constant 0 : index
    %c0_4 = arith.constant 0 : index
    %3 = vector.load %arg3[%c0_3, %c0_4] : memref<1x16xf32, #tpu.memory_space<vmem>>, vector<1x16xf32>
    %4 = vector.broadcast %3 : vector<1x16xf32> to vector<128x16xf32>
    %5 = arith.addf %2, %4 : vector<128x16xf32>
    %cst_5 = arith.constant 0.000000e+00 : f32
    %6 = vector.broadcast %cst_5 : f32 to vector<128x16xf32>
    %7 = arith.maximumf %5, %6 : vector<128x16xf32>
    %8 = arith.truncf %7 : vector<128x16xf32> to vector<128x16xbf16>
    %c0_6 = arith.constant 0 : index
    %c0_7 = arith.constant 0 : index
    %9 = vector.load %arg4[%c0_6, %c0_7] : memref<128x16xbf16, #tpu.memory_space<vmem>>, vector<128x16xbf16>
    tpu.vector_store %arg4[%c0_6, %c0_7], %8 {strides = array<i32>} : memref<128x16xbf16, #tpu.memory_space<vmem>>, vector<128x16xbf16>,
    %cst_8 = arith.constant dense<0.000000e+00> : vector<16xf32>
    %10 = vector.multi_reduction <add>, %7, %cst_8 [0] : vector<128x16xf32> to vector<16xf32>
    %11 = vector.shape_cast %10 : vector<16xf32> to vector<1x16xf32>
    %c0_9 = arith.constant 0 : index
    %c0_10 = arith.constant 0 : index
    %c0_11 = arith.constant 0 : index
    %12 = vector.load %arg5[%c0_9, %c0_10, %c0_11] : memref<1x2x16xf32, #tpu.memory_space<vmem>>, vector<1x1x16xf32>
    %13 = vector.shape_cast %12 : vector<1x1x16xf32> to vector<1x16xf32>
    %14 = vector.shape_cast %11 : vector<1x16xf32> to vector<1x1x16xf32>
    tpu.vector_store %arg5[%c0_9, %c0_10, %c0_11], %14 {strides = array<i32>} : memref<1x2x16xf32, #tpu.memory_space<vmem>>, vector<1x1x16xf32>,
    %15 = arith.mulf %7, %7 : vector<128x16xf32>
    %cst_12 = arith.constant dense<0.000000e+00> : vector<16xf32>
    %16 = vector.multi_reduction <add>, %15, %cst_12 [0] : vector<128x16xf32> to vector<16xf32>
    %17 = vector.shape_cast %16 : vector<16xf32> to vector<1x16xf32>
    %c0_13 = arith.constant 0 : index
    %c1 = arith.constant 1 : index
    %c0_14 = arith.constant 0 : index
    %18 = vector.load %arg5[%c0_13, %c1, %c0_14] : memref<1x2x16xf32, #tpu.memory_space<vmem>>, vector<1x1x16xf32>
    %19 = vector.shape_cast %18 : vector<1x1x16xf32> to vector<1x16xf32>
    %20 = vector.shape_cast %17 : vector<1x16xf32> to vector<1x1x16xf32>
    tpu.vector_store %arg5[%c0_13, %c1, %c0_14], %20 {strides = array<i32>} : memref<1x2x16xf32, #tpu.memory_space<vmem>>, vector<1x1x16xf32>,
    return
  }
  func.func @transform_0(%arg0: i32) -> (i32, i32) {
    %c0_i32 = arith.constant 0 : i32
    %c0_i32_0 = arith.constant 0 : i32
    return %arg0, %c0_i32 : i32, i32
  }
  func.func @transform_1(%arg0: i32) -> (i32, i32) {
    %c0_i32 = arith.constant 0 : i32
    %c0_i32_0 = arith.constant 0 : i32
    %c0_i32_1 = arith.constant 0 : i32
    return %c0_i32, %c0_i32_0 : i32, i32
  }
  func.func @transform_2(%arg0: i32) -> (i32, i32) {
    %c0_i32 = arith.constant 0 : i32
    %c0_i32_0 = arith.constant 0 : i32
    %c0_i32_1 = arith.constant 0 : i32
    return %c0_i32, %c0_i32_0 : i32, i32
  }
  func.func @transform_3(%arg0: i32) -> (i32, i32) {
    %c0_i32 = arith.constant 0 : i32
    %c0_i32_0 = arith.constant 0 : i32
    return %arg0, %c0_i32 : i32, i32
  }
  func.func @transform_4(%arg0: i32) -> (i32, i32, i32) {
    %c0_i32 = arith.constant 0 : i32
    %c0_i32_0 = arith.constant 0 : i32
    %c0_i32_1 = arith.constant 0 : i32
    return %arg0, %c0_i32, %c0_i32_0 : i32, i32, i32
  }
}

module attributes {stable_mosaic.version = 11 : i64} {
  func.func @_conv_kernel(%arg0: i32, %arg1: memref<128x16xbf16, #tpu.memory_space<vmem>>, %arg2: memref<16x32xbf16, #tpu.memory_space<vmem>>, %arg3: memref<1x32xf32, #tpu.memory_space<vmem>>, %arg4: memref<128x32xbf16, #tpu.memory_space<vmem>>) attributes {dimension_semantics = [#tpu.dimension_semantics<parallel>], iteration_bounds = array<i64: 1>, scalar_prefetch = 0 : i64, scratch_operands = 0 : i64, tpu.core_type = #tpu.core_type<tc>, window_params = [{transform_indices = @transform_0, window_bounds = array<i64: 128, 16>}, {pipeline_mode = #tpu.pipeline_mode<synchronous>, transform_indices = @transform_1, window_bounds = array<i64: 16, 32>}, {pipeline_mode = #tpu.pipeline_mode<synchronous>, transform_indices = @transform_2, window_bounds = array<i64: 1, 32>}, {transform_indices = @transform_3, window_bounds = array<i64: 128, 32>}]} {
    %c0 = arith.constant 0 : index
    %c0_0 = arith.constant 0 : index
    %0 = vector.load %arg1[%c0, %c0_0] : memref<128x16xbf16, #tpu.memory_space<vmem>>, vector<128x16xbf16>
    %c0_1 = arith.constant 0 : index
    %c0_2 = arith.constant 0 : index
    %1 = vector.load %arg2[%c0_1, %c0_2] : memref<16x32xbf16, #tpu.memory_space<vmem>>, vector<16x32xbf16>
    %cst = arith.constant dense<0.000000e+00> : vector<128x32xf32>
    %2 = tpu.matmul %0, %1, %cst {dimension_numbers = #tpu.dot_dimension_numbers<[1], [0], [0], [1], [0, 0, 1, 1], [], []>} : vector<128x16xbf16>, vector<16x32xbf16>, vector<128x32xf32> -> vector<128x32xf32>
    %c0_3 = arith.constant 0 : index
    %c0_4 = arith.constant 0 : index
    %3 = vector.load %arg3[%c0_3, %c0_4] : memref<1x32xf32, #tpu.memory_space<vmem>>, vector<1x32xf32>
    %4 = vector.broadcast %3 : vector<1x32xf32> to vector<128x32xf32>
    %5 = arith.addf %2, %4 : vector<128x32xf32>
    %6 = arith.truncf %5 : vector<128x32xf32> to vector<128x32xbf16>
    %c0_5 = arith.constant 0 : index
    %c0_6 = arith.constant 0 : index
    %7 = vector.load %arg4[%c0_5, %c0_6] : memref<128x32xbf16, #tpu.memory_space<vmem>>, vector<128x32xbf16>
    tpu.vector_store %arg4[%c0_5, %c0_6], %6 {strides = array<i32>} : memref<128x32xbf16, #tpu.memory_space<vmem>>, vector<128x32xbf16>,
    return
  }
  func.func @transform_0(%arg0: i32) -> (i32, i32) {
    %c0_i32 = arith.constant 0 : i32
    %c0_i32_0 = arith.constant 0 : i32
    return %arg0, %c0_i32 : i32, i32
  }
  func.func @transform_1(%arg0: i32) -> (i32, i32) {
    %c0_i32 = arith.constant 0 : i32
    %c0_i32_0 = arith.constant 0 : i32
    %c0_i32_1 = arith.constant 0 : i32
    return %c0_i32, %c0_i32_0 : i32, i32
  }
  func.func @transform_2(%arg0: i32) -> (i32, i32) {
    %c0_i32 = arith.constant 0 : i32
    %c0_i32_0 = arith.constant 0 : i32
    %c0_i32_1 = arith.constant 0 : i32
    return %c0_i32, %c0_i32_0 : i32, i32
  }
  func.func @transform_3(%arg0: i32) -> (i32, i32) {
    %c0_i32 = arith.constant 0 : i32
    %c0_i32_0 = arith.constant 0 : i32
    return %arg0, %c0_i32 : i32, i32
  }
}

module attributes {stable_mosaic.version = 11 : i64} {
  func.func @_conv_kernel(%arg0: i32, %arg1: memref<512x144xbf16, #tpu.memory_space<vmem>>, %arg2: memref<144x8xbf16, #tpu.memory_space<vmem>>, %arg3: memref<1x8xf32, #tpu.memory_space<vmem>>, %arg4: memref<512x8xbf16, #tpu.memory_space<vmem>>, %arg5: memref<1x2x8xf32, #tpu.memory_space<vmem>>) attributes {dimension_semantics = [#tpu.dimension_semantics<parallel>], iteration_bounds = array<i64: 1>, scalar_prefetch = 0 : i64, scratch_operands = 0 : i64, tpu.core_type = #tpu.core_type<tc>, window_params = [{transform_indices = @transform_0, window_bounds = array<i64: 512, 144>}, {pipeline_mode = #tpu.pipeline_mode<synchronous>, transform_indices = @transform_1, window_bounds = array<i64: 144, 8>}, {pipeline_mode = #tpu.pipeline_mode<synchronous>, transform_indices = @transform_2, window_bounds = array<i64: 1, 8>}, {transform_indices = @transform_3, window_bounds = array<i64: 512, 8>}, {transform_indices = @transform_4, window_bounds = array<i64: 1, 2, 8>}]} {
    %c0 = arith.constant 0 : index
    %c0_0 = arith.constant 0 : index
    %0 = vector.load %arg1[%c0, %c0_0] : memref<512x144xbf16, #tpu.memory_space<vmem>>, vector<512x144xbf16>
    %c0_1 = arith.constant 0 : index
    %c0_2 = arith.constant 0 : index
    %1 = vector.load %arg2[%c0_1, %c0_2] : memref<144x8xbf16, #tpu.memory_space<vmem>>, vector<144x8xbf16>
    %cst = arith.constant dense<0.000000e+00> : vector<512x8xf32>
    %2 = tpu.matmul %0, %1, %cst {dimension_numbers = #tpu.dot_dimension_numbers<[1], [0], [0], [1], [0, 0, 1, 1], [], []>} : vector<512x144xbf16>, vector<144x8xbf16>, vector<512x8xf32> -> vector<512x8xf32>
    %c0_3 = arith.constant 0 : index
    %c0_4 = arith.constant 0 : index
    %3 = vector.load %arg3[%c0_3, %c0_4] : memref<1x8xf32, #tpu.memory_space<vmem>>, vector<1x8xf32>
    %4 = vector.broadcast %3 : vector<1x8xf32> to vector<512x8xf32>
    %5 = arith.addf %2, %4 : vector<512x8xf32>
    %cst_5 = arith.constant 0.000000e+00 : f32
    %6 = vector.broadcast %cst_5 : f32 to vector<512x8xf32>
    %7 = arith.maximumf %5, %6 : vector<512x8xf32>
    %8 = arith.truncf %7 : vector<512x8xf32> to vector<512x8xbf16>
    %c0_6 = arith.constant 0 : index
    %c0_7 = arith.constant 0 : index
    %9 = vector.load %arg4[%c0_6, %c0_7] : memref<512x8xbf16, #tpu.memory_space<vmem>>, vector<512x8xbf16>
    tpu.vector_store %arg4[%c0_6, %c0_7], %8 {strides = array<i32>} : memref<512x8xbf16, #tpu.memory_space<vmem>>, vector<512x8xbf16>,
    %cst_8 = arith.constant dense<0.000000e+00> : vector<8xf32>
    %10 = vector.multi_reduction <add>, %7, %cst_8 [0] : vector<512x8xf32> to vector<8xf32>
    %11 = vector.shape_cast %10 : vector<8xf32> to vector<1x8xf32>
    %c0_9 = arith.constant 0 : index
    %c0_10 = arith.constant 0 : index
    %c0_11 = arith.constant 0 : index
    %12 = vector.load %arg5[%c0_9, %c0_10, %c0_11] : memref<1x2x8xf32, #tpu.memory_space<vmem>>, vector<1x1x8xf32>
    %13 = vector.shape_cast %12 : vector<1x1x8xf32> to vector<1x8xf32>
    %14 = vector.shape_cast %11 : vector<1x8xf32> to vector<1x1x8xf32>
    tpu.vector_store %arg5[%c0_9, %c0_10, %c0_11], %14 {strides = array<i32>} : memref<1x2x8xf32, #tpu.memory_space<vmem>>, vector<1x1x8xf32>,
    %15 = arith.mulf %7, %7 : vector<512x8xf32>
    %cst_12 = arith.constant dense<0.000000e+00> : vector<8xf32>
    %16 = vector.multi_reduction <add>, %15, %cst_12 [0] : vector<512x8xf32> to vector<8xf32>
    %17 = vector.shape_cast %16 : vector<8xf32> to vector<1x8xf32>
    %c0_13 = arith.constant 0 : index
    %c1 = arith.constant 1 : index
    %c0_14 = arith.constant 0 : index
    %18 = vector.load %arg5[%c0_13, %c1, %c0_14] : memref<1x2x8xf32, #tpu.memory_space<vmem>>, vector<1x1x8xf32>
    %19 = vector.shape_cast %18 : vector<1x1x8xf32> to vector<1x8xf32>
    %20 = vector.shape_cast %17 : vector<1x8xf32> to vector<1x1x8xf32>
    tpu.vector_store %arg5[%c0_13, %c1, %c0_14], %20 {strides = array<i32>} : memref<1x2x8xf32, #tpu.memory_space<vmem>>, vector<1x1x8xf32>,
    return
  }
  func.func @transform_0(%arg0: i32) -> (i32, i32) {
    %c0_i32 = arith.constant 0 : i32
    %c0_i32_0 = arith.constant 0 : i32
    return %arg0, %c0_i32 : i32, i32
  }
  func.func @transform_1(%arg0: i32) -> (i32, i32) {
    %c0_i32 = arith.constant 0 : i32
    %c0_i32_0 = arith.constant 0 : i32
    %c0_i32_1 = arith.constant 0 : i32
    return %c0_i32, %c0_i32_0 : i32, i32
  }
  func.func @transform_2(%arg0: i32) -> (i32, i32) {
    %c0_i32 = arith.constant 0 : i32
    %c0_i32_0 = arith.constant 0 : i32
    %c0_i32_1 = arith.constant 0 : i32
    return %c0_i32, %c0_i32_0 : i32, i32
  }
  func.func @transform_3(%arg0: i32) -> (i32, i32) {
    %c0_i32 = arith.constant 0 : i32
    %c0_i32_0 = arith.constant 0 : i32
    return %arg0, %c0_i32 : i32, i32
  }
  func.func @transform_4(%arg0: i32) -> (i32, i32, i32) {
    %c0_i32 = arith.constant 0 : i32
    %c0_i32_0 = arith.constant 0 : i32
    %c0_i32_1 = arith.constant 0 : i32
    return %arg0, %c0_i32, %c0_i32_0 : i32, i32, i32
  }
}

module attributes {stable_mosaic.version = 11 : i64} {
  func.func @_conv_kernel(%arg0: i32, %arg1: memref<512x8xbf16, #tpu.memory_space<vmem>>, %arg2: memref<8x3xbf16, #tpu.memory_space<vmem>>, %arg3: memref<1x3xf32, #tpu.memory_space<vmem>>, %arg4: memref<512x3xf32, #tpu.memory_space<vmem>>) attributes {dimension_semantics = [#tpu.dimension_semantics<parallel>], iteration_bounds = array<i64: 1>, scalar_prefetch = 0 : i64, scratch_operands = 0 : i64, tpu.core_type = #tpu.core_type<tc>, window_params = [{transform_indices = @transform_0, window_bounds = array<i64: 512, 8>}, {pipeline_mode = #tpu.pipeline_mode<synchronous>, transform_indices = @transform_1, window_bounds = array<i64: 8, 3>}, {pipeline_mode = #tpu.pipeline_mode<synchronous>, transform_indices = @transform_2, window_bounds = array<i64: 1, 3>}, {transform_indices = @transform_3, window_bounds = array<i64: 512, 3>}]} {
    %c0 = arith.constant 0 : index
    %c0_0 = arith.constant 0 : index
    %0 = vector.load %arg1[%c0, %c0_0] : memref<512x8xbf16, #tpu.memory_space<vmem>>, vector<512x8xbf16>
    %c0_1 = arith.constant 0 : index
    %c0_2 = arith.constant 0 : index
    %1 = vector.load %arg2[%c0_1, %c0_2] : memref<8x3xbf16, #tpu.memory_space<vmem>>, vector<8x3xbf16>
    %cst = arith.constant dense<0.000000e+00> : vector<512x3xf32>
    %2 = tpu.matmul %0, %1, %cst {dimension_numbers = #tpu.dot_dimension_numbers<[1], [0], [0], [1], [0, 0, 1, 1], [], []>} : vector<512x8xbf16>, vector<8x3xbf16>, vector<512x3xf32> -> vector<512x3xf32>
    %c0_3 = arith.constant 0 : index
    %c0_4 = arith.constant 0 : index
    %3 = vector.load %arg3[%c0_3, %c0_4] : memref<1x3xf32, #tpu.memory_space<vmem>>, vector<1x3xf32>
    %4 = vector.broadcast %3 : vector<1x3xf32> to vector<512x3xf32>
    %5 = arith.addf %2, %4 : vector<512x3xf32>
    %c0_5 = arith.constant 0 : index
    %c0_6 = arith.constant 0 : index
    %6 = vector.load %arg4[%c0_5, %c0_6] : memref<512x3xf32, #tpu.memory_space<vmem>>, vector<512x3xf32>
    tpu.vector_store %arg4[%c0_5, %c0_6], %5 {strides = array<i32>} : memref<512x3xf32, #tpu.memory_space<vmem>>, vector<512x3xf32>,
    return
  }
  func.func @transform_0(%arg0: i32) -> (i32, i32) {
    %c0_i32 = arith.constant 0 : i32
    %c0_i32_0 = arith.constant 0 : i32
    return %arg0, %c0_i32 : i32, i32
  }
  func.func @transform_1(%arg0: i32) -> (i32, i32) {
    %c0_i32 = arith.constant 0 : i32
    %c0_i32_0 = arith.constant 0 : i32
    %c0_i32_1 = arith.constant 0 : i32
    return %c0_i32, %c0_i32_0 : i32, i32
  }
  func.func @transform_2(%arg0: i32) -> (i32, i32) {
    %c0_i32 = arith.constant 0 : i32
    %c0_i32_0 = arith.constant 0 : i32
    %c0_i32_1 = arith.constant 0 : i32
    return %c0_i32, %c0_i32_0 : i32, i32
  }
  func.func @transform_3(%arg0: i32) -> (i32, i32) {
    %c0_i32 = arith.constant 0 : i32
    %c0_i32_0 = arith.constant 0 : i32
    return %arg0, %c0_i32 : i32, i32
  }
}

</mosaic_0001>

<bundles_post_ra>
// kernel: tile.83
= control target key start
LH: loop header
LB: loop body
LE: loop exit
PB: predicated region body
PF: predicated region fallthrough
CT: control target
= control target key end

     0   :  { %s112_s0 = inlined_call_operand.vmem [shape: f32[8], index: 0, kind: input, shape index: {}]   ;;  %s113_s1 = inlined_call_operand.vmem [shape: f32[128,8], index: 1, kind: output, shape index: {}]  }
   0x1   :  { %v4_v0 = vld [vmem:[%s112_s0] ss:$0 sm:$0xff] }
   0x2   :  { %5 = vst [vmem:[%s113_s1] sm:$0xff] %v4_v0  ;;  %36 = vst [vmem:[%s113_s1 + $0x8] sm:$0xff] %v4_v0 }
   0x3   :  { %37 = vst [vmem:[%s113_s1 + $0x10] sm:$0xff] %v4_v0  ;;  %38 = vst [vmem:[%s113_s1 + $0x18] sm:$0xff] %v4_v0 }
   0x4   :  { %39 = vst [vmem:[%s113_s1 + $0x20] sm:$0xff] %v4_v0  ;;  %40 = vst [vmem:[%s113_s1 + $0x28] sm:$0xff] %v4_v0 }
   0x5   :  { %41 = vst [vmem:[%s113_s1 + $0x30] sm:$0xff] %v4_v0  ;;  %42 = vst [vmem:[%s113_s1 + $0x38] sm:$0xff] %v4_v0 }
   0x6   :  { %43 = vst [vmem:[%s113_s1 + $0x40] sm:$0xff] %v4_v0  ;;  %44 = vst [vmem:[%s113_s1 + $0x48] sm:$0xff] %v4_v0 }
   0x7   :  { %45 = vst [vmem:[%s113_s1 + $0x50] sm:$0xff] %v4_v0  ;;  %46 = vst [vmem:[%s113_s1 + $0x58] sm:$0xff] %v4_v0 }
   0x8   :  { %47 = vst [vmem:[%s113_s1 + $0x60] sm:$0xff] %v4_v0  ;;  %48 = vst [vmem:[%s113_s1 + $0x68] sm:$0xff] %v4_v0 }
   0x9   :  { %49 = vst [vmem:[%s113_s1 + $0x70] sm:$0xff] %v4_v0  ;;  %50 = vst [vmem:[%s113_s1 + $0x78] sm:$0xff] %v4_v0 }

// kernel: tile.84
= control target key start
LH: loop header
LB: loop body
LE: loop exit
PB: predicated region body
PF: predicated region fallthrough
CT: control target
= control target key end

     0   :  { %vm6_vm0 = vcmask 1043458   ;;  %vm10_vm1 = vcmask 1045508   ;;  %vm14_vm2 = vcmask 1047558   ;;  %s20_s6 = smov 3  ;;  %s23_s7 = smov 12  ;;  %vm16_vm3 = vcmask 64512   ;;  %s788_s0 = inlined_call_operand.vmem [shape: f32[128,8], index: 0, kind: input, shape index: {}]   ;;  %s789_s1 = inlined_call_operand.vmem [shape: f32[1,1024], index: 1, kind: output, shape index: {}]  }
   0x1   :  { %v417_v0 = vld [vmem:[%s788_s0 + $0xf] ss:$16 sm:%s20_s6]   ;;  %s28_s12 = smov 48  ;;  %s33_s13 = smov 192  ;;  %vm39_vm4 = vcmask 1048512   ;;  %vm62_vm5 = vcmask 982912  }
   0x2   :  { %v418_v1 = vld [vmem:[%s788_s0 + $0xf] ss:$16 sm:%s23_s7]   ;;  %s66_s18 = smov 3  ;;  %s69_s21 = smov 12  ;;  %vm85_vm6 = vcmask 917312   ;;  %vm108_vm7 = vcmask 851712  }
   0x3   :  { %v26_v2 = vsel %vm6_vm0, %v418_v1, %v417_v0  ;;  %v419_v3 = vld [vmem:[%s788_s0 + $0xf] ss:$16 sm:%s28_s12]   ;;  %v425_v6 = vld [vmem:[%s788_s0 + $0xd] ss:$16 sm:%s66_s18]   ;;  %s74_s22 = smov 48  ;;  %s79_s27 = smov 192 }
   0x4   :  { %v420_v4 = vld [vmem:[%s788_s0 + $0xf] ss:$16 sm:%s33_s13]   ;;  %v31_v5 = vsel %vm10_vm1, %v419_v3, %v26_v2  ;;  %v426_v8 = vld [vmem:[%s788_s0 + $0xd] ss:$16 sm:%s69_s21]   ;;  %s499_s28 = smov 120   ;;  %s43_s2 = smov 3 }
   0x5   :  { %v36_v7 = vsel %vm14_vm2, %v420_v4, %v31_v5  ;;  %v427_v9 = vld [vmem:[%s788_s0 + $0xd] ss:$16 sm:%s74_s22]   ;;  %v72_v10 = vsel %vm6_vm0, %v426_v8, %v425_v6  ;;  %s46_s3 = smov 12  ;;  %v421_v13 = vld [vmem:[%s788_s0 + $0xe] ss:$16 sm:%s43_s2]   ;;  %s51_s8 = smov 48 }
   0x6   :  { %37 = vrot.lane.b32.xlu0 %v36_v7, %s499_s28  ;;  %v428_v11 = vld [vmem:[%s788_s0 + $0xd] ss:$16 sm:%s79_s27]   ;;  %v77_v12 = vsel %vm10_vm1, %v427_v9, %v72_v10  ;;  %s56_s9 = smov 192  ;;  %s89_s14 = smov 3  ;;  %vm131_vm8 = vcmask 786112   ;;  %vm154_vm9 = vcmask 720512  }
   0x7   :  { %v422_v14 = vld [vmem:[%s788_s0 + $0xe] ss:$16 sm:%s46_s3]   ;;  %v82_v15 = vsel %vm14_vm2, %v428_v11, %v77_v12  ;;  %s500_s15 = smov 104   ;;  %v429_v20 = vld [vmem:[%s788_s0 + $0xc] ss:$16 sm:%s89_s14]   ;;  %s92_s18 = smov 12 }
   0x8   :  { %v49_v16 = vsel %vm6_vm0, %v422_v14, %v421_v13  ;;  %v423_v17 = vld [vmem:[%s788_s0 + $0xe] ss:$16 sm:%s51_s8]   ;;  %83 = vrot.lane.b32.xlu1 %v82_v15, %s500_s15  ;;  %s97_s19 = smov 48  ;;  %s102_s24 = smov 192  ;;  %vm177_vm10 = vcmask 654912   ;;  %vm200_vm11 = vcmask 589312  }
   0x9   :  { %v424_v18 = vld [vmem:[%s788_s0 + $0xe] ss:$16 sm:%s56_s9]   ;;  %v54_v19 = vsel %vm10_vm1, %v423_v17, %v49_v16  ;;  %v430_v22 = vld [vmem:[%s788_s0 + $0xc] ss:$16 sm:%s92_s18]   ;;  %s501_s25 = smov 112   ;;  %s112_s28 = smov 3 }
   0xa   :  { %v59_v21 = vsel %vm14_vm2, %v424_v18, %v54_v19  ;;  %v431_v23 = vld [vmem:[%s788_s0 + $0xc] ss:$16 sm:%s97_s19]   ;;  %v95_v24 = vsel %vm6_vm0, %v430_v22, %v429_v20  ;;  %s115_s29 = smov 12  ;;  %v433_v27 = vld [vmem:[%s788_s0 + $0xb] ss:$16 sm:%s112_s28]   ;;  %s120_s5 = smov 48 }
   0xb   :  { %60 = vrot.lane.b32.xlu0 %v59_v21, %s501_s25  ;;  %v432_v25 = vld [vmem:[%s788_s0 + $0xc] ss:$16 sm:%s102_s24]   ;;  %v100_v26 = vsel %vm10_vm1, %v431_v23, %v95_v24  ;;  %s125_s6 = smov 192  ;;  %s135_s11 = smov 3  ;;  %vm223_vm12 = vcmask 523712   ;;  %vm246_vm13 = vcmask 458112  }
   0xc   :  { %v434_v28 = vld [vmem:[%s788_s0 + $0xb] ss:$16 sm:%s115_s29]   ;;  %v105_v29 = vsel %vm14_vm2, %v432_v25, %v100_v26  ;;  %s502_s12 = smov 96   ;;  %v437_v34 = vld [vmem:[%s788_s0 + $0xa] ss:$16 sm:%s135_s11]   ;;  %s138_s15 = smov 12 }
   0xd   :  { %v118_v30 = vsel %vm6_vm0, %v434_v28, %v433_v27  ;;  %v435_v31 = vld [vmem:[%s788_s0 + $0xb] ss:$16 sm:%s120_s5]   ;;  %106 = vrot.lane.b32.xlu1 %v105_v29, %s502_s12  ;;  %s143_s16 = smov 48  ;;  %s148_s21 = smov 192  ;;  %vm269_vm14 = vcmask 392512   ;;  %vm292_vm15 = vcmask 326912  }
   0xe   :  { %v436_v32 = vld [vmem:[%s788_s0 + $0xb] ss:$16 sm:%s125_s6]   ;;  %v123_v33 = vsel %vm10_vm1, %v435_v31, %v118_v30  ;;  %v438_v36 = vld [vmem:[%s788_s0 + $0xa] ss:$16 sm:%s138_s15]   ;;  %s503_s22 = smov 88   ;;  %s158_s25 = smov 3 }
   0xf   :  { %v128_v35 = vsel %vm14_vm2, %v436_v32, %v123_v33  ;;  %v439_v37 = vld [vmem:[%s788_s0 + $0xa] ss:$16 sm:%s143_s16]   ;;  %v141_v38 = vsel %vm6_vm0, %v438_v36, %v437_v34  ;;  %s161_s26 = smov 12  ;;  %v441_v41 = vld [vmem:[%s788_s0 + $0x9] ss:$16 sm:%s158_s25]   ;;  %s166_s2 = smov 48 }
  0x10   :  { %129 = vrot.lane.b32.xlu0 %v128_v35, %s503_s22  ;;  %v440_v39 = vld [vmem:[%s788_s0 + $0xa] ss:$16 sm:%s148_s21]   ;;  %v146_v40 = vsel %vm10_vm1, %v439_v37, %v141_v38  ;;  %s171_s3 = smov 192  ;;  %s181_s8 = smov 3 }
  0x11   :  { %v442_v42 = vld [vmem:[%s788_s0 + $0x9] ss:$16 sm:%s161_s26]   ;;  %v151_v43 = vsel %vm14_vm2, %v440_v39, %v146_v40  ;;  %s504_s9 = smov 80   ;;  %v445_v48 = vld [vmem:[%s788_s0 + $0x8] ss:$16 sm:%s181_s8]   ;;  %s184_s12 = smov 12 }
  0x12   :  { %v164_v44 = vsel %vm6_vm0, %v442_v42, %v441_v41  ;;  %v443_v45 = vld [vmem:[%s788_s0 + $0x9] ss:$16 sm:%s166_s2]   ;;  %152 = vrot.lane.b32.xlu1 %v151_v43, %s504_s9  ;;  %s189_s13 = smov 48  ;;  %s194_s18 = smov 192 }
  0x13   :  { %v444_v46 = vld [vmem:[%s788_s0 + $0x9] ss:$16 sm:%s171_s3]   ;;  %v169_v47 = vsel %vm10_vm1, %v443_v45, %v164_v44  ;;  %v446_v50 = vld [vmem:[%s788_s0 + $0x8] ss:$16 sm:%s184_s12]   ;;  %s505_s19 = smov 72   ;;  %s204_s22 = smov 3 }
  0x14   :  { %v174_v49 = vsel %vm14_vm2, %v444_v46, %v169_v47  ;;  %v447_v51 = vld [vmem:[%s788_s0 + $0x8] ss:$16 sm:%s189_s13]   ;;  %v187_v52 = vsel %vm6_vm0, %v446_v50, %v445_v48  ;;  %s207_s23 = smov 12  ;;  %v449_v55 = vld [vmem:[%s788_s0 + $0x7] ss:$16 sm:%s204_s22]   ;;  %s212_s28 = smov 48 }
  0x15   :  { %175 = vrot.lane.b32.xlu0 %v174_v49, %s505_s19  ;;  %v448_v53 = vld [vmem:[%s788_s0 + $0x8] ss:$16 sm:%s194_s18]   ;;  %v192_v54 = vsel %vm10_vm1, %v447_v51, %v187_v52  ;;  %s217_s29 = smov 192  ;;  %s227_s5 = smov 3 }
  0x16   :  { %v450_v56 = vld [vmem:[%s788_s0 + $0x7] ss:$16 sm:%s207_s23]   ;;  %v197_v57 = vsel %vm14_vm2, %v448_v53, %v192_v54  ;;  %s506_s6 = smov 64   ;;  %v453_v62 = vld [vmem:[%s788_s0 + $0x6] ss:$16 sm:%s227_s5]   ;;  %s230_s9 = smov 12 }
  0x17   :  { %v210_v58 = vsel %vm6_vm0, %v450_v56, %v449_v55  ;;  %v451_v59 = vld [vmem:[%s788_s0 + $0x7] ss:$16 sm:%s212_s28]   ;;  %198 = vrot.lane.b32.xlu1 %v197_v57, %s506_s6  ;;  %s235_s10 = smov 48  ;;  %s240_s15 = smov 192 }
  0x18   :  { %v452_v60 = vld [vmem:[%s788_s0 + $0x7] ss:$16 sm:%s217_s29]   ;;  %v215_v61 = vsel %vm10_vm1, %v451_v59, %v210_v58  ;;  %v454_v0 = vld [vmem:[%s788_s0 + $0x6] ss:$16 sm:%s230_s9]   ;;  %s507_s16 = smov 56   ;;  %s250_s19 = smov 3 }
  0x19   :  { %v220_v63 = vsel %vm14_vm2, %v452_v60, %v215_v61  ;;  %v455_v1 = vld [vmem:[%s788_s0 + $0x6] ss:$16 sm:%s235_s10]   ;;  %v233_v2 = vsel %vm6_vm0, %v454_v0, %v453_v62  ;;  %s253_s20 = smov 12  ;;  %v457_v5 = vld [vmem:[%s788_s0 + $0x5] ss:$16 sm:%s250_s19]   ;;  %s258_s25 = smov 48 }
  0x1a   :  { %221 = vrot.lane.b32.xlu0 %v220_v63, %s507_s16  ;;  %v456_v3 = vld [vmem:[%s788_s0 + $0x6] ss:$16 sm:%s240_s15]   ;;  %v238_v4 = vsel %vm10_vm1, %v455_v1, %v233_v2  ;;  %s263_s26 = smov 192  ;;  %s273_s2 = smov 3 }
  0x1b   :  { %v458_v6 = vld [vmem:[%s788_s0 + $0x5] ss:$16 sm:%s253_s20]   ;;  %v243_v7 = vsel %vm14_vm2, %v456_v3, %v238_v4  ;;  %s508_s3 = smov 48   ;;  %v461_v12 = vld [vmem:[%s788_s0 + $0x4] ss:$16 sm:%s273_s2]   ;;  %s276_s6 = smov 12 }
  0x1c   :  { %v256_v8 = vsel %vm6_vm0, %v458_v6, %v457_v5  ;;  %v459_v9 = vld [vmem:[%s788_s0 + $0x5] ss:$16 sm:%s258_s25]   ;;  %244 = vrot.lane.b32.xlu1 %v243_v7, %s508_s3  ;;  %s281_s7 = smov 48  ;;  %s286_s12 = smov 192 }
  0x1d   :  { %v460_v10 = vld [vmem:[%s788_s0 + $0x5] ss:$16 sm:%s263_s26]   ;;  %v261_v11 = vsel %vm10_vm1, %v459_v9, %v256_v8  ;;  %v462_v14 = vld [vmem:[%s788_s0 + $0x4] ss:$16 sm:%s276_s6]   ;;  %s509_s13 = smov 40   ;;  %s296_s16 = smov 3 }
  0x1e   :  { %v266_v13 = vsel %vm14_vm2, %v460_v10, %v261_v11  ;;  %v463_v15 = vld [vmem:[%s788_s0 + $0x4] ss:$16 sm:%s281_s7]   ;;  %v279_v16 = vsel %vm6_vm0, %v462_v14, %v461_v12  ;;  %s299_s17 = smov 12  ;;  %v465_v19 = vld [vmem:[%s788_s0 + $0x3] ss:$16 sm:%s296_s16]   ;;  %s304_s22 = smov 48 }
  0x1f   :  { %267 = vrot.lane.b32.xlu0 %v266_v13, %s509_s13  ;;  %v464_v17 = vld [vmem:[%s788_s0 + $0x4] ss:$16 sm:%s286_s12]   ;;  %v284_v18 = vsel %vm10_vm1, %v463_v15, %v279_v16  ;;  %s309_s23 = smov 192  ;;  %s319_s28 = smov 3 }
  0x20   :  { %v466_v20 = vld [vmem:[%s788_s0 + $0x3] ss:$16 sm:%s299_s17]   ;;  %v289_v21 = vsel %vm14_vm2, %v464_v17, %v284_v18  ;;  %s510_s29 = smov 32   ;;  %v469_v26 = vld [vmem:[%s788_s0 + $0x2] ss:$16 sm:%s319_s28]   ;;  %s322_s3 = smov 12 }
  0x21   :  { %v302_v22 = vsel %vm6_vm0, %v466_v20, %v465_v19  ;;  %v467_v23 = vld [vmem:[%s788_s0 + $0x3] ss:$16 sm:%s304_s22]   ;;  %290 = vrot.lane.b32.xlu1 %v289_v21, %s510_s29  ;;  %s327_s4 = smov 48  ;;  %s332_s9 = smov 192 }
  0x22   :  { %v468_v24 = vld [vmem:[%s788_s0 + $0x3] ss:$16 sm:%s309_s23]   ;;  %v307_v25 = vsel %vm10_vm1, %v467_v23, %v302_v22  ;;  %v470_v28 = vld [vmem:[%s788_s0 + $0x2] ss:$16 sm:%s322_s3]   ;;  %s511_s10 = smov 24   ;;  %s342_s13 = smov 3 }
  0x23   :  { %v312_v27 = vsel %vm14_vm2, %v468_v24, %v307_v25  ;;  %v471_v29 = vld [vmem:[%s788_s0 + $0x2] ss:$16 sm:%s327_s4]   ;;  %v325_v30 = vsel %vm6_vm0, %v470_v28, %v469_v26  ;;  %s345_s14 = smov 12  ;;  %v473_v33 = vld [vmem:[%s788_s0 + $0x1] ss:$16 sm:%s342_s13]   ;;  %s350_s19 = smov 48 }
  0x24   :  { %313 = vrot.lane.b32.xlu0 %v312_v27, %s511_s10  ;;  %v472_v31 = vld [vmem:[%s788_s0 + $0x2] ss:$16 sm:%s332_s9]   ;;  %v330_v32 = vsel %vm10_vm1, %v471_v29, %v325_v30  ;;  %s355_s20 = smov 192  ;;  %s8_s25 = smov 48 }
  0x25   :  { %v474_v34 = vld [vmem:[%s788_s0 + $0x1] ss:$16 sm:%s345_s14]   ;;  %v335_v35 = vsel %vm14_vm2, %v472_v31, %v330_v32  ;;  %s512_s26 = smov 16   ;;  %v9_v40 = vld [vmem:[%s788_s0] ss:$16 sm:%s8_s25]   ;;  %s12_s29 = smov 192 }
  0x26   :  { %v348_v36 = vsel %vm6_vm0, %v474_v34, %v473_v33  ;;  %v475_v37 = vld [vmem:[%s788_s0 + $0x1] ss:$16 sm:%s350_s19]   ;;  %336 = vrot.lane.b32.xlu1 %v335_v35, %s512_s26  ;;  %s2_s30 = smov 3  ;;  %s4_s6 = smov 12 }
  0x27   :  { %v476_v38 = vld [vmem:[%s788_s0 + $0x1] ss:$16 sm:%s355_s20]   ;;  %v353_v39 = vsel %vm10_vm1, %v475_v37, %v348_v36  ;;  %v13_v42 = vld [vmem:[%s788_s0] ss:$16 sm:%s12_s29]   ;;  %s513_s7 = smov 8  }
  0x28   :  { %v358_v41 = vsel %vm14_vm2, %v476_v38, %v353_v39  ;;  %v3_v43 = vld [vmem:[%s788_s0] ss:$16 sm:%s2_s30]  }
  0x29   :  { %359 = vrot.lane.b32.xlu0 %v358_v41, %s513_s7  ;;  %v5_v44 = vld [vmem:[%s788_s0] ss:$16 sm:%s4_s6]  }
  0x2a   :  { %v7_v45 = vsel %vm6_vm0, %v5_v44, %v3_v43  ;;  %vm315_vm0 = vcmask 261312  }
  0x2b   :  { %v11_v46 = vsel %vm10_vm1, %v9_v40, %v7_v45  ;;  %vm338_vm1 = vcmask 195712  }
  0x2c   :  { %v15_v47 = vsel %vm14_vm2, %v13_v42, %v11_v46  ;;  %vm361_vm2 = vcmask 130112  }
  0x2d   :  { %17 = vst.msk [vmem:[#allocation0] ss:$8 sm:$0xf] %vm16_vm3, %v15_v47   ;;  %18 = vst.msk [vmem:[#allocation0] ss:$8 sm:$0xf0] %vm16_vm3, %v15_v47  }
  0x78   :  { %v38_v48 = vpop.permute.xlu0 %37  }
  0x79   :  { %40 = vst.msk [vmem:[#allocation0] ss:$8 sm:$0xf] %vm39_vm4, %v38_v48   ;;  %41 = vst.msk [vmem:[#allocation0] ss:$8 sm:$0xf0] %vm39_vm4, %v38_v48  }
  0x7a   :  { %v84_v49 = vpop.permute.xlu1 %83  }
  0x7d   :  { %v61_v50 = vpop.permute.xlu0 %60  }
  0x7e   :  { %63 = vst.msk [vmem:[#allocation0] ss:$8 sm:$0xf] %vm62_vm5, %v61_v50   ;;  %64 = vst.msk [vmem:[#allocation0] ss:$8 sm:$0xf0] %vm62_vm5, %v61_v50  }
  0x7f   :  { %86 = vst.msk [vmem:[#allocation0] ss:$8 sm:$0xf] %vm85_vm6, %v84_v49   ;;  %87 = vst.msk [vmem:[#allocation0] ss:$8 sm:$0xf0] %vm85_vm6, %v84_v49   ;;  %v107_v51 = vpop.permute.xlu1 %106  }
  0x80   :  { %109 = vst.msk [vmem:[#allocation0] ss:$8 sm:$0xf] %vm108_vm7, %v107_v51   ;;  %110 = vst.msk [vmem:[#allocation0] ss:$8 sm:$0xf0] %vm108_vm7, %v107_v51  }
  0x82   :  { %v130_v52 = vpop.permute.xlu0 %129  }
  0x83   :  { %132 = vst.msk [vmem:[#allocation0] ss:$8 sm:$0xf] %vm131_vm8, %v130_v52   ;;  %133 = vst.msk [vmem:[#allocation0] ss:$8 sm:$0xf0] %vm131_vm8, %v130_v52  }
  0x84   :  { %v153_v53 = vpop.permute.xlu1 %152  }
  0x85   :  { %155 = vst.msk [vmem:[#allocation0] ss:$8 sm:$0xf] %vm154_vm9, %v153_v53   ;;  %156 = vst.msk [vmem:[#allocation0] ss:$8 sm:$0xf0] %vm154_vm9, %v153_v53  }
  0x87   :  { %v176_v54 = vpop.permute.xlu0 %175  }
  0x88   :  { %178 = vst.msk [vmem:[#allocation0] ss:$8 sm:$0xf] %vm177_vm10, %v176_v54   ;;  %179 = vst.msk [vmem:[#allocation0] ss:$8 sm:$0xf0] %vm177_vm10, %v176_v54  }
  0x89   :  { %v199_v55 = vpop.permute.xlu1 %198  }
  0x8a   :  { %201 = vst.msk [vmem:[#allocation0] ss:$8 sm:$0xf] %vm200_vm11, %v199_v55   ;;  %202 = vst.msk [vmem:[#allocation0] ss:$8 sm:$0xf0] %vm200_vm11, %v199_v55  }
  0x8c   :  { %v222_v56 = vpop.permute.xlu0 %221  }
  0x8d   :  { %224 = vst.msk [vmem:[#allocation0] ss:$8 sm:$0xf] %vm223_vm12, %v222_v56   ;;  %225 = vst.msk [vmem:[#allocation0] ss:$8 sm:$0xf0] %vm223_vm12, %v222_v56  }
  0x8e   :  { %v245_v57 = vpop.permute.xlu1 %244  }
  0x8f   :  { %247 = vst.msk [vmem:[#allocation0] ss:$8 sm:$0xf] %vm246_vm13, %v245_v57   ;;  %248 = vst.msk [vmem:[#allocation0] ss:$8 sm:$0xf0] %vm246_vm13, %v245_v57  }
  0x91   :  { %v268_v58 = vpop.permute.xlu0 %267  }
  0x92   :  { %270 = vst.msk [vmem:[#allocation0] ss:$8 sm:$0xf] %vm269_vm14, %v268_v58   ;;  %271 = vst.msk [vmem:[#allocation0] ss:$8 sm:$0xf0] %vm269_vm14, %v268_v58  }
  0x93   :  { %v291_v59 = vpop.permute.xlu1 %290  }
  0x94   :  { %293 = vst.msk [vmem:[#allocation0] ss:$8 sm:$0xf] %vm292_vm15, %v291_v59   ;;  %294 = vst.msk [vmem:[#allocation0] ss:$8 sm:$0xf0] %vm292_vm15, %v291_v59  }
  0x96   :  { %v314_v60 = vpop.permute.xlu0 %313  }
  0x97   :  { %316 = vst.msk [vmem:[#allocation0] ss:$8 sm:$0xf] %vm315_vm0, %v314_v60   ;;  %317 = vst.msk [vmem:[#allocation0] ss:$8 sm:$0xf0] %vm315_vm0, %v314_v60  }
  0x98   :  { %v337_v61 = vpop.permute.xlu1 %336  }
  0x99   :  { %339 = vst.msk [vmem:[#allocation0] ss:$8 sm:$0xf] %vm338_vm1, %v337_v61   ;;  %340 = vst.msk [vmem:[#allocation0] ss:$8 sm:$0xf0] %vm338_vm1, %v337_v61  }
  0x9b   :  { %v360_v62 = vpop.permute.xlu0 %359  }
  0x9c   :  { %362 = vst.msk [vmem:[#allocation0] ss:$8 sm:$0xf] %vm361_vm2, %v360_v62   ;;  %363 = vst.msk [vmem:[#allocation0] ss:$8 sm:$0xf0] %vm361_vm2, %v360_v62  }
  0xa3   :  { %v367_v63 = vld [vmem:[#allocation0] sm:$0x1]  ;;  %v371_v0 = vld [vmem:[#allocation0 + $0x8] sm:$0x1]  ;;  %v376_v1 = vld [vmem:[#allocation0 + $0x10] sm:$0x1] }
  0xa4   :  { %369 = vst [vmem:[%s789_s1] sm:$0x1] %v367_v63  ;;  %477 = vst [vmem:[%s789_s1 + $0x1] sm:$0x1] %v371_v0  ;;  %v382_v2 = vld [vmem:[#allocation0 + $0x18] sm:$0x1] }
  0xa5   :  { %478 = vst [vmem:[%s789_s1 + $0x2] sm:$0x1] %v376_v1  ;;  %v388_v3 = vld [vmem:[#allocation0 + $0x20] sm:$0x1]  ;;  %v394_v4 = vld [vmem:[#allocation0 + $0x28] sm:$0x1] }
  0xa6   :  { %479 = vst [vmem:[%s789_s1 + $0x3] sm:$0x1] %v382_v2  ;;  %480 = vst [vmem:[%s789_s1 + $0x4] sm:$0x1] %v388_v3  ;;  %v400_v5 = vld [vmem:[#allocation0 + $0x30] sm:$0x1] }
  0xa7   :  { %481 = vst [vmem:[%s789_s1 + $0x5] sm:$0x1] %v394_v4  ;;  %v406_v6 = vld [vmem:[#allocation0 + $0x38] sm:$0x1]  ;;  %482 = vst [vmem:[%s789_s1 + $0x6] sm:$0x1] %v400_v5 }
  0xa8   :  { %483 = vst [vmem:[%s789_s1 + $0x7] sm:$0x1] %v406_v6 }

// kernel: unet_forward.21
= control target key start
LH: loop header
LB: loop body
LE: loop exit
PB: predicated region body
PF: predicated region fallthrough
CT: control target
= control target key end

     0   :  { %v22_v0 = vlaneseq  ;;  %v187_v2 = vmov 1983009808   ;;  %s226_s0 = inlined_call_operand.vmem [shape: bf16[4,1024], index: 0, kind: input, shape index: {}]   ;;  %s227_s1 = inlined_call_operand.vmem [shape: f32[1,1024], index: 1, kind: input, shape index: {}]   ;;  %s228_s2 = inlined_call_operand.vmem [shape: f32[1,1024], index: 2, kind: input, shape index: {}]   ;;  %s229_s3 = inlined_call_operand.vmem [shape: bf16[4,1024], index: 3, kind: output, shape index: {}]  }
   0x1   :  { %v14_v1 = vld [vmem:[%s226_s0] sm:$0xff]  ;;  %v143_v3 = vunpack.c.l.s4 %v187_v2  ;;  %v15_v5 = vld [vmem:[%s226_s0 + $0x8] sm:$0xff] }
   0x2   :  { %v23_v4 = vshrl.u32 %v22_v0, 7  ;;  %v16_v6 = vunpack.c.l.bf16 %v14_v1  ;;  %v17_v7 = vunpack.c.h.bf16 %v14_v1  ;;  %v20_v8 = vld [vmem:[%s227_s1] sm:$0xff]  ;;  %v18_v10 = vunpack.c.l.bf16 %v15_v5 }
   0x3   :  { %v144_v9 = vunpack.c.0.s8 %v143_v3  ;;  %v66_v15 = vld [vmem:[%s228_s2] sm:$0xff]  ;;  %v19_v16 = vunpack.c.h.bf16 %v15_v5 }
   0x4   :  { %v24_v11 = vsub.s32 0, %v23_v4  ;;  %v28_v12 = vsub.s32 1, %v23_v4  ;;  %v32_v13 = vsub.s32 2, %v23_v4  ;;  %v36_v14 = vsub.s32 3, %v23_v4 }
   0x5   :  { %v40_v17 = vsub.s32 4, %v23_v4  ;;  %v44_v18 = vsub.s32 5, %v23_v4  ;;  %v48_v19 = vsub.s32 6, %v23_v4  ;;  %v52_v35 = vsub.s32 7, %v23_v4 }
   0x6   :  { %v25_v20 = vrot.slane %v20_v8, %v24_v11  ;;  %v29_v21 = vrot.slane %v20_v8, %v28_v12  ;;  %v33_v22 = vrot.slane %v20_v8, %v32_v13  ;;  %v37_v23 = vrot.slane %v20_v8, %v36_v14 }
   0x7   :  { %v71_v24 = vrot.slane %v66_v15, %v24_v11  ;;  %v75_v25 = vrot.slane %v66_v15, %v28_v12  ;;  %v79_v26 = vrot.slane %v66_v15, %v32_v13  ;;  %v83_v27 = vrot.slane %v66_v15, %v36_v14 }
   0x8   :  { %v54_v28 = vcombine.low %v25_v20, %v29_v21  ;;  %v55_v29 = vcombine.low %v33_v22, %v37_v23  ;;  %v41_v30 = vrot.slane %v20_v8, %v40_v17  ;;  %v45_v31 = vrot.slane %v20_v8, %v44_v18 }
   0x9   :  { %v100_v32 = vcombine.low %v71_v24, %v75_v25  ;;  %v101_v33 = vcombine.low %v79_v26, %v83_v27  ;;  %v49_v34 = vrot.slane %v20_v8, %v48_v19  ;;  %v87_v39 = vrot.slane %v66_v15, %v40_v17 }
   0xa   :  { %v62_v36 = vmul.f32 %v54_v28, %v16_v6  ;;  %v63_v37 = vmul.f32 %v55_v29, %v17_v7  ;;  %v56_v38 = vcombine.low %v41_v30, %v45_v31  ;;  %v53_v40 = vrot.slane %v20_v8, %v52_v35 }
   0xb   :  { %v91_v41 = vrot.slane %v66_v15, %v44_v18  ;;  %v95_v42 = vrot.slane %v66_v15, %v48_v19  ;;  %v99_v43 = vrot.slane %v66_v15, %v52_v35  ;;  %v147_v52 = vsub.s32 %v144_v9, %v23_v4 }
   0xc   :  { %v108_v44 = vadd.f32 %v100_v32, %v62_v36  ;;  %v109_v45 = vadd.f32 %v101_v33, %v63_v37  ;;  %v64_v46 = vmul.f32 %v56_v38, %v18_v10  ;;  %v57_v47 = vcombine.low %v49_v34, %v53_v40 }
   0xd   :  { %v102_v48 = vcombine.low %v87_v39, %v91_v41  ;;  %v103_v49 = vcombine.low %v95_v42, %v99_v43 }
   0xe   :  { %v116_v50 = vcombine.high %v108_v44, %v108_v44  ;;  %v117_v51 = vcombine.high %v109_v45, %v109_v45  ;;  %v65_v53 = vmul.f32 %v57_v47, %v19_v16 }
   0xf   :  { %v110_v54 = vadd.f32 %v102_v48, %v64_v46 }
  0x10   :  { %v182_v55 = vpack.c.bf16 %v116_v50, %v108_v44  ;;  %v183_v56 = vpack.c.bf16 %v117_v51, %v109_v45  ;;  %v111_v57 = vadd.f32 %v103_v49, %v65_v53 }
  0x11   :  { %v118_v58 = vcombine.high %v110_v54, %v110_v54 }
  0x12   :  { %v148_v59 = vrot.slane %v182_v55, %v147_v52  ;;  %v155_v60 = vrot.slane %v183_v56, %v147_v52  ;;  %v119_v61 = vcombine.high %v111_v57, %v111_v57 }
  0x13   :  { %v184_v62 = vpack.c.bf16 %v118_v58, %v110_v54 }
  0x14   :  { %v156_v63 = vcombine.low %v148_v59, %v155_v60  ;;  %v185_v0 = vpack.c.bf16 %v119_v61, %v111_v57 }
  0x15   :  { %v165_v1 = vrot.slane %v184_v62, %v147_v52 }
  0x16   :  { %176 = vst [vmem:[%s229_s3] sm:$0xff] %v156_v63  ;;  %v172_v2 = vrot.slane %v185_v0, %v147_v52 }
  0x18   :  { %v173_v3 = vcombine.low %v165_v1, %v172_v2 }
  0x1a   :  { %177 = vst [vmem:[%s229_s3 + $0x8] sm:$0xff] %v173_v3 }

// kernel: unet_forward.20
= control target key start
LH: loop header
LB: loop body
LE: loop exit
PB: predicated region body
PF: predicated region fallthrough
CT: control target
= control target key end

     0   :  { %vm360_vm0 = vcmask 1044480   ;;  %vm361_vm1 = vcmask 1045504   ;;  %vm263_vm2 = vcmask 220160   ;;  %v1720_v1 = vmov 65535   ;;  %s2451_s1 = inlined_call_operand.vmem [shape: bf16[27,8], index: 1, kind: input, shape index: {}]   ;;  %s2452_s0 = inlined_call_operand.vmem [shape: bf16[512,27], index: 0, kind: input, shape index: {}]   ;;  %s2453_s2 = inlined_call_operand.vmem [shape: f32[1,8], index: 2, kind: input, shape index: {}]   ;;  %s2454_s3 = inlined_call_operand.vmem [shape: bf16[512,8], index: 3, kind: output, shape index: {0}]   ;;  %s2455_s4 = inlined_call_operand.vmem [shape: f32[1,2,8], index: 4, kind: output, shape index: {1}]  }
   0x1   :  { %v1685_v0 = vld [vmem:[%s2451_s1] sm:$0xff]   ;;  %v362_v2 = vsel %vm360_vm0, 4294967295, %v1720_v1  ;;  %v1686_v3 = vld [vmem:[%s2451_s1 + $0x8] sm:$0x3f]   ;;  %v1689_v8 = vld [vmem:[%s2452_s0 + $0x10] sm:$0xff]   ;;  %vm976_vm3 = vcmask 60416  }
   0x2   :  { %1612 = vmatprep.subr.bf16.mxu0 %v1685_v0  ;;  %v363_v4 = vsel %vm361_vm1, %v362_v2, 0  ;;  %v1687_v5 = vld [vmem:[%s2452_s0] sm:$0xff]   ;;  %1680 = vmatprep.subr.bf16.mxu1 %v1685_v0  ;;  %v1688_v7 = vld [vmem:[%s2452_s0 + $0x8] sm:$0xff]   ;;  %v1690_v9 = vld [vmem:[%s2452_s0 + $0x18] sm:$0xff]   ;;  %vm1041_vm4 = vcmask 64512   ;;  %vm1175_vm5 = vcmask 57344  }
   0x3   :  { %1613 = vmatpush3.bf16.msra.mxu0 %v1685_v0  ;;  %v365_v6 = vand.u32 %v1686_v3, %v363_v4  ;;  %1682 = vmatpush3.bf16.msra.mxu1 %v1685_v0  ;;  %v1691_v10 = vld [vmem:[%s2452_s0 + $0x20] sm:$0xff]   ;;  %v1704_v12 = vld [vmem:[%s2452_s0 + $0x88] sm:$0xff]   ;;  %v1705_v13 = vld [vmem:[%s2452_s0 + $0x90] sm:$0xff]  }
   0x4   :  { %1616 = vmatprep.mubr.msk.bf16.mxu0 %vm263_vm2, %v1687_v5  ;;  %v1703_v11 = vld [vmem:[%s2452_s0 + $0x80] sm:$0xff]   ;;  %v1692_v14 = vld [vmem:[%s2452_s0 + $0x28] sm:$0xff]   ;;  %v1693_v15 = vld [vmem:[%s2452_s0 + $0x30] sm:$0xff]  }
   0x5   :  { %1614 = vmatprep.subr.bf16.mxu0 %v365_v6  ;;  %1681 = vmatprep.subr.bf16.mxu1 %v365_v6  ;;  %v1706_v16 = vld [vmem:[%s2452_s0 + $0x98] sm:$0xff]   ;;  %v1707_v17 = vld [vmem:[%s2452_s0 + $0xa0] sm:$0xff]   ;;  %v1708_v20 = vld [vmem:[%s2452_s0 + $0xa8] sm:$0xff]  }
   0x6   :  { %1648 = vmatprep.mubr.msk.bf16.mxu1 %vm263_vm2, %v1703_v11  ;;  %v1694_v18 = vld [vmem:[%s2452_s0 + $0x38] sm:$0xff]   ;;  %v1695_v19 = vld [vmem:[%s2452_s0 + $0x40] sm:$0xff]   ;;  %v1709_v21 = vld [vmem:[%s2452_s0 + $0xb0] sm:$0xff]  }
   0x7   :  { %1615 = vmatpush3.bf16.msra.mxu0 %v365_v6  ;;  %1683 = vmatpush3.bf16.msra.mxu1 %v365_v6  ;;  %v1696_v22 = vld [vmem:[%s2452_s0 + $0x48] sm:$0xff]   ;;  %v1697_v23 = vld [vmem:[%s2452_s0 + $0x50] sm:$0xff]   ;;  %v1710_v24 = vld [vmem:[%s2452_s0 + $0xb8] sm:$0xff]  }
   0x8   :  { %v1711_v25 = vld [vmem:[%s2452_s0 + $0xc0] sm:$0xff]   ;;  %v1698_v26 = vld [vmem:[%s2452_s0 + $0x58] sm:$0xff]   ;;  %v1712_v28 = vld [vmem:[%s2452_s0 + $0xc8] sm:$0xff]  }
   0x9   :  { %v1699_v27 = vld [vmem:[%s2452_s0 + $0x60] sm:$0xff]   ;;  %v1713_v29 = vld [vmem:[%s2452_s0 + $0xd0] sm:$0xff]   ;;  %v1700_v30 = vld [vmem:[%s2452_s0 + $0x68] sm:$0xff]  }
   0xa   :  { %1617 = vmatmul.mubr.msk.bf16.vlgmr.msra.gmra.mrb[0].mxu0 %vm263_vm2, %v1688_v7  ;;  %1649 = vmatmul.mubr.msk.bf16.vlgmr.msra.gmra.mrb[0].mxu1 %vm263_vm2, %v1704_v12  ;;  %v1701_v31 = vld [vmem:[%s2452_s0 + $0x70] sm:$0xff]   ;;  %v1714_v32 = vld [vmem:[%s2452_s0 + $0xd8] sm:$0xff]   ;;  %v1715_v33 = vld [vmem:[%s2452_s0 + $0xe0] sm:$0xff]  }
   0xb   :  { %1620 = vmatprep.mubr.msk.bf16.mxu0 %vm263_vm2, %v1689_v8  ;;  %1652 = vmatprep.mubr.msk.bf16.mxu1 %vm263_vm2, %v1705_v13  ;;  %v1702_v34 = vld [vmem:[%s2452_s0 + $0x78] sm:$0xff]   ;;  %v1716_v35 = vld [vmem:[%s2452_s0 + $0xe8] sm:$0xff]   ;;  %v1717_v36 = vld [vmem:[%s2452_s0 + $0xf0] sm:$0xff]  }
   0xc   :  { %v1718_v37 = vld [vmem:[%s2452_s0 + $0xf8] sm:$0xff]   ;;  %v1883_v38 = vld [vmem:[%s2453_s2] ss:$0 sm:$0xff] }
  0x12   :  { %1621 = vmatmul.mubr.msk.bf16.gmra.mrb[4].mxu0 %vm263_vm2, %v1690_v9  ;;  %1653 = vmatmul.mubr.msk.bf16.gmra.mrb[4].mxu1 %vm263_vm2, %v1706_v16 }
  0x13   :  { %1624 = vmatprep.mubr.msk.bf16.mxu0 %vm263_vm2, %v1691_v10  ;;  %1656 = vmatprep.mubr.msk.bf16.mxu1 %vm263_vm2, %v1707_v17 }
  0x1a   :  { %1625 = vmatmul.mubr.msk.bf16.gmra.mrb[8].mxu0 %vm263_vm2, %v1692_v14  ;;  %1657 = vmatmul.mubr.msk.bf16.gmra.mrb[8].mxu1 %vm263_vm2, %v1708_v20 }
  0x1b   :  { %1628 = vmatprep.mubr.msk.bf16.mxu0 %vm263_vm2, %v1693_v15  ;;  %1660 = vmatprep.mubr.msk.bf16.mxu1 %vm263_vm2, %v1709_v21 }
  0x22   :  { %1629 = vmatmul.mubr.msk.bf16.gmra.mrb[12].mxu0 %vm263_vm2, %v1694_v18  ;;  %1661 = vmatmul.mubr.msk.bf16.gmra.mrb[12].mxu1 %vm263_vm2, %v1710_v24 }
  0x23   :  { %1632 = vmatprep.mubr.msk.bf16.mxu0 %vm263_vm2, %v1695_v19  ;;  %1664 = vmatprep.mubr.msk.bf16.mxu1 %vm263_vm2, %v1711_v25 }
  0x2a   :  { %1633 = vmatmul.mubr.msk.bf16.gmra.mrb[16].mxu0 %vm263_vm2, %v1696_v22  ;;  %1665 = vmatmul.mubr.msk.bf16.gmra.mrb[16].mxu1 %vm263_vm2, %v1712_v28 }
  0x2b   :  { %1636 = vmatprep.mubr.msk.bf16.mxu0 %vm263_vm2, %v1697_v23  ;;  %1668 = vmatprep.mubr.msk.bf16.mxu1 %vm263_vm2, %v1713_v29 }
  0x32   :  { %1637 = vmatmul.mubr.msk.bf16.gmra.mrb[20].mxu0 %vm263_vm2, %v1698_v26  ;;  %1669 = vmatmul.mubr.msk.bf16.gmra.mrb[20].mxu1 %vm263_vm2, %v1714_v32 }
  0x33   :  { %1640 = vmatprep.mubr.msk.bf16.mxu0 %vm263_vm2, %v1699_v27  ;;  %1672 = vmatprep.mubr.msk.bf16.mxu1 %vm263_vm2, %v1715_v33 }
  0x3a   :  { %1641 = vmatmul.mubr.msk.bf16.gmra.mrb[24].mxu0 %vm263_vm2, %v1700_v30  ;;  %1673 = vmatmul.mubr.msk.bf16.gmra.mrb[24].mxu1 %vm263_vm2, %v1716_v35 }
  0x3b   :  { %1644 = vmatprep.mubr.msk.bf16.mxu0 %vm263_vm2, %v1701_v31  ;;  %1676 = vmatprep.mubr.msk.bf16.mxu1 %vm263_vm2, %v1717_v36 }
  0x42   :  { %1645 = vmatmul.mubr.msk.bf16.gmra.mrb[28].mxu0 %vm263_vm2, %v1702_v34  ;;  %1677 = vmatmul.mubr.msk.bf16.gmra.mrb[28].mxu1 %vm263_vm2, %v1718_v37 }
  0xdd   :  { %v1618_v39 = vpop.f32.mrb[0].mxu0  ;;  %v1650_v11 = vpop.f32.mrb[0].mxu1 }
  0xde   :  { %v410_v40 = vadd.f32 %v1618_v39, %v1883_v38  ;;  %v401_v41 = vpop.f32.mrb[1].mxu0  ;;  %v538_v15 = vadd.f32 %v1650_v11, %v1883_v38  ;;  %v1916_v16 = vpop.f32.mrb[1].mxu1 }
  0xdf   :  { %v402_v42 = vadd.f32 %v1883_v38, %v401_v41  ;;  %v1619_v43 = vpop.f32.mrb[2].mxu0  ;;  %v1920_v21 = vpop.f32.mrb[2].mxu1 }
  0xe0   :  { %v658_v44 = vmax.f32 %v410_v40, 0.0  ;;  %v413_v45 = vadd.f32 %v1619_v43, %v1883_v38  ;;  %v404_v46 = vpop.f32.mrb[3].mxu0  ;;  %v1923_v26 = vpop.f32.mrb[3].mxu1  ;;  %v1934_v33 = vmax.f32 %v538_v15, 0.0 }
  0xe1   :  { %v656_v47 = vmax.f32 %v402_v42, 0.0  ;;  %v405_v48 = vadd.f32 %v1883_v38, %v404_v46 }
  0xe2   :  { %v1516_v49 = vpack.c.bf16 %v658_v44, %v658_v44  ;;  %v659_v50 = vmax.f32 %v413_v45, 0.0  ;;  %v1179_v54 = vmul.f32 %v658_v44, %v658_v44  ;;  %v1045_v1 = vsel %vm1041_vm4, %v658_v44, 0.0 }
  0xe3   :  { %v1514_v51 = vpack.c.bf16 %v656_v47, %v656_v47  ;;  %v1177_v52 = vmul.f32 %v656_v47, %v656_v47  ;;  %v657_v53 = vmax.f32 %v405_v48, 0.0  ;;  %v1042_v56 = vsel %vm1041_vm4, %v656_v47, 0.0 }
  0xe4   :  { %979 = vst.msk [vmem:[%s2454_s3 + $0x8] sm:$0xf] %vm976_vm3, %v1516_v49  ;;  %v1517_v55 = vpack.c.bf16 %v659_v50, %v659_v50  ;;  %v1180_v61 = vmul.f32 %v659_v50, %v659_v50  ;;  %v1244_v12 = vsel %vm1041_vm4, %v1179_v54, 0.0  ;;  %v1047_v17 = vsel %vm1041_vm4, %v659_v50, 0.0 }
  0xe5   :  { %977 = vst.msk [vmem:[%s2454_s3] sm:$0xf] %vm976_vm3, %v1514_v51  ;;  %v1515_v57 = vpack.c.bf16 %v657_v53, %v657_v53  ;;  %v1043_v58 = vsel %vm1041_vm4, %v657_v53, 0.0  ;;  %v1178_v59 = vmul.f32 %v657_v53, %v657_v53  ;;  %v1622_v60 = vpop.f32.mrb[4].mxu0  ;;  %v1241_v2 = vsel %vm1041_vm4, %v1177_v52, 0.0  ;;  %v1945_v50 = vpop.f32.mrb[4].mxu1 }
  0xe6   :  { %980 = vst.msk [vmem:[%s2454_s3 + $0xc] sm:$0xf] %vm976_vm3, %v1517_v55  ;;  %v1044_v62 = vadd.f32 %v1043_v58, %v1042_v56  ;;  %v426_v63 = vadd.f32 %v1622_v60, %v1883_v38  ;;  %v417_v0 = vpop.f32.mrb[5].mxu0  ;;  %v1246_v18 = vsel %vm1041_vm4, %v1180_v61, 0.0  ;;  %v1548_v54 = vpack.c.bf16 %v1934_v33, %v1934_v33  ;;  %v1955_v55 = vpop.f32.mrb[5].mxu1 }
  0xe7   :  { %978 = vst.msk [vmem:[%s2454_s3 + $0x4] sm:$0xf] %vm976_vm3, %v1515_v57  ;;  %v1242_v3 = vsel %vm1041_vm4, %v1178_v59, 0.0  ;;  %v418_v4 = vadd.f32 %v1883_v38, %v417_v0  ;;  %v1623_v5 = vpop.f32.mrb[6].mxu0  ;;  %v1957_v60 = vpop.f32.mrb[6].mxu1 }
  0xe8   :  { %v1046_v6 = vadd.f32 %v1045_v1, %v1044_v62  ;;  %v1243_v7 = vadd.f32 %v1242_v3, %v1241_v2  ;;  %v662_v8 = vmax.f32 %v426_v63, 0.0  ;;  %v429_v9 = vadd.f32 %v1623_v5, %v1883_v38  ;;  %v420_v10 = vpop.f32.mrb[7].mxu0  ;;  %1011 = vst.msk [vmem:[%s2454_s3 + $0x88] sm:$0xf] %vm976_vm3, %v1548_v54  ;;  %v1965_v1 = vpop.f32.mrb[7].mxu1 }
  0xe9   :  { %v660_v13 = vmax.f32 %v418_v4, 0.0  ;;  %v421_v14 = vadd.f32 %v1883_v38, %v420_v10 }
  0xea   :  { %v1245_v19 = vadd.f32 %v1244_v12, %v1243_v7  ;;  %v1520_v20 = vpack.c.bf16 %v662_v8, %v662_v8  ;;  %v1048_v23 = vadd.f32 %v1047_v17, %v1046_v6  ;;  %v663_v28 = vmax.f32 %v429_v9, 0.0 }
  0xeb   :  { %v1518_v22 = vpack.c.bf16 %v660_v13, %v660_v13  ;;  %v1049_v24 = vsel %vm1041_vm4, %v660_v13, 0.0  ;;  %v1181_v25 = vmul.f32 %v660_v13, %v660_v13  ;;  %v661_v29 = vmax.f32 %v421_v14, 0.0 }
  0xec   :  { %983 = vst.msk [vmem:[%s2454_s3 + $0x18] sm:$0xf] %vm976_vm3, %v1520_v20  ;;  %v1247_v27 = vadd.f32 %v1246_v18, %v1245_v19  ;;  %v1050_v30 = vadd.f32 %v1049_v24, %v1048_v23  ;;  %v1053_v34 = vsel %vm1041_vm4, %v662_v8, 0.0  ;;  %v1183_v35 = vmul.f32 %v662_v8, %v662_v8 }
  0xed   :  { %981 = vst.msk [vmem:[%s2454_s3 + $0x10] sm:$0xf] %vm976_vm3, %v1518_v22  ;;  %v1248_v31 = vsel %vm1041_vm4, %v1181_v25, 0.0  ;;  %v1626_v32 = vpop.f32.mrb[8].mxu0  ;;  %v1521_v37 = vpack.c.bf16 %v663_v28, %v663_v28  ;;  %v1519_v40 = vpack.c.bf16 %v661_v29, %v661_v29  ;;  %v1051_v41 = vsel %vm1041_vm4, %v661_v29, 0.0 }
  0xee   :  { %v1249_v36 = vadd.f32 %v1248_v31, %v1247_v27  ;;  %v433_v39 = vpop.f32.mrb[9].mxu0  ;;  %v1182_v42 = vmul.f32 %v661_v29, %v661_v29  ;;  %v442_v43 = vadd.f32 %v1626_v32, %v1883_v38  ;;  %v1184_v45 = vmul.f32 %v663_v28, %v663_v28 }
  0xef   :  { %v1627_v44 = vpop.f32.mrb[10].mxu0  ;;  %984 = vst.msk [vmem:[%s2454_s3 + $0x1c] sm:$0xf] %vm976_vm3, %v1521_v37  ;;  %v1052_v46 = vadd.f32 %v1051_v41, %v1050_v30  ;;  %v434_v47 = vadd.f32 %v1883_v38, %v433_v39  ;;  %982 = vst.msk [vmem:[%s2454_s3 + $0x14] sm:$0xf] %vm976_vm3, %v1519_v40  ;;  %v1252_v61 = vsel %vm1041_vm4, %v1183_v35, 0.0 }
  0xf0   :  { %v445_v48 = vadd.f32 %v1627_v44, %v1883_v38  ;;  %v436_v49 = vpop.f32.mrb[11].mxu0  ;;  %v1250_v51 = vsel %vm1041_vm4, %v1182_v42, 0.0  ;;  %v666_v52 = vmax.f32 %v442_v43, 0.0  ;;  %v1055_v62 = vsel %vm1041_vm4, %v663_v28, 0.0  ;;  %v1990_v28 = vpop.f32.mrb[8].mxu1 }
  0xf1   :  { %v437_v53 = vadd.f32 %v1883_v38, %v436_v49  ;;  %v1054_v56 = vadd.f32 %v1053_v34, %v1052_v46  ;;  %v1251_v57 = vadd.f32 %v1250_v51, %v1249_v36  ;;  %v664_v58 = vmax.f32 %v434_v47, 0.0  ;;  %v1994_v34 = vpop.f32.mrb[9].mxu1 }
  0xf2   :  { %v667_v59 = vmax.f32 %v445_v48, 0.0  ;;  %v1524_v63 = vpack.c.bf16 %v666_v52, %v666_v52  ;;  %v1254_v6 = vsel %vm1041_vm4, %v1184_v45, 0.0  ;;  %v1187_v10 = vmul.f32 %v666_v52, %v666_v52  ;;  %v1997_v40 = vpop.f32.mrb[10].mxu1 }
  0xf3   :  { %v665_v0 = vmax.f32 %v437_v53, 0.0  ;;  %v1253_v2 = vadd.f32 %v1252_v61, %v1251_v57  ;;  %v1522_v3 = vpack.c.bf16 %v664_v58, %v664_v58  ;;  %v1056_v4 = vadd.f32 %v1055_v62, %v1054_v56  ;;  %v2001_v45 = vpop.f32.mrb[11].mxu1 }
  0xf4   :  { %v1057_v5 = vsel %vm1041_vm4, %v664_v58, 0.0  ;;  %987 = vst.msk [vmem:[%s2454_s3 + $0x28] sm:$0xf] %vm976_vm3, %v1524_v63  ;;  %v1185_v7 = vmul.f32 %v664_v58, %v664_v58  ;;  %v1525_v8 = vpack.c.bf16 %v667_v59, %v667_v59  ;;  %v1061_v22 = vsel %vm1041_vm4, %v666_v52, 0.0 }
  0xf5   :  { %v1630_v9 = vpop.f32.mrb[12].mxu0  ;;  %985 = vst.msk [vmem:[%s2454_s3 + $0x20] sm:$0xf] %vm976_vm3, %v1522_v3  ;;  %v1058_v11 = vadd.f32 %v1057_v5, %v1056_v4  ;;  %v1255_v12 = vadd.f32 %v1254_v6, %v1253_v2  ;;  %v1523_v13 = vpack.c.bf16 %v665_v0, %v665_v0  ;;  %v1059_v17 = vsel %vm1041_vm4, %v665_v0, 0.0 }
  0xf6   :  { %v449_v14 = vpop.f32.mrb[13].mxu0  ;;  %v1256_v15 = vsel %vm1041_vm4, %v1185_v7, 0.0  ;;  %988 = vst.msk [vmem:[%s2454_s3 + $0x2c] sm:$0xf] %vm976_vm3, %v1525_v8  ;;  %v1186_v18 = vmul.f32 %v665_v0, %v665_v0  ;;  %v458_v19 = vadd.f32 %v1630_v9, %v1883_v38  ;;  %v1188_v29 = vmul.f32 %v667_v59, %v667_v59  ;;  %v2024_v8 = vpop.f32.mrb[12].mxu1 }
  0xf7   :  { %v1631_v20 = vpop.f32.mrb[14].mxu0  ;;  %v1257_v23 = vadd.f32 %v1256_v15, %v1255_v12  ;;  %986 = vst.msk [vmem:[%s2454_s3 + $0x24] sm:$0xf] %vm976_vm3, %v1523_v13  ;;  %v1060_v24 = vadd.f32 %v1059_v17, %v1058_v11  ;;  %v450_v25 = vadd.f32 %v1883_v38, %v449_v14  ;;  %v1260_v41 = vsel %vm1041_vm4, %v1187_v10, 0.0  ;;  %v2026_v13 = vpop.f32.mrb[13].mxu1 }
  0xf8   :  { %v452_v27 = vpop.f32.mrb[15].mxu0  ;;  %v1258_v30 = vsel %vm1041_vm4, %v1186_v18, 0.0  ;;  %v670_v31 = vmax.f32 %v458_v19, 0.0  ;;  %v461_v32 = vadd.f32 %v1631_v20, %v1883_v38  ;;  %v1063_v42 = vsel %vm1041_vm4, %v667_v59, 0.0  ;;  %v2036_v19 = vpop.f32.mrb[14].mxu1 }
  0xf9   :  { %v1062_v35 = vadd.f32 %v1061_v22, %v1060_v24  ;;  %v1259_v36 = vadd.f32 %v1258_v30, %v1257_v23  ;;  %v668_v37 = vmax.f32 %v450_v25, 0.0  ;;  %v453_v39 = vadd.f32 %v1883_v38, %v452_v27  ;;  %v2040_v25 = vpop.f32.mrb[15].mxu1 }
  0xfa   :  { %v1528_v43 = vpack.c.bf16 %v670_v31, %v670_v31  ;;  %v671_v44 = vmax.f32 %v461_v32, 0.0  ;;  %v1262_v51 = vsel %vm1041_vm4, %v1188_v29, 0.0  ;;  %v530_v61 = vadd.f32 %v1883_v38, %v1916_v16 }
  0xfb   :  { %v1261_v46 = vadd.f32 %v1260_v41, %v1259_v36  ;;  %v1526_v47 = vpack.c.bf16 %v668_v37, %v668_v37  ;;  %v1064_v48 = vadd.f32 %v1063_v42, %v1062_v35  ;;  %v1065_v49 = vsel %vm1041_vm4, %v668_v37, 0.0 }
  0xfc   :  { %991 = vst.msk [vmem:[%s2454_s3 + $0x38] sm:$0xf] %vm976_vm3, %v1528_v43  ;;  %v1189_v52 = vmul.f32 %v668_v37, %v668_v37  ;;  %v1529_v53 = vpack.c.bf16 %v671_v44, %v671_v44  ;;  %v669_v58 = vmax.f32 %v453_v39, 0.0  ;;  %v1191_v62 = vmul.f32 %v670_v31, %v670_v31 }
  0xfd   :  { %v1634_v54 = vpop.f32.mrb[16].mxu0  ;;  %989 = vst.msk [vmem:[%s2454_s3 + $0x30] sm:$0xf] %vm976_vm3, %v1526_v47  ;;  %v1066_v56 = vadd.f32 %v1065_v49, %v1064_v48  ;;  %v1263_v57 = vadd.f32 %v1262_v51, %v1261_v46  ;;  %v1069_v4 = vsel %vm1041_vm4, %v670_v31, 0.0  ;;  %v1192_v14 = vmul.f32 %v671_v44, %v671_v44 }
  0xfe   :  { %v465_v59 = vpop.f32.mrb[17].mxu0  ;;  %v1264_v63 = vsel %vm1041_vm4, %v1189_v52, 0.0  ;;  %992 = vst.msk [vmem:[%s2454_s3 + $0x3c] sm:$0xf] %vm976_vm3, %v1529_v53  ;;  %v474_v0 = vadd.f32 %v1634_v54, %v1883_v38  ;;  %v1527_v6 = vpack.c.bf16 %v669_v58, %v669_v58  ;;  %v1067_v7 = vsel %vm1041_vm4, %v669_v58, 0.0 }
  0xff   :  { %v466_v2 = vadd.f32 %v1883_v38, %v465_v59  ;;  %v1635_v3 = vpop.f32.mrb[18].mxu0  ;;  %v1265_v5 = vadd.f32 %v1264_v63, %v1263_v57  ;;  %v1068_v9 = vadd.f32 %v1067_v7, %v1066_v56  ;;  %v1190_v10 = vmul.f32 %v669_v58, %v669_v58  ;;  %v2063_v59 = vpop.f32.mrb[16].mxu1 }
 0x100   :  { %v468_v16 = vpop.f32.mrb[19].mxu0  ;;  %v674_v11 = vmax.f32 %v474_v0, 0.0  ;;  %990 = vst.msk [vmem:[%s2454_s3 + $0x34] sm:$0xf] %vm976_vm3, %v1527_v6  ;;  %v477_v15 = vadd.f32 %v1635_v3, %v1883_v38  ;;  %v2034_v18 = vmax.f32 %v530_v61, 0.0  ;;  %v1268_v20 = vsel %vm1041_vm4, %v1191_v62, 0.0 }
 0x101   :  { %v672_v12 = vmax.f32 %v466_v2, 0.0  ;;  %v469_v17 = vadd.f32 %v1883_v38, %v468_v16  ;;  %v1070_v22 = vadd.f32 %v1069_v4, %v1068_v9  ;;  %v1266_v23 = vsel %vm1041_vm4, %v1190_v10, 0.0  ;;  %v2070_v2 = vpop.f32.mrb[17].mxu1 }
 0x102   :  { %v1532_v24 = vpack.c.bf16 %v674_v11, %v674_v11  ;;  %v1071_v27 = vsel %vm1041_vm4, %v671_v44, 0.0  ;;  %v1267_v29 = vadd.f32 %v1266_v23, %v1265_v5  ;;  %v675_v36 = vmax.f32 %v477_v15, 0.0  ;;  %v2078_v7 = vpop.f32.mrb[18].mxu1 }
 0x103   :  { %v1530_v30 = vpack.c.bf16 %v672_v12, %v672_v12  ;;  %v1073_v31 = vsel %vm1041_vm4, %v672_v12, 0.0  ;;  %v1072_v32 = vadd.f32 %v1071_v27, %v1070_v22  ;;  %v1193_v35 = vmul.f32 %v672_v12, %v672_v12 }
 0x104   :  { %995 = vst.msk [vmem:[%s2454_s3 + $0x48] sm:$0xf] %vm976_vm3, %v1532_v24  ;;  %v673_v37 = vmax.f32 %v469_v17, 0.0  ;;  %v1270_v41 = vsel %vm1041_vm4, %v1192_v14, 0.0  ;;  %v1269_v42 = vadd.f32 %v1268_v20, %v1267_v29  ;;  %v1546_v46 = vpack.c.bf16 %v2034_v18, %v2034_v18 }
 0x105   :  { %v1638_v39 = vpop.f32.mrb[20].mxu0  ;;  %993 = vst.msk [vmem:[%s2454_s3 + $0x40] sm:$0xf] %vm976_vm3, %v1530_v30  ;;  %v1077_v47 = vsel %vm1041_vm4, %v674_v11, 0.0  ;;  %v1074_v48 = vadd.f32 %v1073_v31, %v1072_v32  ;;  %v1272_v49 = vsel %vm1041_vm4, %v1193_v35, 0.0  ;;  %v1533_v51 = vpack.c.bf16 %v675_v36, %v675_v36 }
 0x106   :  { %v490_v43 = vadd.f32 %v1638_v39, %v1883_v38  ;;  %v481_v44 = vpop.f32.mrb[21].mxu0  ;;  %v1195_v53 = vmul.f32 %v674_v11, %v674_v11  ;;  %v1271_v54 = vadd.f32 %v1270_v41, %v1269_v42  ;;  %v1531_v56 = vpack.c.bf16 %v673_v37, %v673_v37  ;;  %1009 = vst.msk [vmem:[%s2454_s3 + $0x80] sm:$0xf] %vm976_vm3, %v1546_v46  ;;  %v2081_v11 = vpop.f32.mrb[19].mxu1 }
 0x107   :  { %v1639_v52 = vpop.f32.mrb[22].mxu0  ;;  %v1075_v57 = vsel %vm1041_vm4, %v673_v37, 0.0  ;;  %996 = vst.msk [vmem:[%s2454_s3 + $0x4c] sm:$0xf] %vm976_vm3, %v1533_v51  ;;  %v1194_v62 = vmul.f32 %v673_v37, %v673_v37  ;;  %v482_v0 = vadd.f32 %v1883_v38, %v481_v44  ;;  %v1196_v4 = vmul.f32 %v675_v36, %v675_v36 }
 0x108   :  { %v484_v58 = vpop.f32.mrb[23].mxu0  ;;  %v1076_v61 = vadd.f32 %v1075_v57, %v1074_v48  ;;  %v678_v63 = vmax.f32 %v490_v43, 0.0  ;;  %v1273_v3 = vadd.f32 %v1272_v49, %v1271_v54  ;;  %994 = vst.msk [vmem:[%s2454_s3 + $0x44] sm:$0xf] %vm976_vm3, %v1531_v56  ;;  %v493_v5 = vadd.f32 %v1639_v52, %v1883_v38  ;;  %v2097_v48 = vpop.f32.mrb[20].mxu1 }
 0x109   :  { %v485_v6 = vadd.f32 %v1883_v38, %v484_v58  ;;  %v1274_v9 = vsel %vm1041_vm4, %v1194_v62, 0.0  ;;  %v1079_v12 = vsel %vm1041_vm4, %v675_v36, 0.0  ;;  %v676_v15 = vmax.f32 %v482_v0, 0.0  ;;  %v2105_v54 = vpop.f32.mrb[21].mxu1 }
 0x10a   :  { %v1078_v16 = vadd.f32 %v1077_v47, %v1076_v61  ;;  %v1536_v10 = vpack.c.bf16 %v678_v63, %v678_v63  ;;  %v1275_v14 = vadd.f32 %v1274_v9, %v1273_v3  ;;  %v679_v17 = vmax.f32 %v493_v5, 0.0  ;;  %v2114_v62 = vpop.f32.mrb[22].mxu1 }
 0x10b   :  { %v1276_v20 = vsel %vm1041_vm4, %v1195_v53, 0.0  ;;  %v677_v23 = vmax.f32 %v485_v6, 0.0  ;;  %v1278_v27 = vsel %vm1041_vm4, %v1196_v4, 0.0  ;;  %v1534_v30 = vpack.c.bf16 %v676_v15, %v676_v15  ;;  %v2117_v5 = vpop.f32.mrb[23].mxu1 }
 0x10c   :  { %999 = vst.msk [vmem:[%s2454_s3 + $0x58] sm:$0xf] %vm976_vm3, %v1536_v10  ;;  %v1080_v22 = vadd.f32 %v1079_v12, %v1078_v16  ;;  %v1277_v29 = vadd.f32 %v1276_v20, %v1275_v14  ;;  %v1081_v31 = vsel %vm1041_vm4, %v676_v15, 0.0  ;;  %v1085_v35 = vsel %vm1041_vm4, %v678_v63, 0.0 }
 0x10d   :  { %v1642_v24 = vpop.f32.mrb[24].mxu0  ;;  %v1197_v37 = vmul.f32 %v676_v15, %v676_v15  ;;  %v1537_v39 = vpack.c.bf16 %v679_v17, %v679_v17  ;;  %v1199_v42 = vmul.f32 %v678_v63, %v678_v63  ;;  %997 = vst.msk [vmem:[%s2454_s3 + $0x50] sm:$0xf] %vm976_vm3, %v1534_v30  ;;  %v1535_v44 = vpack.c.bf16 %v677_v23, %v677_v23 }
 0x10e   :  { %v497_v32 = vpop.f32.mrb[25].mxu0  ;;  %v1082_v36 = vadd.f32 %v1081_v31, %v1080_v22  ;;  %v1279_v43 = vadd.f32 %v1278_v27, %v1277_v29  ;;  %v1083_v46 = vsel %vm1041_vm4, %v677_v23, 0.0  ;;  %v1198_v52 = vmul.f32 %v677_v23, %v677_v23 }
 0x10f   :  { %v1643_v41 = vpop.f32.mrb[26].mxu0  ;;  %v1280_v49 = vsel %vm1041_vm4, %v1197_v37, 0.0  ;;  %1000 = vst.msk [vmem:[%s2454_s3 + $0x5c] sm:$0xf] %vm976_vm3, %v1537_v39  ;;  %v506_v53 = vadd.f32 %v1642_v24, %v1883_v38  ;;  %v1087_v57 = vsel %vm1041_vm4, %v679_v17, 0.0  ;;  %v498_v58 = vadd.f32 %v1883_v38, %v497_v32 }
 0x110   :  { %v500_v47 = vpop.f32.mrb[27].mxu0  ;;  %v1084_v51 = vadd.f32 %v1083_v46, %v1082_v36  ;;  %v1281_v56 = vadd.f32 %v1280_v49, %v1279_v43  ;;  %998 = vst.msk [vmem:[%s2454_s3 + $0x54] sm:$0xf] %vm976_vm3, %v1535_v44  ;;  %v509_v61 = vadd.f32 %v1643_v41, %v1883_v38  ;;  %v1200_v63 = vmul.f32 %v679_v17, %v679_v17 }
 0x111   :  { %v1282_v3 = vsel %vm1041_vm4, %v1198_v52, 0.0  ;;  %v682_v4 = vmax.f32 %v506_v53, 0.0  ;;  %v680_v16 = vmax.f32 %v498_v58, 0.0  ;;  %v501_v10 = vadd.f32 %v1883_v38, %v500_v47 }
 0x112   :  { %v1086_v0 = vadd.f32 %v1085_v35, %v1084_v51  ;;  %v1283_v6 = vadd.f32 %v1282_v3, %v1281_v56  ;;  %v683_v9 = vmax.f32 %v509_v61, 0.0  ;;  %v1284_v12 = vsel %vm1041_vm4, %v1199_v42, 0.0  ;;  %v2133_v42 = vpop.f32.mrb[24].mxu1 }
 0x113   :  { %v1540_v14 = vpack.c.bf16 %v682_v4, %v682_v4  ;;  %v1538_v23 = vpack.c.bf16 %v680_v16, %v680_v16  ;;  %v1089_v17 = vsel %vm1041_vm4, %v680_v16, 0.0  ;;  %v1201_v24 = vmul.f32 %v680_v16, %v680_v16  ;;  %v2143_v49 = vpop.f32.mrb[25].mxu1 }
 0x114   :  { %v1088_v15 = vadd.f32 %v1087_v57, %v1086_v0  ;;  %v1285_v22 = vadd.f32 %v1284_v12, %v1283_v6  ;;  %v1286_v29 = vsel %vm1041_vm4, %v1200_v63, 0.0  ;;  %v1541_v31 = vpack.c.bf16 %v683_v9, %v683_v9  ;;  %v2146_v57 = vpop.f32.mrb[26].mxu1 }
 0x115   :  { %v1646_v20 = vpop.f32.mrb[28].mxu0  ;;  %1003 = vst.msk [vmem:[%s2454_s3 + $0x68] sm:$0xf] %vm976_vm3, %v1540_v14  ;;  %v1093_v35 = vsel %vm1041_vm4, %v682_v4, 0.0  ;;  %1001 = vst.msk [vmem:[%s2454_s3 + $0x60] sm:$0xf] %vm976_vm3, %v1538_v23  ;;  %v1203_v51 = vmul.f32 %v682_v4, %v682_v4  ;;  %v1204_v16 = vmul.f32 %v683_v9, %v683_v9 }
 0x116   :  { %v513_v27 = vpop.f32.mrb[29].mxu0  ;;  %v1090_v30 = vadd.f32 %v1089_v17, %v1088_v15  ;;  %v1287_v36 = vadd.f32 %v1286_v29, %v1285_v22  ;;  %v1288_v37 = vsel %vm1041_vm4, %v1201_v24, 0.0  ;;  %v681_v39 = vmax.f32 %v501_v10, 0.0  ;;  %1004 = vst.msk [vmem:[%s2454_s3 + $0x6c] sm:$0xf] %vm976_vm3, %v1541_v31  ;;  %v2148_v3 = vpop.f32.mrb[27].mxu1 }
 0x117   :  { %v1647_v32 = vpop.f32.mrb[30].mxu0  ;;  %v522_v43 = vadd.f32 %v1646_v20, %v1883_v38  ;;  %v514_v44 = vadd.f32 %v1883_v38, %v513_v27  ;;  %v1095_v6 = vsel %vm1041_vm4, %v683_v9, 0.0  ;;  %v541_v20 = vadd.f32 %v1920_v21, %v1883_v38 }
 0x118   :  { %v516_v41 = vpop.f32.mrb[31].mxu0  ;;  %v525_v46 = vadd.f32 %v1647_v32, %v1883_v38  ;;  %v1289_v52 = vadd.f32 %v1288_v37, %v1287_v36  ;;  %v1539_v53 = vpack.c.bf16 %v681_v39, %v681_v39  ;;  %v1091_v56 = vsel %vm1041_vm4, %v681_v39, 0.0 }
 0x119   :  { %v517_v47 = vadd.f32 %v1883_v38, %v516_v41  ;;  %v1092_v58 = vadd.f32 %v1091_v56, %v1090_v30  ;;  %v1202_v61 = vmul.f32 %v681_v39, %v681_v39  ;;  %v686_v63 = vmax.f32 %v522_v43, 0.0 }
 0x11a   :  { %v684_v0 = vmax.f32 %v514_v44, 0.0  ;;  %1002 = vst.msk [vmem:[%s2454_s3 + $0x64] sm:$0xf] %vm976_vm3, %v1539_v53  ;;  %v687_v4 = vmax.f32 %v525_v46, 0.0  ;;  %v533_v9 = vadd.f32 %v1883_v38, %v1923_v26  ;;  %v1292_v24 = vsel %vm1041_vm4, %v1203_v51, 0.0  ;;  %v2171_v26 = vpop.f32.mrb[28].mxu1 }
 0x11b   :  { %v685_v10 = vmax.f32 %v517_v47, 0.0  ;;  %v1094_v12 = vadd.f32 %v1093_v35, %v1092_v58  ;;  %v1290_v14 = vsel %vm1041_vm4, %v1202_v61, 0.0  ;;  %v1544_v15 = vpack.c.bf16 %v686_v63, %v686_v63  ;;  %v2179_v41 = vpop.f32.mrb[29].mxu1 }
 0x11c   :  { %v1291_v22 = vadd.f32 %v1290_v14, %v1289_v52  ;;  %v1542_v23 = vpack.c.bf16 %v684_v0, %v684_v0  ;;  %v1097_v17 = vsel %vm1041_vm4, %v684_v0, 0.0  ;;  %v1205_v29 = vmul.f32 %v684_v0, %v684_v0  ;;  %v2185_v51 = vpop.f32.mrb[30].mxu1 }
 0x11d   :  { %1007 = vst.msk [vmem:[%s2454_s3 + $0x78] sm:$0xf] %vm976_vm3, %v1544_v15  ;;  %v1096_v27 = vadd.f32 %v1095_v6, %v1094_v12  ;;  %v1545_v30 = vpack.c.bf16 %v687_v4, %v687_v4  ;;  %v1294_v31 = vsel %vm1041_vm4, %v1204_v16, 0.0  ;;  %v1543_v32 = vpack.c.bf16 %v685_v10, %v685_v10  ;;  %v2192_v61 = vpop.f32.mrb[31].mxu1 }
 0x11e   :  { %v1293_v21 = vadd.f32 %v1292_v24, %v1291_v22  ;;  %1005 = vst.msk [vmem:[%s2454_s3 + $0x70] sm:$0xf] %vm976_vm3, %v1542_v23  ;;  %v1296_v36 = vsel %vm1041_vm4, %v1205_v29, 0.0  ;;  %v1099_v37 = vsel %vm1041_vm4, %v685_v10, 0.0  ;;  %v1206_v39 = vmul.f32 %v685_v10, %v685_v10 }
 0x11f   :  { %v1098_v35 = vadd.f32 %v1097_v17, %v1096_v27  ;;  %1008 = vst.msk [vmem:[%s2454_s3 + $0x7c] sm:$0xf] %vm976_vm3, %v1545_v30  ;;  %v1207_v43 = vmul.f32 %v686_v63, %v686_v63  ;;  %1006 = vst.msk [vmem:[%s2454_s3 + $0x74] sm:$0xf] %vm976_vm3, %v1543_v32  ;;  %v691_v46 = vmax.f32 %v541_v20, 0.0  ;;  %v689_v47 = vmax.f32 %v533_v9, 0.0 }
 0x120   :  { %v1295_v44 = vadd.f32 %v1294_v31, %v1293_v21  ;;  %v1298_v53 = vsel %vm1041_vm4, %v1206_v39, 0.0  ;;  %v554_v56 = vadd.f32 %v1945_v50, %v1883_v38  ;;  %v546_v58 = vadd.f32 %v1883_v38, %v1955_v55 }
 0x121   :  { %v1100_v52 = vadd.f32 %v1099_v37, %v1098_v35  ;;  %v1101_v0 = vsel %vm1041_vm4, %v686_v63, 0.0  ;;  %v1209_v16 = vmul.f32 %v2034_v18, %v2034_v18  ;;  %v1549_v10 = vpack.c.bf16 %v691_v46, %v691_v46 }
 0x122   :  { %v1297_v6 = vadd.f32 %v1296_v36, %v1295_v44  ;;  %v1208_v12 = vmul.f32 %v687_v4, %v687_v4  ;;  %v1105_v15 = vsel %vm1041_vm4, %v2034_v18, 0.0  ;;  %v1547_v20 = vpack.c.bf16 %v689_v47, %v689_v47 }
 0x123   :  { %v1102_v14 = vadd.f32 %v1101_v0, %v1100_v52  ;;  %v1103_v50 = vsel %vm1041_vm4, %v687_v4, 0.0  ;;  %1012 = vst.msk [vmem:[%s2454_s3 + $0x8c] sm:$0xf] %vm976_vm3, %v1549_v10  ;;  %v694_v55 = vmax.f32 %v554_v56, 0.0  ;;  %v692_v63 = vmax.f32 %v546_v58, 0.0 }
 0x124   :  { %v1299_v22 = vadd.f32 %v1298_v53, %v1297_v6  ;;  %v1300_v23 = vsel %vm1041_vm4, %v1207_v43, 0.0  ;;  %1010 = vst.msk [vmem:[%s2454_s3 + $0x84] sm:$0xf] %vm976_vm3, %v1547_v20  ;;  %v557_v18 = vadd.f32 %v1957_v60, %v1883_v38  ;;  %v549_v4 = vadd.f32 %v1883_v38, %v1965_v1 }
 0x125   :  { %v1104_v17 = vadd.f32 %v1103_v50, %v1102_v14  ;;  %v1109_v24 = vsel %vm1041_vm4, %v1934_v33, 0.0  ;;  %v1304_v27 = vsel %vm1041_vm4, %v1209_v16, 0.0  ;;  %v1552_v29 = vpack.c.bf16 %v694_v55, %v694_v55 }
 0x126   :  { %v1301_v9 = vadd.f32 %v1300_v23, %v1299_v22  ;;  %v1302_v30 = vsel %vm1041_vm4, %v1208_v12, 0.0  ;;  %v1210_v21 = vmul.f32 %v689_v47, %v689_v47  ;;  %v1550_v32 = vpack.c.bf16 %v692_v63, %v692_v63 }
 0x127   :  { %v1106_v31 = vadd.f32 %v1105_v15, %v1104_v17  ;;  %v1107_v36 = vsel %vm1041_vm4, %v689_v47, 0.0  ;;  %1015 = vst.msk [vmem:[%s2454_s3 + $0x98] sm:$0xf] %vm976_vm3, %v1552_v29  ;;  %v695_v60 = vmax.f32 %v557_v18, 0.0  ;;  %v693_v1 = vmax.f32 %v549_v4, 0.0 }
 0x128   :  { %v1303_v35 = vadd.f32 %v1302_v30, %v1301_v9  ;;  %v1211_v37 = vmul.f32 %v1934_v33, %v1934_v33  ;;  %1013 = vst.msk [vmem:[%s2454_s3 + $0x90] sm:$0xf] %vm976_vm3, %v1550_v32  ;;  %v570_v43 = vadd.f32 %v1990_v28, %v1883_v38  ;;  %v562_v44 = vadd.f32 %v1883_v38, %v1994_v34 }
 0x129   :  { %v1108_v39 = vadd.f32 %v1107_v36, %v1106_v31  ;;  %v1111_v52 = vsel %vm1041_vm4, %v691_v46, 0.0  ;;  %v1212_v53 = vmul.f32 %v691_v46, %v691_v46  ;;  %v1553_v56 = vpack.c.bf16 %v695_v60, %v695_v60 }
 0x12a   :  { %v1305_v47 = vadd.f32 %v1304_v27, %v1303_v35  ;;  %v1306_v33 = vsel %vm1041_vm4, %v1210_v21, 0.0  ;;  %v1213_v0 = vmul.f32 %v692_v63, %v692_v63  ;;  %v1551_v6 = vpack.c.bf16 %v693_v1, %v693_v1 }
 0x12b   :  { %v1110_v58 = vadd.f32 %v1109_v24, %v1108_v39  ;;  %v1113_v10 = vsel %vm1041_vm4, %v692_v63, 0.0  ;;  %1016 = vst.msk [vmem:[%s2454_s3 + $0x9c] sm:$0xf] %vm976_vm3, %v1553_v56  ;;  %v698_v28 = vmax.f32 %v570_v43, 0.0  ;;  %v696_v34 = vmax.f32 %v562_v44, 0.0 }
 0x12c   :  { %v1307_v16 = vadd.f32 %v1306_v33, %v1305_v47  ;;  %v1308_v12 = vsel %vm1041_vm4, %v1211_v37, 0.0  ;;  %1014 = vst.msk [vmem:[%s2454_s3 + $0x94] sm:$0xf] %vm976_vm3, %v1551_v6  ;;  %v573_v46 = vadd.f32 %v1997_v40, %v1883_v38  ;;  %v565_v15 = vadd.f32 %v1883_v38, %v2001_v45 }
 0x12d   :  { %v1112_v14 = vadd.f32 %v1111_v52, %v1110_v58  ;;  %v1310_v20 = vsel %vm1041_vm4, %v1212_v53, 0.0  ;;  %v1117_v22 = vsel %vm1041_vm4, %v694_v55, 0.0  ;;  %v1556_v63 = vpack.c.bf16 %v698_v28, %v698_v28 }
 0x12e   :  { %v1309_v50 = vadd.f32 %v1308_v12, %v1307_v16  ;;  %v1312_v17 = vsel %vm1041_vm4, %v1213_v0, 0.0  ;;  %v1214_v18 = vmul.f32 %v693_v1, %v693_v1  ;;  %v1554_v4 = vpack.c.bf16 %v696_v34, %v696_v34 }
 0x12f   :  { %v1114_v23 = vadd.f32 %v1113_v10, %v1112_v14  ;;  %v1115_v24 = vsel %vm1041_vm4, %v693_v1, 0.0  ;;  %1019 = vst.msk [vmem:[%s2454_s3 + $0xa8] sm:$0xf] %vm976_vm3, %v1556_v63  ;;  %v699_v40 = vmax.f32 %v573_v46, 0.0  ;;  %v697_v45 = vmax.f32 %v565_v15, 0.0 }
 0x130   :  { %v1311_v9 = vadd.f32 %v1310_v20, %v1309_v50  ;;  %v1215_v27 = vmul.f32 %v694_v55, %v694_v55  ;;  %1017 = vst.msk [vmem:[%s2454_s3 + $0xa0] sm:$0xf] %vm976_vm3, %v1554_v4  ;;  %v586_v30 = vadd.f32 %v2024_v8, %v1883_v38  ;;  %v578_v31 = vadd.f32 %v1883_v38, %v2026_v13 }
 0x131   :  { %v1116_v29 = vadd.f32 %v1115_v24, %v1114_v23  ;;  %v1119_v32 = vsel %vm1041_vm4, %v695_v60, 0.0  ;;  %v1216_v35 = vmul.f32 %v695_v60, %v695_v60  ;;  %v1557_v36 = vpack.c.bf16 %v699_v40, %v699_v40 }
 0x132   :  { %v1313_v21 = vadd.f32 %v1312_v17, %v1311_v9  ;;  %v1314_v55 = vsel %vm1041_vm4, %v1214_v18, 0.0  ;;  %v1217_v37 = vmul.f32 %v696_v34, %v696_v34  ;;  %v1555_v39 = vpack.c.bf16 %v697_v45, %v697_v45 }
 0x133   :  { %v1118_v1 = vadd.f32 %v1117_v22, %v1116_v29  ;;  %v1121_v44 = vsel %vm1041_vm4, %v696_v34, 0.0  ;;  %1020 = vst.msk [vmem:[%s2454_s3 + $0xac] sm:$0xf] %vm976_vm3, %v1557_v36  ;;  %v702_v8 = vmax.f32 %v586_v30, 0.0  ;;  %v700_v13 = vmax.f32 %v578_v31, 0.0 }
 0x134   :  { %v1315_v43 = vadd.f32 %v1314_v55, %v1313_v21  ;;  %v1316_v47 = vsel %vm1041_vm4, %v1215_v27, 0.0  ;;  %1018 = vst.msk [vmem:[%s2454_s3 + $0xa4] sm:$0xf] %vm976_vm3, %v1555_v39  ;;  %v589_v60 = vadd.f32 %v2036_v19, %v1883_v38  ;;  %v581_v53 = vadd.f32 %v1883_v38, %v2040_v25 }
 0x135   :  { %v1120_v52 = vadd.f32 %v1119_v32, %v1118_v1  ;;  %v1318_v56 = vsel %vm1041_vm4, %v1216_v35, 0.0  ;;  %v1125_v33 = vsel %vm1041_vm4, %v698_v28, 0.0  ;;  %v1560_v0 = vpack.c.bf16 %v702_v8, %v702_v8 }
 0x136   :  { %v1317_v58 = vadd.f32 %v1316_v47, %v1315_v43  ;;  %v1320_v16 = vsel %vm1041_vm4, %v1217_v37, 0.0  ;;  %v1218_v10 = vmul.f32 %v697_v45, %v697_v45  ;;  %v1558_v34 = vpack.c.bf16 %v700_v13, %v700_v13 }
 0x137   :  { %v1122_v6 = vadd.f32 %v1121_v44, %v1120_v52  ;;  %v1123_v14 = vsel %vm1041_vm4, %v697_v45, 0.0  ;;  %1023 = vst.msk [vmem:[%s2454_s3 + $0xb8] sm:$0xf] %vm976_vm3, %v1560_v0  ;;  %v703_v19 = vmax.f32 %v589_v60, 0.0  ;;  %v701_v25 = vmax.f32 %v581_v53, 0.0 }
 0x138   :  { %v1319_v12 = vadd.f32 %v1318_v56, %v1317_v58  ;;  %v1219_v46 = vmul.f32 %v698_v28, %v698_v28  ;;  %1021 = vst.msk [vmem:[%s2454_s3 + $0xb0] sm:$0xf] %vm976_vm3, %v1558_v34  ;;  %v602_v20 = vadd.f32 %v2063_v59, %v1883_v38  ;;  %v594_v50 = vadd.f32 %v1883_v38, %v2070_v2 }
 0x139   :  { %v1124_v15 = vadd.f32 %v1123_v14, %v1122_v6  ;;  %v1127_v63 = vsel %vm1041_vm4, %v699_v40, 0.0  ;;  %v1220_v23 = vmul.f32 %v699_v40, %v699_v40  ;;  %v1561_v17 = vpack.c.bf16 %v703_v19, %v703_v19 }
 0x13a   :  { %v1321_v22 = vadd.f32 %v1320_v16, %v1319_v12  ;;  %v1322_v28 = vsel %vm1041_vm4, %v1218_v10, 0.0  ;;  %v1221_v4 = vmul.f32 %v700_v13, %v700_v13  ;;  %v1559_v9 = vpack.c.bf16 %v701_v25, %v701_v25  ;;  %v2343_v12 = vld [vmem:[%s2453_s2] ss:$0 sm:$0xff] }
 0x13b   :  { %v1126_v18 = vadd.f32 %v1125_v33, %v1124_v15  ;;  %v1129_v45 = vsel %vm1041_vm4, %v700_v13, 0.0  ;;  %1024 = vst.msk [vmem:[%s2454_s3 + $0xbc] sm:$0xf] %vm976_vm3, %v1561_v17  ;;  %v706_v59 = vmax.f32 %v602_v20, 0.0  ;;  %v704_v2 = vmax.f32 %v594_v50, 0.0 }
 0x13c   :  { %v1323_v24 = vadd.f32 %v1322_v28, %v1321_v22  ;;  %v1324_v27 = vsel %vm1041_vm4, %v1219_v46, 0.0  ;;  %1022 = vst.msk [vmem:[%s2454_s3 + $0xb4] sm:$0xf] %vm976_vm3, %v1559_v9  ;;  %v605_v40 = vadd.f32 %v2078_v7, %v1883_v38  ;;  %v597_v30 = vadd.f32 %v1883_v38, %v2081_v11 }
 0x13d   :  { %v1128_v29 = vadd.f32 %v1127_v63, %v1126_v18  ;;  %v1326_v31 = vsel %vm1041_vm4, %v1220_v23, 0.0  ;;  %v1133_v32 = vsel %vm1041_vm4, %v702_v8, 0.0  ;;  %v1564_v35 = vpack.c.bf16 %v706_v59, %v706_v59 }
 0x13e   :  { %v1325_v21 = vadd.f32 %v1324_v27, %v1323_v24  ;;  %v1328_v1 = vsel %vm1041_vm4, %v1221_v4, 0.0  ;;  %v1222_v55 = vmul.f32 %v701_v25, %v701_v25  ;;  %v1562_v37 = vpack.c.bf16 %v704_v2, %v704_v2 }
 0x13f   :  { %v1130_v36 = vadd.f32 %v1129_v45, %v1128_v29  ;;  %v1131_v43 = vsel %vm1041_vm4, %v701_v25, 0.0  ;;  %1027 = vst.msk [vmem:[%s2454_s3 + $0xc8] sm:$0xf] %vm976_vm3, %v1564_v35  ;;  %v707_v7 = vmax.f32 %v605_v40, 0.0  ;;  %v705_v11 = vmax.f32 %v597_v30, 0.0 }
 0x140   :  { %v1327_v39 = vadd.f32 %v1326_v31, %v1325_v21  ;;  %v1223_v44 = vmul.f32 %v702_v8, %v702_v8  ;;  %1025 = vst.msk [vmem:[%s2454_s3 + $0xc0] sm:$0xf] %vm976_vm3, %v1562_v37  ;;  %v618_v47 = vadd.f32 %v2097_v48, %v1883_v38  ;;  %v610_v52 = vadd.f32 %v1883_v38, %v2105_v54 }
 0x141   :  { %v1132_v13 = vadd.f32 %v1131_v43, %v1130_v36  ;;  %v1135_v53 = vsel %vm1041_vm4, %v703_v19, 0.0  ;;  %v1224_v56 = vmul.f32 %v703_v19, %v703_v19  ;;  %v1565_v58 = vpack.c.bf16 %v707_v7, %v707_v7 }
 0x142   :  { %v1329_v60 = vadd.f32 %v1328_v1, %v1327_v39  ;;  %v1330_v8 = vsel %vm1041_vm4, %v1222_v55, 0.0  ;;  %v1225_v0 = vmul.f32 %v704_v2, %v704_v2  ;;  %v1563_v6 = vpack.c.bf16 %v705_v11, %v705_v11 }
 0x143   :  { %v1134_v33 = vadd.f32 %v1133_v32, %v1132_v13  ;;  %v1137_v10 = vsel %vm1041_vm4, %v704_v2, 0.0  ;;  %1028 = vst.msk [vmem:[%s2454_s3 + $0xcc] sm:$0xf] %vm976_vm3, %v1565_v58  ;;  %v710_v48 = vmax.f32 %v618_v47, 0.0  ;;  %v708_v38 = vmax.f32 %v610_v52, 0.0 }
 0x144   :  { %v1331_v16 = vadd.f32 %v1330_v8, %v1329_v60  ;;  %v1332_v54 = vsel %vm1041_vm4, %v1223_v44, 0.0  ;;  %1026 = vst.msk [vmem:[%s2454_s3 + $0xc4] sm:$0xf] %vm976_vm3, %v1563_v6  ;;  %v621_v14 = vadd.f32 %v2343_v12, %v2114_v62  ;;  %v613_v19 = vadd.f32 %v2343_v12, %v2117_v5 }
 0x145   :  { %v1136_v34 = vadd.f32 %v1135_v53, %v1134_v33  ;;  %v1334_v25 = vsel %vm1041_vm4, %v1224_v56, 0.0  ;;  %v1141_v15 = vsel %vm1041_vm4, %v706_v59, 0.0  ;;  %v1568_v20 = vpack.c.bf16 %v710_v48, %v710_v48 }
 0x146   :  { %v1333_v46 = vadd.f32 %v1332_v54, %v1331_v16  ;;  %v1336_v22 = vsel %vm1041_vm4, %v1225_v0, 0.0  ;;  %v1226_v63 = vmul.f32 %v705_v11, %v705_v11  ;;  %v1566_v23 = vpack.c.bf16 %v708_v38, %v708_v38 }
 0x147   :  { %v1138_v50 = vadd.f32 %v1137_v10, %v1136_v34  ;;  %v1139_v18 = vsel %vm1041_vm4, %v705_v11, 0.0  ;;  %1031 = vst.msk [vmem:[%s2454_s3 + $0xd8] sm:$0xf] %vm976_vm3, %v1568_v20  ;;  %v711_v62 = vmax.f32 %v621_v14, 0.0  ;;  %v709_v5 = vmax.f32 %v613_v19, 0.0 }
 0x148   :  { %v1335_v17 = vadd.f32 %v1334_v25, %v1333_v46  ;;  %v1227_v28 = vmul.f32 %v706_v59, %v706_v59  ;;  %1029 = vst.msk [vmem:[%s2454_s3 + $0xd0] sm:$0xf] %vm976_vm3, %v1566_v23  ;;  %v634_v9 = vadd.f32 %v2343_v12, %v2133_v42  ;;  %v626_v24 = vadd.f32 %v2343_v12, %v2143_v49 }
 0x149   :  { %v1140_v4 = vadd.f32 %v1139_v18, %v1138_v50  ;;  %v1143_v2 = vsel %vm1041_vm4, %v707_v7, 0.0  ;;  %v1228_v27 = vmul.f32 %v707_v7, %v707_v7  ;;  %v1569_v29 = vpack.c.bf16 %v711_v62, %v711_v62 }
 0x14a   :  { %v1337_v45 = vadd.f32 %v1336_v22, %v1335_v17  ;;  %v1338_v59 = vsel %vm1041_vm4, %v1226_v63, 0.0  ;;  %v1229_v30 = vmul.f32 %v708_v38, %v708_v38  ;;  %v1567_v31 = vpack.c.bf16 %v709_v5, %v709_v5 }
 0x14b   :  { %v1142_v40 = vadd.f32 %v1141_v15, %v1140_v4  ;;  %v1145_v32 = vsel %vm1041_vm4, %v708_v38, 0.0  ;;  %1032 = vst.msk [vmem:[%s2454_s3 + $0xdc] sm:$0xf] %vm976_vm3, %v1569_v29  ;;  %v714_v42 = vmax.f32 %v634_v9, 0.0  ;;  %v712_v49 = vmax.f32 %v626_v24, 0.0 }
 0x14c   :  { %v1339_v21 = vadd.f32 %v1338_v59, %v1337_v45  ;;  %v1340_v35 = vsel %vm1041_vm4, %v1227_v28, 0.0  ;;  %1030 = vst.msk [vmem:[%s2454_s3 + $0xd4] sm:$0xf] %vm976_vm3, %v1567_v31  ;;  %v637_v1 = vadd.f32 %v2343_v12, %v2146_v57  ;;  %v629_v55 = vadd.f32 %v2343_v12, %v2148_v3 }
 0x14d   :  { %v1144_v36 = vadd.f32 %v1143_v2, %v1142_v40  ;;  %v1342_v37 = vsel %vm1041_vm4, %v1228_v27, 0.0  ;;  %v1149_v43 = vsel %vm1041_vm4, %v710_v48, 0.0  ;;  %v1572_v7 = vpack.c.bf16 %v714_v42, %v714_v42 }
 0x14e   :  { %v1341_v39 = vadd.f32 %v1340_v35, %v1339_v21  ;;  %v1344_v44 = vsel %vm1041_vm4, %v1229_v30, 0.0  ;;  %v1230_v13 = vmul.f32 %v709_v5, %v709_v5  ;;  %v1570_v47 = vpack.c.bf16 %v712_v49, %v712_v49 }
 0x14f   :  { %v1146_v11 = vadd.f32 %v1145_v32, %v1144_v36  ;;  %v1147_v60 = vsel %vm1041_vm4, %v709_v5, 0.0  ;;  %1035 = vst.msk [vmem:[%s2454_s3 + $0xe8] sm:$0xf] %vm976_vm3, %v1572_v7  ;;  %v715_v57 = vmax.f32 %v637_v1, 0.0  ;;  %v713_v3 = vmax.f32 %v629_v55, 0.0 }
 0x150   :  { %v1343_v52 = vadd.f32 %v1342_v37, %v1341_v39  ;;  %v1231_v53 = vmul.f32 %v710_v48, %v710_v48  ;;  %1033 = vst.msk [vmem:[%s2454_s3 + $0xe0] sm:$0xf] %vm976_vm3, %v1570_v47  ;;  %v650_v58 = vadd.f32 %v2343_v12, %v2171_v26  ;;  %v642_v33 = vadd.f32 %v2343_v12, %v2179_v41 }
 0x151   :  { %v1148_v56 = vadd.f32 %v1147_v60, %v1146_v11  ;;  %v1151_v0 = vsel %vm1041_vm4, %v711_v62, 0.0  ;;  %v1232_v6 = vmul.f32 %v711_v62, %v711_v62  ;;  %v1573_v16 = vpack.c.bf16 %v715_v57, %v715_v57 }
 0x152   :  { %v1345_v8 = vadd.f32 %v1344_v44, %v1343_v52  ;;  %v1346_v48 = vsel %vm1041_vm4, %v1230_v13, 0.0  ;;  %v1233_v38 = vmul.f32 %v712_v49, %v712_v49  ;;  %v1571_v54 = vpack.c.bf16 %v713_v3, %v713_v3 }
 0x153   :  { %v1150_v10 = vadd.f32 %v1149_v43, %v1148_v56  ;;  %v1153_v14 = vsel %vm1041_vm4, %v712_v49, 0.0  ;;  %1036 = vst.msk [vmem:[%s2454_s3 + $0xec] sm:$0xf] %vm976_vm3, %v1573_v16  ;;  %v718_v26 = vmax.f32 %v650_v58, 0.0  ;;  %v716_v41 = vmax.f32 %v642_v33, 0.0 }
 0x154   :  { %v1347_v34 = vadd.f32 %v1346_v48, %v1345_v8  ;;  %v1348_v19 = vsel %vm1041_vm4, %v1231_v53, 0.0  ;;  %1034 = vst.msk [vmem:[%s2454_s3 + $0xe4] sm:$0xf] %vm976_vm3, %v1571_v54  ;;  %v653_v46 = vadd.f32 %v2343_v12, %v2185_v51  ;;  %v645_v15 = vadd.f32 %v2343_v12, %v2192_v61 }
 0x155   :  { %v1152_v25 = vadd.f32 %v1151_v0, %v1150_v10  ;;  %v1350_v20 = vsel %vm1041_vm4, %v1232_v6, 0.0  ;;  %v1576_v22 = vpack.c.bf16 %v718_v26, %v718_v26  ;;  %v1352_v23 = vsel %vm1041_vm4, %v1233_v38, 0.0 }
 0x156   :  { %v1349_v50 = vadd.f32 %v1348_v19, %v1347_v34  ;;  %v1234_v17 = vmul.f32 %v713_v3, %v713_v3  ;;  %v1574_v18 = vpack.c.bf16 %v716_v41, %v716_v41  ;;  %v1155_v5 = vsel %vm1041_vm4, %v713_v3, 0.0 }
 0x157   :  { %v1154_v63 = vadd.f32 %v1153_v14, %v1152_v25  ;;  %1039 = vst.msk [vmem:[%s2454_s3 + $0xf8] sm:$0xf] %vm976_vm3, %v1576_v22  ;;  %v719_v51 = vmax.f32 %v653_v46, 0.0  ;;  %v717_v28 = vmax.f32 %v645_v15, 0.0  ;;  %v1235_v61 = vmul.f32 %v714_v42, %v714_v42 }
 0x158   :  { %v1351_v62 = vadd.f32 %v1350_v20, %v1349_v50  ;;  %1037 = vst.msk [vmem:[%s2454_s3 + $0xf0] sm:$0xf] %vm976_vm3, %v1574_v18  ;;  %v1157_v4 = vsel %vm1041_vm4, %v714_v42, 0.0  ;;  %v1236_v24 = vmul.f32 %v715_v57, %v715_v57  ;;  %v1354_v27 = vsel %vm1041_vm4, %v1234_v17, 0.0 }
 0x159   :  { %v1156_v12 = vadd.f32 %v1155_v5, %v1154_v63  ;;  %v1577_v45 = vpack.c.bf16 %v719_v51, %v719_v51  ;;  %v1237_v29 = vmul.f32 %v716_v41, %v716_v41  ;;  %v1575_v40 = vpack.c.bf16 %v717_v28, %v717_v28 }
 0x15a   :  { %v1353_v9 = vadd.f32 %v1352_v23, %v1351_v62  ;;  %v1159_v59 = vsel %vm1041_vm4, %v715_v57, 0.0  ;;  %v1161_v31 = vsel %vm1041_vm4, %v716_v41, 0.0  ;;  %v1356_v21 = vsel %vm1041_vm4, %v1235_v61, 0.0 }
 0x15b   :  { %v1158_v2 = vadd.f32 %v1157_v4, %v1156_v12  ;;  %1040 = vst.msk [vmem:[%s2454_s3 + $0xfc] sm:$0xf] %vm976_vm3, %v1577_v45  ;;  %1038 = vst.msk [vmem:[%s2454_s3 + $0xf4] sm:$0xf] %vm976_vm3, %v1575_v40  ;;  %v1358_v49 = vsel %vm1041_vm4, %v1236_v24, 0.0  ;;  %v1360_v36 = vsel %vm1041_vm4, %v1237_v29, 0.0  ;;  %v1238_v1 = vmul.f32 %v717_v28, %v717_v28 }
 0x15c   :  { %v1355_v30 = vadd.f32 %v1354_v27, %v1353_v9  ;;  %v1163_v37 = vsel %vm1041_vm4, %v717_v28, 0.0  ;;  %v1239_v39 = vmul.f32 %v718_v26, %v718_v26  ;;  %v1165_v7 = vsel %vm1041_vm4, %v718_v26, 0.0 }
 0x15d   :  { %v1160_v32 = vadd.f32 %v1159_v59, %v1158_v2  ;;  %v1240_v44 = vmul.f32 %v719_v51, %v719_v51  ;;  %v1362_v47 = vsel %vm1041_vm4, %v1238_v1, 0.0  ;;  %v1167_v52 = vsel %vm1041_vm4, %v719_v51, 0.0 }
 0x15e   :  { %v1357_v42 = vadd.f32 %v1356_v21, %v1355_v30  ;;  %v1364_v57 = vsel %vm1041_vm4, %v1239_v39, 0.0 }
 0x15f   :  { %v1162_v35 = vadd.f32 %v1161_v31, %v1160_v32  ;;  %v1366_v56 = vsel %vm1041_vm4, %v1240_v44, 0.0 }
 0x160   :  { %v1359_v55 = vadd.f32 %v1358_v49, %v1357_v42 }
 0x161   :  { %v1164_v43 = vadd.f32 %v1163_v37, %v1162_v35 }
 0x162   :  { %v1361_v11 = vadd.f32 %v1360_v36, %v1359_v55 }
 0x163   :  { %v1166_v13 = vadd.f32 %v1165_v7, %v1164_v43 }
 0x164   :  { %v1363_v60 = vadd.f32 %v1362_v47, %v1361_v11 }
 0x165   :  { %v1168_v3 = vadd.f32 %v1167_v52, %v1166_v13 }
 0x166   :  { %v1365_v53 = vadd.f32 %v1364_v57, %v1363_v60 }
 0x167   :  { %v1169_v58 = vrot.slane %v1168_v3, 4 }
 0x168   :  { %v1367_v33 = vadd.f32 %v1366_v56, %v1365_v53 }
 0x169   :  { %v1170_v8 = vadd.f32 %v1169_v58, %v1168_v3 }
 0x16a   :  { %v1368_v0 = vrot.slane %v1367_v33, 4 }
 0x16b   :  { %v1171_v6 = vrot.slane %v1170_v8, 2 }
 0x16c   :  { %v1369_v16 = vadd.f32 %v1368_v0, %v1367_v33 }
 0x16d   :  { %v1172_v10 = vadd.f32 %v1171_v6, %v1170_v8 }
 0x16e   :  { %v1370_v48 = vrot.slane %v1369_v16, 2 }
 0x16f   :  { %v1173_v38 = vrot.slane %v1172_v10, 1 }
 0x170   :  { %v1371_v54 = vadd.f32 %v1370_v48, %v1369_v16 }
 0x171   :  { %v1174_v34 = vadd.f32 %v1173_v38, %v1172_v10 }
 0x172   :  { %v1372_v14 = vrot.slane %v1371_v54, 1 }
 0x173   :  { %1176 = vst.msk [vmem:[%s2455_s4] sm:$0x1] %vm1175_vm5, %v1174_v34 }
 0x174   :  { %v1373_v26 = vadd.f32 %v1372_v14, %v1371_v54 }
 0x176   :  { %1374 = vst.msk [vmem:[%s2455_s4 + $0x1] sm:$0x1] %vm1175_vm5, %v1373_v26 }

// kernel: unet_forward.22
= control target key start
LH: loop header
LB: loop body
LE: loop exit
PB: predicated region body
PF: predicated region fallthrough
CT: control target
= control target key end

     0   :  { %vm284_vm0 = vcmask 588800   ;;  %vm381_vm1 = vcmask 1043456   ;;  %vm994_vm2 = vcmask 60416   ;;  %vm1059_vm3 = vcmask 64512   ;;  %s2545_s1 = inlined_call_operand.vmem [shape: bf16[72,8], index: 1, kind: input, shape index: {}]   ;;  %s2546_s0 = inlined_call_operand.vmem [shape: bf16[512,72], index: 0, kind: input, shape index: {}]   ;;  %s2547_s2 = inlined_call_operand.vmem [shape: f32[1,8], index: 2, kind: input, shape index: {}]   ;;  %s2548_s3 = inlined_call_operand.vmem [shape: bf16[512,8], index: 3, kind: output, shape index: {0}]   ;;  %s2549_s4 = inlined_call_operand.vmem [shape: f32[1,2,8], index: 4, kind: output, shape index: {1}]  }
   0x1   :  { %v1722_v0 = vld [vmem:[%s2545_s1] sm:$0xff]   ;;  %v1723_v1 = vld [vmem:[%s2545_s1 + $0x8] sm:$0xff]   ;;  %v1724_v2 = vld [vmem:[%s2545_s1 + $0x10] sm:$0xff]   ;;  %vm1193_vm4 = vcmask 57344  }
   0x2   :  { %1636 = vmatprep.subr.bf16.mxu0 %v1722_v0  ;;  %1710 = vmatprep.subr.bf16.mxu1 %v1722_v0  ;;  %v1727_v3 = vld [vmem:[%s2546_s0] sm:$0xff]   ;;  %v1725_v4 = vld [vmem:[%s2545_s1 + $0x18] sm:$0xff]   ;;  %v1728_v7 = vld [vmem:[%s2546_s0 + $0x8] sm:$0xff]  }
   0x3   :  { %1637 = vmatpush3.bf16.msra.mxu0 %v1722_v0  ;;  %1715 = vmatpush3.bf16.msra.mxu1 %v1722_v0  ;;  %v1726_v5 = vld [vmem:[%s2545_s1 + $0x20] ss:$0 sps:$4 sm:$0xff]   ;;  %v1729_v8 = vld [vmem:[%s2546_s0 + $0x10] sm:$0xff]   ;;  %v1744_v10 = vld [vmem:[%s2546_s0 + $0x88] sm:$0xff]  }
   0x4   :  { %1638 = vmatprep.subr.bf16.mxu0 %v1723_v1  ;;  %1711 = vmatprep.subr.bf16.mxu1 %v1723_v1  ;;  %v383_v6 = vsel %vm381_vm1, %v1726_v5, 0  ;;  %v1743_v9 = vld [vmem:[%s2546_s0 + $0x80] sm:$0xff]   ;;  %v1745_v11 = vld [vmem:[%s2546_s0 + $0x90] sm:$0xff]   ;;  %v1730_v12 = vld [vmem:[%s2546_s0 + $0x18] sm:$0xff]  }
   0x5   :  { %1646 = vmatprep.mubr.msk.bf16.mxu0 %vm284_vm0, %v1727_v3  ;;  %1678 = vmatprep.mubr.msk.bf16.mxu1 %vm284_vm0, %v1743_v9  ;;  %v1731_v13 = vld [vmem:[%s2546_s0 + $0x20] sm:$0xff]   ;;  %v1746_v14 = vld [vmem:[%s2546_s0 + $0x98] sm:$0xff]   ;;  %v1732_v16 = vld [vmem:[%s2546_s0 + $0x28] sm:$0xff]  }
   0x6   :  { %v1747_v15 = vld [vmem:[%s2546_s0 + $0xa0] sm:$0xff]   ;;  %v1733_v17 = vld [vmem:[%s2546_s0 + $0x30] sm:$0xff]   ;;  %v1748_v18 = vld [vmem:[%s2546_s0 + $0xa8] sm:$0xff]  }
   0x7   :  { %1639 = vmatpush3.bf16.msra.mxu0 %v1723_v1  ;;  %1716 = vmatpush3.bf16.msra.mxu1 %v1723_v1  ;;  %v1749_v19 = vld [vmem:[%s2546_s0 + $0xb0] sm:$0xff]   ;;  %v1734_v20 = vld [vmem:[%s2546_s0 + $0x38] sm:$0xff]   ;;  %v1735_v21 = vld [vmem:[%s2546_s0 + $0x40] sm:$0xff]  }
   0x8   :  { %1640 = vmatprep.subr.bf16.mxu0 %v1724_v2  ;;  %1712 = vmatprep.subr.bf16.mxu1 %v1724_v2  ;;  %v1750_v22 = vld [vmem:[%s2546_s0 + $0xb8] sm:$0xff]   ;;  %v1751_v23 = vld [vmem:[%s2546_s0 + $0xc0] sm:$0xff]   ;;  %v1736_v24 = vld [vmem:[%s2546_s0 + $0x48] sm:$0xff]  }
   0x9   :  { %v1737_v25 = vld [vmem:[%s2546_s0 + $0x50] sm:$0xff]   ;;  %v1752_v26 = vld [vmem:[%s2546_s0 + $0xc8] sm:$0xff]   ;;  %v1738_v28 = vld [vmem:[%s2546_s0 + $0x58] sm:$0xff]  }
   0xa   :  { %v1753_v27 = vld [vmem:[%s2546_s0 + $0xd0] sm:$0xff]   ;;  %v1739_v29 = vld [vmem:[%s2546_s0 + $0x60] sm:$0xff]   ;;  %v1754_v30 = vld [vmem:[%s2546_s0 + $0xd8] sm:$0xff]  }
   0xb   :  { %1641 = vmatpush3.bf16.msra.mxu0 %v1724_v2  ;;  %1717 = vmatpush3.bf16.msra.mxu1 %v1724_v2  ;;  %v1755_v31 = vld [vmem:[%s2546_s0 + $0xe0] sm:$0xff]   ;;  %v1740_v32 = vld [vmem:[%s2546_s0 + $0x68] sm:$0xff]   ;;  %v1741_v33 = vld [vmem:[%s2546_s0 + $0x70] sm:$0xff]  }
   0xc   :  { %1642 = vmatprep.subr.bf16.mxu0 %v1725_v4  ;;  %1713 = vmatprep.subr.bf16.mxu1 %v1725_v4  ;;  %v1756_v34 = vld [vmem:[%s2546_s0 + $0xe8] sm:$0xff]   ;;  %v1757_v35 = vld [vmem:[%s2546_s0 + $0xf0] sm:$0xff]   ;;  %v1742_v36 = vld [vmem:[%s2546_s0 + $0x78] sm:$0xff]  }
   0xd   :  { %v1758_v37 = vld [vmem:[%s2546_s0 + $0xf8] sm:$0xff]   ;;  %v1931_v38 = vld [vmem:[%s2547_s2] ss:$0 sm:$0xff] }
   0xf   :  { %1643 = vmatpush3.bf16.msra.mxu0 %v1725_v4  ;;  %1718 = vmatpush3.bf16.msra.mxu1 %v1725_v4 }
  0x10   :  { %1720 = vmatprep.subr.msk.bf16.mxu0 %vm381_vm1, %v1726_v5  ;;  %1721 = vmatprep.subr.msk.bf16.mxu1 %vm381_vm1, %v1726_v5 }
  0x13   :  { %1645 = vmatpush3.bf16.msra.mxu0 %v383_v6  ;;  %1719 = vmatpush3.bf16.msra.mxu1 %v383_v6 }
  0x16   :  { %1647 = vmatmul.mubr.msk.bf16.vlgmr.msra.gmra.mrb[0].mxu0 %vm284_vm0, %v1728_v7  ;;  %1679 = vmatmul.mubr.msk.bf16.vlgmr.msra.gmra.mrb[0].mxu1 %vm284_vm0, %v1744_v10 }
  0x17   :  { %1650 = vmatprep.mubr.msk.bf16.mxu0 %vm284_vm0, %v1729_v8  ;;  %1682 = vmatprep.mubr.msk.bf16.mxu1 %vm284_vm0, %v1745_v11 }
  0x1e   :  { %1651 = vmatmul.mubr.msk.bf16.gmra.mrb[4].mxu0 %vm284_vm0, %v1730_v12  ;;  %1683 = vmatmul.mubr.msk.bf16.gmra.mrb[4].mxu1 %vm284_vm0, %v1746_v14 }
  0x1f   :  { %1654 = vmatprep.mubr.msk.bf16.mxu0 %vm284_vm0, %v1731_v13  ;;  %1686 = vmatprep.mubr.msk.bf16.mxu1 %vm284_vm0, %v1747_v15 }
  0x26   :  { %1655 = vmatmul.mubr.msk.bf16.gmra.mrb[8].mxu0 %vm284_vm0, %v1732_v16  ;;  %1687 = vmatmul.mubr.msk.bf16.gmra.mrb[8].mxu1 %vm284_vm0, %v1748_v18 }
  0x27   :  { %1658 = vmatprep.mubr.msk.bf16.mxu0 %vm284_vm0, %v1733_v17  ;;  %1690 = vmatprep.mubr.msk.bf16.mxu1 %vm284_vm0, %v1749_v19 }
  0x2e   :  { %1659 = vmatmul.mubr.msk.bf16.gmra.mrb[12].mxu0 %vm284_vm0, %v1734_v20  ;;  %1691 = vmatmul.mubr.msk.bf16.gmra.mrb[12].mxu1 %vm284_vm0, %v1750_v22 }
  0x2f   :  { %1662 = vmatprep.mubr.msk.bf16.mxu0 %vm284_vm0, %v1735_v21  ;;  %1694 = vmatprep.mubr.msk.bf16.mxu1 %vm284_vm0, %v1751_v23 }
  0x36   :  { %1663 = vmatmul.mubr.msk.bf16.gmra.mrb[16].mxu0 %vm284_vm0, %v1736_v24  ;;  %1695 = vmatmul.mubr.msk.bf16.gmra.mrb[16].mxu1 %vm284_vm0, %v1752_v26 }
  0x37   :  { %1666 = vmatprep.mubr.msk.bf16.mxu0 %vm284_vm0, %v1737_v25  ;;  %1698 = vmatprep.mubr.msk.bf16.mxu1 %vm284_vm0, %v1753_v27 }
  0x3e   :  { %1667 = vmatmul.mubr.msk.bf16.gmra.mrb[20].mxu0 %vm284_vm0, %v1738_v28  ;;  %1699 = vmatmul.mubr.msk.bf16.gmra.mrb[20].mxu1 %vm284_vm0, %v1754_v30 }
  0x3f   :  { %1670 = vmatprep.mubr.msk.bf16.mxu0 %vm284_vm0, %v1739_v29  ;;  %1702 = vmatprep.mubr.msk.bf16.mxu1 %vm284_vm0, %v1755_v31 }
  0x46   :  { %1671 = vmatmul.mubr.msk.bf16.gmra.mrb[24].mxu0 %vm284_vm0, %v1740_v32  ;;  %1703 = vmatmul.mubr.msk.bf16.gmra.mrb[24].mxu1 %vm284_vm0, %v1756_v34 }
  0x47   :  { %1674 = vmatprep.mubr.msk.bf16.mxu0 %vm284_vm0, %v1741_v33  ;;  %1706 = vmatprep.mubr.msk.bf16.mxu1 %vm284_vm0, %v1757_v35 }
  0x4e   :  { %1675 = vmatmul.mubr.msk.bf16.gmra.mrb[28].mxu0 %vm284_vm0, %v1742_v36  ;;  %1707 = vmatmul.mubr.msk.bf16.gmra.mrb[28].mxu1 %vm284_vm0, %v1758_v37 }
  0xe9   :  { %v1648_v39 = vpop.f32.mrb[0].mxu0  ;;  %v1680_v44 = vpop.f32.mrb[0].mxu1 }
  0xea   :  { %v428_v40 = vadd.f32 %v1648_v39, %v1931_v38  ;;  %v419_v41 = vpop.f32.mrb[1].mxu0  ;;  %v547_v48 = vpop.f32.mrb[1].mxu1  ;;  %v556_v54 = vadd.f32 %v1680_v44, %v1931_v38 }
  0xeb   :  { %v420_v42 = vadd.f32 %v1931_v38, %v419_v41  ;;  %v1649_v43 = vpop.f32.mrb[2].mxu0  ;;  %v1937_v51 = vpop.f32.mrb[2].mxu1  ;;  %v548_v62 = vadd.f32 %v1931_v38, %v547_v48 }
  0xec   :  { %v676_v45 = vmax.f32 %v428_v40, 0.0  ;;  %v431_v46 = vadd.f32 %v1649_v43, %v1931_v38  ;;  %v422_v47 = vpop.f32.mrb[3].mxu0  ;;  %v1940_v55 = vpop.f32.mrb[3].mxu1  ;;  %v1959_v8 = vmax.f32 %v556_v54, 0.0 }
  0xed   :  { %v674_v49 = vmax.f32 %v420_v42, 0.0  ;;  %v423_v50 = vadd.f32 %v1931_v38, %v422_v47  ;;  %v1977_v24 = vmax.f32 %v548_v62, 0.0 }
  0xee   :  { %v1537_v52 = vpack.c.bf16 %v676_v45, %v676_v45  ;;  %v677_v53 = vmax.f32 %v431_v46, 0.0  ;;  %v1197_v56 = vmul.f32 %v676_v45, %v676_v45  ;;  %v1063_v60 = vsel %vm1059_vm3, %v676_v45, 0.0 }
  0xef   :  { %v1535_v57 = vpack.c.bf16 %v674_v49, %v674_v49  ;;  %v1195_v58 = vmul.f32 %v674_v49, %v674_v49  ;;  %v675_v59 = vmax.f32 %v423_v50, 0.0  ;;  %v1060_v63 = vsel %vm1059_vm3, %v674_v49, 0.0 }
  0xf0   :  { %997 = vst.msk [vmem:[%s2548_s3 + $0x8] sm:$0xf] %vm994_vm2, %v1537_v52  ;;  %v1538_v61 = vpack.c.bf16 %v677_v53, %v677_v53  ;;  %v1198_v4 = vmul.f32 %v677_v53, %v677_v53  ;;  %v1262_v9 = vsel %vm1059_vm3, %v1197_v56, 0.0  ;;  %v1569_v23 = vpack.c.bf16 %v1959_v8, %v1959_v8 }
  0xf1   :  { %995 = vst.msk [vmem:[%s2548_s3] sm:$0xf] %vm994_vm2, %v1535_v57  ;;  %v1536_v0 = vpack.c.bf16 %v675_v59, %v675_v59  ;;  %v1061_v1 = vsel %vm1059_vm3, %v675_v59, 0.0  ;;  %v1196_v2 = vmul.f32 %v675_v59, %v675_v59  ;;  %v1652_v3 = vpop.f32.mrb[4].mxu0  ;;  %v1259_v10 = vsel %vm1059_vm3, %v1195_v58, 0.0  ;;  %v1969_v14 = vpop.f32.mrb[4].mxu1 }
  0xf2   :  { %998 = vst.msk [vmem:[%s2548_s3 + $0xc] sm:$0xf] %vm994_vm2, %v1538_v61  ;;  %v1062_v5 = vadd.f32 %v1061_v1, %v1060_v63  ;;  %v444_v6 = vadd.f32 %v1652_v3, %v1931_v38  ;;  %v435_v7 = vpop.f32.mrb[5].mxu0  ;;  %v1972_v20 = vpop.f32.mrb[5].mxu1  ;;  %v1065_v26 = vsel %vm1059_vm3, %v677_v53, 0.0  ;;  %v1264_v27 = vsel %vm1059_vm3, %v1198_v4, 0.0 }
  0xf3   :  { %996 = vst.msk [vmem:[%s2548_s3 + $0x4] sm:$0xf] %vm994_vm2, %v1536_v0  ;;  %v1260_v11 = vsel %vm1059_vm3, %v1196_v2, 0.0  ;;  %v436_v12 = vadd.f32 %v1931_v38, %v435_v7  ;;  %v1653_v13 = vpop.f32.mrb[6].mxu0  ;;  %v1979_v25 = vpop.f32.mrb[6].mxu1  ;;  %v1567_v42 = vpack.c.bf16 %v1977_v24, %v1977_v24 }
  0xf4   :  { %v1064_v15 = vadd.f32 %v1063_v60, %v1062_v5  ;;  %v1261_v16 = vadd.f32 %v1260_v11, %v1259_v10  ;;  %v680_v17 = vmax.f32 %v444_v6, 0.0  ;;  %v447_v18 = vadd.f32 %v1653_v13, %v1931_v38  ;;  %v438_v19 = vpop.f32.mrb[7].mxu0  ;;  %v1983_v30 = vpop.f32.mrb[7].mxu1  ;;  %1029 = vst.msk [vmem:[%s2548_s3 + $0x88] sm:$0xf] %vm994_vm2, %v1569_v23 }
  0xf5   :  { %v678_v21 = vmax.f32 %v436_v12, 0.0  ;;  %v439_v22 = vadd.f32 %v1931_v38, %v438_v19  ;;  %1027 = vst.msk [vmem:[%s2548_s3 + $0x80] sm:$0xf] %vm994_vm2, %v1567_v42 }
  0xf6   :  { %v1263_v28 = vadd.f32 %v1262_v9, %v1261_v16  ;;  %v1541_v29 = vpack.c.bf16 %v680_v17, %v680_v17  ;;  %v1066_v32 = vadd.f32 %v1065_v26, %v1064_v15  ;;  %v681_v36 = vmax.f32 %v447_v18, 0.0 }
  0xf7   :  { %v1539_v31 = vpack.c.bf16 %v678_v21, %v678_v21  ;;  %v1067_v33 = vsel %vm1059_vm3, %v678_v21, 0.0  ;;  %v1199_v34 = vmul.f32 %v678_v21, %v678_v21  ;;  %v679_v37 = vmax.f32 %v439_v22, 0.0 }
  0xf8   :  { %1001 = vst.msk [vmem:[%s2548_s3 + $0x18] sm:$0xf] %vm994_vm2, %v1541_v29  ;;  %v1265_v35 = vadd.f32 %v1264_v27, %v1263_v28  ;;  %v1068_v39 = vadd.f32 %v1067_v33, %v1066_v32  ;;  %v1201_v43 = vmul.f32 %v680_v17, %v680_v17  ;;  %v1542_v45 = vpack.c.bf16 %v681_v36, %v681_v36 }
  0xf9   :  { %999 = vst.msk [vmem:[%s2548_s3 + $0x10] sm:$0xf] %vm994_vm2, %v1539_v31  ;;  %v1266_v40 = vsel %vm1059_vm3, %v1199_v34, 0.0  ;;  %v1656_v41 = vpop.f32.mrb[8].mxu0  ;;  %v1540_v47 = vpack.c.bf16 %v679_v37, %v679_v37  ;;  %v1069_v48 = vsel %vm1059_vm3, %v679_v37, 0.0  ;;  %v1200_v49 = vmul.f32 %v679_v37, %v679_v37  ;;  %v2007_v53 = vpop.f32.mrb[8].mxu1 }
  0xfa   :  { %v1267_v44 = vadd.f32 %v1266_v40, %v1265_v35  ;;  %v451_v46 = vpop.f32.mrb[9].mxu0  ;;  %v460_v50 = vadd.f32 %v1656_v41, %v1931_v38  ;;  %v1071_v54 = vsel %vm1059_vm3, %v680_v17, 0.0  ;;  %1002 = vst.msk [vmem:[%s2548_s3 + $0x1c] sm:$0xf] %vm994_vm2, %v1542_v45  ;;  %v1070_v56 = vadd.f32 %v1069_v48, %v1068_v39  ;;  %v2016_v60 = vpop.f32.mrb[9].mxu1 }
  0xfb   :  { %v1657_v52 = vpop.f32.mrb[10].mxu0  ;;  %v452_v57 = vadd.f32 %v1931_v38, %v451_v46  ;;  %v1202_v61 = vmul.f32 %v681_v36, %v681_v36  ;;  %1000 = vst.msk [vmem:[%s2548_s3 + $0x14] sm:$0xf] %vm994_vm2, %v1540_v47  ;;  %v1268_v62 = vsel %vm1059_vm3, %v1200_v49, 0.0  ;;  %v2024_v1 = vpop.f32.mrb[10].mxu1  ;;  %v1270_v7 = vsel %vm1059_vm3, %v1201_v43, 0.0 }
  0xfc   :  { %v463_v58 = vadd.f32 %v1657_v52, %v1931_v38  ;;  %v454_v59 = vpop.f32.mrb[11].mxu0  ;;  %v684_v63 = vmax.f32 %v460_v50, 0.0  ;;  %v1072_v2 = vadd.f32 %v1071_v54, %v1070_v56  ;;  %v1269_v3 = vadd.f32 %v1268_v62, %v1267_v44  ;;  %v2026_v6 = vpop.f32.mrb[11].mxu1 }
  0xfd   :  { %v455_v0 = vadd.f32 %v1931_v38, %v454_v59  ;;  %v682_v4 = vmax.f32 %v452_v57, 0.0  ;;  %v1073_v9 = vsel %vm1059_vm3, %v681_v36, 0.0  ;;  %v1272_v17 = vsel %vm1059_vm3, %v1202_v61, 0.0 }
  0xfe   :  { %v685_v5 = vmax.f32 %v463_v58, 0.0  ;;  %v1545_v10 = vpack.c.bf16 %v684_v63, %v684_v63  ;;  %v1271_v12 = vadd.f32 %v1270_v7, %v1269_v3  ;;  %v1074_v15 = vadd.f32 %v1073_v9, %v1072_v2 }
  0xff   :  { %v683_v11 = vmax.f32 %v455_v0, 0.0  ;;  %v1543_v13 = vpack.c.bf16 %v682_v4, %v682_v4  ;;  %v1075_v16 = vsel %vm1059_vm3, %v682_v4, 0.0  ;;  %v1203_v18 = vmul.f32 %v682_v4, %v682_v4 }
 0x100   :  { %1005 = vst.msk [vmem:[%s2548_s3 + $0x28] sm:$0xf] %vm994_vm2, %v1545_v10  ;;  %v1546_v19 = vpack.c.bf16 %v685_v5, %v685_v5  ;;  %v1205_v22 = vmul.f32 %v684_v63, %v684_v63  ;;  %v1076_v23 = vadd.f32 %v1075_v16, %v1074_v15  ;;  %v1273_v26 = vadd.f32 %v1272_v17, %v1271_v12 }
 0x101   :  { %v1660_v21 = vpop.f32.mrb[12].mxu0  ;;  %1003 = vst.msk [vmem:[%s2548_s3 + $0x20] sm:$0xf] %vm994_vm2, %v1543_v13  ;;  %v1544_v27 = vpack.c.bf16 %v683_v11, %v683_v11  ;;  %v1274_v29 = vsel %vm1059_vm3, %v1203_v18, 0.0  ;;  %v1077_v31 = vsel %vm1059_vm3, %v683_v11, 0.0  ;;  %v1204_v32 = vmul.f32 %v683_v11, %v683_v11  ;;  %v2047_v35 = vpop.f32.mrb[12].mxu1 }
 0x102   :  { %v467_v28 = vpop.f32.mrb[13].mxu0  ;;  %1006 = vst.msk [vmem:[%s2548_s3 + $0x2c] sm:$0xf] %vm994_vm2, %v1546_v19  ;;  %v476_v33 = vadd.f32 %v1660_v21, %v1931_v38  ;;  %v1079_v36 = vsel %vm1059_vm3, %v684_v63, 0.0  ;;  %v1275_v37 = vadd.f32 %v1274_v29, %v1273_v26  ;;  %v1078_v39 = vadd.f32 %v1077_v31, %v1076_v23  ;;  %v2055_v42 = vpop.f32.mrb[13].mxu1 }
 0x103   :  { %v1661_v34 = vpop.f32.mrb[14].mxu0  ;;  %1004 = vst.msk [vmem:[%s2548_s3 + $0x24] sm:$0xf] %vm994_vm2, %v1544_v27  ;;  %v468_v40 = vadd.f32 %v1931_v38, %v467_v28  ;;  %v1206_v43 = vmul.f32 %v685_v5, %v685_v5  ;;  %v1276_v44 = vsel %vm1059_vm3, %v1204_v32, 0.0  ;;  %v2059_v47 = vpop.f32.mrb[14].mxu1  ;;  %v1278_v56 = vsel %vm1059_vm3, %v1205_v22, 0.0 }
 0x104   :  { %v470_v41 = vpop.f32.mrb[15].mxu0  ;;  %v688_v45 = vmax.f32 %v476_v33, 0.0  ;;  %v479_v46 = vadd.f32 %v1661_v34, %v1931_v38  ;;  %v1080_v48 = vadd.f32 %v1079_v36, %v1078_v39  ;;  %v1277_v49 = vadd.f32 %v1276_v44, %v1275_v37  ;;  %v2062_v54 = vpop.f32.mrb[15].mxu1 }
 0x105   :  { %v686_v50 = vmax.f32 %v468_v40, 0.0  ;;  %v471_v52 = vadd.f32 %v1931_v38, %v470_v41  ;;  %v1081_v57 = vsel %vm1059_vm3, %v685_v5, 0.0  ;;  %v1280_v2 = vsel %vm1059_vm3, %v1206_v43, 0.0 }
 0x106   :  { %v1549_v58 = vpack.c.bf16 %v688_v45, %v688_v45  ;;  %v689_v59 = vmax.f32 %v479_v46, 0.0  ;;  %v1279_v61 = vadd.f32 %v1278_v56, %v1277_v49  ;;  %v1082_v63 = vadd.f32 %v1081_v57, %v1080_v48 }
 0x107   :  { %v1547_v62 = vpack.c.bf16 %v686_v50, %v686_v50  ;;  %v1083_v0 = vsel %vm1059_vm3, %v686_v50, 0.0  ;;  %v1207_v3 = vmul.f32 %v686_v50, %v686_v50  ;;  %v687_v10 = vmax.f32 %v471_v52, 0.0 }
 0x108   :  { %1009 = vst.msk [vmem:[%s2548_s3 + $0x38] sm:$0xf] %vm994_vm2, %v1549_v58  ;;  %v1550_v4 = vpack.c.bf16 %v689_v59, %v689_v59  ;;  %v1084_v5 = vadd.f32 %v1083_v0, %v1082_v63  ;;  %v1281_v9 = vadd.f32 %v1280_v2, %v1279_v61  ;;  %v559_v12 = vadd.f32 %v1937_v51, %v1931_v38 }
 0x109   :  { %v1664_v7 = vpop.f32.mrb[16].mxu0  ;;  %1007 = vst.msk [vmem:[%s2548_s3 + $0x30] sm:$0xf] %vm994_vm2, %v1547_v62  ;;  %v1209_v13 = vmul.f32 %v688_v45, %v688_v45  ;;  %v1282_v15 = vsel %vm1059_vm3, %v1207_v3, 0.0  ;;  %v2085_v19 = vpop.f32.mrb[16].mxu1  ;;  %v1087_v21 = vsel %vm1059_vm3, %v688_v45, 0.0  ;;  %v1548_v23 = vpack.c.bf16 %v687_v10, %v687_v10 }
 0x10a   :  { %v483_v11 = vpop.f32.mrb[17].mxu0  ;;  %1010 = vst.msk [vmem:[%s2548_s3 + $0x3c] sm:$0xf] %vm994_vm2, %v1550_v4  ;;  %v492_v16 = vadd.f32 %v1664_v7, %v1931_v38  ;;  %v1283_v22 = vadd.f32 %v1282_v15, %v1281_v9  ;;  %v1085_v51 = vsel %vm1059_vm3, %v687_v10, 0.0  ;;  %v2089_v27 = vpop.f32.mrb[17].mxu1  ;;  %v1208_v29 = vmul.f32 %v687_v10, %v687_v10 }
 0x10b   :  { %v484_v17 = vadd.f32 %v1931_v38, %v483_v11  ;;  %v1665_v18 = vpop.f32.mrb[18].mxu0  ;;  %v1086_v28 = vadd.f32 %v1085_v51, %v1084_v5  ;;  %v2091_v33 = vpop.f32.mrb[18].mxu1  ;;  %v1210_v34 = vmul.f32 %v689_v59, %v689_v59  ;;  %1008 = vst.msk [vmem:[%s2548_s3 + $0x34] sm:$0xf] %vm994_vm2, %v1548_v23  ;;  %v2099_v39 = vmax.f32 %v559_v12, 0.0 }
 0x10c   :  { %v486_v26 = vpop.f32.mrb[19].mxu0  ;;  %v692_v31 = vmax.f32 %v492_v16, 0.0  ;;  %v495_v36 = vadd.f32 %v1665_v18, %v1931_v38  ;;  %v2101_v40 = vpop.f32.mrb[19].mxu1  ;;  %v1286_v41 = vsel %vm1059_vm3, %v1209_v13, 0.0  ;;  %v1284_v44 = vsel %vm1059_vm3, %v1208_v29, 0.0 }
 0x10d   :  { %v690_v32 = vmax.f32 %v484_v17, 0.0  ;;  %v487_v37 = vadd.f32 %v1931_v38, %v486_v26  ;;  %v1088_v43 = vadd.f32 %v1087_v21, %v1086_v28  ;;  %v1089_v46 = vsel %vm1059_vm3, %v689_v59, 0.0 }
 0x10e   :  { %v1553_v45 = vpack.c.bf16 %v692_v31, %v692_v31  ;;  %v1285_v48 = vadd.f32 %v1284_v44, %v1283_v22  ;;  %v693_v57 = vmax.f32 %v495_v36, 0.0  ;;  %v1288_v62 = vsel %vm1059_vm3, %v1210_v34, 0.0 }
 0x10f   :  { %v1551_v49 = vpack.c.bf16 %v690_v32, %v690_v32  ;;  %v1091_v50 = vsel %vm1059_vm3, %v690_v32, 0.0  ;;  %v1090_v52 = vadd.f32 %v1089_v46, %v1088_v43  ;;  %v1211_v56 = vmul.f32 %v690_v32, %v690_v32 }
 0x110   :  { %1013 = vst.msk [vmem:[%s2548_s3 + $0x48] sm:$0xf] %vm994_vm2, %v1553_v45  ;;  %v691_v58 = vmax.f32 %v487_v37, 0.0  ;;  %v1287_v63 = vadd.f32 %v1286_v41, %v1285_v48  ;;  %v1570_v2 = vpack.c.bf16 %v2099_v39, %v2099_v39  ;;  %v1095_v3 = vsel %vm1059_vm3, %v692_v31, 0.0 }
 0x111   :  { %v1668_v61 = vpop.f32.mrb[20].mxu0  ;;  %1011 = vst.msk [vmem:[%s2548_s3 + $0x40] sm:$0xf] %vm994_vm2, %v1551_v49  ;;  %v1092_v4 = vadd.f32 %v1091_v50, %v1090_v52  ;;  %v1290_v7 = vsel %vm1059_vm3, %v1211_v56, 0.0  ;;  %v1554_v5 = vpack.c.bf16 %v693_v57, %v693_v57  ;;  %v2121_v10 = vpop.f32.mrb[20].mxu1  ;;  %v1213_v11 = vmul.f32 %v692_v31, %v692_v31 }
 0x112   :  { %v508_v59 = vadd.f32 %v1668_v61, %v1931_v38  ;;  %v499_v0 = vpop.f32.mrb[21].mxu0  ;;  %v1289_v12 = vadd.f32 %v1288_v62, %v1287_v63  ;;  %v1552_v13 = vpack.c.bf16 %v691_v58, %v691_v58  ;;  %v1093_v15 = vsel %vm1059_vm3, %v691_v58, 0.0  ;;  %1030 = vst.msk [vmem:[%s2548_s3 + $0x8c] sm:$0xf] %vm994_vm2, %v1570_v2  ;;  %v2128_v17 = vpop.f32.mrb[21].mxu1 }
 0x113   :  { %v1669_v9 = vpop.f32.mrb[22].mxu0  ;;  %1014 = vst.msk [vmem:[%s2548_s3 + $0x4c] sm:$0xf] %vm994_vm2, %v1554_v5  ;;  %v1094_v18 = vadd.f32 %v1093_v15, %v1092_v4  ;;  %v1212_v21 = vmul.f32 %v691_v58, %v691_v58  ;;  %v500_v23 = vadd.f32 %v1931_v38, %v499_v0  ;;  %v2135_v51 = vpop.f32.mrb[22].mxu1  ;;  %v1214_v28 = vmul.f32 %v693_v57, %v693_v57 }
 0x114   :  { %v502_v16 = vpop.f32.mrb[23].mxu0  ;;  %v696_v22 = vmax.f32 %v508_v59, 0.0  ;;  %v1291_v26 = vadd.f32 %v1290_v7, %v1289_v12  ;;  %1012 = vst.msk [vmem:[%s2548_s3 + $0x44] sm:$0xf] %vm994_vm2, %v1552_v13  ;;  %v511_v29 = vadd.f32 %v1669_v9, %v1931_v38  ;;  %v2143_v32 = vpop.f32.mrb[23].mxu1  ;;  %v1097_v41 = vsel %vm1059_vm3, %v693_v57, 0.0 }
 0x115   :  { %v503_v31 = vadd.f32 %v1931_v38, %v502_v16  ;;  %v1096_v34 = vadd.f32 %v1095_v3, %v1094_v18  ;;  %v1292_v36 = vsel %vm1059_vm3, %v1212_v21, 0.0  ;;  %v694_v44 = vmax.f32 %v500_v23, 0.0 }
 0x116   :  { %v1557_v37 = vpack.c.bf16 %v696_v22, %v696_v22  ;;  %v1293_v43 = vadd.f32 %v1292_v36, %v1291_v26  ;;  %v697_v45 = vmax.f32 %v511_v29, 0.0  ;;  %v1294_v46 = vsel %vm1059_vm3, %v1213_v11, 0.0 }
 0x117   :  { %v1098_v48 = vadd.f32 %v1097_v41, %v1096_v34  ;;  %v695_v49 = vmax.f32 %v503_v31, 0.0  ;;  %v1296_v52 = vsel %vm1059_vm3, %v1214_v28, 0.0  ;;  %v1555_v58 = vpack.c.bf16 %v694_v44, %v694_v44 }
 0x118   :  { %1017 = vst.msk [vmem:[%s2548_s3 + $0x58] sm:$0xf] %vm994_vm2, %v1557_v37  ;;  %v1295_v56 = vadd.f32 %v1294_v46, %v1293_v43  ;;  %v1099_v61 = vsel %vm1059_vm3, %v694_v44, 0.0  ;;  %v1103_v62 = vsel %vm1059_vm3, %v696_v22, 0.0  ;;  %v1215_v59 = vmul.f32 %v694_v44, %v694_v44 }
 0x119   :  { %v1672_v50 = vpop.f32.mrb[24].mxu0  ;;  %v1100_v63 = vadd.f32 %v1099_v61, %v1098_v48  ;;  %v1558_v0 = vpack.c.bf16 %v697_v45, %v697_v45  ;;  %v2155_v3 = vpop.f32.mrb[24].mxu1  ;;  %v1217_v4 = vmul.f32 %v696_v22, %v696_v22  ;;  %1015 = vst.msk [vmem:[%s2548_s3 + $0x50] sm:$0xf] %vm994_vm2, %v1555_v58  ;;  %v1556_v5 = vpack.c.bf16 %v695_v49, %v695_v49 }
 0x11a   :  { %v515_v57 = vpop.f32.mrb[25].mxu0  ;;  %v1297_v7 = vadd.f32 %v1296_v52, %v1295_v56  ;;  %v1101_v9 = vsel %vm1059_vm3, %v695_v49, 0.0  ;;  %v2162_v12 = vpop.f32.mrb[25].mxu1  ;;  %v1298_v13 = vsel %vm1059_vm3, %v1215_v59, 0.0  ;;  %v1216_v16 = vmul.f32 %v695_v49, %v695_v49 }
 0x11b   :  { %v1673_v2 = vpop.f32.mrb[26].mxu0  ;;  %1018 = vst.msk [vmem:[%s2548_s3 + $0x5c] sm:$0xf] %vm994_vm2, %v1558_v0  ;;  %v1102_v15 = vadd.f32 %v1101_v9, %v1100_v63  ;;  %v524_v18 = vadd.f32 %v1672_v50, %v1931_v38  ;;  %v2170_v21 = vpop.f32.mrb[26].mxu1  ;;  %v1105_v23 = vsel %vm1059_vm3, %v697_v45, 0.0  ;;  %v516_v26 = vadd.f32 %v1931_v38, %v515_v57 }
 0x11c   :  { %v518_v11 = vpop.f32.mrb[27].mxu0  ;;  %v1299_v22 = vadd.f32 %v1298_v13, %v1297_v7  ;;  %1016 = vst.msk [vmem:[%s2548_s3 + $0x54] sm:$0xf] %vm994_vm2, %v1556_v5  ;;  %v527_v28 = vadd.f32 %v1673_v2, %v1931_v38  ;;  %v2179_v29 = vpop.f32.mrb[27].mxu1  ;;  %v1218_v31 = vmul.f32 %v697_v45, %v697_v45  ;;  %v1300_v36 = vsel %vm1059_vm3, %v1216_v16, 0.0 }
 0x11d   :  { %v1104_v34 = vadd.f32 %v1103_v62, %v1102_v15  ;;  %v700_v37 = vmax.f32 %v524_v18, 0.0  ;;  %v698_v43 = vmax.f32 %v516_v26, 0.0  ;;  %v519_v46 = vadd.f32 %v1931_v38, %v518_v11 }
 0x11e   :  { %v1301_v41 = vadd.f32 %v1300_v36, %v1299_v22  ;;  %v701_v44 = vmax.f32 %v527_v28, 0.0  ;;  %v1302_v48 = vsel %vm1059_vm3, %v1217_v4, 0.0  ;;  %v1304_v62 = vsel %vm1059_vm3, %v1218_v31, 0.0 }
 0x11f   :  { %v1561_v49 = vpack.c.bf16 %v700_v37, %v700_v37  ;;  %v1106_v50 = vadd.f32 %v1105_v23, %v1104_v34  ;;  %v1559_v58 = vpack.c.bf16 %v698_v43, %v698_v43  ;;  %v1107_v61 = vsel %vm1059_vm3, %v698_v43, 0.0 }
 0x120   :  { %v1303_v56 = vadd.f32 %v1302_v48, %v1301_v41  ;;  %v1219_v57 = vmul.f32 %v698_v43, %v698_v43  ;;  %v1562_v59 = vpack.c.bf16 %v701_v44, %v701_v44  ;;  %v1111_v4 = vsel %vm1059_vm3, %v700_v37, 0.0 }
 0x121   :  { %v1676_v52 = vpop.f32.mrb[28].mxu0  ;;  %1021 = vst.msk [vmem:[%s2548_s3 + $0x68] sm:$0xf] %vm994_vm2, %v1561_v49  ;;  %v1108_v63 = vadd.f32 %v1107_v61, %v1106_v50  ;;  %v2190_v2 = vpop.f32.mrb[28].mxu1  ;;  %1019 = vst.msk [vmem:[%s2548_s3 + $0x60] sm:$0xf] %vm994_vm2, %v1559_v58  ;;  %v1221_v26 = vmul.f32 %v700_v37, %v700_v37  ;;  %v1222_v50 = vmul.f32 %v701_v44, %v701_v44 }
 0x122   :  { %v531_v45 = vpop.f32.mrb[29].mxu0  ;;  %v1305_v7 = vadd.f32 %v1304_v62, %v1303_v56  ;;  %v1306_v5 = vsel %vm1059_vm3, %v1219_v57, 0.0  ;;  %v699_v9 = vmax.f32 %v519_v46, 0.0  ;;  %v2198_v13 = vpop.f32.mrb[29].mxu1  ;;  %1022 = vst.msk [vmem:[%s2548_s3 + $0x6c] sm:$0xf] %vm994_vm2, %v1562_v59  ;;  %v540_v15 = vadd.f32 %v1676_v52, %v1931_v38 }
 0x123   :  { %v1677_v0 = vpop.f32.mrb[30].mxu0  ;;  %v532_v16 = vadd.f32 %v1931_v38, %v531_v45  ;;  %v2208_v23 = vpop.f32.mrb[30].mxu1  ;;  %v1113_v49 = vsel %vm1059_vm3, %v701_v44, 0.0  ;;  %v551_v57 = vadd.f32 %v1931_v38, %v1940_v55  ;;  %v572_v44 = vadd.f32 %v1969_v14, %v1931_v38 }
 0x124   :  { %v534_v11 = vpop.f32.mrb[31].mxu0  ;;  %v543_v18 = vadd.f32 %v1677_v0, %v1931_v38  ;;  %v1307_v28 = vadd.f32 %v1306_v5, %v1305_v7  ;;  %v1560_v31 = vpack.c.bf16 %v699_v9, %v699_v9  ;;  %v1109_v34 = vsel %vm1059_vm3, %v699_v9, 0.0  ;;  %v2211_v36 = vpop.f32.mrb[31].mxu1 }
 0x125   :  { %v535_v22 = vadd.f32 %v1931_v38, %v534_v11  ;;  %v1110_v41 = vadd.f32 %v1109_v34, %v1108_v63  ;;  %v1220_v43 = vmul.f32 %v699_v9, %v699_v9  ;;  %v704_v46 = vmax.f32 %v540_v15, 0.0 }
 0x126   :  { %v702_v48 = vmax.f32 %v532_v16, 0.0  ;;  %1020 = vst.msk [vmem:[%s2548_s3 + $0x64] sm:$0xf] %vm994_vm2, %v1560_v31  ;;  %v705_v52 = vmax.f32 %v543_v18, 0.0  ;;  %v1310_v59 = vsel %vm1059_vm3, %v1221_v26, 0.0  ;;  %v1312_v5 = vsel %vm1059_vm3, %v1222_v50, 0.0 }
 0x127   :  { %v703_v37 = vmax.f32 %v535_v22, 0.0  ;;  %v1112_v56 = vadd.f32 %v1111_v4, %v1110_v41  ;;  %v1308_v58 = vsel %vm1059_vm3, %v1220_v43, 0.0  ;;  %v1565_v61 = vpack.c.bf16 %v704_v46, %v704_v46 }
 0x128   :  { %v1309_v45 = vadd.f32 %v1308_v58, %v1307_v28  ;;  %v1563_v62 = vpack.c.bf16 %v702_v48, %v702_v48  ;;  %v1115_v63 = vsel %vm1059_vm3, %v702_v48, 0.0  ;;  %v1223_v4 = vmul.f32 %v702_v48, %v702_v48 }
 0x129   :  { %1025 = vst.msk [vmem:[%s2548_s3 + $0x78] sm:$0xf] %vm994_vm2, %v1565_v61  ;;  %v1114_v0 = vadd.f32 %v1113_v49, %v1112_v56  ;;  %v1566_v7 = vpack.c.bf16 %v705_v52, %v705_v52  ;;  %v1564_v9 = vpack.c.bf16 %v703_v37, %v703_v37  ;;  %v1117_v15 = vsel %vm1059_vm3, %v703_v37, 0.0 }
 0x12a   :  { %v1311_v55 = vadd.f32 %v1310_v59, %v1309_v45  ;;  %1023 = vst.msk [vmem:[%s2548_s3 + $0x70] sm:$0xf] %vm994_vm2, %v1563_v62  ;;  %v1314_v11 = vsel %vm1059_vm3, %v1223_v4, 0.0  ;;  %v1224_v16 = vmul.f32 %v703_v37, %v703_v37  ;;  %v1225_v18 = vmul.f32 %v704_v46, %v704_v46 }
 0x12b   :  { %v1116_v14 = vadd.f32 %v1115_v63, %v1114_v0  ;;  %1026 = vst.msk [vmem:[%s2548_s3 + $0x7c] sm:$0xf] %vm994_vm2, %v1566_v7  ;;  %1024 = vst.msk [vmem:[%s2548_s3 + $0x74] sm:$0xf] %vm994_vm2, %v1564_v9  ;;  %v707_v26 = vmax.f32 %v551_v57, 0.0  ;;  %v2244_v28 = vmax.f32 %v572_v44, 0.0  ;;  %v564_v41 = vadd.f32 %v1931_v38, %v1972_v20 }
 0x12c   :  { %v1313_v22 = vadd.f32 %v1312_v5, %v1311_v55  ;;  %v1316_v34 = vsel %vm1059_vm3, %v1224_v16, 0.0  ;;  %v575_v43 = vadd.f32 %v1979_v25, %v1931_v38  ;;  %v1119_v48 = vsel %vm1059_vm3, %v704_v46, 0.0 }
 0x12d   :  { %v1118_v31 = vadd.f32 %v1117_v15, %v1116_v14  ;;  %v1227_v50 = vmul.f32 %v1977_v24, %v1977_v24  ;;  %v1568_v37 = vpack.c.bf16 %v707_v26, %v707_v26  ;;  %v1226_v56 = vmul.f32 %v705_v52, %v705_v52 }
 0x12e   :  { %v1315_v49 = vadd.f32 %v1314_v11, %v1313_v22  ;;  %v1123_v61 = vsel %vm1059_vm3, %v1977_v24, 0.0  ;;  %v1573_v57 = vpack.c.bf16 %v2244_v28, %v2244_v28  ;;  %v1121_v20 = vsel %vm1059_vm3, %v705_v52, 0.0 }
 0x12f   :  { %v1120_v58 = vadd.f32 %v1119_v48, %v1118_v31  ;;  %1028 = vst.msk [vmem:[%s2548_s3 + $0x84] sm:$0xf] %vm994_vm2, %v1568_v37  ;;  %v710_v25 = vmax.f32 %v564_v41, 0.0  ;;  %v713_v46 = vmax.f32 %v575_v43, 0.0  ;;  %v1318_v62 = vsel %vm1059_vm3, %v1225_v18, 0.0 }
 0x130   :  { %v1317_v45 = vadd.f32 %v1316_v34, %v1315_v49  ;;  %1033 = vst.msk [vmem:[%s2548_s3 + $0x98] sm:$0xf] %vm994_vm2, %v1573_v57  ;;  %v567_v24 = vadd.f32 %v1931_v38, %v1983_v30  ;;  %v588_v52 = vadd.f32 %v2007_v53, %v1931_v38  ;;  %v1127_v59 = vsel %vm1059_vm3, %v1959_v8, 0.0 }
 0x131   :  { %v1122_v63 = vadd.f32 %v1121_v20, %v1120_v58  ;;  %v1322_v0 = vsel %vm1059_vm3, %v1227_v50, 0.0  ;;  %v1571_v4 = vpack.c.bf16 %v710_v25, %v710_v25  ;;  %v1320_v7 = vsel %vm1059_vm3, %v1226_v56, 0.0 }
 0x132   :  { %v1319_v44 = vadd.f32 %v1318_v62, %v1317_v45  ;;  %v1228_v55 = vmul.f32 %v707_v26, %v707_v26  ;;  %v1574_v9 = vpack.c.bf16 %v713_v46, %v713_v46  ;;  %v1125_v11 = vsel %vm1059_vm3, %v707_v26, 0.0 }
 0x133   :  { %v1124_v5 = vadd.f32 %v1123_v61, %v1122_v63  ;;  %1031 = vst.msk [vmem:[%s2548_s3 + $0x90] sm:$0xf] %vm994_vm2, %v1571_v4  ;;  %v711_v30 = vmax.f32 %v567_v24, 0.0  ;;  %v2281_v53 = vmax.f32 %v588_v52, 0.0  ;;  %v1229_v15 = vmul.f32 %v1959_v8, %v1959_v8 }
 0x134   :  { %v1321_v14 = vadd.f32 %v1320_v7, %v1319_v44  ;;  %1034 = vst.msk [vmem:[%s2548_s3 + $0x9c] sm:$0xf] %vm994_vm2, %v1574_v9  ;;  %v580_v18 = vadd.f32 %v1931_v38, %v2016_v60  ;;  %v591_v22 = vadd.f32 %v2024_v1, %v1931_v38  ;;  %v1129_v31 = vsel %vm1059_vm3, %v2099_v39, 0.0 }
 0x135   :  { %v1126_v16 = vadd.f32 %v1125_v11, %v1124_v5  ;;  %v1230_v34 = vmul.f32 %v2099_v39, %v2099_v39  ;;  %v1572_v8 = vpack.c.bf16 %v711_v30, %v711_v30  ;;  %v1324_v43 = vsel %vm1059_vm3, %v1228_v55, 0.0 }
 0x136   :  { %v1323_v26 = vadd.f32 %v1322_v0, %v1321_v14  ;;  %v1231_v48 = vmul.f32 %v710_v25, %v710_v25  ;;  %v1577_v49 = vpack.c.bf16 %v2281_v53, %v2281_v53  ;;  %v1131_v60 = vsel %vm1059_vm3, %v710_v25, 0.0 }
 0x137   :  { %v1128_v41 = vadd.f32 %v1127_v59, %v1126_v16  ;;  %1032 = vst.msk [vmem:[%s2548_s3 + $0x94] sm:$0xf] %vm994_vm2, %v1572_v8  ;;  %v714_v1 = vmax.f32 %v580_v18, 0.0  ;;  %v717_v37 = vmax.f32 %v591_v22, 0.0  ;;  %v1326_v39 = vsel %vm1059_vm3, %v1229_v15, 0.0 }
 0x138   :  { %v1325_v50 = vadd.f32 %v1324_v43, %v1323_v26  ;;  %1037 = vst.msk [vmem:[%s2548_s3 + $0xa8] sm:$0xf] %vm994_vm2, %v1577_v49  ;;  %v583_v58 = vadd.f32 %v1931_v38, %v2026_v6  ;;  %v604_v61 = vadd.f32 %v2047_v35, %v1931_v38  ;;  %v1328_v57 = vsel %vm1059_vm3, %v1230_v34, 0.0 }
 0x139   :  { %v1130_v56 = vadd.f32 %v1129_v31, %v1128_v41  ;;  %v1135_v45 = vsel %vm1059_vm3, %v2244_v28, 0.0  ;;  %v1575_v25 = vpack.c.bf16 %v714_v1, %v714_v1  ;;  %v1330_v63 = vsel %vm1059_vm3, %v1231_v48, 0.0 }
 0x13a   :  { %v1327_v20 = vadd.f32 %v1326_v39, %v1325_v50  ;;  %v1232_v24 = vmul.f32 %v711_v30, %v711_v30  ;;  %v1578_v52 = vpack.c.bf16 %v717_v37, %v717_v37  ;;  %v1133_v59 = vsel %vm1059_vm3, %v711_v30, 0.0 }
 0x13b   :  { %v1132_v62 = vadd.f32 %v1131_v60, %v1130_v56  ;;  %1035 = vst.msk [vmem:[%s2548_s3 + $0xa0] sm:$0xf] %vm994_vm2, %v1575_v25  ;;  %v715_v6 = vmax.f32 %v583_v58, 0.0  ;;  %v2323_v35 = vmax.f32 %v604_v61, 0.0  ;;  %v1233_v0 = vmul.f32 %v2244_v28, %v2244_v28 }
 0x13c   :  { %v1329_v44 = vadd.f32 %v1328_v57, %v1327_v20  ;;  %1038 = vst.msk [vmem:[%s2548_s3 + $0xac] sm:$0xf] %vm994_vm2, %v1578_v52  ;;  %v596_v7 = vadd.f32 %v1931_v38, %v2055_v42  ;;  %v607_v5 = vadd.f32 %v2059_v47, %v1931_v38  ;;  %v1137_v9 = vsel %vm1059_vm3, %v713_v46, 0.0 }
 0x13d   :  { %v1134_v4 = vadd.f32 %v1133_v59, %v1132_v62  ;;  %v1234_v14 = vmul.f32 %v713_v46, %v713_v46  ;;  %v1576_v11 = vpack.c.bf16 %v715_v6, %v715_v6  ;;  %v1332_v28 = vsel %vm1059_vm3, %v1232_v24, 0.0 }
 0x13e   :  { %v1331_v55 = vadd.f32 %v1330_v63, %v1329_v44  ;;  %v1235_v15 = vmul.f32 %v714_v1, %v714_v1  ;;  %v1581_v16 = vpack.c.bf16 %v2323_v35, %v2323_v35  ;;  %v1139_v22 = vsel %vm1059_vm3, %v714_v1, 0.0 }
 0x13f   :  { %v1136_v30 = vadd.f32 %v1135_v45, %v1134_v4  ;;  %1036 = vst.msk [vmem:[%s2548_s3 + $0xa4] sm:$0xf] %vm994_vm2, %v1576_v11  ;;  %v718_v42 = vmax.f32 %v596_v7, 0.0  ;;  %v721_v47 = vmax.f32 %v607_v5, 0.0  ;;  %v1334_v46 = vsel %vm1059_vm3, %v1233_v0, 0.0 }
 0x140   :  { %v1333_v18 = vadd.f32 %v1332_v28, %v1331_v55  ;;  %1041 = vst.msk [vmem:[%s2548_s3 + $0xb8] sm:$0xf] %vm994_vm2, %v1581_v16  ;;  %v599_v31 = vadd.f32 %v1931_v38, %v2062_v54  ;;  %v620_v34 = vadd.f32 %v2085_v19, %v1931_v38  ;;  %v1336_v8 = vsel %vm1059_vm3, %v1234_v14, 0.0 }
 0x141   :  { %v1138_v26 = vadd.f32 %v1137_v9, %v1136_v30  ;;  %v1143_v43 = vsel %vm1059_vm3, %v2281_v53, 0.0  ;;  %v1579_v48 = vpack.c.bf16 %v718_v42, %v718_v42  ;;  %v1338_v50 = vsel %vm1059_vm3, %v1235_v15, 0.0 }
 0x142   :  { %v1335_v41 = vadd.f32 %v1334_v46, %v1333_v18  ;;  %v1236_v60 = vmul.f32 %v715_v6, %v715_v6  ;;  %v1582_v1 = vpack.c.bf16 %v721_v47, %v721_v47  ;;  %v1141_v56 = vsel %vm1059_vm3, %v715_v6, 0.0 }
 0x143   :  { %v1140_v49 = vadd.f32 %v1139_v22, %v1138_v26  ;;  %1039 = vst.msk [vmem:[%s2548_s3 + $0xb0] sm:$0xf] %vm994_vm2, %v1579_v48  ;;  %v719_v54 = vmax.f32 %v599_v31, 0.0  ;;  %v2362_v19 = vmax.f32 %v620_v34, 0.0  ;;  %v1237_v58 = vmul.f32 %v2281_v53, %v2281_v53 }
 0x144   :  { %v1337_v39 = vadd.f32 %v1336_v8, %v1335_v41  ;;  %1042 = vst.msk [vmem:[%s2548_s3 + $0xbc] sm:$0xf] %vm994_vm2, %v1582_v1  ;;  %v612_v57 = vadd.f32 %v1931_v38, %v2089_v27  ;;  %v623_v20 = vadd.f32 %v2091_v33, %v1931_v38  ;;  %v1145_v25 = vsel %vm1059_vm3, %v717_v37, 0.0  ;;  %v2430_v1 = vld [vmem:[%s2547_s2] ss:$0 sm:$0xff] }
 0x145   :  { %v1142_v61 = vadd.f32 %v1141_v56, %v1140_v49  ;;  %v1238_v62 = vmul.f32 %v717_v37, %v717_v37  ;;  %v1580_v63 = vpack.c.bf16 %v719_v54, %v719_v54  ;;  %v1340_v53 = vsel %vm1059_vm3, %v1236_v60, 0.0 }
 0x146   :  { %v1339_v45 = vadd.f32 %v1338_v50, %v1337_v39  ;;  %v1239_v52 = vmul.f32 %v718_v42, %v718_v42  ;;  %v1585_v44 = vpack.c.bf16 %v2362_v19, %v2362_v19  ;;  %v1147_v6 = vsel %vm1059_vm3, %v718_v42, 0.0 }
 0x147   :  { %v1144_v24 = vadd.f32 %v1143_v43, %v1142_v61  ;;  %1040 = vst.msk [vmem:[%s2548_s3 + $0xb4] sm:$0xf] %vm994_vm2, %v1580_v63  ;;  %v722_v27 = vmax.f32 %v612_v57, 0.0  ;;  %v725_v33 = vmax.f32 %v623_v20, 0.0  ;;  %v1342_v37 = vsel %vm1059_vm3, %v1237_v58, 0.0 }
 0x148   :  { %v1341_v59 = vadd.f32 %v1340_v53, %v1339_v45  ;;  %1045 = vst.msk [vmem:[%s2548_s3 + $0xc8] sm:$0xf] %vm994_vm2, %v1585_v44  ;;  %v615_v4 = vadd.f32 %v1931_v38, %v2101_v40  ;;  %v636_v7 = vadd.f32 %v2121_v10, %v1931_v38  ;;  %v1344_v5 = vsel %vm1059_vm3, %v1238_v62, 0.0 }
 0x149   :  { %v1146_v0 = vadd.f32 %v1145_v25, %v1144_v24  ;;  %v1151_v9 = vsel %vm1059_vm3, %v2323_v35, 0.0  ;;  %v1583_v14 = vpack.c.bf16 %v722_v27, %v722_v27  ;;  %v1346_v30 = vsel %vm1059_vm3, %v1239_v52, 0.0 }
 0x14a   :  { %v1343_v55 = vadd.f32 %v1342_v37, %v1341_v59  ;;  %v1240_v28 = vmul.f32 %v719_v54, %v719_v54  ;;  %v1586_v15 = vpack.c.bf16 %v725_v33, %v725_v33  ;;  %v1149_v18 = vsel %vm1059_vm3, %v719_v54, 0.0 }
 0x14b   :  { %v1148_v11 = vadd.f32 %v1147_v6, %v1146_v0  ;;  %1043 = vst.msk [vmem:[%s2548_s3 + $0xc0] sm:$0xf] %vm994_vm2, %v1583_v14  ;;  %v723_v40 = vmax.f32 %v615_v4, 0.0  ;;  %v2401_v10 = vmax.f32 %v636_v7, 0.0  ;;  %v1241_v22 = vmul.f32 %v2323_v35, %v2323_v35 }
 0x14c   :  { %v1345_v16 = vadd.f32 %v1344_v5, %v1343_v55  ;;  %1046 = vst.msk [vmem:[%s2548_s3 + $0xcc] sm:$0xf] %vm994_vm2, %v1586_v15  ;;  %v628_v46 = vadd.f32 %v1931_v38, %v2128_v17  ;;  %v639_v26 = vadd.f32 %v2135_v51, %v1931_v38  ;;  %v1153_v34 = vsel %vm1059_vm3, %v721_v47, 0.0 }
 0x14d   :  { %v1150_v42 = vadd.f32 %v1149_v18, %v1148_v11  ;;  %v1242_v8 = vmul.f32 %v721_v47, %v721_v47  ;;  %v1584_v41 = vpack.c.bf16 %v723_v40, %v723_v40  ;;  %v1348_v35 = vsel %vm1059_vm3, %v1240_v28, 0.0 }
 0x14e   :  { %v1347_v31 = vadd.f32 %v1346_v30, %v1345_v16  ;;  %v1243_v48 = vmul.f32 %v722_v27, %v722_v27  ;;  %v1589_v49 = vpack.c.bf16 %v2401_v10, %v2401_v10  ;;  %v1155_v60 = vsel %vm1059_vm3, %v722_v27, 0.0 }
 0x14f   :  { %v1152_v43 = vadd.f32 %v1151_v9, %v1150_v42  ;;  %1044 = vst.msk [vmem:[%s2548_s3 + $0xc4] sm:$0xf] %vm994_vm2, %v1584_v41  ;;  %v726_v38 = vmax.f32 %v628_v46, 0.0  ;;  %v729_v17 = vmax.f32 %v639_v26, 0.0  ;;  %v1350_v51 = vsel %vm1059_vm3, %v1241_v22, 0.0 }
 0x150   :  { %v1349_v50 = vadd.f32 %v1348_v35, %v1347_v31  ;;  %1049 = vst.msk [vmem:[%s2548_s3 + $0xd8] sm:$0xf] %vm994_vm2, %v1589_v49  ;;  %v631_v39 = vadd.f32 %v2430_v1, %v2143_v32  ;;  %v652_v56 = vadd.f32 %v2430_v1, %v2155_v3  ;;  %v1352_v54 = vsel %vm1059_vm3, %v1242_v8, 0.0 }
 0x151   :  { %v1154_v47 = vadd.f32 %v1153_v34, %v1152_v43  ;;  %v1159_v61 = vsel %vm1059_vm3, %v2362_v19, 0.0  ;;  %v1587_v57 = vpack.c.bf16 %v726_v38, %v726_v38  ;;  %v1354_v45 = vsel %vm1059_vm3, %v1243_v48, 0.0 }
 0x152   :  { %v1351_v58 = vadd.f32 %v1350_v51, %v1349_v50  ;;  %v1244_v25 = vmul.f32 %v723_v40, %v723_v40  ;;  %v1590_v62 = vpack.c.bf16 %v729_v17, %v729_v17  ;;  %v1157_v24 = vsel %vm1059_vm3, %v723_v40, 0.0 }
 0x153   :  { %v1156_v20 = vadd.f32 %v1155_v60, %v1154_v47  ;;  %1047 = vst.msk [vmem:[%s2548_s3 + $0xd0] sm:$0xf] %vm994_vm2, %v1587_v57  ;;  %v727_v32 = vmax.f32 %v631_v39, 0.0  ;;  %v2445_v3 = vmax.f32 %v652_v56, 0.0  ;;  %v1245_v53 = vmul.f32 %v2362_v19, %v2362_v19 }
 0x154   :  { %v1353_v63 = vadd.f32 %v1352_v54, %v1351_v58  ;;  %1050 = vst.msk [vmem:[%s2548_s3 + $0xdc] sm:$0xf] %vm994_vm2, %v1590_v62  ;;  %v644_v44 = vadd.f32 %v2430_v1, %v2162_v12  ;;  %v655_v59 = vadd.f32 %v2430_v1, %v2170_v21  ;;  %v1161_v27 = vsel %vm1059_vm3, %v725_v33, 0.0 }
 0x155   :  { %v1158_v52 = vadd.f32 %v1157_v24, %v1156_v20  ;;  %v1246_v37 = vmul.f32 %v725_v33, %v725_v33  ;;  %v1588_v0 = vpack.c.bf16 %v727_v32, %v727_v32  ;;  %v1356_v19 = vsel %vm1059_vm3, %v1244_v25, 0.0 }
 0x156   :  { %v1355_v6 = vadd.f32 %v1354_v45, %v1353_v63  ;;  %v1247_v7 = vmul.f32 %v726_v38, %v726_v38  ;;  %v1593_v5 = vpack.c.bf16 %v2445_v3, %v2445_v3  ;;  %v1163_v9 = vsel %vm1059_vm3, %v726_v38, 0.0 }
 0x157   :  { %v1160_v4 = vadd.f32 %v1159_v61, %v1158_v52  ;;  %1048 = vst.msk [vmem:[%s2548_s3 + $0xd4] sm:$0xf] %vm994_vm2, %v1588_v0  ;;  %v730_v12 = vmax.f32 %v644_v44, 0.0  ;;  %v733_v21 = vmax.f32 %v655_v59, 0.0  ;;  %v1358_v33 = vsel %vm1059_vm3, %v1245_v53, 0.0 }
 0x158   :  { %v1357_v55 = vadd.f32 %v1356_v19, %v1355_v6  ;;  %1053 = vst.msk [vmem:[%s2548_s3 + $0xe8] sm:$0xf] %vm994_vm2, %v1593_v5  ;;  %v647_v11 = vadd.f32 %v2430_v1, %v2179_v29  ;;  %v668_v30 = vadd.f32 %v2430_v1, %v2190_v2  ;;  %v1360_v28 = vsel %vm1059_vm3, %v1246_v37, 0.0 }
 0x159   :  { %v1162_v14 = vadd.f32 %v1161_v27, %v1160_v4  ;;  %v1167_v16 = vsel %vm1059_vm3, %v2401_v10, 0.0  ;;  %v1591_v18 = vpack.c.bf16 %v730_v12, %v730_v12  ;;  %v1362_v22 = vsel %vm1059_vm3, %v1247_v7, 0.0 }
 0x15a   :  { %v1359_v15 = vadd.f32 %v1358_v33, %v1357_v55  ;;  %v1248_v42 = vmul.f32 %v727_v32, %v727_v32  ;;  %v1594_v46 = vpack.c.bf16 %v733_v21, %v733_v21  ;;  %v1165_v31 = vsel %vm1059_vm3, %v727_v32, 0.0 }
 0x15b   :  { %v1164_v40 = vadd.f32 %v1163_v9, %v1162_v14  ;;  %1051 = vst.msk [vmem:[%s2548_s3 + $0xe0] sm:$0xf] %vm994_vm2, %v1591_v18  ;;  %v731_v29 = vmax.f32 %v647_v11, 0.0  ;;  %v736_v2 = vmax.f32 %v668_v30, 0.0  ;;  %v1249_v34 = vmul.f32 %v2401_v10, %v2401_v10 }
 0x15c   :  { %v1361_v26 = vadd.f32 %v1360_v28, %v1359_v15  ;;  %1054 = vst.msk [vmem:[%s2548_s3 + $0xec] sm:$0xf] %vm994_vm2, %v1594_v46  ;;  %v660_v41 = vadd.f32 %v2430_v1, %v2198_v13  ;;  %v671_v43 = vadd.f32 %v2430_v1, %v2208_v23  ;;  %v1169_v48 = vsel %vm1059_vm3, %v729_v17, 0.0 }
 0x15d   :  { %v1166_v8 = vadd.f32 %v1165_v31, %v1164_v40  ;;  %v1250_v49 = vmul.f32 %v729_v17, %v729_v17  ;;  %v1592_v50 = vpack.c.bf16 %v731_v29, %v731_v29  ;;  %v1364_v10 = vsel %vm1059_vm3, %v1248_v42, 0.0 }
 0x15e   :  { %v1363_v35 = vadd.f32 %v1362_v22, %v1361_v26  ;;  %v1251_v38 = vmul.f32 %v730_v12, %v730_v12  ;;  %v1597_v51 = vpack.c.bf16 %v736_v2, %v736_v2  ;;  %v1171_v39 = vsel %vm1059_vm3, %v730_v12, 0.0 }
 0x15f   :  { %v1168_v60 = vadd.f32 %v1167_v16, %v1166_v8  ;;  %1052 = vst.msk [vmem:[%s2548_s3 + $0xe4] sm:$0xf] %vm994_vm2, %v1592_v50  ;;  %v734_v13 = vmax.f32 %v660_v41, 0.0  ;;  %v737_v23 = vmax.f32 %v671_v43, 0.0  ;;  %v1366_v56 = vsel %vm1059_vm3, %v1249_v34, 0.0 }
 0x160   :  { %v1365_v47 = vadd.f32 %v1364_v10, %v1363_v35  ;;  %1057 = vst.msk [vmem:[%s2548_s3 + $0xf8] sm:$0xf] %vm994_vm2, %v1597_v51  ;;  %v663_v17 = vadd.f32 %v2430_v1, %v2211_v36  ;;  %v1368_v58 = vsel %vm1059_vm3, %v1250_v49, 0.0  ;;  %v1370_v45 = vsel %vm1059_vm3, %v1251_v38, 0.0 }
 0x161   :  { %v1170_v54 = vadd.f32 %v1169_v48, %v1168_v60  ;;  %v1595_v57 = vpack.c.bf16 %v734_v13, %v734_v13  ;;  %v1252_v25 = vmul.f32 %v731_v29, %v731_v29  ;;  %v1598_v62 = vpack.c.bf16 %v737_v23, %v737_v23 }
 0x162   :  { %v1367_v61 = vadd.f32 %v1366_v56, %v1365_v47  ;;  %v1173_v24 = vsel %vm1059_vm3, %v731_v29, 0.0  ;;  %v735_v32 = vmax.f32 %v663_v17, 0.0  ;;  %v1253_v36 = vmul.f32 %v2445_v3, %v2445_v3 }
 0x163   :  { %v1172_v20 = vadd.f32 %v1171_v39, %v1170_v54  ;;  %1055 = vst.msk [vmem:[%s2548_s3 + $0xf0] sm:$0xf] %vm994_vm2, %v1595_v57  ;;  %1058 = vst.msk [vmem:[%s2548_s3 + $0xfc] sm:$0xf] %vm994_vm2, %v1598_v62  ;;  %v1175_v53 = vsel %vm1059_vm3, %v2445_v3, 0.0  ;;  %v1254_v59 = vmul.f32 %v733_v21, %v733_v21  ;;  %v1372_v27 = vsel %vm1059_vm3, %v1252_v25, 0.0 }
 0x164   :  { %v1369_v63 = vadd.f32 %v1368_v58, %v1367_v61  ;;  %v1596_v44 = vpack.c.bf16 %v735_v32, %v735_v32  ;;  %v1255_v37 = vmul.f32 %v734_v13, %v734_v13  ;;  %v1177_v0 = vsel %vm1059_vm3, %v733_v21, 0.0 }
 0x165   :  { %v1174_v1 = vadd.f32 %v1173_v24, %v1172_v20  ;;  %v1179_v19 = vsel %vm1059_vm3, %v734_v13, 0.0  ;;  %v1374_v7 = vsel %vm1059_vm3, %v1253_v36, 0.0  ;;  %v1376_v55 = vsel %vm1059_vm3, %v1254_v59, 0.0 }
 0x166   :  { %v1371_v52 = vadd.f32 %v1370_v45, %v1369_v63  ;;  %1056 = vst.msk [vmem:[%s2548_s3 + $0xf4] sm:$0xf] %vm994_vm2, %v1596_v44  ;;  %v1378_v12 = vsel %vm1059_vm3, %v1255_v37, 0.0  ;;  %v1256_v33 = vmul.f32 %v735_v32, %v735_v32  ;;  %v1181_v21 = vsel %vm1059_vm3, %v735_v32, 0.0 }
 0x167   :  { %v1176_v6 = vadd.f32 %v1175_v53, %v1174_v1  ;;  %v1257_v11 = vmul.f32 %v736_v2, %v736_v2  ;;  %v1183_v28 = vsel %vm1059_vm3, %v736_v2, 0.0  ;;  %v1258_v16 = vmul.f32 %v737_v23, %v737_v23 }
 0x168   :  { %v1373_v4 = vadd.f32 %v1372_v27, %v1371_v52  ;;  %v1380_v40 = vsel %vm1059_vm3, %v1256_v33, 0.0  ;;  %v1185_v22 = vsel %vm1059_vm3, %v737_v23, 0.0 }
 0x169   :  { %v1178_v3 = vadd.f32 %v1177_v0, %v1176_v6  ;;  %v1382_v46 = vsel %vm1059_vm3, %v1257_v11, 0.0  ;;  %v1384_v29 = vsel %vm1059_vm3, %v1258_v16, 0.0 }
 0x16a   :  { %v1375_v5 = vadd.f32 %v1374_v7, %v1373_v4 }
 0x16b   :  { %v1180_v9 = vadd.f32 %v1179_v19, %v1178_v3 }
 0x16c   :  { %v1377_v14 = vadd.f32 %v1376_v55, %v1375_v5 }
 0x16d   :  { %v1182_v30 = vadd.f32 %v1181_v21, %v1180_v9 }
 0x16e   :  { %v1379_v15 = vadd.f32 %v1378_v12, %v1377_v14 }
 0x16f   :  { %v1184_v18 = vadd.f32 %v1183_v28, %v1182_v30 }
 0x170   :  { %v1381_v42 = vadd.f32 %v1380_v40, %v1379_v15 }
 0x171   :  { %v1186_v26 = vadd.f32 %v1185_v22, %v1184_v18 }
 0x172   :  { %v1383_v31 = vadd.f32 %v1382_v46, %v1381_v42 }
 0x173   :  { %v1187_v34 = vrot.slane %v1186_v26, 4 }
 0x174   :  { %v1385_v8 = vadd.f32 %v1384_v29, %v1383_v31 }
 0x175   :  { %v1188_v41 = vadd.f32 %v1187_v34, %v1186_v26 }
 0x176   :  { %v1386_v43 = vrot.slane %v1385_v8, 4 }
 0x177   :  { %v1189_v35 = vrot.slane %v1188_v41, 2 }
 0x178   :  { %v1387_v2 = vadd.f32 %v1386_v43, %v1385_v8 }
 0x179   :  { %v1190_v48 = vadd.f32 %v1189_v35, %v1188_v41 }
 0x17a   :  { %v1388_v49 = vrot.slane %v1387_v2, 2 }
 0x17b   :  { %v1191_v50 = vrot.slane %v1190_v48, 1 }
 0x17c   :  { %v1389_v60 = vadd.f32 %v1388_v49, %v1387_v2 }
 0x17d   :  { %v1192_v10 = vadd.f32 %v1191_v50, %v1190_v48 }
 0x17e   :  { %v1390_v38 = vrot.slane %v1389_v60, 1 }
 0x17f   :  { %1194 = vst.msk [vmem:[%s2549_s4] sm:$0x1] %vm1193_vm4, %v1192_v10 }
 0x180   :  { %v1391_v51 = vadd.f32 %v1390_v38, %v1389_v60 }
 0x182   :  { %1392 = vst.msk [vmem:[%s2549_s4 + $0x1] sm:$0x1] %vm1193_vm4, %v1391_v51 }

// kernel: tile.103
= control target key start
LH: loop header
LB: loop body
LE: loop exit
PB: predicated region body
PF: predicated region fallthrough
CT: control target
= control target key end

     0   :  { %s64_s0 = inlined_call_operand.vmem [shape: f32[16], index: 0, kind: input, shape index: {}]   ;;  %s65_s1 = inlined_call_operand.vmem [shape: f32[64,16], index: 1, kind: output, shape index: {}]  }
   0x1   :  { %v4_v0 = vld [vmem:[%s64_s0] ss:$0 sm:$0xff] }
   0x2   :  { %5 = vst [vmem:[%s65_s1] sm:$0xff] %v4_v0  ;;  %20 = vst [vmem:[%s65_s1 + $0x8] sm:$0xff] %v4_v0 }
   0x3   :  { %21 = vst [vmem:[%s65_s1 + $0x10] sm:$0xff] %v4_v0  ;;  %22 = vst [vmem:[%s65_s1 + $0x18] sm:$0xff] %v4_v0 }
   0x4   :  { %23 = vst [vmem:[%s65_s1 + $0x20] sm:$0xff] %v4_v0  ;;  %24 = vst [vmem:[%s65_s1 + $0x28] sm:$0xff] %v4_v0 }
   0x5   :  { %25 = vst [vmem:[%s65_s1 + $0x30] sm:$0xff] %v4_v0  ;;  %26 = vst [vmem:[%s65_s1 + $0x38] sm:$0xff] %v4_v0 }

// kernel: tile.104
= control target key start
LH: loop header
LB: loop body
LE: loop exit
PB: predicated region body
PF: predicated region fallthrough
CT: control target
= control target key end

     0   :  { %vm4_vm0 = vcmask 1047556   ;;  %s167_s16 = smov 112   ;;  %s168_s19 = smov 80   ;;  %vm6_vm1 = vcmask 130048   ;;  %vm17_vm2 = vcmask 1048448   ;;  %vm28_vm3 = vcmask 917248   ;;  %s264_s0 = inlined_call_operand.vmem [shape: f32[64,16], index: 0, kind: input, shape index: {}]   ;;  %s265_s1 = inlined_call_operand.vmem [shape: f32[1,1024], index: 1, kind: output, shape index: {}]  }
   0x1   :  { %v139_v0 = vld [vmem:[%s264_s0 + $0x7] ss:$8 sm:$0xf]   ;;  %v143_v2 = vld [vmem:[%s264_s0 + $0x5] ss:$8 sm:$0xf]  }
   0x2   :  { %v140_v1 = vld [vmem:[%s264_s0 + $0x7] ss:$8 sm:$0xf0]   ;;  %v144_v4 = vld [vmem:[%s264_s0 + $0x5] ss:$8 sm:$0xf0]  }
   0x3   :  { %v14_v3 = vsel %vm4_vm0, %v140_v1, %v139_v0  ;;  %v141_v5 = vld [vmem:[%s264_s0 + $0x6] ss:$8 sm:$0xf]   ;;  %v36_v6 = vsel %vm4_vm0, %v144_v4, %v143_v2  ;;  %v145_v9 = vld [vmem:[%s264_s0 + $0x4] ss:$8 sm:$0xf]  }
   0x4   :  { %15 = vrot.lane.b32.xlu0 %v14_v3, %s167_s16  ;;  %v142_v7 = vld [vmem:[%s264_s0 + $0x6] ss:$8 sm:$0xf0]   ;;  %37 = vrot.lane.b32.xlu1 %v36_v6, %s168_s19  ;;  %v146_v10 = vld [vmem:[%s264_s0 + $0x4] ss:$8 sm:$0xf0]  }
   0x5   :  { %v25_v8 = vsel %vm4_vm0, %v142_v7, %v141_v5  ;;  %v47_v11 = vsel %vm4_vm0, %v146_v10, %v145_v9  ;;  %v147_v12 = vld [vmem:[%s264_s0 + $0x3] ss:$8 sm:$0xf]   ;;  %v149_v14 = vld [vmem:[%s264_s0 + $0x2] ss:$8 sm:$0xf]  }
   0x6   :  { %v148_v13 = vld [vmem:[%s264_s0 + $0x3] ss:$8 sm:$0xf0]   ;;  %s169_s30 = smov 96   ;;  %s170_s4 = smov 64   ;;  %vm39_vm4 = vcmask 786048  }
   0x7   :  { %v150_v15 = vld [vmem:[%s264_s0 + $0x2] ss:$8 sm:$0xf0]   ;;  %v58_v16 = vsel %vm4_vm0, %v148_v13, %v147_v12  ;;  %v151_v17 = vld [vmem:[%s264_s0 + $0x1] ss:$8 sm:$0xf]  }
   0x8   :  { %26 = vrot.lane.b32.xlu0 %v25_v8, %s169_s30  ;;  %48 = vrot.lane.b32.xlu1 %v47_v11, %s170_s4  ;;  %v152_v18 = vld [vmem:[%s264_s0 + $0x1] ss:$8 sm:$0xf0]   ;;  %v69_v19 = vsel %vm4_vm0, %v150_v15, %v149_v14  ;;  %v2_v20 = vld [vmem:[%s264_s0] ss:$8 sm:$0xf]  }
   0x9   :  { %v3_v21 = vld [vmem:[%s264_s0] ss:$8 sm:$0xf0]   ;;  %s171_s0 = smov 48   ;;  %s172_s13 = smov 32   ;;  %v80_v23 = vsel %vm4_vm0, %v152_v18, %v151_v17  ;;  %vm50_vm5 = vcmask 654848  }
   0xa   :  { %v5_v22 = vsel %vm4_vm0, %v3_v21, %v2_v20  ;;  %s173_s14 = smov 16   ;;  %vm61_vm6 = vcmask 523648   ;;  %vm72_vm7 = vcmask 392448   ;;  %vm83_vm8 = vcmask 261248  }
   0xb   :  { %7 = vst.msk [vmem:[#allocation0] ss:$8 sm:$0xf] %vm6_vm1, %v5_v22   ;;  %8 = vst.msk [vmem:[#allocation0] ss:$8 sm:$0xf0] %vm6_vm1, %v5_v22  }
   0xc   :  { %59 = vrot.lane.b32.xlu0 %v58_v16, %s171_s0  ;;  %70 = vrot.lane.b32.xlu1 %v69_v19, %s172_s13 }
  0x10   :  { %81 = vrot.lane.b32.xlu0 %v80_v23, %s173_s14 }
  0x76   :  { %v16_v24 = vpop.permute.xlu0 %15   ;;  %v38_v25 = vpop.permute.xlu1 %37  }
  0x77   :  { %18 = vst.msk [vmem:[#allocation0] ss:$8 sm:$0xf] %vm17_vm2, %v16_v24   ;;  %19 = vst.msk [vmem:[#allocation0] ss:$8 sm:$0xf0] %vm17_vm2, %v16_v24  }
  0x7a   :  { %v27_v26 = vpop.permute.xlu0 %26   ;;  %v49_v27 = vpop.permute.xlu1 %48  }
  0x7b   :  { %29 = vst.msk [vmem:[#allocation0] ss:$8 sm:$0xf] %vm28_vm3, %v27_v26   ;;  %30 = vst.msk [vmem:[#allocation0] ss:$8 sm:$0xf0] %vm28_vm3, %v27_v26  }
  0x7c   :  { %40 = vst.msk [vmem:[#allocation0] ss:$8 sm:$0xf] %vm39_vm4, %v38_v25   ;;  %41 = vst.msk [vmem:[#allocation0] ss:$8 sm:$0xf0] %vm39_vm4, %v38_v25  }
  0x7d   :  { %51 = vst.msk [vmem:[#allocation0] ss:$8 sm:$0xf] %vm50_vm5, %v49_v27   ;;  %52 = vst.msk [vmem:[#allocation0] ss:$8 sm:$0xf0] %vm50_vm5, %v49_v27  }
  0x7e   :  { %v60_v28 = vpop.permute.xlu0 %59   ;;  %v71_v29 = vpop.permute.xlu1 %70  }
  0x7f   :  { %62 = vst.msk [vmem:[#allocation0] ss:$8 sm:$0xf] %vm61_vm6, %v60_v28   ;;  %63 = vst.msk [vmem:[#allocation0] ss:$8 sm:$0xf0] %vm61_vm6, %v60_v28  }
  0x80   :  { %73 = vst.msk [vmem:[#allocation0] ss:$8 sm:$0xf] %vm72_vm7, %v71_v29   ;;  %74 = vst.msk [vmem:[#allocation0] ss:$8 sm:$0xf0] %vm72_vm7, %v71_v29  }
  0x82   :  { %v82_v30 = vpop.permute.xlu0 %81  }
  0x83   :  { %84 = vst.msk [vmem:[#allocation0] ss:$8 sm:$0xf] %vm83_vm8, %v82_v30   ;;  %85 = vst.msk [vmem:[#allocation0] ss:$8 sm:$0xf0] %vm83_vm8, %v82_v30  }
  0x8a   :  { %v89_v31 = vld [vmem:[#allocation0] sm:$0x1]  ;;  %v93_v32 = vld [vmem:[#allocation0 + $0x8] sm:$0x1]  ;;  %v98_v33 = vld [vmem:[#allocation0 + $0x10] sm:$0x1] }
  0x8b   :  { %91 = vst [vmem:[%s265_s1] sm:$0x1] %v89_v31  ;;  %153 = vst [vmem:[%s265_s1 + $0x1] sm:$0x1] %v93_v32  ;;  %v104_v34 = vld [vmem:[#allocation0 + $0x18] sm:$0x1] }
  0x8c   :  { %154 = vst [vmem:[%s265_s1 + $0x2] sm:$0x1] %v98_v33  ;;  %v110_v35 = vld [vmem:[#allocation0 + $0x20] sm:$0x1]  ;;  %v116_v36 = vld [vmem:[#allocation0 + $0x28] sm:$0x1] }
  0x8d   :  { %155 = vst [vmem:[%s265_s1 + $0x3] sm:$0x1] %v104_v34  ;;  %156 = vst [vmem:[%s265_s1 + $0x4] sm:$0x1] %v110_v35  ;;  %v122_v37 = vld [vmem:[#allocation0 + $0x30] sm:$0x1] }
  0x8e   :  { %157 = vst [vmem:[%s265_s1 + $0x5] sm:$0x1] %v116_v36  ;;  %v128_v38 = vld [vmem:[#allocation0 + $0x38] sm:$0x1]  ;;  %158 = vst [vmem:[%s265_s1 + $0x6] sm:$0x1] %v122_v37 }
  0x8f   :  { %159 = vst [vmem:[%s265_s1 + $0x7] sm:$0x1] %v128_v38 }

// kernel: unet_forward.24
= control target key start
LH: loop header
LB: loop body
LE: loop exit
PB: predicated region body
PF: predicated region fallthrough
CT: control target
= control target key end

     0   :  { %vm116_vm0 = vcmask 588800   ;;  %vm141_vm1 = vcmask 1043456   ;;  %vm322_vm2 = vcmask 125952   ;;  %vm339_vm3 = vcmask 130048   ;;  %s768_s1 = inlined_call_operand.vmem [shape: bf16[72,16], index: 1, kind: input, shape index: {}]   ;;  %s769_s0 = inlined_call_operand.vmem [shape: bf16[128,72], index: 0, kind: input, shape index: {}]   ;;  %s770_s2 = inlined_call_operand.vmem [shape: f32[1,16], index: 2, kind: input, shape index: {}]   ;;  %s771_s3 = inlined_call_operand.vmem [shape: bf16[128,16], index: 3, kind: output, shape index: {0}]   ;;  %s772_s4 = inlined_call_operand.vmem [shape: f32[1,2,16], index: 4, kind: output, shape index: {1}]  }
   0x1   :  { %v546_v0 = vld [vmem:[%s768_s1] sm:$0xff]   ;;  %v547_v1 = vld [vmem:[%s768_s1 + $0x8] sm:$0xff]   ;;  %v548_v2 = vld [vmem:[%s768_s1 + $0x10] sm:$0xff]   ;;  %vm377_vm4 = vcmask 122880  }
   0x2   :  { %508 = vmatprep.subr.bf16.mxu0 %v546_v0  ;;  %534 = vmatprep.subr.bf16.mxu1 %v546_v0  ;;  %v551_v3 = vld [vmem:[%s769_s0] sm:$0xff]   ;;  %v549_v4 = vld [vmem:[%s768_s1 + $0x18] sm:$0xff]   ;;  %v552_v8 = vld [vmem:[%s769_s0 + $0x8] sm:$0xff]  }
   0x3   :  { %509 = vmatpush3.bf16.msra.mxu0 %v546_v0  ;;  %539 = vmatpush3.bf16.msra.mxu1 %v546_v0  ;;  %v555_v5 = vld [vmem:[%s769_s0 + $0x20] sm:$0xff]   ;;  %v556_v9 = vld [vmem:[%s769_s0 + $0x28] sm:$0xff]   ;;  %v553_v10 = vld [vmem:[%s769_s0 + $0x10] sm:$0xff]  }
   0x4   :  { %510 = vmatprep.subr.bf16.mxu0 %v547_v1  ;;  %535 = vmatprep.subr.bf16.mxu1 %v547_v1  ;;  %v550_v6 = vld [vmem:[%s768_s1 + $0x20] ss:$0 sps:$4 sm:$0xff]   ;;  %v557_v11 = vld [vmem:[%s769_s0 + $0x30] sm:$0xff]   ;;  %v554_v12 = vld [vmem:[%s769_s0 + $0x18] sm:$0xff]  }
   0x5   :  { %518 = vmatprep.mubr.msk.bf16.mxu0 %vm116_vm0, %v551_v3  ;;  %526 = vmatprep.mubr.msk.bf16.mxu1 %vm116_vm0, %v555_v5  ;;  %v143_v7 = vsel %vm141_vm1, %v550_v6, 0  ;;  %v558_v13 = vld [vmem:[%s769_s0 + $0x38] sm:$0xff]   ;;  %v634_v14 = vld [vmem:[%s770_s2] ss:$0 sm:$0xff] }
   0x7   :  { %511 = vmatpush3.bf16.msra.mxu0 %v547_v1  ;;  %540 = vmatpush3.bf16.msra.mxu1 %v547_v1 }
   0x8   :  { %512 = vmatprep.subr.bf16.mxu0 %v548_v2  ;;  %536 = vmatprep.subr.bf16.mxu1 %v548_v2 }
   0xb   :  { %513 = vmatpush3.bf16.msra.mxu0 %v548_v2  ;;  %541 = vmatpush3.bf16.msra.mxu1 %v548_v2 }
   0xc   :  { %514 = vmatprep.subr.bf16.mxu0 %v549_v4  ;;  %537 = vmatprep.subr.bf16.mxu1 %v549_v4 }
   0xf   :  { %515 = vmatpush3.bf16.msra.mxu0 %v549_v4  ;;  %542 = vmatpush3.bf16.msra.mxu1 %v549_v4 }
  0x10   :  { %544 = vmatprep.subr.msk.bf16.mxu0 %vm141_vm1, %v550_v6  ;;  %545 = vmatprep.subr.msk.bf16.mxu1 %vm141_vm1, %v550_v6 }
  0x13   :  { %517 = vmatpush3.bf16.msra.mxu0 %v143_v7  ;;  %543 = vmatpush3.bf16.msra.mxu1 %v143_v7 }
  0x16   :  { %519 = vmatmul.mubr.msk.bf16.vlgmr.msra.gmra.mrb[0].mxu0 %vm116_vm0, %v552_v8  ;;  %527 = vmatmul.mubr.msk.bf16.vlgmr.msra.gmra.mrb[0].mxu1 %vm116_vm0, %v556_v9 }
  0x17   :  { %522 = vmatprep.mubr.msk.bf16.mxu0 %vm116_vm0, %v553_v10  ;;  %530 = vmatprep.mubr.msk.bf16.mxu1 %vm116_vm0, %v557_v11 }
  0x1e   :  { %523 = vmatmul.mubr.msk.bf16.gmra.mrb[4].mxu0 %vm116_vm0, %v554_v12  ;;  %531 = vmatmul.mubr.msk.bf16.gmra.mrb[4].mxu1 %vm116_vm0, %v558_v13 }
  0xe9   :  { %v520_v15 = vpop.f32.mrb[0].mxu0  ;;  %v528_v16 = vpop.f32.mrb[0].mxu1 }
  0xea   :  { %v188_v17 = vadd.f32 %v520_v15, %v634_v14  ;;  %v179_v18 = vpop.f32.mrb[1].mxu0  ;;  %v220_v19 = vadd.f32 %v528_v16, %v634_v14  ;;  %v211_v20 = vpop.f32.mrb[1].mxu1 }
  0xeb   :  { %v180_v21 = vadd.f32 %v634_v14, %v179_v18  ;;  %v521_v22 = vpop.f32.mrb[2].mxu0  ;;  %v529_v23 = vpop.f32.mrb[2].mxu1  ;;  %v212_v27 = vadd.f32 %v634_v14, %v211_v20 }
  0xec   :  { %v244_v24 = vmax.f32 %v188_v17, 0.0  ;;  %v191_v25 = vadd.f32 %v521_v22, %v634_v14  ;;  %v182_v26 = vpop.f32.mrb[3].mxu0  ;;  %v214_v28 = vpop.f32.mrb[3].mxu1  ;;  %v642_v33 = vmax.f32 %v220_v19, 0.0  ;;  %v223_v40 = vadd.f32 %v529_v23, %v634_v14 }
  0xed   :  { %v242_v29 = vmax.f32 %v180_v21, 0.0  ;;  %v183_v30 = vadd.f32 %v634_v14, %v182_v26  ;;  %v648_v39 = vmax.f32 %v212_v27, 0.0  ;;  %v215_v17 = vadd.f32 %v634_v14, %v214_v28 }
  0xee   :  { %v481_v31 = vpack.c.bf16 %v244_v24, %v244_v24  ;;  %v245_v32 = vmax.f32 %v191_v25, 0.0  ;;  %v381_v37 = vmul.f32 %v244_v24, %v244_v24  ;;  %v489_v51 = vpack.c.bf16 %v642_v33, %v642_v33 }
  0xef   :  { %v479_v34 = vpack.c.bf16 %v242_v29, %v242_v29  ;;  %v379_v35 = vmul.f32 %v242_v29, %v242_v29  ;;  %v243_v36 = vmax.f32 %v183_v30, 0.0  ;;  %v340_v41 = vsel %vm339_vm3, %v242_v29, 0.0 }
  0xf0   :  { %325 = vst.msk [vmem:[%s771_s3 + $0x8] sm:$0xf] %vm322_vm2, %v481_v31  ;;  %v482_v38 = vpack.c.bf16 %v245_v32, %v245_v32  ;;  %v382_v47 = vmul.f32 %v245_v32, %v245_v32  ;;  %v343_v53 = vsel %vm339_vm3, %v244_v24, 0.0  ;;  %333 = vst.msk [vmem:[%s771_s3 + $0x28] sm:$0xf] %vm322_vm2, %v489_v51  ;;  %v398_v1 = vsel %vm339_vm3, %v381_v37, 0.0 }
  0xf1   :  { %323 = vst.msk [vmem:[%s771_s3] sm:$0xf] %vm322_vm2, %v479_v34  ;;  %v480_v42 = vpack.c.bf16 %v243_v36, %v243_v36  ;;  %v341_v43 = vsel %vm339_vm3, %v243_v36, 0.0  ;;  %v380_v44 = vmul.f32 %v243_v36, %v243_v36  ;;  %v524_v45 = vpop.f32.mrb[4].mxu0  ;;  %v532_v46 = vpop.f32.mrb[4].mxu1  ;;  %v395_v54 = vsel %vm339_vm3, %v379_v35, 0.0 }
  0xf2   :  { %326 = vst.msk [vmem:[%s771_s3 + $0xc] sm:$0xf] %vm322_vm2, %v482_v38  ;;  %v342_v48 = vadd.f32 %v341_v43, %v340_v41  ;;  %v204_v49 = vadd.f32 %v524_v45, %v634_v14  ;;  %v195_v50 = vpop.f32.mrb[5].mxu0  ;;  %v227_v52 = vpop.f32.mrb[5].mxu1  ;;  %v487_v4 = vpack.c.bf16 %v648_v39, %v648_v39  ;;  %v345_v5 = vsel %vm339_vm3, %v245_v32, 0.0 }
  0xf3   :  { %324 = vst.msk [vmem:[%s771_s3 + $0x4] sm:$0xf] %vm322_vm2, %v480_v42  ;;  %v396_v55 = vsel %vm339_vm3, %v380_v44, 0.0  ;;  %v196_v56 = vadd.f32 %v634_v14, %v195_v50  ;;  %v525_v57 = vpop.f32.mrb[6].mxu0  ;;  %v533_v58 = vpop.f32.mrb[6].mxu1  ;;  %v400_v6 = vsel %vm339_vm3, %v382_v47, 0.0  ;;  %v387_v27 = vmul.f32 %v648_v39, %v648_v39 }
  0xf4   :  { %v344_v59 = vadd.f32 %v343_v53, %v342_v48  ;;  %v397_v60 = vadd.f32 %v396_v55, %v395_v54  ;;  %v248_v61 = vmax.f32 %v204_v49, 0.0  ;;  %v207_v62 = vadd.f32 %v525_v57, %v634_v14  ;;  %v198_v63 = vpop.f32.mrb[7].mxu0  ;;  %v230_v0 = vpop.f32.mrb[7].mxu1  ;;  %331 = vst.msk [vmem:[%s771_s3 + $0x20] sm:$0xf] %vm322_vm2, %v487_v4 }
  0xf5   :  { %v246_v2 = vmax.f32 %v196_v56, 0.0  ;;  %v199_v3 = vadd.f32 %v634_v14, %v198_v63  ;;  %v253_v30 = vmax.f32 %v223_v40, 0.0  ;;  %v251_v31 = vmax.f32 %v215_v17, 0.0 }
  0xf6   :  { %v399_v7 = vadd.f32 %v398_v1, %v397_v60  ;;  %v485_v8 = vpack.c.bf16 %v248_v61, %v248_v61  ;;  %v346_v10 = vadd.f32 %v345_v5, %v344_v59  ;;  %v249_v15 = vmax.f32 %v207_v62, 0.0 }
  0xf7   :  { %v483_v9 = vpack.c.bf16 %v246_v2, %v246_v2  ;;  %v347_v11 = vsel %vm339_vm3, %v246_v2, 0.0  ;;  %v383_v12 = vmul.f32 %v246_v2, %v246_v2  ;;  %v247_v16 = vmax.f32 %v199_v3, 0.0 }
  0xf8   :  { %329 = vst.msk [vmem:[%s771_s3 + $0x18] sm:$0xf] %vm322_vm2, %v485_v8  ;;  %v401_v13 = vadd.f32 %v400_v6, %v399_v7  ;;  %v348_v18 = vadd.f32 %v347_v11, %v346_v10  ;;  %v351_v20 = vsel %vm339_vm3, %v248_v61, 0.0  ;;  %v385_v21 = vmul.f32 %v248_v61, %v248_v61 }
  0xf9   :  { %327 = vst.msk [vmem:[%s771_s3 + $0x10] sm:$0xf] %vm322_vm2, %v483_v9  ;;  %v402_v19 = vsel %vm339_vm3, %v383_v12, 0.0  ;;  %v486_v23 = vpack.c.bf16 %v249_v15, %v249_v15  ;;  %v484_v24 = vpack.c.bf16 %v247_v16, %v247_v16  ;;  %v349_v25 = vsel %vm339_vm3, %v247_v16, 0.0 }
  0xfa   :  { %v403_v22 = vadd.f32 %v402_v19, %v401_v13  ;;  %v384_v26 = vmul.f32 %v247_v16, %v247_v16  ;;  %v386_v28 = vmul.f32 %v249_v15, %v249_v15  ;;  %v350_v29 = vadd.f32 %v349_v25, %v348_v18 }
  0xfb   :  { %330 = vst.msk [vmem:[%s771_s3 + $0x1c] sm:$0xf] %vm322_vm2, %v486_v23  ;;  %328 = vst.msk [vmem:[%s771_s3 + $0x14] sm:$0xf] %vm322_vm2, %v484_v24  ;;  %v236_v34 = vadd.f32 %v532_v46, %v634_v14  ;;  %v228_v35 = vadd.f32 %v634_v14, %v227_v52  ;;  %v239_v36 = vadd.f32 %v533_v58, %v634_v14  ;;  %v406_v37 = vsel %vm339_vm3, %v385_v21, 0.0 }
  0xfc   :  { %v404_v32 = vsel %vm339_vm3, %v384_v26, 0.0  ;;  %v352_v38 = vadd.f32 %v351_v20, %v350_v29  ;;  %v490_v42 = vpack.c.bf16 %v253_v30, %v253_v30  ;;  %v353_v40 = vsel %vm339_vm3, %v249_v15, 0.0 }
  0xfd   :  { %v405_v41 = vadd.f32 %v404_v32, %v403_v22  ;;  %v355_v43 = vsel %vm339_vm3, %v648_v39, 0.0  ;;  %v410_v44 = vsel %vm339_vm3, %v387_v27, 0.0  ;;  %v488_v45 = vpack.c.bf16 %v251_v31, %v251_v31 }
  0xfe   :  { %v354_v48 = vadd.f32 %v353_v40, %v352_v38  ;;  %334 = vst.msk [vmem:[%s771_s3 + $0x2c] sm:$0xf] %vm322_vm2, %v490_v42  ;;  %v256_v46 = vmax.f32 %v236_v34, 0.0  ;;  %v254_v49 = vmax.f32 %v228_v35, 0.0  ;;  %v408_v50 = vsel %vm339_vm3, %v386_v28, 0.0 }
  0xff   :  { %v407_v47 = vadd.f32 %v406_v37, %v405_v41  ;;  %332 = vst.msk [vmem:[%s771_s3 + $0x24] sm:$0xf] %vm322_vm2, %v488_v45  ;;  %v388_v39 = vmul.f32 %v251_v31, %v251_v31  ;;  %v257_v51 = vmax.f32 %v239_v36, 0.0  ;;  %v231_v52 = vadd.f32 %v634_v14, %v230_v0 }
 0x100   :  { %v356_v53 = vadd.f32 %v355_v43, %v354_v48  ;;  %v493_v55 = vpack.c.bf16 %v256_v46, %v256_v46  ;;  %v389_v56 = vmul.f32 %v642_v33, %v642_v33  ;;  %v357_v57 = vsel %vm339_vm3, %v251_v31, 0.0 }
 0x101   :  { %v409_v54 = vadd.f32 %v408_v50, %v407_v47  ;;  %v491_v58 = vpack.c.bf16 %v254_v49, %v254_v49  ;;  %v359_v59 = vsel %vm339_vm3, %v642_v33, 0.0  ;;  %v494_v14 = vpack.c.bf16 %v257_v51, %v257_v51 }
 0x102   :  { %v358_v61 = vadd.f32 %v357_v57, %v356_v53  ;;  %337 = vst.msk [vmem:[%s771_s3 + $0x38] sm:$0xf] %vm322_vm2, %v493_v55  ;;  %v390_v62 = vmul.f32 %v253_v30, %v253_v30  ;;  %v412_v63 = vsel %vm339_vm3, %v388_v39, 0.0  ;;  %v391_v0 = vmul.f32 %v254_v49, %v254_v49 }
 0x103   :  { %v411_v60 = vadd.f32 %v410_v44, %v409_v54  ;;  %335 = vst.msk [vmem:[%s771_s3 + $0x30] sm:$0xf] %vm322_vm2, %v491_v58  ;;  %v255_v1 = vmax.f32 %v231_v52, 0.0  ;;  %338 = vst.msk [vmem:[%s771_s3 + $0x3c] sm:$0xf] %vm322_vm2, %v494_v14  ;;  %v414_v3 = vsel %vm339_vm3, %v389_v56, 0.0  ;;  %v393_v15 = vmul.f32 %v256_v46, %v256_v46 }
 0x104   :  { %v360_v2 = vadd.f32 %v359_v59, %v358_v61  ;;  %v361_v4 = vsel %vm339_vm3, %v253_v30, 0.0  ;;  %v363_v5 = vsel %vm339_vm3, %v254_v49, 0.0  ;;  %v416_v9 = vsel %vm339_vm3, %v390_v62, 0.0 }
 0x105   :  { %v413_v33 = vadd.f32 %v412_v63, %v411_v60  ;;  %v492_v6 = vpack.c.bf16 %v255_v1, %v255_v1  ;;  %v418_v10 = vsel %vm339_vm3, %v391_v0, 0.0  ;;  %v392_v11 = vmul.f32 %v255_v1, %v255_v1 }
 0x106   :  { %v362_v8 = vadd.f32 %v361_v4, %v360_v2  ;;  %v365_v16 = vsel %vm339_vm3, %v255_v1, 0.0  ;;  %v367_v19 = vsel %vm339_vm3, %v256_v46, 0.0  ;;  %v394_v20 = vmul.f32 %v257_v51, %v257_v51 }
 0x107   :  { %v415_v7 = vadd.f32 %v414_v3, %v413_v33  ;;  %336 = vst.msk [vmem:[%s771_s3 + $0x34] sm:$0xf] %vm322_vm2, %v492_v6  ;;  %v420_v21 = vsel %vm339_vm3, %v392_v11, 0.0  ;;  %v422_v24 = vsel %vm339_vm3, %v393_v15, 0.0  ;;  %v369_v25 = vsel %vm339_vm3, %v257_v51, 0.0 }
 0x108   :  { %v364_v12 = vadd.f32 %v363_v5, %v362_v8  ;;  %v424_v28 = vsel %vm339_vm3, %v394_v20, 0.0 }
 0x109   :  { %v417_v13 = vadd.f32 %v416_v9, %v415_v7 }
 0x10a   :  { %v366_v18 = vadd.f32 %v365_v16, %v364_v12 }
 0x10b   :  { %v419_v17 = vadd.f32 %v418_v10, %v417_v13 }
 0x10c   :  { %v368_v22 = vadd.f32 %v367_v19, %v366_v18 }
 0x10d   :  { %v421_v23 = vadd.f32 %v420_v21, %v419_v17 }
 0x10e   :  { %v370_v26 = vadd.f32 %v369_v25, %v368_v22 }
 0x10f   :  { %v423_v27 = vadd.f32 %v422_v24, %v421_v23 }
 0x110   :  { %v371_v29 = vrot.slane %v370_v26, 4 }
 0x111   :  { %v425_v30 = vadd.f32 %v424_v28, %v423_v27 }
 0x112   :  { %v372_v31 = vadd.f32 %v371_v29, %v370_v26 }
 0x113   :  { %v426_v32 = vrot.slane %v425_v30, 4 }
 0x114   :  { %v373_v34 = vrot.slane %v372_v31, 2 }
 0x115   :  { %v427_v35 = vadd.f32 %v426_v32, %v425_v30 }
 0x116   :  { %v374_v36 = vadd.f32 %v373_v34, %v372_v31 }
 0x117   :  { %v428_v37 = vrot.slane %v427_v35, 2 }
 0x118   :  { %v375_v38 = vrot.slane %v374_v36, 1 }
 0x119   :  { %v429_v41 = vadd.f32 %v428_v37, %v427_v35 }
 0x11a   :  { %v376_v42 = vadd.f32 %v375_v38, %v374_v36 }
 0x11b   :  { %v430_v40 = vrot.slane %v429_v41, 1 }
 0x11c   :  { %378 = vst.msk [vmem:[%s772_s4] sm:$0x1] %vm377_vm4, %v376_v42 }
 0x11d   :  { %v431_v43 = vadd.f32 %v430_v40, %v429_v41 }
 0x11f   :  { %432 = vst.msk [vmem:[%s772_s4 + $0x1] sm:$0x1] %vm377_vm4, %v431_v43 }

// kernel: unet_forward.25
= control target key start
LH: loop header
LB: loop body
LE: loop exit
PB: predicated region body
PF: predicated region fallthrough
CT: control target
= control target key end

     0   :  { %v19_v0 = vlaneseq  ;;  %v282_v2 = vmov 1983009808   ;;  %v283_v48 = vmov 1966171168   ;;  %s316_s0 = inlined_call_operand.vmem [shape: bf16[2,1024], index: 0, kind: input, shape index: {}]   ;;  %s317_s1 = inlined_call_operand.vmem [shape: f32[1,1024], index: 1, kind: input, shape index: {}]   ;;  %s318_s2 = inlined_call_operand.vmem [shape: f32[1,1024], index: 2, kind: input, shape index: {}]   ;;  %s319_s3 = inlined_call_operand.vmem [shape: bf16[2,1024], index: 3, kind: output, shape index: {}]  }
   0x1   :  { %v14_v1 = vld [vmem:[%s316_s0] sm:$0xff]  ;;  %v54_v3 = vunpack.c.l.s4 %v282_v2  ;;  %v226_v49 = vunpack.c.l.s4 %v283_v48 }
   0x2   :  { %v20_v4 = vshrl.u32 %v19_v0, 7  ;;  %v15_v5 = vunpack.c.l.bf16 %v14_v1  ;;  %v16_v6 = vunpack.c.h.bf16 %v14_v1  ;;  %v17_v7 = vld [vmem:[%s317_s1] sm:$0xff] }
   0x3   :  { %v55_v8 = vunpack.c.0.s8 %v54_v3  ;;  %v89_v17 = vld [vmem:[%s318_s2] sm:$0xff]  ;;  %v227_v58 = vunpack.c.0.s8 %v226_v49 }
   0x4   :  { %v21_v9 = vsub.s32 0, %v20_v4  ;;  %v25_v10 = vsub.s32 1, %v20_v4  ;;  %v29_v11 = vsub.s32 2, %v20_v4  ;;  %v33_v12 = vsub.s32 3, %v20_v4 }
   0x5   :  { %v37_v13 = vsub.s32 4, %v20_v4  ;;  %v41_v14 = vsub.s32 5, %v20_v4  ;;  %v45_v15 = vsub.s32 6, %v20_v4  ;;  %v49_v16 = vsub.s32 7, %v20_v4 }
   0x6   :  { %v22_v18 = vrot.slane %v17_v7, %v21_v9  ;;  %v26_v19 = vrot.slane %v17_v7, %v25_v10  ;;  %v30_v20 = vrot.slane %v17_v7, %v29_v11  ;;  %v34_v21 = vrot.slane %v17_v7, %v33_v12 }
   0x7   :  { %v38_v22 = vrot.slane %v17_v7, %v37_v13  ;;  %v42_v23 = vrot.slane %v17_v7, %v41_v14  ;;  %v46_v24 = vrot.slane %v17_v7, %v45_v15  ;;  %v50_v25 = vrot.slane %v17_v7, %v49_v16 }
   0x8   :  { %v51_v26 = vcombine.low %v22_v18, %v26_v19  ;;  %v52_v27 = vcombine.low %v30_v20, %v34_v21  ;;  %v58_v28 = vsub.s32 %v55_v8, %v20_v4  ;;  %v94_v29 = vrot.slane %v89_v17, %v21_v9 }
   0x9   :  { %v68_v30 = vcombine.low %v38_v22, %v42_v23  ;;  %v69_v31 = vcombine.low %v46_v24, %v50_v25  ;;  %v98_v32 = vrot.slane %v89_v17, %v25_v10  ;;  %v102_v33 = vrot.slane %v89_v17, %v29_v11 }
   0xa   :  { %v59_v34 = vrot.slane %v51_v26, %v58_v28  ;;  %v66_v35 = vrot.slane %v52_v27, %v58_v28  ;;  %v106_v36 = vrot.slane %v89_v17, %v33_v12  ;;  %v110_v37 = vrot.slane %v89_v17, %v37_v13 }
   0xb   :  { %v76_v38 = vrot.slane %v68_v30, %v58_v28  ;;  %v83_v39 = vrot.slane %v69_v31, %v58_v28  ;;  %v114_v40 = vrot.slane %v89_v17, %v41_v14  ;;  %v118_v41 = vrot.slane %v89_v17, %v45_v15 }
   0xc   :  { %v67_v42 = vcombine.low %v59_v34, %v66_v35  ;;  %v122_v43 = vrot.slane %v89_v17, %v49_v16  ;;  %v123_v44 = vcombine.low %v94_v29, %v98_v32  ;;  %v124_v45 = vcombine.low %v102_v33, %v106_v36 }
   0xd   :  { %v84_v46 = vcombine.low %v76_v38, %v83_v39  ;;  %v140_v47 = vcombine.low %v110_v37, %v114_v40  ;;  %v230_v0 = vsub.s32 %v227_v58, %v20_v4 }
   0xe   :  { %v87_v50 = vmul.f32 %v67_v42, %v15_v5  ;;  %v131_v51 = vrot.slane %v123_v44, %v58_v28  ;;  %v138_v52 = vrot.slane %v124_v45, %v58_v28  ;;  %v141_v53 = vcombine.low %v118_v41, %v122_v43 }
   0xf   :  { %v148_v54 = vrot.slane %v140_v47, %v58_v28  ;;  %v88_v55 = vmul.f32 %v84_v46, %v16_v6 }
  0x10   :  { %v139_v56 = vcombine.low %v131_v51, %v138_v52  ;;  %v155_v57 = vrot.slane %v141_v53, %v58_v28 }
  0x12   :  { %v156_v59 = vcombine.low %v148_v54, %v155_v57  ;;  %v159_v60 = vadd.f32 %v139_v56, %v87_v50 }
  0x14   :  { %v160_v61 = vadd.f32 %v156_v59, %v88_v55  ;;  %v163_v62 = vcombine.high %v159_v60, %v159_v60  ;;  %v170_v63 = vrot.slane %v159_v60, %v58_v28 }
  0x16   :  { %v177_v1 = vrot.slane %v163_v62, %v58_v28  ;;  %v178_v2 = vcombine.high %v170_v63, %v170_v63  ;;  %v180_v3 = vcombine.high %v160_v61, %v160_v61  ;;  %v187_v7 = vrot.slane %v160_v61, %v58_v28 }
  0x18   :  { %v179_v8 = vcombine.high %v177_v1, %v177_v1  ;;  %v194_v5 = vrot.slane %v180_v3, %v58_v28  ;;  %v195_v9 = vcombine.high %v187_v7, %v187_v7  ;;  %v276_v10 = vpack.c.bf16 %v178_v2, %v170_v63 }
  0x1a   :  { %v196_v11 = vcombine.high %v194_v5, %v194_v5  ;;  %v277_v12 = vpack.c.bf16 %v179_v8, %v177_v1  ;;  %v278_v6 = vpack.c.bf16 %v195_v9, %v187_v7  ;;  %v231_v13 = vrot.slane %v276_v10, %v230_v0 }
  0x1c   :  { %v279_v14 = vpack.c.bf16 %v196_v11, %v194_v5  ;;  %v238_v15 = vrot.slane %v277_v12, %v230_v0  ;;  %v245_v16 = vrot.slane %v278_v6, %v230_v0 }
  0x1e   :  { %v252_v17 = vrot.slane %v279_v14, %v230_v0  ;;  %v253_v18 = vcombine.low %v231_v13, %v238_v15 }
  0x20   :  { %v254_v19 = vcombine.low %v245_v16, %v252_v17  ;;  %v261_v20 = vrot.slane %v253_v18, %v230_v0 }
  0x22   :  { %v268_v4 = vrot.slane %v254_v19, %v230_v0 }
  0x24   :  { %v269_v21 = vcombine.low %v261_v20, %v268_v4 }
  0x26   :  { %271 = vst [vmem:[%s319_s3] sm:$0xff] %v269_v21 }

// kernel: tile.123
= control target key start
LH: loop header
LB: loop body
LE: loop exit
PB: predicated region body
PF: predicated region fallthrough
CT: control target
= control target key end

     0   :  { %s40_s0 = inlined_call_operand.vmem [shape: f32[32], index: 0, kind: input, shape index: {}]   ;;  %s41_s1 = inlined_call_operand.vmem [shape: f32[32,32], index: 1, kind: output, shape index: {}]  }
   0x1   :  { %v4_v0 = vld [vmem:[%s40_s0] ss:$0 sm:$0xff] }
   0x2   :  { %5 = vst [vmem:[%s41_s1] sm:$0xff] %v4_v0  ;;  %12 = vst [vmem:[%s41_s1 + $0x8] sm:$0xff] %v4_v0 }
   0x3   :  { %13 = vst [vmem:[%s41_s1 + $0x10] sm:$0xff] %v4_v0  ;;  %14 = vst [vmem:[%s41_s1 + $0x18] sm:$0xff] %v4_v0 }

// kernel: unet_forward.26
= control target key start
LH: loop header
LB: loop body
LE: loop exit
PB: predicated region body
PF: predicated region fallthrough
CT: control target
= control target key end

     0   :  { %v622_v0 = vmov 0   ;;  %vm184_vm0 = vcmask 130048   ;;  %vm386_vm1 = vcmask 125952   ;;  %vm440_vm2 = vcmask 122880   ;;  %s896_s1 = inlined_call_operand.vmem [shape: bf16[144,16], index: 1, kind: input, shape index: {}]   ;;  %s897_s0 = inlined_call_operand.vmem [shape: bf16[128,144], index: 0, kind: input, shape index: {}]   ;;  %s898_s2 = inlined_call_operand.vmem [shape: f32[1,16], index: 2, kind: input, shape index: {}]   ;;  %s899_s3 = inlined_call_operand.vmem [shape: bf16[128,16], index: 3, kind: output, shape index: {0}]   ;;  %s900_s4 = inlined_call_operand.vmem [shape: f32[1,2,16], index: 4, kind: output, shape index: {1}]  }
   0x1   :  { %209 = vmatprep.subr.bf16.mxu0 %v622_v0  ;;  %v589_v1 = vld [vmem:[%s896_s1] sm:$0xff]   ;;  %570 = vmatprep.subr.bf16.mxu1 %v622_v0  ;;  %v590_v2 = vld [vmem:[%s896_s1 + $0x8] sm:$0xff]   ;;  %v591_v3 = vld [vmem:[%s896_s1 + $0x10] sm:$0xff]  }
   0x2   :  { %210 = vmatpush1.bf16.msra.mxu0 %v589_v1  ;;  %579 = vmatpush1.bf16.msra.mxu1 %v589_v1  ;;  %v592_v4 = vld [vmem:[%s896_s1 + $0x18] sm:$0xff]   ;;  %v600_v5 = vld [vmem:[%s897_s0 + $0x4] ss:$8 sps:$4 sm:$0xff]   ;;  %v595_v9 = vld [vmem:[%s896_s1 + $0x30] sm:$0xff]  }
   0x3   :  { %211 = vmatprep.subr.bf16.mxu0 %v622_v0  ;;  %571 = vmatprep.subr.bf16.mxu1 %v622_v0  ;;  %v606_v6 = vld [vmem:[%s897_s0 + $0x44] ss:$8 sps:$4 sm:$0xff]   ;;  %v596_v10 = vld [vmem:[%s896_s1 + $0x38] sm:$0xff]   ;;  %v598_v12 = vld [vmem:[%s897_s0] ss:$8 sps:$4 sm:$0xff]  }
   0x4   :  { %530 = vmatprep.mubr.msk.bf16.mxu0 %vm184_vm0, %v600_v5  ;;  %v593_v7 = vld [vmem:[%s896_s1 + $0x20] sm:$0xff]   ;;  %534 = vmatprep.mubr.msk.bf16.mxu1 %vm184_vm0, %v606_v6  ;;  %v594_v8 = vld [vmem:[%s896_s1 + $0x28] sm:$0xff]   ;;  %v601_v14 = vld [vmem:[%s897_s0 + $0x14] ss:$8 sps:$4 sm:$0xff]  }
   0x5   :  { %v597_v11 = vld [vmem:[%s896_s1 + $0x40] sm:$0xff]   ;;  %v610_v15 = vld [vmem:[%s897_s0 + $0x54] ss:$8 sps:$4 sm:$0xff]   ;;  %v603_v16 = vld [vmem:[%s897_s0 + $0x10] ss:$8 sps:$4 sm:$0xff]  }
   0x6   :  { %212 = vmatpush1.bf16.msra.mxu0 %v590_v2  ;;  %580 = vmatpush1.bf16.msra.mxu1 %v590_v2  ;;  %v604_v13 = vld [vmem:[%s897_s0 + $0x40] ss:$8 sps:$4 sm:$0xff]   ;;  %v612_v17 = vld [vmem:[%s897_s0 + $0x50] ss:$8 sps:$4 sm:$0xff]   ;;  %v607_v18 = vld [vmem:[%s897_s0 + $0x24] ss:$8 sps:$4 sm:$0xff]  }
   0x7   :  { %213 = vmatprep.subr.bf16.mxu0 %v622_v0  ;;  %572 = vmatprep.subr.bf16.mxu1 %v622_v0  ;;  %v616_v19 = vld [vmem:[%s897_s0 + $0x64] ss:$8 sps:$4 sm:$0xff]   ;;  %v609_v20 = vld [vmem:[%s897_s0 + $0x20] ss:$8 sps:$4 sm:$0xff]   ;;  %v613_v22 = vld [vmem:[%s897_s0 + $0x34] ss:$8 sps:$4 sm:$0xff]  }
   0x8   :  { %v618_v21 = vld [vmem:[%s897_s0 + $0x60] ss:$8 sps:$4 sm:$0xff]   ;;  %v619_v23 = vld [vmem:[%s897_s0 + $0x74] ss:$8 sps:$4 sm:$0xff]   ;;  %v615_v24 = vld [vmem:[%s897_s0 + $0x30] ss:$8 sps:$4 sm:$0xff]  }
   0x9   :  { %v621_v25 = vld [vmem:[%s897_s0 + $0x70] ss:$8 sps:$4 sm:$0xff]   ;;  %v734_v26 = vld [vmem:[%s898_s2] ss:$0 sm:$0xff] }
   0xa   :  { %214 = vmatpush1.bf16.msra.mxu0 %v591_v3  ;;  %581 = vmatpush1.bf16.msra.mxu1 %v591_v3 }
   0xb   :  { %215 = vmatprep.subr.bf16.mxu0 %v622_v0  ;;  %573 = vmatprep.subr.bf16.mxu1 %v622_v0 }
   0xe   :  { %216 = vmatpush1.bf16.msra.mxu0 %v592_v4  ;;  %582 = vmatpush1.bf16.msra.mxu1 %v592_v4 }
   0xf   :  { %217 = vmatprep.subr.bf16.mxu0 %v622_v0  ;;  %574 = vmatprep.subr.bf16.mxu1 %v622_v0 }
  0x12   :  { %218 = vmatpush1.bf16.msra.mxu0 %v593_v7  ;;  %583 = vmatpush1.bf16.msra.mxu1 %v593_v7 }
  0x13   :  { %219 = vmatprep.subr.bf16.mxu0 %v622_v0  ;;  %575 = vmatprep.subr.bf16.mxu1 %v622_v0 }
  0x16   :  { %220 = vmatpush1.bf16.msra.mxu0 %v594_v8  ;;  %584 = vmatpush1.bf16.msra.mxu1 %v594_v8 }
  0x17   :  { %221 = vmatprep.subr.bf16.mxu0 %v622_v0  ;;  %576 = vmatprep.subr.bf16.mxu1 %v622_v0 }
  0x1a   :  { %222 = vmatpush1.bf16.msra.mxu0 %v595_v9  ;;  %585 = vmatpush1.bf16.msra.mxu1 %v595_v9 }
  0x1b   :  { %223 = vmatprep.subr.bf16.mxu0 %v622_v0  ;;  %577 = vmatprep.subr.bf16.mxu1 %v622_v0 }
  0x1e   :  { %224 = vmatpush1.bf16.msra.mxu0 %v596_v10  ;;  %586 = vmatpush1.bf16.msra.mxu1 %v596_v10 }
  0x1f   :  { %225 = vmatprep.subr.bf16.mxu0 %v622_v0  ;;  %578 = vmatprep.subr.bf16.mxu1 %v622_v0 }
  0x22   :  { %226 = vmatpush1.bf16.msra.mxu0 %v597_v11  ;;  %587 = vmatpush1.bf16.msra.mxu1 %v597_v11 }
  0x25   :  { %242 = vmatmul.mubr.bf16.vlgmr.msra.gmra.mrb[0].mxu0 %v598_v12  ;;  %274 = vmatmul.mubr.bf16.vlgmr.msra.gmra.mrb[0].mxu1 %v604_v13 }
  0x26   :  { %531 = vmatprep.mubr.msk.bf16.mxu0 %vm184_vm0, %v601_v14  ;;  %535 = vmatprep.mubr.msk.bf16.mxu1 %vm184_vm0, %v610_v15 }
  0x2d   :  { %250 = vmatmul.mubr.bf16.gmra.mrb[4].mxu0 %v603_v16  ;;  %282 = vmatmul.mubr.bf16.gmra.mrb[4].mxu1 %v612_v17 }
  0x2e   :  { %532 = vmatprep.mubr.msk.bf16.mxu0 %vm184_vm0, %v607_v18  ;;  %536 = vmatprep.mubr.msk.bf16.mxu1 %vm184_vm0, %v616_v19 }
  0x35   :  { %258 = vmatmul.mubr.bf16.gmra.mrb[8].mxu0 %v609_v20  ;;  %290 = vmatmul.mubr.bf16.gmra.mrb[8].mxu1 %v618_v21 }
  0x36   :  { %533 = vmatprep.mubr.msk.bf16.mxu0 %vm184_vm0, %v613_v22  ;;  %537 = vmatprep.mubr.msk.bf16.mxu1 %vm184_vm0, %v619_v23 }
  0x3d   :  { %266 = vmatmul.mubr.bf16.gmra.mrb[12].mxu0 %v615_v24  ;;  %298 = vmatmul.mubr.bf16.gmra.mrb[12].mxu1 %v621_v25 }
  0xf8   :  { %v243_v27 = vpop.f32.mrb[0].mxu0  ;;  %v275_v28 = vpop.f32.mrb[0].mxu1 }
  0xf9   :  { %v244_v29 = vadd.f32 %v734_v26, %v243_v27  ;;  %v245_v30 = vpop.f32.mrb[1].mxu0  ;;  %v276_v31 = vadd.f32 %v734_v26, %v275_v28  ;;  %v277_v32 = vpop.f32.mrb[1].mxu1 }
  0xfa   :  { %v246_v33 = vpop.f32.mrb[2].mxu0  ;;  %v278_v34 = vpop.f32.mrb[2].mxu1 }
  0xfb   :  { %v306_v35 = vmax.f32 %v244_v29, 0.0  ;;  %v247_v36 = vadd.f32 %v734_v26, %v246_v33  ;;  %v248_v37 = vpop.f32.mrb[3].mxu0  ;;  %v739_v38 = vmax.f32 %v276_v31, 0.0  ;;  %v279_v39 = vadd.f32 %v734_v26, %v278_v34  ;;  %v280_v40 = vpop.f32.mrb[3].mxu1 }
  0xfd   :  { %v554_v41 = vpack.c.bf16 %v306_v35, %v306_v35  ;;  %v442_v42 = vmul.f32 %v306_v35, %v306_v35  ;;  %v307_v43 = vmax.f32 %v247_v36, 0.0  ;;  %v562_v44 = vpack.c.bf16 %v739_v38, %v739_v38 }
  0xfe   :  { %v744_v45 = vmax.f32 %v279_v39, 0.0  ;;  %v403_v46 = vsel %vm184_vm0, %v306_v35, 0.0 }
  0xff   :  { %387 = vst.msk [vmem:[%s899_s3] sm:$0xf] %vm386_vm1, %v554_v41  ;;  %v555_v47 = vpack.c.bf16 %v307_v43, %v307_v43  ;;  %v404_v48 = vsel %vm184_vm0, %v307_v43, 0.0  ;;  %v443_v49 = vmul.f32 %v307_v43, %v307_v43  ;;  %395 = vst.msk [vmem:[%s899_s3 + $0x20] sm:$0xf] %vm386_vm1, %v562_v44  ;;  %v458_v54 = vsel %vm184_vm0, %v442_v42, 0.0 }
 0x100   :  { %v405_v50 = vadd.f32 %v404_v48, %v403_v46  ;;  %v251_v51 = vpop.f32.mrb[4].mxu0  ;;  %v563_v52 = vpack.c.bf16 %v744_v45, %v744_v45  ;;  %v283_v53 = vpop.f32.mrb[4].mxu1 }
 0x101   :  { %388 = vst.msk [vmem:[%s899_s3 + $0x4] sm:$0xf] %vm386_vm1, %v555_v47  ;;  %v459_v55 = vsel %vm184_vm0, %v443_v49, 0.0  ;;  %v252_v56 = vadd.f32 %v734_v26, %v251_v51  ;;  %v253_v57 = vpop.f32.mrb[5].mxu0  ;;  %v284_v58 = vadd.f32 %v734_v26, %v283_v53  ;;  %v285_v59 = vpop.f32.mrb[5].mxu1 }
 0x102   :  { %v460_v60 = vadd.f32 %v459_v55, %v458_v54  ;;  %v254_v61 = vpop.f32.mrb[6].mxu0  ;;  %396 = vst.msk [vmem:[%s899_s3 + $0x24] sm:$0xf] %vm386_vm1, %v563_v52  ;;  %v286_v62 = vpop.f32.mrb[6].mxu1 }
 0x103   :  { %v308_v63 = vmax.f32 %v252_v56, 0.0  ;;  %v255_v0 = vadd.f32 %v734_v26, %v254_v61  ;;  %v256_v1 = vpop.f32.mrb[7].mxu0  ;;  %v771_v2 = vmax.f32 %v284_v58, 0.0  ;;  %v288_v3 = vpop.f32.mrb[7].mxu1  ;;  %v287_v4 = vadd.f32 %v734_v26, %v286_v62 }
 0x105   :  { %v556_v5 = vpack.c.bf16 %v308_v63, %v308_v63  ;;  %v406_v6 = vsel %vm184_vm0, %v308_v63, 0.0  ;;  %v444_v7 = vmul.f32 %v308_v63, %v308_v63  ;;  %v309_v8 = vmax.f32 %v255_v0, 0.0 }
 0x106   :  { %v407_v9 = vadd.f32 %v406_v6, %v405_v50  ;;  %v564_v10 = vpack.c.bf16 %v771_v2, %v771_v2  ;;  %v787_v18 = vmax.f32 %v287_v4, 0.0 }
 0x107   :  { %389 = vst.msk [vmem:[%s899_s3 + $0x8] sm:$0xf] %vm386_vm1, %v556_v5  ;;  %v461_v11 = vsel %vm184_vm0, %v444_v7, 0.0  ;;  %v557_v12 = vpack.c.bf16 %v309_v8, %v309_v8  ;;  %v408_v13 = vsel %vm184_vm0, %v309_v8, 0.0  ;;  %v445_v14 = vmul.f32 %v309_v8, %v309_v8 }
 0x108   :  { %v462_v15 = vadd.f32 %v461_v11, %v460_v60  ;;  %v409_v16 = vadd.f32 %v408_v13, %v407_v9  ;;  %v259_v17 = vpop.f32.mrb[8].mxu0  ;;  %397 = vst.msk [vmem:[%s899_s3 + $0x28] sm:$0xf] %vm386_vm1, %v564_v10  ;;  %v291_v19 = vpop.f32.mrb[8].mxu1  ;;  %v565_v28 = vpack.c.bf16 %v787_v18, %v787_v18  ;;  %v450_v9 = vmul.f32 %v739_v38, %v739_v38 }
 0x109   :  { %390 = vst.msk [vmem:[%s899_s3 + $0xc] sm:$0xf] %vm386_vm1, %v557_v12  ;;  %v463_v20 = vsel %vm184_vm0, %v445_v14, 0.0  ;;  %v260_v21 = vadd.f32 %v734_v26, %v259_v17  ;;  %v261_v22 = vpop.f32.mrb[9].mxu0  ;;  %v292_v23 = vadd.f32 %v734_v26, %v291_v19  ;;  %v293_v24 = vpop.f32.mrb[9].mxu1  ;;  %v418_v19 = vsel %vm184_vm0, %v739_v38, 0.0 }
 0x10a   :  { %v464_v25 = vadd.f32 %v463_v20, %v462_v15  ;;  %v262_v27 = vpop.f32.mrb[10].mxu0  ;;  %v294_v29 = vpop.f32.mrb[10].mxu1  ;;  %398 = vst.msk [vmem:[%s899_s3 + $0x2c] sm:$0xf] %vm386_vm1, %v565_v28  ;;  %v451_v20 = vmul.f32 %v744_v45, %v744_v45  ;;  %v452_v38 = vmul.f32 %v771_v2, %v771_v2 }
 0x10b   :  { %v310_v30 = vmax.f32 %v260_v21, 0.0  ;;  %v263_v31 = vadd.f32 %v734_v26, %v262_v27  ;;  %v264_v32 = vpop.f32.mrb[11].mxu0  ;;  %v799_v33 = vmax.f32 %v292_v23, 0.0  ;;  %v296_v34 = vpop.f32.mrb[11].mxu1  ;;  %v295_v35 = vadd.f32 %v734_v26, %v294_v29 }
 0x10c   :  { %v420_v27 = vsel %vm184_vm0, %v744_v45, 0.0  ;;  %v453_v32 = vmul.f32 %v787_v18, %v787_v18 }
 0x10d   :  { %v558_v36 = vpack.c.bf16 %v310_v30, %v310_v30  ;;  %v410_v37 = vsel %vm184_vm0, %v310_v30, 0.0  ;;  %v446_v39 = vmul.f32 %v310_v30, %v310_v30  ;;  %v311_v40 = vmax.f32 %v263_v31, 0.0 }
 0x10e   :  { %v411_v41 = vadd.f32 %v410_v37, %v409_v16  ;;  %v566_v42 = vpack.c.bf16 %v799_v33, %v799_v33  ;;  %v819_v51 = vmax.f32 %v295_v35, 0.0  ;;  %v475_v30 = vsel %vm184_vm0, %v451_v20, 0.0 }
 0x10f   :  { %391 = vst.msk [vmem:[%s899_s3 + $0x10] sm:$0xf] %vm386_vm1, %v558_v36  ;;  %v465_v43 = vsel %vm184_vm0, %v446_v39, 0.0  ;;  %v559_v44 = vpack.c.bf16 %v311_v40, %v311_v40  ;;  %v412_v46 = vsel %vm184_vm0, %v311_v40, 0.0  ;;  %v447_v47 = vmul.f32 %v311_v40, %v311_v40 }
 0x110   :  { %v466_v48 = vadd.f32 %v465_v43, %v464_v25  ;;  %v413_v49 = vadd.f32 %v412_v46, %v411_v41  ;;  %v267_v50 = vpop.f32.mrb[12].mxu0  ;;  %399 = vst.msk [vmem:[%s899_s3 + $0x30] sm:$0xf] %vm386_vm1, %v566_v42  ;;  %v299_v52 = vpop.f32.mrb[12].mxu1  ;;  %v567_v60 = vpack.c.bf16 %v819_v51, %v819_v51  ;;  %v473_v25 = vsel %vm184_vm0, %v450_v9, 0.0 }
 0x111   :  { %392 = vst.msk [vmem:[%s899_s3 + $0x14] sm:$0xf] %vm386_vm1, %v559_v44  ;;  %v467_v53 = vsel %vm184_vm0, %v447_v47, 0.0  ;;  %v268_v54 = vadd.f32 %v734_v26, %v267_v50  ;;  %v269_v55 = vpop.f32.mrb[13].mxu0  ;;  %v300_v56 = vadd.f32 %v734_v26, %v299_v52  ;;  %v301_v57 = vpop.f32.mrb[13].mxu1  ;;  %v422_v31 = vsel %vm184_vm0, %v771_v2, 0.0 }
 0x112   :  { %v468_v58 = vadd.f32 %v467_v53, %v466_v48  ;;  %v270_v59 = vpop.f32.mrb[14].mxu0  ;;  %v302_v61 = vpop.f32.mrb[14].mxu1  ;;  %400 = vst.msk [vmem:[%s899_s3 + $0x34] sm:$0xf] %vm386_vm1, %v567_v60  ;;  %v477_v35 = vsel %vm184_vm0, %v452_v38, 0.0  ;;  %v424_v36 = vsel %vm184_vm0, %v787_v18, 0.0  ;;  %v454_v37 = vmul.f32 %v799_v33, %v799_v33 }
 0x113   :  { %v312_v62 = vmax.f32 %v268_v54, 0.0  ;;  %v271_v63 = vadd.f32 %v734_v26, %v270_v59  ;;  %v272_v0 = vpop.f32.mrb[15].mxu0  ;;  %v320_v1 = vmax.f32 %v300_v56, 0.0  ;;  %v304_v3 = vpop.f32.mrb[15].mxu1  ;;  %v303_v4 = vadd.f32 %v734_v26, %v302_v61 }
 0x114   :  { %v479_v41 = vsel %vm184_vm0, %v453_v32, 0.0  ;;  %v426_v2 = vsel %vm184_vm0, %v799_v33, 0.0  ;;  %v455_v42 = vmul.f32 %v819_v51, %v819_v51  ;;  %v481_v47 = vsel %vm184_vm0, %v454_v37, 0.0 }
 0x115   :  { %v560_v5 = vpack.c.bf16 %v312_v62, %v312_v62  ;;  %v414_v6 = vsel %vm184_vm0, %v312_v62, 0.0  ;;  %v448_v7 = vmul.f32 %v312_v62, %v312_v62  ;;  %v313_v8 = vmax.f32 %v271_v63, 0.0 }
 0x116   :  { %v415_v10 = vadd.f32 %v414_v6, %v413_v49  ;;  %v568_v11 = vpack.c.bf16 %v320_v1, %v320_v1  ;;  %v321_v17 = vmax.f32 %v303_v4, 0.0  ;;  %v456_v43 = vmul.f32 %v320_v1, %v320_v1 }
 0x117   :  { %393 = vst.msk [vmem:[%s899_s3 + $0x18] sm:$0xf] %vm386_vm1, %v560_v5  ;;  %v469_v12 = vsel %vm184_vm0, %v448_v7, 0.0  ;;  %v561_v13 = vpack.c.bf16 %v313_v8, %v313_v8  ;;  %v416_v26 = vsel %vm184_vm0, %v313_v8, 0.0  ;;  %v449_v14 = vmul.f32 %v313_v8, %v313_v8 }
 0x118   :  { %v470_v15 = vadd.f32 %v469_v12, %v468_v58  ;;  %v417_v16 = vadd.f32 %v416_v26, %v415_v10  ;;  %401 = vst.msk [vmem:[%s899_s3 + $0x38] sm:$0xf] %vm386_vm1, %v568_v11  ;;  %v569_v24 = vpack.c.bf16 %v321_v17, %v321_v17  ;;  %v428_v18 = vsel %vm184_vm0, %v819_v51, 0.0 }
 0x119   :  { %394 = vst.msk [vmem:[%s899_s3 + $0x1c] sm:$0xf] %vm386_vm1, %v561_v13  ;;  %v471_v21 = vsel %vm184_vm0, %v449_v14, 0.0  ;;  %v430_v48 = vsel %vm184_vm0, %v320_v1, 0.0  ;;  %v483_v52 = vsel %vm184_vm0, %v455_v42, 0.0  ;;  %v485_v53 = vsel %vm184_vm0, %v456_v43, 0.0 }
 0x11a   :  { %v419_v22 = vadd.f32 %v418_v19, %v417_v16  ;;  %v472_v23 = vadd.f32 %v471_v21, %v470_v15  ;;  %402 = vst.msk [vmem:[%s899_s3 + $0x3c] sm:$0xf] %vm386_vm1, %v569_v24  ;;  %v457_v33 = vmul.f32 %v321_v17, %v321_v17  ;;  %v432_v56 = vsel %vm184_vm0, %v321_v17, 0.0 }
 0x11c   :  { %v421_v28 = vadd.f32 %v420_v27, %v419_v22  ;;  %v474_v29 = vadd.f32 %v473_v25, %v472_v23  ;;  %v487_v59 = vsel %vm184_vm0, %v457_v33, 0.0 }
 0x11e   :  { %v476_v34 = vadd.f32 %v475_v30, %v474_v29  ;;  %v423_v45 = vadd.f32 %v422_v31, %v421_v28 }
 0x120   :  { %v425_v39 = vadd.f32 %v424_v36, %v423_v45  ;;  %v478_v40 = vadd.f32 %v477_v35, %v476_v34 }
 0x122   :  { %v427_v44 = vadd.f32 %v426_v2, %v425_v39  ;;  %v480_v46 = vadd.f32 %v479_v41, %v478_v40 }
 0x124   :  { %v482_v49 = vadd.f32 %v481_v47, %v480_v46  ;;  %v429_v50 = vadd.f32 %v428_v18, %v427_v44 }
 0x126   :  { %v484_v54 = vadd.f32 %v483_v52, %v482_v49  ;;  %v431_v55 = vadd.f32 %v430_v48, %v429_v50 }
 0x128   :  { %v486_v57 = vadd.f32 %v485_v53, %v484_v54  ;;  %v433_v58 = vadd.f32 %v432_v56, %v431_v55 }
 0x12a   :  { %v434_v60 = vrot.slane %v433_v58, 4  ;;  %v488_v61 = vadd.f32 %v487_v59, %v486_v57 }
 0x12c   :  { %v435_v51 = vadd.f32 %v434_v60, %v433_v58  ;;  %v489_v62 = vrot.slane %v488_v61, 4 }
 0x12e   :  { %v436_v63 = vrot.slane %v435_v51, 2  ;;  %v490_v0 = vadd.f32 %v489_v62, %v488_v61 }
 0x130   :  { %v437_v1 = vadd.f32 %v436_v63, %v435_v51  ;;  %v491_v3 = vrot.slane %v490_v0, 2 }
 0x132   :  { %v438_v4 = vrot.slane %v437_v1, 1  ;;  %v492_v5 = vadd.f32 %v491_v3, %v490_v0 }
 0x134   :  { %v439_v6 = vadd.f32 %v438_v4, %v437_v1  ;;  %v493_v7 = vrot.slane %v492_v5, 1 }
 0x136   :  { %441 = vst.msk [vmem:[%s900_s4] sm:$0x1] %vm440_vm2, %v439_v6  ;;  %v494_v8 = vadd.f32 %v493_v7, %v492_v5 }
 0x138   :  { %495 = vst.msk [vmem:[%s900_s4 + $0x1] sm:$0x1] %vm440_vm2, %v494_v8 }

// kernel: tile.124
= control target key start
LH: loop header
LB: loop body
LE: loop exit
PB: predicated region body
PF: predicated region fallthrough
CT: control target
= control target key end

     0   :  { %s93_s8 = smov 96   ;;  %vm3_vm0 = vcmask 261120   ;;  %s95_s15 = smov 64   ;;  %vm10_vm1 = vcmask 1048320   ;;  %vm17_vm2 = vcmask 785920   ;;  %vm24_vm3 = vcmask 523520   ;;  %s142_s0 = inlined_call_operand.vmem [shape: f32[32,32], index: 0, kind: input, shape index: {}]   ;;  %s143_s1 = inlined_call_operand.vmem [shape: f32[1,1024], index: 1, kind: output, shape index: {}]  }
   0x1   :  { %v80_v0 = vld [vmem:[%s142_s0 + $0x3] ss:$4 sm:$0xff]   ;;  %v82_v1 = vld [vmem:[%s142_s0 + $0x1] ss:$4 sm:$0xff]   ;;  %v2_v2 = vld [vmem:[%s142_s0] ss:$4 sm:$0xff]  }
   0x2   :  { %8 = vrot.lane.b32.xlu0 %v80_v0, %s93_s8  ;;  %v81_v3 = vld [vmem:[%s142_s0 + $0x2] ss:$4 sm:$0xff]   ;;  %s94_s0 = smov 32   ;;  %4 = vst.msk [vmem:[#allocation0] ss:$8 sm:$0xf] %vm3_vm0, %v2_v2  }
   0x3   :  { %22 = vrot.lane.b32.xlu1 %v82_v1, %s94_s0  ;;  %5 = vst.msk [vmem:[#allocation0] ss:$8 sm:$0xf0] %vm3_vm0, %v2_v2  }
   0x6   :  { %15 = vrot.lane.b32.xlu0 %v81_v3, %s95_s15 }
  0x74   :  { %v9_v4 = vpop.permute.xlu0 %8  }
  0x75   :  { %11 = vst.msk [vmem:[#allocation0] ss:$8 sm:$0xf] %vm10_vm1, %v9_v4   ;;  %12 = vst.msk [vmem:[#allocation0] ss:$8 sm:$0xf0] %vm10_vm1, %v9_v4   ;;  %v23_v5 = vpop.permute.xlu1 %22  }
  0x78   :  { %v16_v6 = vpop.permute.xlu0 %15  }
  0x79   :  { %18 = vst.msk [vmem:[#allocation0] ss:$8 sm:$0xf] %vm17_vm2, %v16_v6   ;;  %19 = vst.msk [vmem:[#allocation0] ss:$8 sm:$0xf0] %vm17_vm2, %v16_v6  }
  0x7a   :  { %25 = vst.msk [vmem:[#allocation0] ss:$8 sm:$0xf] %vm24_vm3, %v23_v5   ;;  %26 = vst.msk [vmem:[#allocation0] ss:$8 sm:$0xf0] %vm24_vm3, %v23_v5  }
  0x81   :  { %v30_v7 = vld [vmem:[#allocation0] sm:$0x1]  ;;  %v34_v8 = vld [vmem:[#allocation0 + $0x8] sm:$0x1]  ;;  %v39_v9 = vld [vmem:[#allocation0 + $0x10] sm:$0x1] }
  0x82   :  { %32 = vst [vmem:[%s143_s1] sm:$0x1] %v30_v7  ;;  %83 = vst [vmem:[%s143_s1 + $0x1] sm:$0x1] %v34_v8  ;;  %v45_v10 = vld [vmem:[#allocation0 + $0x18] sm:$0x1] }
  0x83   :  { %84 = vst [vmem:[%s143_s1 + $0x2] sm:$0x1] %v39_v9  ;;  %v51_v11 = vld [vmem:[#allocation0 + $0x20] sm:$0x1]  ;;  %v57_v12 = vld [vmem:[#allocation0 + $0x28] sm:$0x1] }
  0x84   :  { %85 = vst [vmem:[%s143_s1 + $0x3] sm:$0x1] %v45_v10  ;;  %86 = vst [vmem:[%s143_s1 + $0x4] sm:$0x1] %v51_v11  ;;  %v63_v13 = vld [vmem:[#allocation0 + $0x30] sm:$0x1] }
  0x85   :  { %87 = vst [vmem:[%s143_s1 + $0x5] sm:$0x1] %v57_v12  ;;  %v69_v14 = vld [vmem:[#allocation0 + $0x38] sm:$0x1]  ;;  %88 = vst [vmem:[%s143_s1 + $0x6] sm:$0x1] %v63_v13 }
  0x86   :  { %89 = vst [vmem:[%s143_s1 + $0x7] sm:$0x1] %v69_v14 }

// kernel: unet_forward.28
= control target key start
LH: loop header
LB: loop body
LE: loop exit
PB: predicated region body
PF: predicated region fallthrough
CT: control target
= control target key end

     0   :  { %v299_v0 = vmov 0   ;;  %vm118_vm0 = vcmask 130048   ;;  %vm194_vm1 = vcmask 257024   ;;  %vm199_vm2 = vcmask 261120   ;;  %s397_s1 = inlined_call_operand.vmem [shape: bf16[144,32], index: 1, kind: input, shape index: {}]   ;;  %s398_s0 = inlined_call_operand.vmem [shape: bf16[32,144], index: 0, kind: input, shape index: {}]   ;;  %s399_s2 = inlined_call_operand.vmem [shape: f32[1,32], index: 2, kind: input, shape index: {}]   ;;  %s400_s3 = inlined_call_operand.vmem [shape: bf16[32,32], index: 3, kind: output, shape index: {0}]   ;;  %s401_s4 = inlined_call_operand.vmem [shape: f32[1,2,32], index: 4, kind: output, shape index: {1}]  }
   0x1   :  { %125 = vmatprep.subr.bf16.mxu0 %v299_v0  ;;  %265 = vmatprep.subr.bf16.mxu1 %v299_v0  ;;  %v284_v1 = vld [vmem:[%s397_s1] sm:$0xff]   ;;  %v285_v2 = vld [vmem:[%s397_s1 + $0x8] sm:$0xff]   ;;  %v286_v3 = vld [vmem:[%s397_s1 + $0x10] sm:$0xff]   ;;  %vm213_vm3 = vcmask 253952  }
   0x2   :  { %126 = vmatpush1.bf16.msra.mxu0 %v284_v1  ;;  %274 = vmatpush1.bf16.msra.mxu1 %v284_v1  ;;  %v287_v4 = vld [vmem:[%s397_s1 + $0x18] sm:$0xff]   ;;  %v295_v5 = vld [vmem:[%s398_s0 + $0x4] ss:$8 sps:$4 sm:$0xff]   ;;  %v290_v9 = vld [vmem:[%s397_s1 + $0x30] sm:$0xff]  }
   0x3   :  { %127 = vmatprep.subr.bf16.mxu0 %v299_v0  ;;  %266 = vmatprep.subr.bf16.mxu1 %v299_v0  ;;  %v298_v6 = vld [vmem:[%s398_s0 + $0x14] ss:$8 sps:$4 sm:$0xff]   ;;  %v288_v7 = vld [vmem:[%s397_s1 + $0x20] sm:$0xff]   ;;  %v289_v8 = vld [vmem:[%s397_s1 + $0x28] sm:$0xff]  }
   0x4   :  { %255 = vmatprep.mubr.msk.bf16.mxu0 %vm118_vm0, %v295_v5  ;;  %256 = vmatprep.mubr.msk.bf16.mxu1 %vm118_vm0, %v298_v6  ;;  %v291_v10 = vld [vmem:[%s397_s1 + $0x38] sm:$0xff]   ;;  %v292_v11 = vld [vmem:[%s397_s1 + $0x40] sm:$0xff]  }
   0x5   :  { %v293_v12 = vld [vmem:[%s398_s0] ss:$8 sps:$4 sm:$0xff]   ;;  %v296_v13 = vld [vmem:[%s398_s0 + $0x10] ss:$8 sps:$4 sm:$0xff]  }
   0x6   :  { %128 = vmatpush1.bf16.msra.mxu0 %v285_v2  ;;  %275 = vmatpush1.bf16.msra.mxu1 %v285_v2  ;;  %v241_v14 = vld [vmem:[%s399_s2] ss:$0 sm:$0xff] }
   0x7   :  { %129 = vmatprep.subr.bf16.mxu0 %v299_v0  ;;  %267 = vmatprep.subr.bf16.mxu1 %v299_v0 }
   0xa   :  { %130 = vmatpush1.bf16.msra.mxu0 %v286_v3  ;;  %276 = vmatpush1.bf16.msra.mxu1 %v286_v3 }
   0xb   :  { %131 = vmatprep.subr.bf16.mxu0 %v299_v0  ;;  %268 = vmatprep.subr.bf16.mxu1 %v299_v0 }
   0xe   :  { %132 = vmatpush1.bf16.msra.mxu0 %v287_v4  ;;  %277 = vmatpush1.bf16.msra.mxu1 %v287_v4 }
   0xf   :  { %133 = vmatprep.subr.bf16.mxu0 %v299_v0  ;;  %269 = vmatprep.subr.bf16.mxu1 %v299_v0 }
  0x12   :  { %134 = vmatpush1.bf16.msra.mxu0 %v288_v7  ;;  %278 = vmatpush1.bf16.msra.mxu1 %v288_v7 }
  0x13   :  { %135 = vmatprep.subr.bf16.mxu0 %v299_v0  ;;  %270 = vmatprep.subr.bf16.mxu1 %v299_v0 }
  0x16   :  { %136 = vmatpush1.bf16.msra.mxu0 %v289_v8  ;;  %279 = vmatpush1.bf16.msra.mxu1 %v289_v8 }
  0x17   :  { %137 = vmatprep.subr.bf16.mxu0 %v299_v0  ;;  %271 = vmatprep.subr.bf16.mxu1 %v299_v0 }
  0x1a   :  { %138 = vmatpush1.bf16.msra.mxu0 %v290_v9  ;;  %280 = vmatpush1.bf16.msra.mxu1 %v290_v9 }
  0x1b   :  { %139 = vmatprep.subr.bf16.mxu0 %v299_v0  ;;  %272 = vmatprep.subr.bf16.mxu1 %v299_v0 }
  0x1e   :  { %140 = vmatpush1.bf16.msra.mxu0 %v291_v10  ;;  %281 = vmatpush1.bf16.msra.mxu1 %v291_v10 }
  0x1f   :  { %141 = vmatprep.subr.bf16.mxu0 %v299_v0  ;;  %273 = vmatprep.subr.bf16.mxu1 %v299_v0 }
  0x22   :  { %142 = vmatpush1.bf16.msra.mxu0 %v292_v11  ;;  %282 = vmatpush1.bf16.msra.mxu1 %v292_v11 }
  0x25   :  { %158 = vmatmul.mubr.bf16.vlgmr.msra.gmra.mrb[0].mxu0 %v293_v12  ;;  %166 = vmatmul.mubr.bf16.vlgmr.msra.gmra.mrb[0].mxu1 %v296_v13 }
  0xf8   :  { %v159_v15 = vpop.f32.mrb[0].mxu0  ;;  %v167_v16 = vpop.f32.mrb[0].mxu1 }
  0xf9   :  { %v160_v17 = vadd.f32 %v241_v14, %v159_v15  ;;  %v161_v18 = vpop.f32.mrb[1].mxu0  ;;  %v168_v19 = vadd.f32 %v241_v14, %v167_v16  ;;  %v169_v20 = vpop.f32.mrb[1].mxu1 }
  0xfa   :  { %v162_v21 = vpop.f32.mrb[2].mxu0  ;;  %v170_v22 = vpop.f32.mrb[2].mxu1 }
  0xfb   :  { %v174_v23 = vmax.f32 %v160_v17, 0.0  ;;  %v176_v24 = vmax.f32 %v168_v19, 0.0  ;;  %v163_v25 = vadd.f32 %v241_v14, %v162_v21  ;;  %v164_v26 = vpop.f32.mrb[3].mxu0  ;;  %v171_v27 = vadd.f32 %v241_v14, %v170_v22  ;;  %v172_v28 = vpop.f32.mrb[3].mxu1 }
  0xfd   :  { %v261_v29 = vpack.c.bf16 %v174_v23, %v174_v23  ;;  %v263_v30 = vpack.c.bf16 %v176_v24, %v176_v24  ;;  %v215_v31 = vmul.f32 %v174_v23, %v174_v23  ;;  %v217_v32 = vmul.f32 %v176_v24, %v176_v24 }
  0xfe   :  { %v175_v33 = vmax.f32 %v163_v25, 0.0  ;;  %v177_v34 = vmax.f32 %v171_v27, 0.0  ;;  %v200_v35 = vsel %vm199_vm2, %v174_v23, 0.0  ;;  %v203_v36 = vsel %vm199_vm2, %v176_v24, 0.0 }
  0xff   :  { %195 = vst.msk [vmem:[%s400_s3] sm:$0xf] %vm194_vm1, %v261_v29  ;;  %197 = vst.msk [vmem:[%s400_s3 + $0x8] sm:$0xf] %vm194_vm1, %v263_v30  ;;  %v219_v42 = vsel %vm199_vm2, %v215_v31, 0.0  ;;  %v222_v43 = vsel %vm199_vm2, %v217_v32, 0.0 }
 0x100   :  { %v262_v37 = vpack.c.bf16 %v175_v33, %v175_v33  ;;  %v201_v38 = vsel %vm199_vm2, %v175_v33, 0.0  ;;  %v216_v39 = vmul.f32 %v175_v33, %v175_v33  ;;  %v264_v41 = vpack.c.bf16 %v177_v34, %v177_v34 }
 0x101   :  { %v202_v40 = vadd.f32 %v201_v38, %v200_v35  ;;  %v218_v45 = vmul.f32 %v177_v34, %v177_v34  ;;  %v205_v48 = vsel %vm199_vm2, %v177_v34, 0.0 }
 0x102   :  { %196 = vst.msk [vmem:[%s400_s3 + $0x4] sm:$0xf] %vm194_vm1, %v262_v37  ;;  %v220_v44 = vsel %vm199_vm2, %v216_v39, 0.0  ;;  %198 = vst.msk [vmem:[%s400_s3 + $0xc] sm:$0xf] %vm194_vm1, %v264_v41 }
 0x103   :  { %v221_v46 = vadd.f32 %v220_v44, %v219_v42  ;;  %v204_v47 = vadd.f32 %v203_v36, %v202_v40  ;;  %v224_v51 = vsel %vm199_vm2, %v218_v45, 0.0 }
 0x105   :  { %v206_v49 = vadd.f32 %v205_v48, %v204_v47  ;;  %v223_v50 = vadd.f32 %v222_v43, %v221_v46 }
 0x107   :  { %v207_v52 = vrot.slane %v206_v49, 4  ;;  %v225_v53 = vadd.f32 %v224_v51, %v223_v50 }
 0x109   :  { %v208_v54 = vadd.f32 %v207_v52, %v206_v49  ;;  %v226_v55 = vrot.slane %v225_v53, 4 }
 0x10b   :  { %v209_v56 = vrot.slane %v208_v54, 2  ;;  %v227_v57 = vadd.f32 %v226_v55, %v225_v53 }
 0x10d   :  { %v210_v58 = vadd.f32 %v209_v56, %v208_v54  ;;  %v228_v59 = vrot.slane %v227_v57, 2 }
 0x10f   :  { %v211_v60 = vrot.slane %v210_v58, 1  ;;  %v229_v61 = vadd.f32 %v228_v59, %v227_v57 }
 0x111   :  { %v212_v62 = vadd.f32 %v211_v60, %v210_v58  ;;  %v230_v63 = vrot.slane %v229_v61, 1 }
 0x113   :  { %214 = vst.msk [vmem:[%s401_s4] sm:$0x1] %vm213_vm3, %v212_v62  ;;  %v231_v0 = vadd.f32 %v230_v63, %v229_v61 }
 0x115   :  { %232 = vst.msk [vmem:[%s401_s4 + $0x1] sm:$0x1] %vm213_vm3, %v231_v0 }

// kernel: unet_forward.29
= control target key start
LH: loop header
LB: loop body
LE: loop exit
PB: predicated region body
PF: predicated region fallthrough
CT: control target
= control target key end

     0   :  { %v22_v0 = vlaneseq  ;;  %v210_v2 = vmov 857870592   ;;  %v211_v4 = vmov 2003195204   ;;  %v212_v6 = vmov 1966171168   ;;  %s289_s0 = inlined_call_operand.vmem [shape: bf16[1,1024], index: 0, kind: input, shape index: {}]   ;;  %s290_s1 = inlined_call_operand.vmem [shape: f32[1,1024], index: 1, kind: input, shape index: {}]   ;;  %s291_s2 = inlined_call_operand.vmem [shape: f32[1,1024], index: 2, kind: input, shape index: {}]   ;;  %s292_s3 = inlined_call_operand.vmem [shape: bf16[1,1024], index: 3, kind: output, shape index: {}]  }
   0x1   :  { %v14_v1 = vld [vmem:[%s289_s0] sm:$0xff]  ;;  %v20_v3 = vunpack.c.l.s4 %v210_v2  ;;  %v27_v5 = vunpack.c.l.s4 %v211_v4  ;;  %v120_v7 = vunpack.c.l.s4 %v212_v6  ;;  %vm165_vm0 = vcmask 1040384  }
   0x2   :  { %v23_v8 = vshrl.u32 %v22_v0, 7  ;;  %vm166_vm1 = vsmask.f32 256  ;;  %vm168_vm2 = vcmask 1041409   ;;  %v15_v11 = vunpack.c.l.bf16 %v14_v1  ;;  %v17_v13 = vld [vmem:[%s290_s1] sm:$0xff] }
   0x3   :  { %v21_v9 = vunpack.c.0.s8 %v20_v3  ;;  %v28_v10 = vunpack.c.0.s8 %v27_v5  ;;  %v16_v12 = vunpack.c.h.bf16 %v14_v1  ;;  %v37_v14 = vld [vmem:[%s291_s2] sm:$0xff]  ;;  %vm242_vm3 = vmand %vm165_vm0, %vm166_vm1  ;;  %v121_v18 = vunpack.c.0.s8 %v120_v7 }
   0x4   :  { %vm169_vm4 = vsmask.f32 1280  ;;  %vm172_vm6 = vcmask 1042434   ;;  %vm173_vm7 = vsmask.f32 2304  ;;  %vm176_vm8 = vcmask 1043459  }
   0x5   :  { %v24_v16 = vsub.s32 %v21_v9, %v23_v8  ;;  %v31_v17 = vsub.s32 %v28_v10, %v23_v8  ;;  %vm246_vm5 = vmand %vm168_vm2, %vm169_vm4  ;;  %vm177_vm9 = vsmask.f32 3328  ;;  %v61_v24 = vsub.s32 0, %v23_v8  ;;  %v196_v57 = vld [vmem:[%s292_s3] sm:$0xff] }
   0x6   :  { %vm171_vm10 = vmor %vm246_vm5, %vm242_vm3  ;;  %v65_v25 = vsub.s32 2, %v23_v8  ;;  %v69_v26 = vsub.s32 4, %v23_v8  ;;  %v73_v27 = vsub.s32 6, %v23_v8  ;;  %vm180_vm13 = vcmask 1044484  }
   0x7   :  { %v25_v20 = vrot.slane %v17_v13, %v24_v16  ;;  %v32_v21 = vrot.slane %v17_v13, %v31_v17  ;;  %v45_v22 = vrot.slane %v37_v14, %v24_v16  ;;  %v52_v23 = vrot.slane %v37_v14, %v31_v17  ;;  %vm174_vm11 = vmand %vm172_vm6, %vm173_vm7 }
   0x8   :  { %vm254_vm12 = vmor %vm174_vm11, %vm171_vm10  ;;  %vm181_vm14 = vsmask.f32 4352  ;;  %vm184_vm1 = vcmask 1045509   ;;  %vm185_vm2 = vsmask.f32 5376  ;;  %v124_v34 = vsub.s32 %v121_v18, %v23_v8 }
   0x9   :  { %v35_v28 = vmul.f32 %v25_v20, %v15_v11  ;;  %v36_v29 = vmul.f32 %v32_v21, %v16_v12  ;;  %vm260_vm15 = vmand %vm176_vm8, %vm177_vm9  ;;  %vm188_vm4 = vcmask 1046534   ;;  %vm189_vm5 = vsmask.f32 6400 }
   0xa   :  { %vm179_vm0 = vmor %vm260_vm15, %vm254_vm12  ;;  %vm192_vm10 = vcmask 1047559   ;;  %vm193_vm11 = vsmask.f32 7424 }
   0xb   :  { %v55_v32 = vadd.f32 %v45_v22, %v35_v28  ;;  %v56_v33 = vadd.f32 %v52_v23, %v36_v29  ;;  %vm182_vm3 = vmand %vm180_vm13, %vm181_vm14 }
   0xc   :  { %vm268_vm6 = vmor %vm182_vm3, %vm179_vm0 }
   0xd   :  { %v62_v35 = vrot.slane %v55_v32, %v61_v24  ;;  %v66_v36 = vrot.slane %v55_v32, %v65_v25  ;;  %v70_v37 = vrot.slane %v55_v32, %v69_v26  ;;  %v74_v38 = vrot.slane %v55_v32, %v73_v27  ;;  %vm273_vm7 = vmand %vm184_vm1, %vm185_vm2 }
   0xe   :  { %v78_v40 = vrot.slane %v56_v33, %v61_v24  ;;  %v82_v41 = vrot.slane %v56_v33, %v65_v25  ;;  %v86_v42 = vrot.slane %v56_v33, %v69_v26  ;;  %v90_v43 = vrot.slane %v56_v33, %v73_v27  ;;  %vm187_vm8 = vmor %vm273_vm7, %vm268_vm6 }
   0xf   :  { %v203_v45 = vpack.c.bf16 %v66_v36, %v62_v35  ;;  %v204_v46 = vpack.c.bf16 %v74_v38, %v70_v37  ;;  %vm190_vm9 = vmand %vm188_vm4, %vm189_vm5 }
  0x10   :  { %v205_v47 = vpack.c.bf16 %v82_v41, %v78_v40  ;;  %v206_v48 = vpack.c.bf16 %v90_v43, %v86_v42  ;;  %vm191_vm12 = vmor %vm190_vm9, %vm187_vm8 }
  0x11   :  { %v125_v49 = vrot.slane %v203_v45, %v124_v34  ;;  %v132_v50 = vrot.slane %v204_v46, %v124_v34  ;;  %vm194_vm13 = vmand %vm192_vm10, %vm193_vm11 }
  0x12   :  { %v139_v51 = vrot.slane %v205_v47, %v124_v34  ;;  %v146_v52 = vrot.slane %v206_v48, %v124_v34  ;;  %vm195_vm14 = vmor %vm194_vm13, %vm191_vm12 }
  0x13   :  { %v147_v53 = vcombine.low %v125_v49, %v132_v50 }
  0x14   :  { %v148_v54 = vcombine.low %v139_v51, %v146_v52 }
  0x15   :  { %v155_v55 = vrot.slane %v147_v53, %v124_v34 }
  0x16   :  { %v162_v56 = vrot.slane %v148_v54, %v124_v34 }
  0x18   :  { %v163_v58 = vcombine.low %v155_v55, %v162_v56 }
  0x1a   :  { %v197_v59 = vsel %vm195_vm14, %v163_v58, %v196_v57 }
  0x1b   :  { %198 = vst [vmem:[%s292_s3] sm:$0xff] %v197_v59 }

// kernel: tile.133
= control target key start
LH: loop header
LB: loop body
LE: loop exit
PB: predicated region body
PF: predicated region fallthrough
CT: control target
= control target key end

     0   :  { %s22_s0 = inlined_call_operand.vmem [shape: f32[16], index: 0, kind: input, shape index: {}]   ;;  %s23_s1 = inlined_call_operand.vmem [shape: f32[4,16], index: 1, kind: output, shape index: {}]  }
   0x1   :  { %v4_v0 = vld [vmem:[%s22_s0] ss:$0 sm:$0xff] }
   0x2   :  { %5 = vst [vmem:[%s23_s1] sm:$0xf] %v4_v0 }

// kernel: unet_forward.31
= control target key start
LH: loop header
LB: loop body
LE: loop exit
PB: predicated region body
PF: predicated region fallthrough
CT: control target
= control target key end

     0   :  { %vm52_vm0 = vcmask 261120   ;;  %vm124_vm1 = vcmask 519168   ;;  %s211_s1 = inlined_call_operand.vmem [shape: bf16[32,64], index: 1, kind: input, shape index: {}]   ;;  %s212_s0 = inlined_call_operand.vmem [shape: bf16[32,32], index: 0, kind: input, shape index: {}]   ;;  %s213_s2 = inlined_call_operand.vmem [shape: f32[1,64], index: 2, kind: input, shape index: {}]   ;;  %s214_s3 = inlined_call_operand.vmem [shape: bf16[32,64], index: 3, kind: output, shape index: {}]  }
   0x1   :  { %v160_v0 = vld [vmem:[%s211_s1] sm:$0xff]   ;;  %v161_v1 = vld [vmem:[%s211_s1 + $0x8] sm:$0xff]  }
   0x2   :  { %152 = vmatprep.subr.bf16.mxu0 %v160_v0  ;;  %v162_v2 = vld [vmem:[%s212_s0] sm:$0xff]   ;;  %v163_v3 = vld [vmem:[%s212_s0 + $0x8] sm:$0xff]  }
   0x3   :  { %153 = vmatpush3.bf16.msra.mxu0 %v160_v0  ;;  %156 = vmatprep.mubr.msk.bf16.mxu0 %vm52_vm0, %v162_v2  ;;  %v133_v4 = vld [vmem:[%s213_s2] ss:$0 sm:$0xff] }
   0x4   :  { %154 = vmatprep.subr.bf16.mxu0 %v161_v1 }
   0x7   :  { %155 = vmatpush3.bf16.msra.mxu0 %v161_v1 }
   0xa   :  { %157 = vmatmul.mubr.msk.bf16.vlgmr.msra.gmra.mrb[0].mxu0 %vm52_vm0, %v163_v3 }
  0xdd   :  { %v158_v5 = vpop.f32.mrb[0].mxu0 }
  0xde   :  { %v102_v6 = vadd.f32 %v158_v5, %v133_v4  ;;  %v93_v7 = vpop.f32.mrb[1].mxu0 }
  0xdf   :  { %v94_v8 = vadd.f32 %v133_v4, %v93_v7  ;;  %v159_v9 = vpop.f32.mrb[2].mxu0 }
  0xe0   :  { %v146_v10 = vpack.c.bf16 %v102_v6, %v102_v6  ;;  %v105_v11 = vadd.f32 %v159_v9, %v133_v4  ;;  %v96_v12 = vpop.f32.mrb[3].mxu0 }
  0xe1   :  { %v144_v13 = vpack.c.bf16 %v94_v8, %v94_v8  ;;  %v97_v14 = vadd.f32 %v133_v4, %v96_v12 }
  0xe2   :  { %127 = vst.msk [vmem:[%s214_s3 + $0x8] sm:$0xf] %vm124_vm1, %v146_v10  ;;  %v147_v15 = vpack.c.bf16 %v105_v11, %v105_v11 }
  0xe3   :  { %125 = vst.msk [vmem:[%s214_s3] sm:$0xf] %vm124_vm1, %v144_v13  ;;  %v145_v16 = vpack.c.bf16 %v97_v14, %v97_v14 }
  0xe4   :  { %128 = vst.msk [vmem:[%s214_s3 + $0xc] sm:$0xf] %vm124_vm1, %v147_v15 }
  0xe5   :  { %126 = vst.msk [vmem:[%s214_s3 + $0x4] sm:$0xf] %vm124_vm1, %v145_v16 }

// kernel: unet_forward.30
= control target key start
LH: loop header
LB: loop body
LE: loop exit
PB: predicated region body
PF: predicated region fallthrough
CT: control target
= control target key end

     0   :  { %vm206_vm0 = vcmask 261120   ;;  %vm331_vm1 = vcmask 257024   ;;  %vm349_vm2 = vcmask 253952   ;;  %s610_s1 = inlined_call_operand.vmem [shape: bf16[288,32], index: 1, kind: input, shape index: {}]   ;;  %s611_s0 = inlined_call_operand.vmem [shape: bf16[32,288], index: 0, kind: input, shape index: {}]   ;;  %s612_s2 = inlined_call_operand.vmem [shape: f32[1,32], index: 2, kind: input, shape index: {}]   ;;  %s613_s3 = inlined_call_operand.vmem [shape: bf16[32,32], index: 3, kind: output, shape index: {0}]   ;;  %s614_s4 = inlined_call_operand.vmem [shape: f32[1,2,32], index: 4, kind: output, shape index: {1}]  }
   0x1   :  { %v452_v0 = vld [vmem:[%s610_s1 + $0x40] sm:$0xff]   ;;  %v454_v2 = vld [vmem:[%s610_s1 + $0x48] sm:$0xff]   ;;  %v456_v4 = vld [vmem:[%s610_s1 + $0x50] sm:$0xff]  }
   0x2   :  { %v453_v1 = vld [vmem:[%s610_s1] sm:$0xff]   ;;  %412 = vmatprep.subr.bf16.mxu0 %v452_v0  ;;  %v455_v3 = vld [vmem:[%s610_s1 + $0x8] sm:$0xff]   ;;  %v457_v5 = vld [vmem:[%s610_s1 + $0x10] sm:$0xff]  }
   0x3   :  { %413 = vmatpush3.bf16.msra.mxu0 %v453_v1  ;;  %v458_v6 = vld [vmem:[%s610_s1 + $0x58] sm:$0xff]   ;;  %v460_v8 = vld [vmem:[%s610_s1 + $0x60] sm:$0xff]   ;;  %v462_v11 = vld [vmem:[%s610_s1 + $0x68] sm:$0xff]  }
   0x4   :  { %414 = vmatprep.subr.bf16.mxu0 %v454_v2  ;;  %v459_v7 = vld [vmem:[%s610_s1 + $0x18] sm:$0xff]   ;;  %v461_v9 = vld [vmem:[%s610_s1 + $0x20] sm:$0xff]   ;;  %v463_v12 = vld [vmem:[%s610_s1 + $0x28] sm:$0xff]  }
   0x5   :  { %v467_v10 = vld [vmem:[%s610_s1 + $0x80] sm:$0xff]   ;;  %v464_v13 = vld [vmem:[%s610_s1 + $0x70] sm:$0xff]   ;;  %v472_v15 = vld [vmem:[%s610_s1 + $0x88] sm:$0xff]  }
   0x6   :  { %444 = vmatprep.subr.bf16.mxu1 %v467_v10  ;;  %v471_v14 = vld [vmem:[%s611_s0 + $0x4] ss:$12 sps:$4 sm:$0xff]   ;;  %v473_v16 = vld [vmem:[%s611_s0 + $0x8] ss:$12 sps:$4 sm:$0xff]   ;;  %v474_v17 = vld [vmem:[%s611_s0 + $0x20] ss:$12 sps:$4 sm:$0xff]  }
   0x7   :  { %415 = vmatpush3.bf16.msra.mxu0 %v455_v3  ;;  %445 = vmatpush3.bf16.msra.mxu1 %v467_v10  ;;  %v465_v18 = vld [vmem:[%s610_s1 + $0x30] sm:$0xff]   ;;  %v466_v19 = vld [vmem:[%s610_s1 + $0x78] sm:$0xff]   ;;  %v469_v21 = vld [vmem:[%s611_s0] ss:$12 sps:$4 sm:$0xff]  }
   0x8   :  { %416 = vmatprep.subr.bf16.mxu0 %v456_v4  ;;  %245 = vmatprep.mubr.bf16.mxu0 %v471_v14  ;;  %v468_v20 = vld [vmem:[%s610_s1 + $0x38] sm:$0xff]   ;;  %v377_v30 = vld [vmem:[%s612_s2] ss:$0 sm:$0xff] }
   0x9   :  { %446 = vmatprep.subr.bf16.mxu1 %v472_v15  ;;  %448 = vmatprep.mubr.msk.bf16.mxu1 %vm206_vm0, %v473_v16  ;;  %v475_v22 = vld [vmem:[%s611_s0 + $0x1c] ss:$12 sps:$4 sm:$0xff]   ;;  %v477_v23 = vld [vmem:[%s611_s0 + $0x18] ss:$12 sps:$4 sm:$0xff]  }
   0xb   :  { %417 = vmatpush3.bf16.msra.mxu0 %v457_v5  ;;  %447 = vmatpush3.bf16.msra.mxu1 %v472_v15 }
   0xc   :  { %418 = vmatprep.subr.bf16.mxu0 %v458_v6 }
   0xe   :  { %449 = vmatmul.mubr.msk.bf16.vlgmr.msra.gmra.mrb[0].mxu1 %vm206_vm0, %v474_v17 }
   0xf   :  { %419 = vmatpush3.bf16.msra.mxu0 %v459_v7 }
  0x10   :  { %420 = vmatprep.subr.bf16.mxu0 %v460_v8 }
  0x13   :  { %421 = vmatpush3.bf16.msra.mxu0 %v461_v9 }
  0x14   :  { %422 = vmatprep.subr.bf16.mxu0 %v462_v11 }
  0x17   :  { %423 = vmatpush3.bf16.msra.mxu0 %v463_v12 }
  0x18   :  { %424 = vmatprep.subr.bf16.mxu0 %v464_v13 }
  0x1b   :  { %425 = vmatpush3.bf16.msra.mxu0 %v465_v18 }
  0x1c   :  { %426 = vmatprep.subr.bf16.mxu0 %v466_v19 }
  0x1f   :  { %427 = vmatpush3.bf16.msra.mxu0 %v468_v20 }
  0x22   :  { %246 = vmatmul.mubr.bf16.vlgmr.msra.gmra.mrb[0].mxu0 %v469_v21 }
  0x23   :  { %253 = vmatprep.mubr.bf16.mxu0 %v475_v22 }
  0x2a   :  { %254 = vmatmul.mubr.bf16.gmra.mrb[4].mxu0 %v477_v23 }
  0xe1   :  { %v450_v24 = vpop.f32.mrb[0].mxu1 }
  0xe2   :  { %v296_v25 = vpop.f32.mrb[1].mxu1 }
  0xe3   :  { %v451_v26 = vpop.f32.mrb[2].mxu1 }
  0xe4   :  { %v299_v27 = vpop.f32.mrb[3].mxu1 }
  0xf5   :  { %v428_v28 = vpop.f32.mrb[0].mxu0 }
  0xf6   :  { %v429_v29 = vpop.f32.mrb[1].mxu0 }
  0xf7   :  { %v430_v31 = vadd.f32 %v429_v29, %v428_v28  ;;  %v431_v32 = vpop.f32.mrb[2].mxu0 }
  0xf8   :  { %v432_v33 = vpop.f32.mrb[3].mxu0 }
  0xf9   :  { %v433_v34 = vadd.f32 %v432_v33, %v431_v32  ;;  %v248_v35 = vadd.f32 %v430_v31, %v377_v30 }
  0xfb   :  { %v297_v36 = vadd.f32 %v296_v25, %v248_v35  ;;  %v251_v37 = vadd.f32 %v433_v34, %v377_v30 }
  0xfd   :  { %v311_v38 = vmax.f32 %v297_v36, 0.0  ;;  %v300_v39 = vadd.f32 %v299_v27, %v251_v37  ;;  %v434_v40 = vpop.f32.mrb[4].mxu0 }
  0xfe   :  { %v435_v41 = vpop.f32.mrb[5].mxu0 }
  0xff   :  { %v408_v42 = vpack.c.bf16 %v311_v38, %v311_v38  ;;  %v351_v43 = vmul.f32 %v311_v38, %v311_v38  ;;  %v312_v44 = vmax.f32 %v300_v39, 0.0  ;;  %v437_v45 = vpop.f32.mrb[6].mxu0  ;;  %v436_v46 = vadd.f32 %v435_v41, %v434_v40 }
 0x100   :  { %v438_v47 = vpop.f32.mrb[7].mxu0  ;;  %v336_v48 = vsel %vm206_vm0, %v311_v38, 0.0 }
 0x101   :  { %332 = vst.msk [vmem:[%s613_s3] sm:$0xf] %vm331_vm1, %v408_v42  ;;  %v409_v49 = vpack.c.bf16 %v312_v44, %v312_v44  ;;  %v337_v50 = vsel %vm206_vm0, %v312_v44, 0.0  ;;  %v352_v51 = vmul.f32 %v312_v44, %v312_v44  ;;  %v256_v53 = vadd.f32 %v436_v46, %v377_v30 }
 0x102   :  { %v338_v52 = vadd.f32 %v337_v50, %v336_v48  ;;  %v439_v54 = vadd.f32 %v438_v47, %v437_v45  ;;  %v355_v55 = vsel %vm206_vm0, %v351_v43, 0.0 }
 0x103   :  { %333 = vst.msk [vmem:[%s613_s3 + $0x4] sm:$0xf] %vm331_vm1, %v409_v49  ;;  %v356_v56 = vsel %vm206_vm0, %v352_v51, 0.0  ;;  %v305_v58 = vadd.f32 %v450_v24, %v256_v53 }
 0x104   :  { %v357_v57 = vadd.f32 %v356_v56, %v355_v55  ;;  %v259_v59 = vadd.f32 %v439_v54, %v377_v30 }
 0x105   :  { %v313_v60 = vmax.f32 %v305_v58, 0.0 }
 0x106   :  { %v308_v61 = vadd.f32 %v451_v26, %v259_v59 }
 0x107   :  { %v410_v62 = vpack.c.bf16 %v313_v60, %v313_v60  ;;  %v339_v63 = vsel %vm206_vm0, %v313_v60, 0.0  ;;  %v353_v0 = vmul.f32 %v313_v60, %v313_v60 }
 0x108   :  { %v314_v1 = vmax.f32 %v308_v61, 0.0  ;;  %v340_v2 = vadd.f32 %v339_v63, %v338_v52 }
 0x109   :  { %334 = vst.msk [vmem:[%s613_s3 + $0x8] sm:$0xf] %vm331_vm1, %v410_v62  ;;  %v358_v3 = vsel %vm206_vm0, %v353_v0, 0.0 }
 0x10a   :  { %v411_v4 = vpack.c.bf16 %v314_v1, %v314_v1  ;;  %v341_v5 = vsel %vm206_vm0, %v314_v1, 0.0  ;;  %v354_v6 = vmul.f32 %v314_v1, %v314_v1  ;;  %v359_v7 = vadd.f32 %v358_v3, %v357_v57 }
 0x10b   :  { %v342_v8 = vadd.f32 %v341_v5, %v340_v2 }
 0x10c   :  { %335 = vst.msk [vmem:[%s613_s3 + $0xc] sm:$0xf] %vm331_vm1, %v411_v4  ;;  %v360_v9 = vsel %vm206_vm0, %v354_v6, 0.0 }
 0x10d   :  { %v343_v10 = vrot.slane %v342_v8, 4  ;;  %v361_v11 = vadd.f32 %v360_v9, %v359_v7 }
 0x10f   :  { %v344_v12 = vadd.f32 %v343_v10, %v342_v8  ;;  %v362_v13 = vrot.slane %v361_v11, 4 }
 0x111   :  { %v345_v14 = vrot.slane %v344_v12, 2  ;;  %v363_v15 = vadd.f32 %v362_v13, %v361_v11 }
 0x113   :  { %v346_v16 = vadd.f32 %v345_v14, %v344_v12  ;;  %v364_v17 = vrot.slane %v363_v15, 2 }
 0x115   :  { %v347_v18 = vrot.slane %v346_v16, 1  ;;  %v365_v19 = vadd.f32 %v364_v17, %v363_v15 }
 0x117   :  { %v348_v20 = vadd.f32 %v347_v18, %v346_v16  ;;  %v366_v21 = vrot.slane %v365_v19, 1 }
 0x119   :  { %350 = vst.msk [vmem:[%s614_s4] sm:$0x1] %vm349_vm2, %v348_v20  ;;  %v367_v22 = vadd.f32 %v366_v21, %v365_v19 }
 0x11b   :  { %368 = vst.msk [vmem:[%s614_s4 + $0x1] sm:$0x1] %vm349_vm2, %v367_v22 }

// kernel: tile.148
= control target key start
LH: loop header
LB: loop body
LE: loop exit
PB: predicated region body
PF: predicated region fallthrough
CT: control target
= control target key end

     0   :  { %s22_s0 = inlined_call_operand.vmem [shape: f32[8], index: 0, kind: input, shape index: {}]   ;;  %s23_s1 = inlined_call_operand.vmem [shape: f32[4,8], index: 1, kind: output, shape index: {}]  }
   0x1   :  { %v4_v0 = vld [vmem:[%s22_s0] ss:$0 sm:$0xff] }
   0x2   :  { %5 = vst [vmem:[%s23_s1] sm:$0xf] %v4_v0 }

// kernel: unet_forward.35
= control target key start
LH: loop header
LB: loop body
LE: loop exit
PB: predicated region body
PF: predicated region fallthrough
CT: control target
= control target key end

     0   :  { %vm86_vm0 = vcmask 130048   ;;  %vm272_vm1 = vcmask 257024   ;;  %s503_s1 = inlined_call_operand.vmem [shape: bf16[16,32], index: 1, kind: input, shape index: {}]   ;;  %s504_s0 = inlined_call_operand.vmem [shape: bf16[128,16], index: 0, kind: input, shape index: {}]   ;;  %s505_s2 = inlined_call_operand.vmem [shape: f32[1,32], index: 2, kind: input, shape index: {}]   ;;  %s506_s3 = inlined_call_operand.vmem [shape: bf16[128,32], index: 3, kind: output, shape index: {}]  }
   0x1   :  { %v372_v0 = vld [vmem:[%s503_s1] sm:$0xff]   ;;  %v375_v3 = vld [vmem:[%s504_s0 + $0x8] sm:$0xff]   ;;  %v377_v5 = vld [vmem:[%s504_s0 + $0x10] sm:$0xff]  }
   0x2   :  { %v373_v1 = vld [vmem:[%s504_s0] sm:$0xff]   ;;  %352 = vmatprep.subr.bf16.mxu0 %v372_v0  ;;  %370 = vmatprep.subr.bf16.mxu1 %v372_v0  ;;  %v376_v4 = vld [vmem:[%s504_s0 + $0x28] sm:$0xff]   ;;  %v378_v6 = vld [vmem:[%s504_s0 + $0x30] sm:$0xff]  }
   0x3   :  { %v374_v2 = vld [vmem:[%s504_s0 + $0x20] sm:$0xff]   ;;  %353 = vmatpush3.bf16.msra.mxu0 %v372_v0  ;;  %371 = vmatpush3.bf16.msra.mxu1 %v372_v0  ;;  %v379_v7 = vld [vmem:[%s504_s0 + $0x18] sm:$0xff]  }
   0x4   :  { %354 = vmatprep.mubr.msk.bf16.mxu0 %vm86_vm0, %v373_v1  ;;  %362 = vmatprep.mubr.msk.bf16.mxu1 %vm86_vm0, %v374_v2  ;;  %v380_v8 = vld [vmem:[%s504_s0 + $0x38] sm:$0xff]   ;;  %v293_v9 = vld [vmem:[%s505_s2] ss:$0 sm:$0xff] }
   0x6   :  { %355 = vmatmul.mubr.msk.bf16.vlgmr.msra.gmra.mrb[0].mxu0 %vm86_vm0, %v375_v3  ;;  %363 = vmatmul.mubr.msk.bf16.vlgmr.msra.gmra.mrb[0].mxu1 %vm86_vm0, %v376_v4 }
   0x7   :  { %358 = vmatprep.mubr.msk.bf16.mxu0 %vm86_vm0, %v377_v5  ;;  %366 = vmatprep.mubr.msk.bf16.mxu1 %vm86_vm0, %v378_v6 }
   0xe   :  { %359 = vmatmul.mubr.msk.bf16.gmra.mrb[4].mxu0 %vm86_vm0, %v379_v7  ;;  %367 = vmatmul.mubr.msk.bf16.gmra.mrb[4].mxu1 %vm86_vm0, %v380_v8 }
  0xd9   :  { %v356_v10 = vpop.f32.mrb[0].mxu0  ;;  %v364_v11 = vpop.f32.mrb[0].mxu1 }
  0xda   :  { %v154_v12 = vadd.f32 %v356_v10, %v293_v9  ;;  %v186_v13 = vadd.f32 %v364_v11, %v293_v9  ;;  %v145_v14 = vpop.f32.mrb[1].mxu0  ;;  %v177_v15 = vpop.f32.mrb[1].mxu1 }
  0xdb   :  { %v146_v16 = vadd.f32 %v293_v9, %v145_v14  ;;  %v178_v17 = vadd.f32 %v293_v9, %v177_v15  ;;  %v357_v18 = vpop.f32.mrb[2].mxu0  ;;  %v365_v19 = vpop.f32.mrb[2].mxu1 }
  0xdc   :  { %v329_v20 = vpack.c.bf16 %v154_v12, %v154_v12  ;;  %v337_v21 = vpack.c.bf16 %v186_v13, %v186_v13  ;;  %v157_v22 = vadd.f32 %v357_v18, %v293_v9  ;;  %v189_v23 = vadd.f32 %v365_v19, %v293_v9  ;;  %v148_v24 = vpop.f32.mrb[3].mxu0  ;;  %v180_v25 = vpop.f32.mrb[3].mxu1 }
  0xdd   :  { %v327_v26 = vpack.c.bf16 %v146_v16, %v146_v16  ;;  %v335_v27 = vpack.c.bf16 %v178_v17, %v178_v17  ;;  %v149_v28 = vadd.f32 %v293_v9, %v148_v24  ;;  %v181_v29 = vadd.f32 %v293_v9, %v180_v25 }
  0xde   :  { %275 = vst.msk [vmem:[%s506_s3 + $0x8] sm:$0xf] %vm272_vm1, %v329_v20  ;;  %283 = vst.msk [vmem:[%s506_s3 + $0x28] sm:$0xf] %vm272_vm1, %v337_v21  ;;  %v330_v30 = vpack.c.bf16 %v157_v22, %v157_v22  ;;  %v338_v31 = vpack.c.bf16 %v189_v23, %v189_v23 }
  0xdf   :  { %273 = vst.msk [vmem:[%s506_s3] sm:$0xf] %vm272_vm1, %v327_v26  ;;  %281 = vst.msk [vmem:[%s506_s3 + $0x20] sm:$0xf] %vm272_vm1, %v335_v27  ;;  %v328_v32 = vpack.c.bf16 %v149_v28, %v149_v28  ;;  %v336_v33 = vpack.c.bf16 %v181_v29, %v181_v29 }
  0xe0   :  { %276 = vst.msk [vmem:[%s506_s3 + $0xc] sm:$0xf] %vm272_vm1, %v330_v30  ;;  %284 = vst.msk [vmem:[%s506_s3 + $0x2c] sm:$0xf] %vm272_vm1, %v338_v31 }
  0xe1   :  { %274 = vst.msk [vmem:[%s506_s3 + $0x4] sm:$0xf] %vm272_vm1, %v328_v32  ;;  %282 = vst.msk [vmem:[%s506_s3 + $0x24] sm:$0xf] %vm272_vm1, %v336_v33  ;;  %v360_v34 = vpop.f32.mrb[4].mxu0  ;;  %v368_v35 = vpop.f32.mrb[4].mxu1 }
  0xe2   :  { %v170_v36 = vadd.f32 %v360_v34, %v293_v9  ;;  %v202_v37 = vadd.f32 %v368_v35, %v293_v9  ;;  %v161_v38 = vpop.f32.mrb[5].mxu0  ;;  %v193_v39 = vpop.f32.mrb[5].mxu1 }
  0xe3   :  { %v162_v40 = vadd.f32 %v293_v9, %v161_v38  ;;  %v194_v41 = vadd.f32 %v293_v9, %v193_v39  ;;  %v361_v42 = vpop.f32.mrb[6].mxu0  ;;  %v369_v43 = vpop.f32.mrb[6].mxu1 }
  0xe4   :  { %v333_v44 = vpack.c.bf16 %v170_v36, %v170_v36  ;;  %v341_v45 = vpack.c.bf16 %v202_v37, %v202_v37  ;;  %v173_v46 = vadd.f32 %v361_v42, %v293_v9  ;;  %v205_v47 = vadd.f32 %v369_v43, %v293_v9  ;;  %v164_v48 = vpop.f32.mrb[7].mxu0  ;;  %v196_v49 = vpop.f32.mrb[7].mxu1 }
  0xe5   :  { %v331_v50 = vpack.c.bf16 %v162_v40, %v162_v40  ;;  %v339_v51 = vpack.c.bf16 %v194_v41, %v194_v41  ;;  %v165_v52 = vadd.f32 %v293_v9, %v164_v48  ;;  %v197_v53 = vadd.f32 %v293_v9, %v196_v49 }
  0xe6   :  { %279 = vst.msk [vmem:[%s506_s3 + $0x18] sm:$0xf] %vm272_vm1, %v333_v44  ;;  %287 = vst.msk [vmem:[%s506_s3 + $0x38] sm:$0xf] %vm272_vm1, %v341_v45  ;;  %v334_v54 = vpack.c.bf16 %v173_v46, %v173_v46  ;;  %v342_v55 = vpack.c.bf16 %v205_v47, %v205_v47 }
  0xe7   :  { %277 = vst.msk [vmem:[%s506_s3 + $0x10] sm:$0xf] %vm272_vm1, %v331_v50  ;;  %285 = vst.msk [vmem:[%s506_s3 + $0x30] sm:$0xf] %vm272_vm1, %v339_v51  ;;  %v332_v56 = vpack.c.bf16 %v165_v52, %v165_v52  ;;  %v340_v57 = vpack.c.bf16 %v197_v53, %v197_v53 }
  0xe8   :  { %280 = vst.msk [vmem:[%s506_s3 + $0x1c] sm:$0xf] %vm272_vm1, %v334_v54  ;;  %288 = vst.msk [vmem:[%s506_s3 + $0x3c] sm:$0xf] %vm272_vm1, %v342_v55 }
  0xe9   :  { %278 = vst.msk [vmem:[%s506_s3 + $0x14] sm:$0xf] %vm272_vm1, %v332_v56  ;;  %286 = vst.msk [vmem:[%s506_s3 + $0x34] sm:$0xf] %vm272_vm1, %v340_v57 }

// kernel: unet_forward.32
= control target key start
LH: loop header
LB: loop body
LE: loop exit
PB: predicated region body
PF: predicated region fallthrough
CT: control target
= control target key end

     0   :  { %vm320_vm0 = vcmask 261120   ;;  %vm619_vm1 = vcmask 125952   ;;  %vm636_vm2 = vcmask 130048   ;;  %vm674_vm3 = vcmask 122880   ;;  %s1281_s1 = inlined_call_operand.vmem [shape: bf16[288,16], index: 1, kind: input, shape index: {}]   ;;  %s1282_s0 = inlined_call_operand.vmem [shape: bf16[128,288], index: 0, kind: input, shape index: {}]   ;;  %s1283_s2 = inlined_call_operand.vmem [shape: f32[1,16], index: 2, kind: input, shape index: {}]   ;;  %s1284_s3 = inlined_call_operand.vmem [shape: bf16[128,16], index: 3, kind: output, shape index: {0}]   ;;  %s1285_s4 = inlined_call_operand.vmem [shape: f32[1,2,16], index: 4, kind: output, shape index: {1}]  }
   0x1   :  { %v931_v0 = vld [vmem:[%s1281_s1 + $0x40] sm:$0xff]   ;;  %v933_v2 = vld [vmem:[%s1281_s1 + $0x48] sm:$0xff]   ;;  %v935_v4 = vld [vmem:[%s1281_s1 + $0x50] sm:$0xff]  }
   0x2   :  { %v932_v1 = vld [vmem:[%s1281_s1] sm:$0xff]   ;;  %821 = vmatprep.subr.bf16.mxu0 %v931_v0  ;;  %915 = vmatprep.subr.bf16.mxu1 %v931_v0  ;;  %v934_v3 = vld [vmem:[%s1281_s1 + $0x8] sm:$0xff]   ;;  %v936_v5 = vld [vmem:[%s1281_s1 + $0x10] sm:$0xff]  }
   0x3   :  { %822 = vmatpush3.bf16.msra.mxu0 %v932_v1  ;;  %923 = vmatpush3.bf16.msra.mxu1 %v932_v1  ;;  %v937_v6 = vld [vmem:[%s1281_s1 + $0x58] sm:$0xff]   ;;  %v939_v8 = vld [vmem:[%s1281_s1 + $0x60] sm:$0xff]   ;;  %v941_v10 = vld [vmem:[%s1281_s1 + $0x68] sm:$0xff]  }
   0x4   :  { %823 = vmatprep.subr.bf16.mxu0 %v933_v2  ;;  %916 = vmatprep.subr.bf16.mxu1 %v933_v2  ;;  %v938_v7 = vld [vmem:[%s1281_s1 + $0x18] sm:$0xff]   ;;  %v940_v9 = vld [vmem:[%s1281_s1 + $0x20] sm:$0xff]   ;;  %v942_v13 = vld [vmem:[%s1281_s1 + $0x28] sm:$0xff]  }
   0x5   :  { %v949_v11 = vld [vmem:[%s1282_s0 + $0x4] ss:$12 sps:$4 sm:$0xff]   ;;  %v952_v12 = vld [vmem:[%s1282_s0 + $0x94] ss:$12 sps:$4 sm:$0xff]   ;;  %v945_v16 = vld [vmem:[%s1281_s1 + $0x78] sm:$0xff]  }
   0x6   :  { %v943_v14 = vld [vmem:[%s1281_s1 + $0x70] sm:$0xff]   ;;  %377 = vmatprep.mubr.bf16.mxu0 %v949_v11  ;;  %425 = vmatprep.mubr.bf16.mxu1 %v952_v12  ;;  %v946_v17 = vld [vmem:[%s1281_s1 + $0x38] sm:$0xff]   ;;  %v947_v18 = vld [vmem:[%s1282_s0] ss:$12 sps:$4 sm:$0xff]  }
   0x7   :  { %824 = vmatpush3.bf16.msra.mxu0 %v934_v3  ;;  %924 = vmatpush3.bf16.msra.mxu1 %v934_v3  ;;  %v944_v15 = vld [vmem:[%s1281_s1 + $0x30] sm:$0xff]   ;;  %v957_v19 = vld [vmem:[%s1281_s1 + $0x80] sm:$0xff]   ;;  %v953_v21 = vld [vmem:[%s1282_s0 + $0x1c] ss:$12 sps:$4 sm:$0xff]  }
   0x8   :  { %825 = vmatprep.subr.bf16.mxu0 %v935_v4  ;;  %917 = vmatprep.subr.bf16.mxu1 %v935_v4  ;;  %v950_v20 = vld [vmem:[%s1282_s0 + $0x90] ss:$12 sps:$4 sm:$0xff]   ;;  %v955_v22 = vld [vmem:[%s1282_s0 + $0xac] ss:$12 sps:$4 sm:$0xff]   ;;  %v959_v25 = vld [vmem:[%s1282_s0 + $0xa8] ss:$12 sps:$4 sm:$0xff]  }
   0x9   :  { %v960_v23 = vld [vmem:[%s1281_s1 + $0x88] sm:$0xff]   ;;  %v958_v24 = vld [vmem:[%s1282_s0 + $0x18] ss:$12 sps:$4 sm:$0xff]   ;;  %v961_v26 = vld [vmem:[%s1282_s0 + $0x34] ss:$12 sps:$4 sm:$0xff]  }
   0xa   :  { %v963_v27 = vld [vmem:[%s1282_s0 + $0x8] ss:$12 sps:$4 sm:$0xff]   ;;  %v964_v28 = vld [vmem:[%s1282_s0 + $0x30] ss:$12 sps:$4 sm:$0xff]   ;;  %v965_v29 = vld [vmem:[%s1282_s0 + $0x20] ss:$12 sps:$4 sm:$0xff]  }
   0xb   :  { %826 = vmatpush3.bf16.msra.mxu0 %v936_v5  ;;  %925 = vmatpush3.bf16.msra.mxu1 %v936_v5  ;;  %v966_v30 = vld [vmem:[%s1282_s0 + $0x4c] ss:$12 sps:$4 sm:$0xff]   ;;  %v969_v32 = vld [vmem:[%s1282_s0 + $0x48] ss:$12 sps:$4 sm:$0xff]   ;;  %v970_v33 = vld [vmem:[%s1282_s0 + $0x50] ss:$12 sps:$4 sm:$0xff]  }
   0xc   :  { %827 = vmatprep.subr.bf16.mxu0 %v937_v6  ;;  %918 = vmatprep.subr.bf16.mxu1 %v937_v6  ;;  %v968_v31 = vld [vmem:[%s1282_s0 + $0x38] ss:$12 sps:$4 sm:$0xff]   ;;  %v973_v35 = vld [vmem:[%s1282_s0 + $0x68] ss:$12 sps:$4 sm:$0xff]   ;;  %v974_v36 = vld [vmem:[%s1282_s0 + $0x60] ss:$12 sps:$4 sm:$0xff]  }
   0xd   :  { %v971_v34 = vld [vmem:[%s1282_s0 + $0x64] ss:$12 sps:$4 sm:$0xff]   ;;  %v975_v37 = vld [vmem:[%s1282_s0 + $0x80] ss:$12 sps:$4 sm:$0xff]   ;;  %v976_v38 = vld [vmem:[%s1282_s0 + $0x7c] ss:$12 sps:$4 sm:$0xff]  }
   0xe   :  { %v978_v39 = vld [vmem:[%s1282_s0 + $0x98] ss:$12 sps:$4 sm:$0xff]   ;;  %v980_v41 = vld [vmem:[%s1282_s0 + $0xb0] ss:$12 sps:$4 sm:$0xff]   ;;  %v1151_v2 = vld [vmem:[%s1283_s2] ss:$0 sm:$0xff] }
   0xf   :  { %828 = vmatpush3.bf16.msra.mxu0 %v938_v7  ;;  %926 = vmatpush3.bf16.msra.mxu1 %v938_v7  ;;  %v979_v40 = vld [vmem:[%s1282_s0 + $0x78] ss:$12 sps:$4 sm:$0xff]  }
  0x10   :  { %829 = vmatprep.subr.bf16.mxu0 %v939_v8  ;;  %919 = vmatprep.subr.bf16.mxu1 %v939_v8 }
  0x13   :  { %830 = vmatpush3.bf16.msra.mxu0 %v940_v9  ;;  %927 = vmatpush3.bf16.msra.mxu1 %v940_v9 }
  0x14   :  { %831 = vmatprep.subr.bf16.mxu0 %v941_v10  ;;  %920 = vmatprep.subr.bf16.mxu1 %v941_v10 }
  0x17   :  { %832 = vmatpush3.bf16.msra.mxu0 %v942_v13  ;;  %928 = vmatpush3.bf16.msra.mxu1 %v942_v13 }
  0x18   :  { %833 = vmatprep.subr.bf16.mxu0 %v943_v14  ;;  %921 = vmatprep.subr.bf16.mxu1 %v943_v14 }
  0x1b   :  { %834 = vmatpush3.bf16.msra.mxu0 %v944_v15  ;;  %929 = vmatpush3.bf16.msra.mxu1 %v944_v15 }
  0x1c   :  { %835 = vmatprep.subr.bf16.mxu0 %v945_v16  ;;  %922 = vmatprep.subr.bf16.mxu1 %v945_v16 }
  0x1f   :  { %836 = vmatpush3.bf16.msra.mxu0 %v946_v17  ;;  %930 = vmatpush3.bf16.msra.mxu1 %v946_v17 }
  0x20   :  { %895 = vmatprep.subr.bf16.mxu1 %v957_v19 }
  0x22   :  { %378 = vmatmul.mubr.bf16.vlgmr.msra.gmra.mrb[0].mxu0 %v947_v18  ;;  %426 = vmatmul.mubr.bf16.vlgmr.msra.gmra.mrb[0].mxu1 %v950_v20 }
  0x23   :  { %385 = vmatprep.mubr.bf16.mxu0 %v953_v21  ;;  %433 = vmatprep.mubr.bf16.mxu1 %v955_v22 }
  0x24   :  { %896 = vmatpush3.bf16.msra.mxu1 %v957_v19 }
  0x25   :  { %897 = vmatprep.subr.bf16.mxu1 %v960_v23 }
  0x28   :  { %898 = vmatpush3.bf16.msra.mxu1 %v960_v23 }
  0x2a   :  { %386 = vmatmul.mubr.bf16.gmra.mrb[4].mxu0 %v958_v24  ;;  %434 = vmatmul.mubr.bf16.gmra.mrb[4].mxu1 %v959_v25 }
  0x2b   :  { %393 = vmatprep.mubr.bf16.mxu0 %v961_v26  ;;  %899 = vmatprep.mubr.msk.bf16.mxu1 %vm320_vm0, %v963_v27 }
  0x32   :  { %394 = vmatmul.mubr.bf16.gmra.mrb[8].mxu0 %v964_v28  ;;  %900 = vmatmul.mubr.msk.bf16.vlgmr.msra.gmra.mrb[8].mxu1 %vm320_vm0, %v965_v29 }
  0x33   :  { %401 = vmatprep.mubr.bf16.mxu0 %v966_v30  ;;  %903 = vmatprep.mubr.msk.bf16.mxu1 %vm320_vm0, %v968_v31 }
  0x3a   :  { %402 = vmatmul.mubr.bf16.gmra.mrb[12].mxu0 %v969_v32  ;;  %904 = vmatmul.mubr.msk.bf16.gmra.mrb[12].mxu1 %vm320_vm0, %v970_v33 }
  0x3b   :  { %409 = vmatprep.mubr.bf16.mxu0 %v971_v34  ;;  %907 = vmatprep.mubr.msk.bf16.mxu1 %vm320_vm0, %v973_v35 }
  0x42   :  { %410 = vmatmul.mubr.bf16.gmra.mrb[16].mxu0 %v974_v36  ;;  %908 = vmatmul.mubr.msk.bf16.gmra.mrb[16].mxu1 %vm320_vm0, %v975_v37 }
  0x43   :  { %417 = vmatprep.mubr.bf16.mxu0 %v976_v38  ;;  %911 = vmatprep.mubr.msk.bf16.mxu1 %vm320_vm0, %v978_v39 }
  0x4a   :  { %418 = vmatmul.mubr.bf16.gmra.mrb[20].mxu0 %v979_v40  ;;  %912 = vmatmul.mubr.msk.bf16.gmra.mrb[20].mxu1 %vm320_vm0, %v980_v41 }
  0xf5   :  { %v837_v42 = vpop.f32.mrb[0].mxu0  ;;  %v873_v43 = vpop.f32.mrb[0].mxu1 }
  0xf6   :  { %v838_v44 = vpop.f32.mrb[1].mxu0  ;;  %v874_v45 = vpop.f32.mrb[1].mxu1 }
  0xf7   :  { %v839_v46 = vadd.f32 %v838_v44, %v837_v42  ;;  %v840_v47 = vpop.f32.mrb[2].mxu0  ;;  %v1140_v48 = vadd.f32 %v874_v45, %v873_v43  ;;  %v876_v49 = vpop.f32.mrb[2].mxu1 }
  0xf8   :  { %v841_v50 = vpop.f32.mrb[3].mxu0  ;;  %v877_v51 = vpop.f32.mrb[3].mxu1 }
  0xf9   :  { %v842_v52 = vadd.f32 %v841_v50, %v840_v47  ;;  %v1142_v53 = vadd.f32 %v877_v51, %v876_v49  ;;  %v380_v6 = vadd.f32 %v839_v46, %v1151_v2 }
  0xfb   :  { %v383_v15 = vadd.f32 %v842_v52, %v1151_v2 }
  0xfd   :  { %v843_v54 = vpop.f32.mrb[4].mxu0  ;;  %v879_v55 = vpop.f32.mrb[4].mxu1 }
  0xfe   :  { %v844_v56 = vpop.f32.mrb[5].mxu0  ;;  %v880_v57 = vpop.f32.mrb[5].mxu1 }
  0xff   :  { %v845_v58 = vadd.f32 %v844_v56, %v843_v54  ;;  %v846_v59 = vpop.f32.mrb[6].mxu0  ;;  %v1144_v60 = vadd.f32 %v880_v57, %v879_v55  ;;  %v882_v61 = vpop.f32.mrb[6].mxu1 }
 0x100   :  { %v847_v62 = vpop.f32.mrb[7].mxu0  ;;  %v883_v63 = vpop.f32.mrb[7].mxu1 }
 0x101   :  { %v848_v0 = vadd.f32 %v847_v62, %v846_v59  ;;  %v1146_v1 = vadd.f32 %v883_v63, %v882_v61  ;;  %v388_v3 = vadd.f32 %v845_v58, %v1151_v2 }
 0x103   :  { %v391_v10 = vadd.f32 %v848_v0, %v1151_v2 }
 0x105   :  { %v849_v4 = vpop.f32.mrb[8].mxu0  ;;  %v901_v5 = vpop.f32.mrb[8].mxu1 }
 0x106   :  { %v485_v7 = vadd.f32 %v901_v5, %v388_v3  ;;  %v850_v8 = vpop.f32.mrb[9].mxu0  ;;  %v476_v9 = vpop.f32.mrb[9].mxu1 }
 0x107   :  { %v851_v11 = vadd.f32 %v850_v8, %v849_v4  ;;  %v477_v12 = vadd.f32 %v476_v9, %v380_v6  ;;  %v852_v13 = vpop.f32.mrb[10].mxu0  ;;  %v902_v14 = vpop.f32.mrb[10].mxu1 }
 0x108   :  { %v541_v16 = vmax.f32 %v485_v7, 0.0  ;;  %v488_v17 = vadd.f32 %v902_v14, %v391_v10  ;;  %v853_v18 = vpop.f32.mrb[11].mxu0  ;;  %v479_v19 = vpop.f32.mrb[11].mxu1 }
 0x109   :  { %v539_v20 = vmax.f32 %v477_v12, 0.0  ;;  %v854_v21 = vadd.f32 %v853_v18, %v852_v13  ;;  %v480_v22 = vadd.f32 %v479_v19, %v383_v15  ;;  %v396_v30 = vadd.f32 %v851_v11, %v1151_v2 }
 0x10a   :  { %v807_v23 = vpack.c.bf16 %v541_v16, %v541_v16  ;;  %v542_v24 = vmax.f32 %v488_v17, 0.0  ;;  %v678_v28 = vmul.f32 %v541_v16, %v541_v16  ;;  %v640_v37 = vsel %vm636_vm2, %v541_v16, 0.0 }
 0x10b   :  { %v805_v25 = vpack.c.bf16 %v539_v20, %v539_v20  ;;  %v676_v26 = vmul.f32 %v539_v20, %v539_v20  ;;  %v540_v27 = vmax.f32 %v480_v22, 0.0  ;;  %v637_v31 = vsel %vm636_vm2, %v539_v20, 0.0 }
 0x10c   :  { %622 = vst.msk [vmem:[%s1284_s3 + $0x8] sm:$0xf] %vm619_vm1, %v807_v23  ;;  %v808_v29 = vpack.c.bf16 %v542_v24, %v542_v24  ;;  %v679_v39 = vmul.f32 %v542_v24, %v542_v24  ;;  %v399_v49 = vadd.f32 %v854_v21, %v1151_v2  ;;  %v695_v50 = vsel %vm636_vm2, %v678_v28, 0.0 }
 0x10d   :  { %620 = vst.msk [vmem:[%s1284_s3] sm:$0xf] %vm619_vm1, %v805_v25  ;;  %v806_v32 = vpack.c.bf16 %v540_v27, %v540_v27  ;;  %v638_v33 = vsel %vm636_vm2, %v540_v27, 0.0  ;;  %v677_v34 = vmul.f32 %v540_v27, %v540_v27  ;;  %v855_v35 = vpop.f32.mrb[12].mxu0  ;;  %v905_v36 = vpop.f32.mrb[12].mxu1  ;;  %v692_v38 = vsel %vm636_vm2, %v676_v26, 0.0 }
 0x10e   :  { %623 = vst.msk [vmem:[%s1284_s3 + $0xc] sm:$0xf] %vm619_vm1, %v808_v29  ;;  %v639_v40 = vadd.f32 %v638_v33, %v637_v31  ;;  %v856_v41 = vpop.f32.mrb[13].mxu0  ;;  %v492_v42 = vpop.f32.mrb[13].mxu1  ;;  %v642_v51 = vsel %vm636_vm2, %v542_v24, 0.0  ;;  %v697_v62 = vsel %vm636_vm2, %v679_v39, 0.0 }
 0x10f   :  { %621 = vst.msk [vmem:[%s1284_s3 + $0x4] sm:$0xf] %vm619_vm1, %v806_v32  ;;  %v693_v43 = vsel %vm636_vm2, %v677_v34, 0.0  ;;  %v857_v44 = vadd.f32 %v856_v41, %v855_v35  ;;  %v493_v45 = vadd.f32 %v492_v42, %v396_v30  ;;  %v858_v46 = vpop.f32.mrb[14].mxu0  ;;  %v906_v47 = vpop.f32.mrb[14].mxu1 }
 0x110   :  { %v641_v52 = vadd.f32 %v640_v37, %v639_v40  ;;  %v694_v54 = vadd.f32 %v693_v43, %v692_v38  ;;  %v859_v55 = vpop.f32.mrb[15].mxu0  ;;  %v495_v56 = vpop.f32.mrb[15].mxu1 }
 0x111   :  { %v404_v57 = vadd.f32 %v857_v44, %v1151_v2  ;;  %v543_v58 = vmax.f32 %v493_v45, 0.0  ;;  %v860_v59 = vadd.f32 %v859_v55, %v858_v46  ;;  %v496_v61 = vadd.f32 %v495_v56, %v399_v49 }
 0x112   :  { %v696_v63 = vadd.f32 %v695_v50, %v694_v54  ;;  %v643_v0 = vadd.f32 %v642_v51, %v641_v52  ;;  %v436_v45 = vadd.f32 %v1144_v60, %v1151_v2  ;;  %v428_v51 = vadd.f32 %v1140_v48, %v1151_v2 }
 0x113   :  { %v501_v3 = vadd.f32 %v905_v36, %v404_v57  ;;  %v809_v4 = vpack.c.bf16 %v543_v58, %v543_v58  ;;  %v644_v5 = vsel %vm636_vm2, %v543_v58, 0.0  ;;  %v680_v6 = vmul.f32 %v543_v58, %v543_v58 }
 0x114   :  { %v645_v7 = vadd.f32 %v644_v5, %v643_v0  ;;  %v698_v8 = vadd.f32 %v697_v62, %v696_v63  ;;  %v407_v9 = vadd.f32 %v860_v59, %v1151_v2  ;;  %v544_v10 = vmax.f32 %v496_v61, 0.0 }
 0x115   :  { %v545_v11 = vmax.f32 %v501_v3, 0.0  ;;  %624 = vst.msk [vmem:[%s1284_s3 + $0x10] sm:$0xf] %vm619_vm1, %v809_v4  ;;  %v699_v12 = vsel %vm636_vm2, %v680_v6, 0.0  ;;  %v861_v13 = vpop.f32.mrb[16].mxu0  ;;  %v1191_v14 = vpop.f32.mrb[16].mxu1 }
 0x116   :  { %v700_v15 = vadd.f32 %v699_v12, %v698_v8  ;;  %v504_v16 = vadd.f32 %v906_v47, %v407_v9  ;;  %v810_v17 = vpack.c.bf16 %v544_v10, %v544_v10  ;;  %v646_v18 = vsel %vm636_vm2, %v544_v10, 0.0  ;;  %v862_v19 = vpop.f32.mrb[17].mxu0  ;;  %v508_v20 = vpop.f32.mrb[17].mxu1 }
 0x117   :  { %v811_v21 = vpack.c.bf16 %v545_v11, %v545_v11  ;;  %v682_v22 = vmul.f32 %v545_v11, %v545_v11  ;;  %v647_v23 = vadd.f32 %v646_v18, %v645_v7  ;;  %v648_v24 = vsel %vm636_vm2, %v545_v11, 0.0  ;;  %v864_v25 = vpop.f32.mrb[18].mxu0  ;;  %v1195_v26 = vpop.f32.mrb[18].mxu1 }
 0x118   :  { %v546_v27 = vmax.f32 %v504_v16, 0.0  ;;  %625 = vst.msk [vmem:[%s1284_s3 + $0x14] sm:$0xf] %vm619_vm1, %v810_v17  ;;  %v681_v28 = vmul.f32 %v544_v10, %v544_v10  ;;  %v863_v29 = vadd.f32 %v862_v19, %v861_v13  ;;  %v865_v30 = vpop.f32.mrb[19].mxu0  ;;  %v511_v31 = vpop.f32.mrb[19].mxu1  ;;  %v439_v12 = vadd.f32 %v1146_v1, %v1151_v2 }
 0x119   :  { %626 = vst.msk [vmem:[%s1284_s3 + $0x18] sm:$0xf] %vm619_vm1, %v811_v21  ;;  %v649_v32 = vadd.f32 %v648_v24, %v647_v23  ;;  %v703_v33 = vsel %vm636_vm2, %v682_v22, 0.0  ;;  %v866_v34 = vadd.f32 %v865_v30, %v864_v25  ;;  %v431_v13 = vadd.f32 %v1142_v53, %v1151_v2 }
 0x11a   :  { %v812_v35 = vpack.c.bf16 %v546_v27, %v546_v27  ;;  %v683_v36 = vmul.f32 %v546_v27, %v546_v27  ;;  %v701_v37 = vsel %vm636_vm2, %v681_v28, 0.0  ;;  %v412_v38 = vadd.f32 %v863_v29, %v1151_v2 }
 0x11b   :  { %v702_v39 = vadd.f32 %v701_v37, %v700_v15  ;;  %v650_v40 = vsel %vm636_vm2, %v546_v27, 0.0  ;;  %v415_v41 = vadd.f32 %v866_v34, %v1151_v2 }
 0x11c   :  { %627 = vst.msk [vmem:[%s1284_s3 + $0x1c] sm:$0xf] %vm619_vm1, %v812_v35  ;;  %v509_v42 = vadd.f32 %v508_v20, %v412_v38  ;;  %v651_v43 = vadd.f32 %v650_v40, %v649_v32  ;;  %v705_v44 = vsel %vm636_vm2, %v683_v36, 0.0 }
 0x11d   :  { %v704_v46 = vadd.f32 %v703_v33, %v702_v39  ;;  %v512_v47 = vadd.f32 %v511_v31, %v415_v41  ;;  %v867_v49 = vpop.f32.mrb[20].mxu0  ;;  %v913_v50 = vpop.f32.mrb[20].mxu1 }
 0x11e   :  { %v547_v52 = vmax.f32 %v509_v42, 0.0  ;;  %v533_v54 = vadd.f32 %v913_v50, %v436_v45  ;;  %v868_v55 = vpop.f32.mrb[21].mxu0  ;;  %v524_v56 = vpop.f32.mrb[21].mxu1 }
 0x11f   :  { %v706_v57 = vadd.f32 %v705_v44, %v704_v46  ;;  %v548_v58 = vmax.f32 %v512_v47, 0.0  ;;  %v869_v59 = vadd.f32 %v868_v55, %v867_v49  ;;  %v525_v61 = vadd.f32 %v524_v56, %v428_v51  ;;  %v870_v62 = vpop.f32.mrb[22].mxu0  ;;  %v914_v63 = vpop.f32.mrb[22].mxu1 }
 0x120   :  { %v813_v0 = vpack.c.bf16 %v547_v52, %v547_v52  ;;  %v652_v60 = vsel %vm636_vm2, %v547_v52, 0.0  ;;  %v684_v3 = vmul.f32 %v547_v52, %v547_v52  ;;  %v553_v4 = vmax.f32 %v533_v54, 0.0  ;;  %v871_v5 = vpop.f32.mrb[23].mxu0  ;;  %v527_v6 = vpop.f32.mrb[23].mxu1 }
 0x121   :  { %v653_v7 = vadd.f32 %v652_v60, %v651_v43  ;;  %v814_v8 = vpack.c.bf16 %v548_v58, %v548_v58  ;;  %v654_v48 = vsel %vm636_vm2, %v548_v58, 0.0  ;;  %v685_v9 = vmul.f32 %v548_v58, %v548_v58 }
 0x122   :  { %628 = vst.msk [vmem:[%s1284_s3 + $0x20] sm:$0xf] %vm619_vm1, %v813_v0  ;;  %v707_v10 = vsel %vm636_vm2, %v684_v3, 0.0  ;;  %v819_v11 = vpack.c.bf16 %v553_v4, %v553_v4  ;;  %v420_v18 = vadd.f32 %v869_v59, %v1151_v2  ;;  %v551_v1 = vmax.f32 %v525_v61, 0.0 }
 0x123   :  { %v708_v15 = vadd.f32 %v707_v10, %v706_v57  ;;  %629 = vst.msk [vmem:[%s1284_s3 + $0x24] sm:$0xf] %vm619_vm1, %v814_v8  ;;  %v655_v16 = vadd.f32 %v654_v48, %v653_v7  ;;  %v709_v17 = vsel %vm636_vm2, %v685_v9, 0.0  ;;  %v536_v19 = vadd.f32 %v914_v63, %v439_v12 }
 0x124   :  { %634 = vst.msk [vmem:[%s1284_s3 + $0x38] sm:$0xf] %vm619_vm1, %v819_v11  ;;  %v872_v20 = vadd.f32 %v871_v5, %v870_v62  ;;  %v517_v21 = vadd.f32 %v1191_v14, %v420_v18  ;;  %v528_v22 = vadd.f32 %v527_v6, %v431_v13  ;;  %v817_v23 = vpack.c.bf16 %v551_v1, %v551_v1 }
 0x125   :  { %v710_v53 = vadd.f32 %v709_v17, %v708_v15  ;;  %v554_v24 = vmax.f32 %v536_v19, 0.0  ;;  %v660_v41 = vsel %vm636_vm2, %v551_v1, 0.0  ;;  %v690_v46 = vmul.f32 %v553_v4, %v553_v4 }
 0x126   :  { %v549_v25 = vmax.f32 %v517_v21, 0.0  ;;  %v423_v27 = vadd.f32 %v872_v20, %v1151_v2  ;;  %v552_v28 = vmax.f32 %v528_v22, 0.0  ;;  %632 = vst.msk [vmem:[%s1284_s3 + $0x30] sm:$0xf] %vm619_vm1, %v817_v23  ;;  %v664_v52 = vsel %vm636_vm2, %v553_v4, 0.0 }
 0x127   :  { %v820_v29 = vpack.c.bf16 %v554_v24, %v554_v24  ;;  %v691_v54 = vmul.f32 %v554_v24, %v554_v24  ;;  %v719_v58 = vsel %vm636_vm2, %v690_v46, 0.0  ;;  %v666_v59 = vsel %vm636_vm2, %v554_v24, 0.0 }
 0x128   :  { %v815_v30 = vpack.c.bf16 %v549_v25, %v549_v25  ;;  %v656_v31 = vsel %vm636_vm2, %v549_v25, 0.0  ;;  %v686_v32 = vmul.f32 %v549_v25, %v549_v25  ;;  %v520_v33 = vadd.f32 %v1195_v26, %v423_v27 }
 0x129   :  { %v657_v14 = vadd.f32 %v656_v31, %v655_v16  ;;  %635 = vst.msk [vmem:[%s1284_s3 + $0x3c] sm:$0xf] %vm619_vm1, %v820_v29  ;;  %v818_v2 = vpack.c.bf16 %v552_v28, %v552_v28  ;;  %v688_v26 = vmul.f32 %v551_v1, %v551_v1  ;;  %v689_v43 = vmul.f32 %v552_v28, %v552_v28 }
 0x12a   :  { %630 = vst.msk [vmem:[%s1284_s3 + $0x28] sm:$0xf] %vm619_vm1, %v815_v30  ;;  %v711_v34 = vsel %vm636_vm2, %v686_v32, 0.0  ;;  %v550_v35 = vmax.f32 %v520_v33, 0.0  ;;  %v662_v49 = vsel %vm636_vm2, %v552_v28, 0.0  ;;  %v721_v63 = vsel %vm636_vm2, %v691_v54, 0.0 }
 0x12b   :  { %v712_v36 = vadd.f32 %v711_v34, %v710_v53  ;;  %633 = vst.msk [vmem:[%s1284_s3 + $0x34] sm:$0xf] %vm619_vm1, %v818_v2  ;;  %v715_v47 = vsel %vm636_vm2, %v688_v26, 0.0  ;;  %v717_v55 = vsel %vm636_vm2, %v689_v43, 0.0 }
 0x12c   :  { %v816_v37 = vpack.c.bf16 %v550_v35, %v550_v35  ;;  %v658_v38 = vsel %vm636_vm2, %v550_v35, 0.0  ;;  %v687_v39 = vmul.f32 %v550_v35, %v550_v35 }
 0x12d   :  { %v659_v40 = vadd.f32 %v658_v38, %v657_v14 }
 0x12e   :  { %631 = vst.msk [vmem:[%s1284_s3 + $0x2c] sm:$0xf] %vm619_vm1, %v816_v37  ;;  %v713_v42 = vsel %vm636_vm2, %v687_v39, 0.0 }
 0x12f   :  { %v661_v44 = vadd.f32 %v660_v41, %v659_v40  ;;  %v714_v45 = vadd.f32 %v713_v42, %v712_v36 }
 0x131   :  { %v663_v50 = vadd.f32 %v662_v49, %v661_v44  ;;  %v716_v51 = vadd.f32 %v715_v47, %v714_v45 }
 0x133   :  { %v665_v56 = vadd.f32 %v664_v52, %v663_v50  ;;  %v718_v57 = vadd.f32 %v717_v55, %v716_v51 }
 0x135   :  { %v667_v61 = vadd.f32 %v666_v59, %v665_v56  ;;  %v720_v62 = vadd.f32 %v719_v58, %v718_v57 }
 0x137   :  { %v668_v0 = vrot.slane %v667_v61, 4  ;;  %v722_v60 = vadd.f32 %v721_v63, %v720_v62 }
 0x139   :  { %v669_v3 = vadd.f32 %v668_v0, %v667_v61  ;;  %v723_v5 = vrot.slane %v722_v60, 4 }
 0x13b   :  { %v670_v6 = vrot.slane %v669_v3, 2  ;;  %v724_v7 = vadd.f32 %v723_v5, %v722_v60 }
 0x13d   :  { %v671_v4 = vadd.f32 %v670_v6, %v669_v3  ;;  %v725_v8 = vrot.slane %v724_v7, 2 }
 0x13f   :  { %v672_v48 = vrot.slane %v671_v4, 1  ;;  %v726_v9 = vadd.f32 %v725_v8, %v724_v7 }
 0x141   :  { %v673_v10 = vadd.f32 %v672_v48, %v671_v4  ;;  %v727_v11 = vrot.slane %v726_v9, 1 }
 0x143   :  { %675 = vst.msk [vmem:[%s1285_s4] sm:$0x1] %vm674_vm3, %v673_v10  ;;  %v728_v12 = vadd.f32 %v727_v11, %v726_v9 }
 0x145   :  { %729 = vst.msk [vmem:[%s1285_s4 + $0x1] sm:$0x1] %vm674_vm3, %v728_v12 }

// kernel: unet_forward.39
= control target key start
LH: loop header
LB: loop body
LE: loop exit
PB: predicated region body
PF: predicated region fallthrough
CT: control target
= control target key end

     0   :  { %vm344_vm0 = vcmask 1043456   ;;  %vm247_vm1 = vcmask 64512   ;;  %vm637_vm2 = vcmask 23552   ;;  %s1382_s1 = inlined_call_operand.vmem [shape: bf16[8,3], index: 1, kind: input, shape index: {}]   ;;  %s1383_s0 = inlined_call_operand.vmem [shape: bf16[512,8], index: 0, kind: input, shape index: {}]   ;;  %s1384_s2 = inlined_call_operand.vmem [shape: f32[1,3], index: 2, kind: input, shape index: {}]   ;;  %s1385_s3 = inlined_call_operand.vmem [shape: f32[512,3], index: 3, kind: output, shape index: {}]  }
   0x1   :  { %v79_v0 = vld [vmem:[%s1382_s1] sm:$0xf]  ;;  %v876_v4 = vld [vmem:[%s1383_s0 + $0x8] sm:$0xff]   ;;  %v878_v6 = vld [vmem:[%s1383_s0 + $0x10] sm:$0xff]  }
   0x2   :  { %872 = vmatprep.subr.msk.bf16.mxu0 %vm344_vm0, %v79_v0  ;;  %873 = vmatprep.subr.msk.bf16.mxu1 %vm344_vm0, %v79_v0  ;;  %v346_v1 = vsel %vm344_vm0, %v79_v0, 0  ;;  %v874_v2 = vld [vmem:[%s1383_s0] sm:$0xff]   ;;  %v877_v5 = vld [vmem:[%s1383_s0 + $0x88] sm:$0xff]   ;;  %v879_v7 = vld [vmem:[%s1383_s0 + $0x90] sm:$0xff]  }
   0x3   :  { %805 = vmatpush3.bf16.msra.mxu0 %v346_v1  ;;  %871 = vmatpush3.bf16.msra.mxu1 %v346_v1  ;;  %v875_v3 = vld [vmem:[%s1383_s0 + $0x80] sm:$0xff]   ;;  %v880_v8 = vld [vmem:[%s1383_s0 + $0x18] sm:$0xff]   ;;  %v884_v12 = vld [vmem:[%s1383_s0 + $0x28] sm:$0xff]  }
   0x4   :  { %806 = vmatprep.mubr.msk.bf16.mxu0 %vm247_vm1, %v874_v2  ;;  %838 = vmatprep.mubr.msk.bf16.mxu1 %vm247_vm1, %v875_v3  ;;  %v881_v9 = vld [vmem:[%s1383_s0 + $0x98] sm:$0xff]   ;;  %v882_v10 = vld [vmem:[%s1383_s0 + $0x20] sm:$0xff]   ;;  %v885_v13 = vld [vmem:[%s1383_s0 + $0xa8] sm:$0xff]  }
   0x5   :  { %v883_v11 = vld [vmem:[%s1383_s0 + $0xa0] sm:$0xff]   ;;  %v886_v14 = vld [vmem:[%s1383_s0 + $0x30] sm:$0xff]   ;;  %v888_v16 = vld [vmem:[%s1383_s0 + $0x38] sm:$0xff]  }
   0x6   :  { %807 = vmatmul.mubr.msk.bf16.vlgmr.msra.gmra.mrb[0].mxu0 %vm247_vm1, %v876_v4  ;;  %839 = vmatmul.mubr.msk.bf16.vlgmr.msra.gmra.mrb[0].mxu1 %vm247_vm1, %v877_v5  ;;  %v887_v15 = vld [vmem:[%s1383_s0 + $0xb0] sm:$0xff]   ;;  %v889_v17 = vld [vmem:[%s1383_s0 + $0xb8] sm:$0xff]   ;;  %v890_v18 = vld [vmem:[%s1383_s0 + $0x40] sm:$0xff]  }
   0x7   :  { %810 = vmatprep.mubr.msk.bf16.mxu0 %vm247_vm1, %v878_v6  ;;  %842 = vmatprep.mubr.msk.bf16.mxu1 %vm247_vm1, %v879_v7  ;;  %v891_v19 = vld [vmem:[%s1383_s0 + $0xc0] sm:$0xff]   ;;  %v892_v20 = vld [vmem:[%s1383_s0 + $0x48] sm:$0xff]   ;;  %v894_v22 = vld [vmem:[%s1383_s0 + $0x50] sm:$0xff]  }
   0x8   :  { %v893_v21 = vld [vmem:[%s1383_s0 + $0xc8] sm:$0xff]   ;;  %v895_v23 = vld [vmem:[%s1383_s0 + $0xd0] sm:$0xff]   ;;  %v896_v24 = vld [vmem:[%s1383_s0 + $0x58] sm:$0xff]  }
   0x9   :  { %v897_v25 = vld [vmem:[%s1383_s0 + $0xd8] sm:$0xff]   ;;  %v898_v26 = vld [vmem:[%s1383_s0 + $0x60] sm:$0xff]   ;;  %v900_v28 = vld [vmem:[%s1383_s0 + $0x68] sm:$0xff]  }
   0xa   :  { %v899_v27 = vld [vmem:[%s1383_s0 + $0xe0] sm:$0xff]   ;;  %v901_v29 = vld [vmem:[%s1383_s0 + $0xe8] sm:$0xff]   ;;  %v902_v30 = vld [vmem:[%s1383_s0 + $0x70] sm:$0xff]  }
   0xb   :  { %v903_v31 = vld [vmem:[%s1383_s0 + $0xf0] sm:$0xff]   ;;  %v904_v32 = vld [vmem:[%s1383_s0 + $0x78] sm:$0xff]   ;;  %v1060_v34 = vld [vmem:[%s1384_s2] ss:$0 sm:$0xff] }
   0xc   :  { %v905_v33 = vld [vmem:[%s1383_s0 + $0xf8] sm:$0xff]  }
   0xe   :  { %811 = vmatmul.mubr.msk.bf16.gmra.mrb[4].mxu0 %vm247_vm1, %v880_v8  ;;  %843 = vmatmul.mubr.msk.bf16.gmra.mrb[4].mxu1 %vm247_vm1, %v881_v9 }
   0xf   :  { %814 = vmatprep.mubr.msk.bf16.mxu0 %vm247_vm1, %v882_v10  ;;  %846 = vmatprep.mubr.msk.bf16.mxu1 %vm247_vm1, %v883_v11 }
  0x16   :  { %815 = vmatmul.mubr.msk.bf16.gmra.mrb[8].mxu0 %vm247_vm1, %v884_v12  ;;  %847 = vmatmul.mubr.msk.bf16.gmra.mrb[8].mxu1 %vm247_vm1, %v885_v13 }
  0x17   :  { %818 = vmatprep.mubr.msk.bf16.mxu0 %vm247_vm1, %v886_v14  ;;  %850 = vmatprep.mubr.msk.bf16.mxu1 %vm247_vm1, %v887_v15 }
  0x1e   :  { %819 = vmatmul.mubr.msk.bf16.gmra.mrb[12].mxu0 %vm247_vm1, %v888_v16  ;;  %851 = vmatmul.mubr.msk.bf16.gmra.mrb[12].mxu1 %vm247_vm1, %v889_v17 }
  0x1f   :  { %822 = vmatprep.mubr.msk.bf16.mxu0 %vm247_vm1, %v890_v18  ;;  %854 = vmatprep.mubr.msk.bf16.mxu1 %vm247_vm1, %v891_v19 }
  0x26   :  { %823 = vmatmul.mubr.msk.bf16.gmra.mrb[16].mxu0 %vm247_vm1, %v892_v20  ;;  %855 = vmatmul.mubr.msk.bf16.gmra.mrb[16].mxu1 %vm247_vm1, %v893_v21 }
  0x27   :  { %826 = vmatprep.mubr.msk.bf16.mxu0 %vm247_vm1, %v894_v22  ;;  %858 = vmatprep.mubr.msk.bf16.mxu1 %vm247_vm1, %v895_v23 }
  0x2e   :  { %827 = vmatmul.mubr.msk.bf16.gmra.mrb[20].mxu0 %vm247_vm1, %v896_v24  ;;  %859 = vmatmul.mubr.msk.bf16.gmra.mrb[20].mxu1 %vm247_vm1, %v897_v25 }
  0x2f   :  { %830 = vmatprep.mubr.msk.bf16.mxu0 %vm247_vm1, %v898_v26  ;;  %862 = vmatprep.mubr.msk.bf16.mxu1 %vm247_vm1, %v899_v27 }
  0x36   :  { %831 = vmatmul.mubr.msk.bf16.gmra.mrb[24].mxu0 %vm247_vm1, %v900_v28  ;;  %863 = vmatmul.mubr.msk.bf16.gmra.mrb[24].mxu1 %vm247_vm1, %v901_v29 }
  0x37   :  { %834 = vmatprep.mubr.msk.bf16.mxu0 %vm247_vm1, %v902_v30  ;;  %866 = vmatprep.mubr.msk.bf16.mxu1 %vm247_vm1, %v903_v31 }
  0x3e   :  { %835 = vmatmul.mubr.msk.bf16.gmra.mrb[28].mxu0 %vm247_vm1, %v904_v32  ;;  %867 = vmatmul.mubr.msk.bf16.gmra.mrb[28].mxu1 %vm247_vm1, %v905_v33 }
  0xd9   :  { %v808_v35 = vpop.f32.mrb[0].mxu0  ;;  %v840_v37 = vpop.f32.mrb[0].mxu1 }
  0xda   :  { %v391_v36 = vadd.f32 %v808_v35, %v1060_v34  ;;  %v382_v38 = vpop.f32.mrb[1].mxu0  ;;  %v519_v39 = vadd.f32 %v840_v37, %v1060_v34  ;;  %v510_v41 = vpop.f32.mrb[1].mxu1 }
  0xdb   :  { %v383_v40 = vadd.f32 %v1060_v34, %v382_v38  ;;  %v809_v42 = vpop.f32.mrb[2].mxu0  ;;  %v511_v43 = vadd.f32 %v1060_v34, %v510_v41  ;;  %v841_v45 = vpop.f32.mrb[2].mxu1 }
  0xdc   :  { %640 = vst.msk [vmem:[%s1385_s3 + $0x10] sm:$0xff] %vm637_vm2, %v391_v36  ;;  %v394_v44 = vadd.f32 %v809_v42, %v1060_v34  ;;  %v385_v46 = vpop.f32.mrb[3].mxu0  ;;  %672 = vst.msk [vmem:[%s1385_s3 + $0x110] sm:$0xff] %vm637_vm2, %v519_v39  ;;  %v522_v47 = vadd.f32 %v841_v45, %v1060_v34  ;;  %v513_v49 = vpop.f32.mrb[3].mxu1 }
  0xdd   :  { %638 = vst.msk [vmem:[%s1385_s3] sm:$0xff] %vm637_vm2, %v383_v40  ;;  %v386_v48 = vadd.f32 %v1060_v34, %v385_v46  ;;  %670 = vst.msk [vmem:[%s1385_s3 + $0x100] sm:$0xff] %vm637_vm2, %v511_v43  ;;  %v514_v50 = vadd.f32 %v1060_v34, %v513_v49 }
  0xde   :  { %641 = vst.msk [vmem:[%s1385_s3 + $0x18] sm:$0xff] %vm637_vm2, %v394_v44  ;;  %673 = vst.msk [vmem:[%s1385_s3 + $0x118] sm:$0xff] %vm637_vm2, %v522_v47 }
  0xdf   :  { %639 = vst.msk [vmem:[%s1385_s3 + $0x8] sm:$0xff] %vm637_vm2, %v386_v48  ;;  %671 = vst.msk [vmem:[%s1385_s3 + $0x108] sm:$0xff] %vm637_vm2, %v514_v50 }
  0xe1   :  { %v812_v51 = vpop.f32.mrb[4].mxu0  ;;  %v844_v53 = vpop.f32.mrb[4].mxu1 }
  0xe2   :  { %v407_v52 = vadd.f32 %v812_v51, %v1060_v34  ;;  %v398_v54 = vpop.f32.mrb[5].mxu0  ;;  %v535_v55 = vadd.f32 %v844_v53, %v1060_v34  ;;  %v526_v57 = vpop.f32.mrb[5].mxu1 }
  0xe3   :  { %v399_v56 = vadd.f32 %v1060_v34, %v398_v54  ;;  %v813_v58 = vpop.f32.mrb[6].mxu0  ;;  %v527_v59 = vadd.f32 %v1060_v34, %v526_v57  ;;  %v845_v61 = vpop.f32.mrb[6].mxu1 }
  0xe4   :  { %644 = vst.msk [vmem:[%s1385_s3 + $0x30] sm:$0xff] %vm637_vm2, %v407_v52  ;;  %v410_v60 = vadd.f32 %v813_v58, %v1060_v34  ;;  %v401_v62 = vpop.f32.mrb[7].mxu0  ;;  %676 = vst.msk [vmem:[%s1385_s3 + $0x130] sm:$0xff] %vm637_vm2, %v535_v55  ;;  %v538_v63 = vadd.f32 %v845_v61, %v1060_v34  ;;  %v529_v1 = vpop.f32.mrb[7].mxu1 }
  0xe5   :  { %642 = vst.msk [vmem:[%s1385_s3 + $0x20] sm:$0xff] %vm637_vm2, %v399_v56  ;;  %v402_v0 = vadd.f32 %v1060_v34, %v401_v62  ;;  %674 = vst.msk [vmem:[%s1385_s3 + $0x120] sm:$0xff] %vm637_vm2, %v527_v59  ;;  %v530_v2 = vadd.f32 %v1060_v34, %v529_v1 }
  0xe6   :  { %645 = vst.msk [vmem:[%s1385_s3 + $0x38] sm:$0xff] %vm637_vm2, %v410_v60  ;;  %677 = vst.msk [vmem:[%s1385_s3 + $0x138] sm:$0xff] %vm637_vm2, %v538_v63 }
  0xe7   :  { %643 = vst.msk [vmem:[%s1385_s3 + $0x28] sm:$0xff] %vm637_vm2, %v402_v0  ;;  %675 = vst.msk [vmem:[%s1385_s3 + $0x128] sm:$0xff] %vm637_vm2, %v530_v2 }
  0xe9   :  { %v816_v3 = vpop.f32.mrb[8].mxu0  ;;  %v848_v5 = vpop.f32.mrb[8].mxu1 }
  0xea   :  { %v423_v4 = vadd.f32 %v816_v3, %v1060_v34  ;;  %v414_v6 = vpop.f32.mrb[9].mxu0  ;;  %v551_v7 = vadd.f32 %v848_v5, %v1060_v34  ;;  %v542_v9 = vpop.f32.mrb[9].mxu1 }
  0xeb   :  { %v415_v8 = vadd.f32 %v1060_v34, %v414_v6  ;;  %v817_v10 = vpop.f32.mrb[10].mxu0  ;;  %v543_v11 = vadd.f32 %v1060_v34, %v542_v9  ;;  %v849_v13 = vpop.f32.mrb[10].mxu1 }
  0xec   :  { %648 = vst.msk [vmem:[%s1385_s3 + $0x50] sm:$0xff] %vm637_vm2, %v423_v4  ;;  %v426_v12 = vadd.f32 %v817_v10, %v1060_v34  ;;  %v417_v14 = vpop.f32.mrb[11].mxu0  ;;  %680 = vst.msk [vmem:[%s1385_s3 + $0x150] sm:$0xff] %vm637_vm2, %v551_v7  ;;  %v554_v15 = vadd.f32 %v849_v13, %v1060_v34  ;;  %v545_v17 = vpop.f32.mrb[11].mxu1 }
  0xed   :  { %646 = vst.msk [vmem:[%s1385_s3 + $0x40] sm:$0xff] %vm637_vm2, %v415_v8  ;;  %v418_v16 = vadd.f32 %v1060_v34, %v417_v14  ;;  %678 = vst.msk [vmem:[%s1385_s3 + $0x140] sm:$0xff] %vm637_vm2, %v543_v11  ;;  %v546_v18 = vadd.f32 %v1060_v34, %v545_v17 }
  0xee   :  { %649 = vst.msk [vmem:[%s1385_s3 + $0x58] sm:$0xff] %vm637_vm2, %v426_v12  ;;  %681 = vst.msk [vmem:[%s1385_s3 + $0x158] sm:$0xff] %vm637_vm2, %v554_v15 }
  0xef   :  { %647 = vst.msk [vmem:[%s1385_s3 + $0x48] sm:$0xff] %vm637_vm2, %v418_v16  ;;  %679 = vst.msk [vmem:[%s1385_s3 + $0x148] sm:$0xff] %vm637_vm2, %v546_v18 }
  0xf1   :  { %v820_v19 = vpop.f32.mrb[12].mxu0  ;;  %v852_v21 = vpop.f32.mrb[12].mxu1 }
  0xf2   :  { %v439_v20 = vadd.f32 %v820_v19, %v1060_v34  ;;  %v430_v22 = vpop.f32.mrb[13].mxu0  ;;  %v567_v23 = vadd.f32 %v852_v21, %v1060_v34  ;;  %v558_v25 = vpop.f32.mrb[13].mxu1 }
  0xf3   :  { %v431_v24 = vadd.f32 %v1060_v34, %v430_v22  ;;  %v821_v26 = vpop.f32.mrb[14].mxu0  ;;  %v559_v27 = vadd.f32 %v1060_v34, %v558_v25  ;;  %v853_v29 = vpop.f32.mrb[14].mxu1 }
  0xf4   :  { %652 = vst.msk [vmem:[%s1385_s3 + $0x70] sm:$0xff] %vm637_vm2, %v439_v20  ;;  %v442_v28 = vadd.f32 %v821_v26, %v1060_v34  ;;  %v433_v30 = vpop.f32.mrb[15].mxu0  ;;  %684 = vst.msk [vmem:[%s1385_s3 + $0x170] sm:$0xff] %vm637_vm2, %v567_v23  ;;  %v570_v31 = vadd.f32 %v853_v29, %v1060_v34  ;;  %v561_v33 = vpop.f32.mrb[15].mxu1 }
  0xf5   :  { %650 = vst.msk [vmem:[%s1385_s3 + $0x60] sm:$0xff] %vm637_vm2, %v431_v24  ;;  %v434_v32 = vadd.f32 %v1060_v34, %v433_v30  ;;  %682 = vst.msk [vmem:[%s1385_s3 + $0x160] sm:$0xff] %vm637_vm2, %v559_v27  ;;  %v562_v35 = vadd.f32 %v1060_v34, %v561_v33 }
  0xf6   :  { %653 = vst.msk [vmem:[%s1385_s3 + $0x78] sm:$0xff] %vm637_vm2, %v442_v28  ;;  %685 = vst.msk [vmem:[%s1385_s3 + $0x178] sm:$0xff] %vm637_vm2, %v570_v31 }
  0xf7   :  { %651 = vst.msk [vmem:[%s1385_s3 + $0x68] sm:$0xff] %vm637_vm2, %v434_v32  ;;  %683 = vst.msk [vmem:[%s1385_s3 + $0x168] sm:$0xff] %vm637_vm2, %v562_v35 }
  0xf9   :  { %v824_v36 = vpop.f32.mrb[16].mxu0  ;;  %v856_v38 = vpop.f32.mrb[16].mxu1 }
  0xfa   :  { %v455_v37 = vadd.f32 %v824_v36, %v1060_v34  ;;  %v446_v39 = vpop.f32.mrb[17].mxu0  ;;  %v583_v40 = vadd.f32 %v856_v38, %v1060_v34  ;;  %v574_v42 = vpop.f32.mrb[17].mxu1 }
  0xfb   :  { %v447_v41 = vadd.f32 %v1060_v34, %v446_v39  ;;  %v825_v43 = vpop.f32.mrb[18].mxu0  ;;  %v575_v44 = vadd.f32 %v1060_v34, %v574_v42  ;;  %v857_v46 = vpop.f32.mrb[18].mxu1 }
  0xfc   :  { %656 = vst.msk [vmem:[%s1385_s3 + $0x90] sm:$0xff] %vm637_vm2, %v455_v37  ;;  %v458_v45 = vadd.f32 %v825_v43, %v1060_v34  ;;  %v449_v47 = vpop.f32.mrb[19].mxu0  ;;  %688 = vst.msk [vmem:[%s1385_s3 + $0x190] sm:$0xff] %vm637_vm2, %v583_v40  ;;  %v586_v48 = vadd.f32 %v857_v46, %v1060_v34  ;;  %v577_v50 = vpop.f32.mrb[19].mxu1 }
  0xfd   :  { %654 = vst.msk [vmem:[%s1385_s3 + $0x80] sm:$0xff] %vm637_vm2, %v447_v41  ;;  %v450_v49 = vadd.f32 %v1060_v34, %v449_v47  ;;  %686 = vst.msk [vmem:[%s1385_s3 + $0x180] sm:$0xff] %vm637_vm2, %v575_v44  ;;  %v578_v51 = vadd.f32 %v1060_v34, %v577_v50 }
  0xfe   :  { %657 = vst.msk [vmem:[%s1385_s3 + $0x98] sm:$0xff] %vm637_vm2, %v458_v45  ;;  %689 = vst.msk [vmem:[%s1385_s3 + $0x198] sm:$0xff] %vm637_vm2, %v586_v48 }
  0xff   :  { %655 = vst.msk [vmem:[%s1385_s3 + $0x88] sm:$0xff] %vm637_vm2, %v450_v49  ;;  %687 = vst.msk [vmem:[%s1385_s3 + $0x188] sm:$0xff] %vm637_vm2, %v578_v51 }
 0x101   :  { %v828_v52 = vpop.f32.mrb[20].mxu0  ;;  %v860_v54 = vpop.f32.mrb[20].mxu1 }
 0x102   :  { %v471_v53 = vadd.f32 %v828_v52, %v1060_v34  ;;  %v462_v55 = vpop.f32.mrb[21].mxu0  ;;  %v599_v56 = vadd.f32 %v860_v54, %v1060_v34  ;;  %v590_v58 = vpop.f32.mrb[21].mxu1 }
 0x103   :  { %v463_v57 = vadd.f32 %v1060_v34, %v462_v55  ;;  %v829_v59 = vpop.f32.mrb[22].mxu0  ;;  %v591_v60 = vadd.f32 %v1060_v34, %v590_v58  ;;  %v861_v62 = vpop.f32.mrb[22].mxu1 }
 0x104   :  { %660 = vst.msk [vmem:[%s1385_s3 + $0xb0] sm:$0xff] %vm637_vm2, %v471_v53  ;;  %v474_v61 = vadd.f32 %v829_v59, %v1060_v34  ;;  %v465_v63 = vpop.f32.mrb[23].mxu0  ;;  %692 = vst.msk [vmem:[%s1385_s3 + $0x1b0] sm:$0xff] %vm637_vm2, %v599_v56  ;;  %v602_v0 = vadd.f32 %v861_v62, %v1060_v34  ;;  %v593_v2 = vpop.f32.mrb[23].mxu1 }
 0x105   :  { %658 = vst.msk [vmem:[%s1385_s3 + $0xa0] sm:$0xff] %vm637_vm2, %v463_v57  ;;  %v466_v1 = vadd.f32 %v1060_v34, %v465_v63  ;;  %690 = vst.msk [vmem:[%s1385_s3 + $0x1a0] sm:$0xff] %vm637_vm2, %v591_v60  ;;  %v594_v3 = vadd.f32 %v1060_v34, %v593_v2 }
 0x106   :  { %661 = vst.msk [vmem:[%s1385_s3 + $0xb8] sm:$0xff] %vm637_vm2, %v474_v61  ;;  %693 = vst.msk [vmem:[%s1385_s3 + $0x1b8] sm:$0xff] %vm637_vm2, %v602_v0 }
 0x107   :  { %659 = vst.msk [vmem:[%s1385_s3 + $0xa8] sm:$0xff] %vm637_vm2, %v466_v1  ;;  %691 = vst.msk [vmem:[%s1385_s3 + $0x1a8] sm:$0xff] %vm637_vm2, %v594_v3 }
 0x109   :  { %v832_v4 = vpop.f32.mrb[24].mxu0  ;;  %v864_v6 = vpop.f32.mrb[24].mxu1 }
 0x10a   :  { %v487_v5 = vadd.f32 %v832_v4, %v1060_v34  ;;  %v478_v7 = vpop.f32.mrb[25].mxu0  ;;  %v615_v8 = vadd.f32 %v864_v6, %v1060_v34  ;;  %v606_v10 = vpop.f32.mrb[25].mxu1 }
 0x10b   :  { %v479_v9 = vadd.f32 %v1060_v34, %v478_v7  ;;  %v833_v11 = vpop.f32.mrb[26].mxu0  ;;  %v607_v12 = vadd.f32 %v1060_v34, %v606_v10  ;;  %v865_v14 = vpop.f32.mrb[26].mxu1 }
 0x10c   :  { %664 = vst.msk [vmem:[%s1385_s3 + $0xd0] sm:$0xff] %vm637_vm2, %v487_v5  ;;  %v490_v13 = vadd.f32 %v833_v11, %v1060_v34  ;;  %v481_v15 = vpop.f32.mrb[27].mxu0  ;;  %696 = vst.msk [vmem:[%s1385_s3 + $0x1d0] sm:$0xff] %vm637_vm2, %v615_v8  ;;  %v618_v16 = vadd.f32 %v865_v14, %v1060_v34  ;;  %v609_v18 = vpop.f32.mrb[27].mxu1 }
 0x10d   :  { %662 = vst.msk [vmem:[%s1385_s3 + $0xc0] sm:$0xff] %vm637_vm2, %v479_v9  ;;  %v482_v17 = vadd.f32 %v1060_v34, %v481_v15  ;;  %694 = vst.msk [vmem:[%s1385_s3 + $0x1c0] sm:$0xff] %vm637_vm2, %v607_v12  ;;  %v610_v19 = vadd.f32 %v1060_v34, %v609_v18 }
 0x10e   :  { %665 = vst.msk [vmem:[%s1385_s3 + $0xd8] sm:$0xff] %vm637_vm2, %v490_v13  ;;  %697 = vst.msk [vmem:[%s1385_s3 + $0x1d8] sm:$0xff] %vm637_vm2, %v618_v16 }
 0x10f   :  { %663 = vst.msk [vmem:[%s1385_s3 + $0xc8] sm:$0xff] %vm637_vm2, %v482_v17  ;;  %695 = vst.msk [vmem:[%s1385_s3 + $0x1c8] sm:$0xff] %vm637_vm2, %v610_v19 }
 0x111   :  { %v836_v20 = vpop.f32.mrb[28].mxu0  ;;  %v868_v22 = vpop.f32.mrb[28].mxu1 }
 0x112   :  { %v503_v21 = vadd.f32 %v836_v20, %v1060_v34  ;;  %v494_v23 = vpop.f32.mrb[29].mxu0  ;;  %v631_v24 = vadd.f32 %v868_v22, %v1060_v34  ;;  %v622_v26 = vpop.f32.mrb[29].mxu1 }
 0x113   :  { %v495_v25 = vadd.f32 %v1060_v34, %v494_v23  ;;  %v837_v27 = vpop.f32.mrb[30].mxu0  ;;  %v623_v28 = vadd.f32 %v1060_v34, %v622_v26  ;;  %v869_v30 = vpop.f32.mrb[30].mxu1 }
 0x114   :  { %668 = vst.msk [vmem:[%s1385_s3 + $0xf0] sm:$0xff] %vm637_vm2, %v503_v21  ;;  %v506_v29 = vadd.f32 %v837_v27, %v1060_v34  ;;  %v497_v31 = vpop.f32.mrb[31].mxu0  ;;  %700 = vst.msk [vmem:[%s1385_s3 + $0x1f0] sm:$0xff] %vm637_vm2, %v631_v24  ;;  %v634_v32 = vadd.f32 %v869_v30, %v1060_v34  ;;  %v625_v35 = vpop.f32.mrb[31].mxu1 }
 0x115   :  { %666 = vst.msk [vmem:[%s1385_s3 + $0xe0] sm:$0xff] %vm637_vm2, %v495_v25  ;;  %v498_v33 = vadd.f32 %v1060_v34, %v497_v31  ;;  %698 = vst.msk [vmem:[%s1385_s3 + $0x1e0] sm:$0xff] %vm637_vm2, %v623_v28  ;;  %v626_v36 = vadd.f32 %v1060_v34, %v625_v35 }
 0x116   :  { %669 = vst.msk [vmem:[%s1385_s3 + $0xf8] sm:$0xff] %vm637_vm2, %v506_v29  ;;  %701 = vst.msk [vmem:[%s1385_s3 + $0x1f8] sm:$0xff] %vm637_vm2, %v634_v32 }
 0x117   :  { %667 = vst.msk [vmem:[%s1385_s3 + $0xe8] sm:$0xff] %vm637_vm2, %v498_v33  ;;  %699 = vst.msk [vmem:[%s1385_s3 + $0x1e8] sm:$0xff] %vm637_vm2, %v626_v36 }

// kernel: unet_forward.36
= control target key start
LH: loop header
LB: loop body
LE: loop exit
PB: predicated region body
PF: predicated region fallthrough
CT: control target
= control target key end

     0   :  { %v1920_v0 = vmov 0   ;;  %vm448_vm0 = vcmask 130048   ;;  %vm1154_vm1 = vcmask 60416   ;;  %vm1219_vm2 = vcmask 64512   ;;  %s2880_s1 = inlined_call_operand.vmem [shape: bf16[144,8], index: 1, kind: input, shape index: {}]   ;;  %s2881_s0 = inlined_call_operand.vmem [shape: bf16[512,144], index: 0, kind: input, shape index: {}]   ;;  %s2882_s2 = inlined_call_operand.vmem [shape: f32[1,8], index: 2, kind: input, shape index: {}]   ;;  %s2883_s3 = inlined_call_operand.vmem [shape: bf16[512,8], index: 3, kind: output, shape index: {0}]   ;;  %s2884_s4 = inlined_call_operand.vmem [shape: f32[1,2,8], index: 4, kind: output, shape index: {1}]  }
   0x1   :  { %545 = vmatprep.subr.bf16.mxu0 %v1920_v0  ;;  %v1814_v1 = vld [vmem:[%s2880_s1] sm:$0xff]   ;;  %1795 = vmatprep.subr.bf16.mxu1 %v1920_v0  ;;  %v1815_v2 = vld [vmem:[%s2880_s1 + $0x8] sm:$0xff]   ;;  %v1816_v3 = vld [vmem:[%s2880_s1 + $0x10] sm:$0xff]   ;;  %vm1353_vm3 = vcmask 57344  }
   0x2   :  { %546 = vmatpush1.bf16.msra.mxu0 %v1814_v1  ;;  %1804 = vmatpush1.bf16.msra.mxu1 %v1814_v1  ;;  %v1817_v4 = vld [vmem:[%s2880_s1 + $0x18] sm:$0xff]   ;;  %v1825_v5 = vld [vmem:[%s2881_s0 + $0x4] ss:$8 sps:$4 sm:$0xff]   ;;  %v1820_v9 = vld [vmem:[%s2880_s1 + $0x30] sm:$0xff]  }
   0x3   :  { %547 = vmatprep.subr.bf16.mxu0 %v1920_v0  ;;  %1796 = vmatprep.subr.bf16.mxu1 %v1920_v0  ;;  %v1818_v6 = vld [vmem:[%s2880_s1 + $0x20] sm:$0xff]   ;;  %v1819_v7 = vld [vmem:[%s2880_s1 + $0x28] sm:$0xff]   ;;  %v1821_v10 = vld [vmem:[%s2880_s1 + $0x38] sm:$0xff]  }
   0x4   :  { %1635 = vmatprep.mubr.msk.bf16.mxu0 %vm448_vm0, %v1825_v5  ;;  %v1849_v8 = vld [vmem:[%s2881_s0 + $0x104] ss:$8 sps:$4 sm:$0xff]   ;;  %v1823_v12 = vld [vmem:[%s2881_s0] ss:$8 sps:$4 sm:$0xff]   ;;  %v1826_v13 = vld [vmem:[%s2881_s0 + $0x14] ss:$8 sps:$4 sm:$0xff]  }
   0x5   :  { %1651 = vmatprep.mubr.msk.bf16.mxu1 %vm448_vm0, %v1849_v8  ;;  %v1822_v11 = vld [vmem:[%s2880_s1 + $0x40] sm:$0xff]   ;;  %v1853_v15 = vld [vmem:[%s2881_s0 + $0x114] ss:$8 sps:$4 sm:$0xff]   ;;  %v1828_v16 = vld [vmem:[%s2881_s0 + $0x10] ss:$8 sps:$4 sm:$0xff]  }
   0x6   :  { %548 = vmatpush1.bf16.msra.mxu0 %v1815_v2  ;;  %1805 = vmatpush1.bf16.msra.mxu1 %v1815_v2  ;;  %v1847_v14 = vld [vmem:[%s2881_s0 + $0x100] ss:$8 sps:$4 sm:$0xff]   ;;  %v1829_v17 = vld [vmem:[%s2881_s0 + $0x24] ss:$8 sps:$4 sm:$0xff]   ;;  %v1855_v18 = vld [vmem:[%s2881_s0 + $0x110] ss:$8 sps:$4 sm:$0xff]  }
   0x7   :  { %549 = vmatprep.subr.bf16.mxu0 %v1920_v0  ;;  %1797 = vmatprep.subr.bf16.mxu1 %v1920_v0  ;;  %v1859_v19 = vld [vmem:[%s2881_s0 + $0x124] ss:$8 sps:$4 sm:$0xff]   ;;  %v1831_v20 = vld [vmem:[%s2881_s0 + $0x20] ss:$8 sps:$4 sm:$0xff]   ;;  %v1832_v21 = vld [vmem:[%s2881_s0 + $0x34] ss:$8 sps:$4 sm:$0xff]  }
   0x8   :  { %v1861_v22 = vld [vmem:[%s2881_s0 + $0x120] ss:$8 sps:$4 sm:$0xff]   ;;  %v1865_v23 = vld [vmem:[%s2881_s0 + $0x134] ss:$8 sps:$4 sm:$0xff]   ;;  %v1834_v24 = vld [vmem:[%s2881_s0 + $0x30] ss:$8 sps:$4 sm:$0xff]  }
   0x9   :  { %v1867_v25 = vld [vmem:[%s2881_s0 + $0x130] ss:$8 sps:$4 sm:$0xff]   ;;  %v1835_v26 = vld [vmem:[%s2881_s0 + $0x44] ss:$8 sps:$4 sm:$0xff]   ;;  %v1837_v28 = vld [vmem:[%s2881_s0 + $0x40] ss:$8 sps:$4 sm:$0xff]  }
   0xa   :  { %550 = vmatpush1.bf16.msra.mxu0 %v1816_v3  ;;  %1806 = vmatpush1.bf16.msra.mxu1 %v1816_v3  ;;  %v1871_v27 = vld [vmem:[%s2881_s0 + $0x144] ss:$8 sps:$4 sm:$0xff]   ;;  %v1873_v29 = vld [vmem:[%s2881_s0 + $0x140] ss:$8 sps:$4 sm:$0xff]   ;;  %v1838_v30 = vld [vmem:[%s2881_s0 + $0x54] ss:$8 sps:$4 sm:$0xff]  }
   0xb   :  { %551 = vmatprep.subr.bf16.mxu0 %v1920_v0  ;;  %1798 = vmatprep.subr.bf16.mxu1 %v1920_v0  ;;  %v1877_v31 = vld [vmem:[%s2881_s0 + $0x154] ss:$8 sps:$4 sm:$0xff]   ;;  %v1840_v32 = vld [vmem:[%s2881_s0 + $0x50] ss:$8 sps:$4 sm:$0xff]   ;;  %v1841_v34 = vld [vmem:[%s2881_s0 + $0x64] ss:$8 sps:$4 sm:$0xff]  }
   0xc   :  { %v1879_v33 = vld [vmem:[%s2881_s0 + $0x150] ss:$8 sps:$4 sm:$0xff]   ;;  %v1883_v35 = vld [vmem:[%s2881_s0 + $0x164] ss:$8 sps:$4 sm:$0xff]   ;;  %v1843_v36 = vld [vmem:[%s2881_s0 + $0x60] ss:$8 sps:$4 sm:$0xff]  }
   0xd   :  { %v1885_v37 = vld [vmem:[%s2881_s0 + $0x160] ss:$8 sps:$4 sm:$0xff]   ;;  %v1844_v38 = vld [vmem:[%s2881_s0 + $0x74] ss:$8 sps:$4 sm:$0xff]   ;;  %v1846_v40 = vld [vmem:[%s2881_s0 + $0x70] ss:$8 sps:$4 sm:$0xff]  }
   0xe   :  { %552 = vmatpush1.bf16.msra.mxu0 %v1817_v4  ;;  %1807 = vmatpush1.bf16.msra.mxu1 %v1817_v4  ;;  %v1889_v39 = vld [vmem:[%s2881_s0 + $0x174] ss:$8 sps:$4 sm:$0xff]   ;;  %v1891_v41 = vld [vmem:[%s2881_s0 + $0x170] ss:$8 sps:$4 sm:$0xff]   ;;  %v1850_v42 = vld [vmem:[%s2881_s0 + $0x84] ss:$8 sps:$4 sm:$0xff]  }
   0xf   :  { %553 = vmatprep.subr.bf16.mxu0 %v1920_v0  ;;  %1799 = vmatprep.subr.bf16.mxu1 %v1920_v0  ;;  %v1895_v43 = vld [vmem:[%s2881_s0 + $0x184] ss:$8 sps:$4 sm:$0xff]   ;;  %v1852_v44 = vld [vmem:[%s2881_s0 + $0x80] ss:$8 sps:$4 sm:$0xff]   ;;  %v1856_v46 = vld [vmem:[%s2881_s0 + $0x94] ss:$8 sps:$4 sm:$0xff]  }
  0x10   :  { %v1897_v45 = vld [vmem:[%s2881_s0 + $0x180] ss:$8 sps:$4 sm:$0xff]   ;;  %v1898_v47 = vld [vmem:[%s2881_s0 + $0x194] ss:$8 sps:$4 sm:$0xff]   ;;  %v1858_v48 = vld [vmem:[%s2881_s0 + $0x90] ss:$8 sps:$4 sm:$0xff]  }
  0x11   :  { %v1900_v49 = vld [vmem:[%s2881_s0 + $0x190] ss:$8 sps:$4 sm:$0xff]   ;;  %v1862_v50 = vld [vmem:[%s2881_s0 + $0xa4] ss:$8 sps:$4 sm:$0xff]   ;;  %v1864_v52 = vld [vmem:[%s2881_s0 + $0xa0] ss:$8 sps:$4 sm:$0xff]  }
  0x12   :  { %554 = vmatpush1.bf16.msra.mxu0 %v1818_v6  ;;  %1808 = vmatpush1.bf16.msra.mxu1 %v1818_v6  ;;  %v1901_v51 = vld [vmem:[%s2881_s0 + $0x1a4] ss:$8 sps:$4 sm:$0xff]   ;;  %v1903_v53 = vld [vmem:[%s2881_s0 + $0x1a0] ss:$8 sps:$4 sm:$0xff]   ;;  %v1868_v54 = vld [vmem:[%s2881_s0 + $0xb4] ss:$8 sps:$4 sm:$0xff]  }
  0x13   :  { %555 = vmatprep.subr.bf16.mxu0 %v1920_v0  ;;  %1800 = vmatprep.subr.bf16.mxu1 %v1920_v0  ;;  %v1904_v55 = vld [vmem:[%s2881_s0 + $0x1b4] ss:$8 sps:$4 sm:$0xff]   ;;  %v1870_v56 = vld [vmem:[%s2881_s0 + $0xb0] ss:$8 sps:$4 sm:$0xff]   ;;  %v1874_v58 = vld [vmem:[%s2881_s0 + $0xc4] ss:$8 sps:$4 sm:$0xff]  }
  0x14   :  { %v1906_v57 = vld [vmem:[%s2881_s0 + $0x1b0] ss:$8 sps:$4 sm:$0xff]   ;;  %v1907_v59 = vld [vmem:[%s2881_s0 + $0x1c4] ss:$8 sps:$4 sm:$0xff]   ;;  %v1876_v60 = vld [vmem:[%s2881_s0 + $0xc0] ss:$8 sps:$4 sm:$0xff]  }
  0x15   :  { %v1909_v61 = vld [vmem:[%s2881_s0 + $0x1c0] ss:$8 sps:$4 sm:$0xff]   ;;  %v1880_v62 = vld [vmem:[%s2881_s0 + $0xd4] ss:$8 sps:$4 sm:$0xff]   ;;  %v1912_v1 = vld [vmem:[%s2881_s0 + $0x1d0] ss:$8 sps:$4 sm:$0xff]  }
  0x16   :  { %556 = vmatpush1.bf16.msra.mxu0 %v1819_v7  ;;  %1809 = vmatpush1.bf16.msra.mxu1 %v1819_v7  ;;  %v1910_v63 = vld [vmem:[%s2881_s0 + $0x1d4] ss:$8 sps:$4 sm:$0xff]   ;;  %v1886_v2 = vld [vmem:[%s2881_s0 + $0xe4] ss:$8 sps:$4 sm:$0xff]   ;;  %v1888_v4 = vld [vmem:[%s2881_s0 + $0xe0] ss:$8 sps:$4 sm:$0xff]  }
  0x17   :  { %557 = vmatprep.subr.bf16.mxu0 %v1920_v0  ;;  %1801 = vmatprep.subr.bf16.mxu1 %v1920_v0  ;;  %v1913_v3 = vld [vmem:[%s2881_s0 + $0x1e4] ss:$8 sps:$4 sm:$0xff]   ;;  %v1915_v5 = vld [vmem:[%s2881_s0 + $0x1e0] ss:$8 sps:$4 sm:$0xff]   ;;  %v1892_v6 = vld [vmem:[%s2881_s0 + $0xf4] ss:$8 sps:$4 sm:$0xff]  }
  0x18   :  { %v1916_v7 = vld [vmem:[%s2881_s0 + $0x1f4] ss:$8 sps:$4 sm:$0xff]   ;;  %v1894_v8 = vld [vmem:[%s2881_s0 + $0xf0] ss:$8 sps:$4 sm:$0xff]  }
  0x1a   :  { %558 = vmatpush1.bf16.msra.mxu0 %v1820_v9  ;;  %1810 = vmatpush1.bf16.msra.mxu1 %v1820_v9  ;;  %v1918_v9 = vld [vmem:[%s2881_s0 + $0x1f0] ss:$8 sps:$4 sm:$0xff]  }
  0x1b   :  { %559 = vmatprep.subr.bf16.mxu0 %v1920_v0  ;;  %1802 = vmatprep.subr.bf16.mxu1 %v1920_v0 }
  0x1e   :  { %560 = vmatpush1.bf16.msra.mxu0 %v1821_v10  ;;  %1811 = vmatpush1.bf16.msra.mxu1 %v1821_v10  ;;  %v2200_v10 = vld [vmem:[%s2882_s2] ss:$0 sm:$0xff] }
  0x1f   :  { %561 = vmatprep.subr.bf16.mxu0 %v1920_v0  ;;  %1803 = vmatprep.subr.bf16.mxu1 %v1920_v0  ;;  %v1882_v0 = vld [vmem:[%s2881_s0 + $0xd0] ss:$8 sps:$4 sm:$0xff]  }
  0x22   :  { %562 = vmatpush1.bf16.msra.mxu0 %v1822_v11  ;;  %1812 = vmatpush1.bf16.msra.mxu1 %v1822_v11 }
  0x25   :  { %578 = vmatmul.mubr.bf16.vlgmr.msra.gmra.mrb[0].mxu0 %v1823_v12  ;;  %706 = vmatmul.mubr.bf16.vlgmr.msra.gmra.mrb[0].mxu1 %v1847_v14 }
  0x26   :  { %1636 = vmatprep.mubr.msk.bf16.mxu0 %vm448_vm0, %v1826_v13  ;;  %1652 = vmatprep.mubr.msk.bf16.mxu1 %vm448_vm0, %v1853_v15 }
  0x2d   :  { %586 = vmatmul.mubr.bf16.gmra.mrb[4].mxu0 %v1828_v16  ;;  %714 = vmatmul.mubr.bf16.gmra.mrb[4].mxu1 %v1855_v18 }
  0x2e   :  { %1637 = vmatprep.mubr.msk.bf16.mxu0 %vm448_vm0, %v1829_v17  ;;  %1653 = vmatprep.mubr.msk.bf16.mxu1 %vm448_vm0, %v1859_v19 }
  0x35   :  { %594 = vmatmul.mubr.bf16.gmra.mrb[8].mxu0 %v1831_v20  ;;  %722 = vmatmul.mubr.bf16.gmra.mrb[8].mxu1 %v1861_v22 }
  0x36   :  { %1638 = vmatprep.mubr.msk.bf16.mxu0 %vm448_vm0, %v1832_v21  ;;  %1654 = vmatprep.mubr.msk.bf16.mxu1 %vm448_vm0, %v1865_v23 }
  0x3d   :  { %602 = vmatmul.mubr.bf16.gmra.mrb[12].mxu0 %v1834_v24  ;;  %730 = vmatmul.mubr.bf16.gmra.mrb[12].mxu1 %v1867_v25 }
  0x3e   :  { %1639 = vmatprep.mubr.msk.bf16.mxu0 %vm448_vm0, %v1835_v26  ;;  %1655 = vmatprep.mubr.msk.bf16.mxu1 %vm448_vm0, %v1871_v27 }
  0x45   :  { %610 = vmatmul.mubr.bf16.gmra.mrb[16].mxu0 %v1837_v28  ;;  %738 = vmatmul.mubr.bf16.gmra.mrb[16].mxu1 %v1873_v29 }
  0x46   :  { %1640 = vmatprep.mubr.msk.bf16.mxu0 %vm448_vm0, %v1838_v30  ;;  %1656 = vmatprep.mubr.msk.bf16.mxu1 %vm448_vm0, %v1877_v31 }
  0x4d   :  { %618 = vmatmul.mubr.bf16.gmra.mrb[20].mxu0 %v1840_v32  ;;  %746 = vmatmul.mubr.bf16.gmra.mrb[20].mxu1 %v1879_v33 }
  0x4e   :  { %1641 = vmatprep.mubr.msk.bf16.mxu0 %vm448_vm0, %v1841_v34  ;;  %1657 = vmatprep.mubr.msk.bf16.mxu1 %vm448_vm0, %v1883_v35 }
  0x55   :  { %626 = vmatmul.mubr.bf16.gmra.mrb[24].mxu0 %v1843_v36  ;;  %754 = vmatmul.mubr.bf16.gmra.mrb[24].mxu1 %v1885_v37 }
  0x56   :  { %1642 = vmatprep.mubr.msk.bf16.mxu0 %vm448_vm0, %v1844_v38  ;;  %1658 = vmatprep.mubr.msk.bf16.mxu1 %vm448_vm0, %v1889_v39 }
  0x5d   :  { %634 = vmatmul.mubr.bf16.gmra.mrb[28].mxu0 %v1846_v40  ;;  %762 = vmatmul.mubr.bf16.gmra.mrb[28].mxu1 %v1891_v41 }
  0x5e   :  { %1643 = vmatprep.mubr.msk.bf16.mxu0 %vm448_vm0, %v1850_v42  ;;  %1659 = vmatprep.mubr.msk.bf16.mxu1 %vm448_vm0, %v1895_v43 }
  0x65   :  { %642 = vmatmul.mubr.bf16.gmra.mrb[32].mxu0 %v1852_v44  ;;  %770 = vmatmul.mubr.bf16.gmra.mrb[32].mxu1 %v1897_v45 }
  0x66   :  { %1644 = vmatprep.mubr.msk.bf16.mxu0 %vm448_vm0, %v1856_v46  ;;  %1660 = vmatprep.mubr.msk.bf16.mxu1 %vm448_vm0, %v1898_v47 }
  0x6d   :  { %650 = vmatmul.mubr.bf16.gmra.mrb[36].mxu0 %v1858_v48  ;;  %778 = vmatmul.mubr.bf16.gmra.mrb[36].mxu1 %v1900_v49 }
  0x6e   :  { %1645 = vmatprep.mubr.msk.bf16.mxu0 %vm448_vm0, %v1862_v50  ;;  %1661 = vmatprep.mubr.msk.bf16.mxu1 %vm448_vm0, %v1901_v51 }
  0x75   :  { %658 = vmatmul.mubr.bf16.gmra.mrb[40].mxu0 %v1864_v52  ;;  %786 = vmatmul.mubr.bf16.gmra.mrb[40].mxu1 %v1903_v53 }
  0x76   :  { %1646 = vmatprep.mubr.msk.bf16.mxu0 %vm448_vm0, %v1868_v54  ;;  %1662 = vmatprep.mubr.msk.bf16.mxu1 %vm448_vm0, %v1904_v55 }
  0x7d   :  { %666 = vmatmul.mubr.bf16.gmra.mrb[44].mxu0 %v1870_v56  ;;  %794 = vmatmul.mubr.bf16.gmra.mrb[44].mxu1 %v1906_v57 }
  0x7e   :  { %1647 = vmatprep.mubr.msk.bf16.mxu0 %vm448_vm0, %v1874_v58  ;;  %1663 = vmatprep.mubr.msk.bf16.mxu1 %vm448_vm0, %v1907_v59 }
  0x85   :  { %674 = vmatmul.mubr.bf16.gmra.mrb[48].mxu0 %v1876_v60  ;;  %802 = vmatmul.mubr.bf16.gmra.mrb[48].mxu1 %v1909_v61 }
  0x86   :  { %1648 = vmatprep.mubr.msk.bf16.mxu0 %vm448_vm0, %v1880_v62  ;;  %1664 = vmatprep.mubr.msk.bf16.mxu1 %vm448_vm0, %v1910_v63 }
  0x8d   :  { %682 = vmatmul.mubr.bf16.gmra.mrb[52].mxu0 %v1882_v0  ;;  %810 = vmatmul.mubr.bf16.gmra.mrb[52].mxu1 %v1912_v1 }
  0x8e   :  { %1649 = vmatprep.mubr.msk.bf16.mxu0 %vm448_vm0, %v1886_v2  ;;  %1665 = vmatprep.mubr.msk.bf16.mxu1 %vm448_vm0, %v1913_v3 }
  0x95   :  { %690 = vmatmul.mubr.bf16.gmra.mrb[56].mxu0 %v1888_v4  ;;  %818 = vmatmul.mubr.bf16.gmra.mrb[56].mxu1 %v1915_v5 }
  0x96   :  { %1650 = vmatprep.mubr.msk.bf16.mxu0 %vm448_vm0, %v1892_v6  ;;  %1666 = vmatprep.mubr.msk.bf16.mxu1 %vm448_vm0, %v1916_v7 }
  0x9d   :  { %698 = vmatmul.mubr.bf16.gmra.mrb[60].mxu0 %v1894_v8  ;;  %826 = vmatmul.mubr.bf16.gmra.mrb[60].mxu1 %v1918_v9 }
  0xf8   :  { %v579_v11 = vpop.f32.mrb[0].mxu0  ;;  %v707_v12 = vpop.f32.mrb[0].mxu1 }
  0xf9   :  { %v580_v13 = vadd.f32 %v2200_v10, %v579_v11  ;;  %v581_v14 = vpop.f32.mrb[1].mxu0  ;;  %v708_v15 = vadd.f32 %v2200_v10, %v707_v12  ;;  %v709_v16 = vpop.f32.mrb[1].mxu1 }
  0xfa   :  { %v582_v17 = vpop.f32.mrb[2].mxu0  ;;  %v710_v18 = vpop.f32.mrb[2].mxu1 }
  0xfb   :  { %v834_v19 = vmax.f32 %v580_v13, 0.0  ;;  %v583_v20 = vadd.f32 %v2200_v10, %v582_v17  ;;  %v584_v21 = vpop.f32.mrb[3].mxu0  ;;  %v2205_v22 = vmax.f32 %v708_v15, 0.0  ;;  %v711_v23 = vadd.f32 %v2200_v10, %v710_v18  ;;  %v712_v24 = vpop.f32.mrb[3].mxu1 }
  0xfd   :  { %v1731_v25 = vpack.c.bf16 %v834_v19, %v834_v19  ;;  %v1355_v26 = vmul.f32 %v834_v19, %v834_v19  ;;  %v835_v27 = vmax.f32 %v583_v20, 0.0  ;;  %v1763_v28 = vpack.c.bf16 %v2205_v22, %v2205_v22 }
  0xfe   :  { %v2210_v29 = vmax.f32 %v711_v23, 0.0  ;;  %v1220_v30 = vsel %vm1219_vm2, %v834_v19, 0.0 }
  0xff   :  { %1155 = vst.msk [vmem:[%s2883_s3] sm:$0xf] %vm1154_vm1, %v1731_v25  ;;  %v1732_v31 = vpack.c.bf16 %v835_v27, %v835_v27  ;;  %v1221_v32 = vsel %vm1219_vm2, %v835_v27, 0.0  ;;  %v1356_v33 = vmul.f32 %v835_v27, %v835_v27  ;;  %1187 = vst.msk [vmem:[%s2883_s3 + $0x80] sm:$0xf] %vm1154_vm1, %v1763_v28  ;;  %v1419_v38 = vsel %vm1219_vm2, %v1355_v26, 0.0 }
 0x100   :  { %v1222_v34 = vadd.f32 %v1221_v32, %v1220_v30  ;;  %v587_v35 = vpop.f32.mrb[4].mxu0  ;;  %v1764_v36 = vpack.c.bf16 %v2210_v29, %v2210_v29  ;;  %v715_v37 = vpop.f32.mrb[4].mxu1 }
 0x101   :  { %1156 = vst.msk [vmem:[%s2883_s3 + $0x4] sm:$0xf] %vm1154_vm1, %v1732_v31  ;;  %v1420_v39 = vsel %vm1219_vm2, %v1356_v33, 0.0  ;;  %v588_v40 = vadd.f32 %v2200_v10, %v587_v35  ;;  %v589_v41 = vpop.f32.mrb[5].mxu0  ;;  %v716_v42 = vadd.f32 %v2200_v10, %v715_v37  ;;  %v717_v43 = vpop.f32.mrb[5].mxu1 }
 0x102   :  { %v1421_v44 = vadd.f32 %v1420_v39, %v1419_v38  ;;  %v590_v45 = vpop.f32.mrb[6].mxu0  ;;  %1188 = vst.msk [vmem:[%s2883_s3 + $0x84] sm:$0xf] %vm1154_vm1, %v1764_v36  ;;  %v718_v46 = vpop.f32.mrb[6].mxu1 }
 0x103   :  { %v836_v47 = vmax.f32 %v588_v40, 0.0  ;;  %v591_v48 = vadd.f32 %v2200_v10, %v590_v45  ;;  %v592_v49 = vpop.f32.mrb[7].mxu0  ;;  %v2237_v50 = vmax.f32 %v716_v42, 0.0  ;;  %v720_v51 = vpop.f32.mrb[7].mxu1  ;;  %v719_v52 = vadd.f32 %v2200_v10, %v718_v46 }
 0x105   :  { %v1733_v53 = vpack.c.bf16 %v836_v47, %v836_v47  ;;  %v1223_v54 = vsel %vm1219_vm2, %v836_v47, 0.0  ;;  %v1357_v55 = vmul.f32 %v836_v47, %v836_v47  ;;  %v837_v56 = vmax.f32 %v591_v48, 0.0 }
 0x106   :  { %v1224_v57 = vadd.f32 %v1223_v54, %v1222_v34  ;;  %v1765_v58 = vpack.c.bf16 %v2237_v50, %v2237_v50  ;;  %v2253_v2 = vmax.f32 %v719_v52, 0.0 }
 0x107   :  { %1157 = vst.msk [vmem:[%s2883_s3 + $0x8] sm:$0xf] %vm1154_vm1, %v1733_v53  ;;  %v1422_v59 = vsel %vm1219_vm2, %v1357_v55, 0.0  ;;  %v1734_v60 = vpack.c.bf16 %v837_v56, %v837_v56  ;;  %v1225_v61 = vsel %vm1219_vm2, %v837_v56, 0.0  ;;  %v1358_v62 = vmul.f32 %v837_v56, %v837_v56 }
 0x108   :  { %v1423_v63 = vadd.f32 %v1422_v59, %v1421_v44  ;;  %v1226_v0 = vadd.f32 %v1225_v61, %v1224_v57  ;;  %v595_v1 = vpop.f32.mrb[8].mxu0  ;;  %1189 = vst.msk [vmem:[%s2883_s3 + $0x88] sm:$0xf] %vm1154_vm1, %v1765_v58  ;;  %v723_v3 = vpop.f32.mrb[8].mxu1  ;;  %v1766_v12 = vpack.c.bf16 %v2253_v2, %v2253_v2 }
 0x109   :  { %1158 = vst.msk [vmem:[%s2883_s3 + $0xc] sm:$0xf] %vm1154_vm1, %v1734_v60  ;;  %v1424_v4 = vsel %vm1219_vm2, %v1358_v62, 0.0  ;;  %v596_v5 = vadd.f32 %v2200_v10, %v595_v1  ;;  %v597_v6 = vpop.f32.mrb[9].mxu0  ;;  %v724_v7 = vadd.f32 %v2200_v10, %v723_v3  ;;  %v725_v8 = vpop.f32.mrb[9].mxu1 }
 0x10a   :  { %v1425_v9 = vadd.f32 %v1424_v4, %v1423_v63  ;;  %v598_v11 = vpop.f32.mrb[10].mxu0  ;;  %v726_v13 = vpop.f32.mrb[10].mxu1  ;;  %1190 = vst.msk [vmem:[%s2883_s3 + $0x8c] sm:$0xf] %vm1154_vm1, %v1766_v12 }
 0x10b   :  { %v838_v14 = vmax.f32 %v596_v5, 0.0  ;;  %v599_v15 = vadd.f32 %v2200_v10, %v598_v11  ;;  %v600_v16 = vpop.f32.mrb[11].mxu0  ;;  %v2265_v17 = vmax.f32 %v724_v7, 0.0  ;;  %v728_v18 = vpop.f32.mrb[11].mxu1  ;;  %v727_v19 = vadd.f32 %v2200_v10, %v726_v13 }
 0x10d   :  { %v1735_v20 = vpack.c.bf16 %v838_v14, %v838_v14  ;;  %v1227_v21 = vsel %vm1219_vm2, %v838_v14, 0.0  ;;  %v1359_v23 = vmul.f32 %v838_v14, %v838_v14  ;;  %v839_v24 = vmax.f32 %v599_v15, 0.0 }
 0x10e   :  { %v1228_v25 = vadd.f32 %v1227_v21, %v1226_v0  ;;  %v1767_v26 = vpack.c.bf16 %v2265_v17, %v2265_v17  ;;  %v2285_v35 = vmax.f32 %v727_v19, 0.0 }
 0x10f   :  { %1159 = vst.msk [vmem:[%s2883_s3 + $0x10] sm:$0xf] %vm1154_vm1, %v1735_v20  ;;  %v1426_v27 = vsel %vm1219_vm2, %v1359_v23, 0.0  ;;  %v1736_v28 = vpack.c.bf16 %v839_v24, %v839_v24  ;;  %v1229_v30 = vsel %vm1219_vm2, %v839_v24, 0.0  ;;  %v1360_v31 = vmul.f32 %v839_v24, %v839_v24 }
 0x110   :  { %v1427_v32 = vadd.f32 %v1426_v27, %v1425_v9  ;;  %v1230_v33 = vadd.f32 %v1229_v30, %v1228_v25  ;;  %v603_v34 = vpop.f32.mrb[12].mxu0  ;;  %1191 = vst.msk [vmem:[%s2883_s3 + $0x90] sm:$0xf] %vm1154_vm1, %v1767_v26  ;;  %v731_v36 = vpop.f32.mrb[12].mxu1  ;;  %v1768_v44 = vpack.c.bf16 %v2285_v35, %v2285_v35 }
 0x111   :  { %1160 = vst.msk [vmem:[%s2883_s3 + $0x14] sm:$0xf] %vm1154_vm1, %v1736_v28  ;;  %v1428_v37 = vsel %vm1219_vm2, %v1360_v31, 0.0  ;;  %v604_v38 = vadd.f32 %v2200_v10, %v603_v34  ;;  %v605_v39 = vpop.f32.mrb[13].mxu0  ;;  %v732_v40 = vadd.f32 %v2200_v10, %v731_v36  ;;  %v733_v41 = vpop.f32.mrb[13].mxu1 }
 0x112   :  { %v1429_v42 = vadd.f32 %v1428_v37, %v1427_v32  ;;  %v606_v43 = vpop.f32.mrb[14].mxu0  ;;  %v734_v45 = vpop.f32.mrb[14].mxu1  ;;  %1192 = vst.msk [vmem:[%s2883_s3 + $0x94] sm:$0xf] %vm1154_vm1, %v1768_v44 }
 0x113   :  { %v840_v46 = vmax.f32 %v604_v38, 0.0  ;;  %v607_v47 = vadd.f32 %v2200_v10, %v606_v43  ;;  %v608_v48 = vpop.f32.mrb[15].mxu0  ;;  %v2297_v49 = vmax.f32 %v732_v40, 0.0  ;;  %v736_v51 = vpop.f32.mrb[15].mxu1  ;;  %v735_v52 = vadd.f32 %v2200_v10, %v734_v45 }
 0x115   :  { %v1737_v53 = vpack.c.bf16 %v840_v46, %v840_v46  ;;  %v1231_v54 = vsel %vm1219_vm2, %v840_v46, 0.0  ;;  %v1361_v55 = vmul.f32 %v840_v46, %v840_v46  ;;  %v841_v56 = vmax.f32 %v607_v47, 0.0 }
 0x116   :  { %v1232_v57 = vadd.f32 %v1231_v54, %v1230_v33  ;;  %v1769_v58 = vpack.c.bf16 %v2297_v49, %v2297_v49  ;;  %v2317_v3 = vmax.f32 %v735_v52, 0.0 }
 0x117   :  { %1161 = vst.msk [vmem:[%s2883_s3 + $0x18] sm:$0xf] %vm1154_vm1, %v1737_v53  ;;  %v1430_v59 = vsel %vm1219_vm2, %v1361_v55, 0.0  ;;  %v1738_v60 = vpack.c.bf16 %v841_v56, %v841_v56  ;;  %v1233_v61 = vsel %vm1219_vm2, %v841_v56, 0.0  ;;  %v1362_v62 = vmul.f32 %v841_v56, %v841_v56 }
 0x118   :  { %v1431_v63 = vadd.f32 %v1430_v59, %v1429_v42  ;;  %v1234_v0 = vadd.f32 %v1233_v61, %v1232_v57  ;;  %v611_v1 = vpop.f32.mrb[16].mxu0  ;;  %1193 = vst.msk [vmem:[%s2883_s3 + $0x98] sm:$0xf] %vm1154_vm1, %v1769_v58  ;;  %v739_v4 = vpop.f32.mrb[16].mxu1  ;;  %v1770_v13 = vpack.c.bf16 %v2317_v3, %v2317_v3 }
 0x119   :  { %1162 = vst.msk [vmem:[%s2883_s3 + $0x1c] sm:$0xf] %vm1154_vm1, %v1738_v60  ;;  %v1432_v5 = vsel %vm1219_vm2, %v1362_v62, 0.0  ;;  %v612_v6 = vadd.f32 %v2200_v10, %v611_v1  ;;  %v613_v7 = vpop.f32.mrb[17].mxu0  ;;  %v740_v8 = vadd.f32 %v2200_v10, %v739_v4  ;;  %v741_v9 = vpop.f32.mrb[17].mxu1 }
 0x11a   :  { %v1433_v11 = vadd.f32 %v1432_v5, %v1431_v63  ;;  %v614_v12 = vpop.f32.mrb[18].mxu0  ;;  %v742_v14 = vpop.f32.mrb[18].mxu1  ;;  %1194 = vst.msk [vmem:[%s2883_s3 + $0x9c] sm:$0xf] %vm1154_vm1, %v1770_v13 }
 0x11b   :  { %v842_v15 = vmax.f32 %v612_v6, 0.0  ;;  %v615_v16 = vadd.f32 %v2200_v10, %v614_v12  ;;  %v616_v18 = vpop.f32.mrb[19].mxu0  ;;  %v2329_v19 = vmax.f32 %v740_v8, 0.0  ;;  %v744_v20 = vpop.f32.mrb[19].mxu1  ;;  %v743_v21 = vadd.f32 %v2200_v10, %v742_v14 }
 0x11d   :  { %v1739_v23 = vpack.c.bf16 %v842_v15, %v842_v15  ;;  %v1235_v24 = vsel %vm1219_vm2, %v842_v15, 0.0  ;;  %v1363_v25 = vmul.f32 %v842_v15, %v842_v15  ;;  %v843_v26 = vmax.f32 %v615_v16, 0.0 }
 0x11e   :  { %v1236_v27 = vadd.f32 %v1235_v24, %v1234_v0  ;;  %v1771_v28 = vpack.c.bf16 %v2329_v19, %v2329_v19  ;;  %v2349_v38 = vmax.f32 %v743_v21, 0.0 }
 0x11f   :  { %1163 = vst.msk [vmem:[%s2883_s3 + $0x20] sm:$0xf] %vm1154_vm1, %v1739_v23  ;;  %v1434_v30 = vsel %vm1219_vm2, %v1363_v25, 0.0  ;;  %v1740_v31 = vpack.c.bf16 %v843_v26, %v843_v26  ;;  %v1237_v32 = vsel %vm1219_vm2, %v843_v26, 0.0  ;;  %v1364_v33 = vmul.f32 %v843_v26, %v843_v26 }
 0x120   :  { %v1435_v34 = vadd.f32 %v1434_v30, %v1433_v11  ;;  %v1238_v36 = vadd.f32 %v1237_v32, %v1236_v27  ;;  %v619_v37 = vpop.f32.mrb[20].mxu0  ;;  %1195 = vst.msk [vmem:[%s2883_s3 + $0xa0] sm:$0xf] %vm1154_vm1, %v1771_v28  ;;  %v747_v39 = vpop.f32.mrb[20].mxu1  ;;  %v1772_v47 = vpack.c.bf16 %v2349_v38, %v2349_v38 }
 0x121   :  { %1164 = vst.msk [vmem:[%s2883_s3 + $0x24] sm:$0xf] %vm1154_vm1, %v1740_v31  ;;  %v1436_v40 = vsel %vm1219_vm2, %v1364_v33, 0.0  ;;  %v620_v41 = vadd.f32 %v2200_v10, %v619_v37  ;;  %v621_v42 = vpop.f32.mrb[21].mxu0  ;;  %v748_v43 = vadd.f32 %v2200_v10, %v747_v39  ;;  %v749_v44 = vpop.f32.mrb[21].mxu1 }
 0x122   :  { %v1437_v45 = vadd.f32 %v1436_v40, %v1435_v34  ;;  %v622_v46 = vpop.f32.mrb[22].mxu0  ;;  %v750_v48 = vpop.f32.mrb[22].mxu1  ;;  %1196 = vst.msk [vmem:[%s2883_s3 + $0xa4] sm:$0xf] %vm1154_vm1, %v1772_v47 }
 0x123   :  { %v844_v51 = vmax.f32 %v620_v41, 0.0  ;;  %v623_v52 = vadd.f32 %v2200_v10, %v622_v46  ;;  %v624_v53 = vpop.f32.mrb[23].mxu0  ;;  %v2361_v54 = vmax.f32 %v748_v43, 0.0  ;;  %v752_v55 = vpop.f32.mrb[23].mxu1  ;;  %v751_v56 = vadd.f32 %v2200_v10, %v750_v48 }
 0x125   :  { %v1741_v57 = vpack.c.bf16 %v844_v51, %v844_v51  ;;  %v1239_v58 = vsel %vm1219_vm2, %v844_v51, 0.0  ;;  %v1365_v59 = vmul.f32 %v844_v51, %v844_v51  ;;  %v845_v60 = vmax.f32 %v623_v52, 0.0 }
 0x126   :  { %v1240_v61 = vadd.f32 %v1239_v58, %v1238_v36  ;;  %v1773_v62 = vpack.c.bf16 %v2361_v54, %v2361_v54  ;;  %v2381_v8 = vmax.f32 %v751_v56, 0.0 }
 0x127   :  { %1165 = vst.msk [vmem:[%s2883_s3 + $0x28] sm:$0xf] %vm1154_vm1, %v1741_v57  ;;  %v1438_v63 = vsel %vm1219_vm2, %v1365_v59, 0.0  ;;  %v1742_v0 = vpack.c.bf16 %v845_v60, %v845_v60  ;;  %v1241_v1 = vsel %vm1219_vm2, %v845_v60, 0.0  ;;  %v1366_v4 = vmul.f32 %v845_v60, %v845_v60 }
 0x128   :  { %v1439_v5 = vadd.f32 %v1438_v63, %v1437_v45  ;;  %v1242_v6 = vadd.f32 %v1241_v1, %v1240_v61  ;;  %v627_v7 = vpop.f32.mrb[24].mxu0  ;;  %1197 = vst.msk [vmem:[%s2883_s3 + $0xa8] sm:$0xf] %vm1154_vm1, %v1773_v62  ;;  %v755_v9 = vpop.f32.mrb[24].mxu1  ;;  %v1774_v20 = vpack.c.bf16 %v2381_v8, %v2381_v8 }
 0x129   :  { %1166 = vst.msk [vmem:[%s2883_s3 + $0x2c] sm:$0xf] %vm1154_vm1, %v1742_v0  ;;  %v1440_v11 = vsel %vm1219_vm2, %v1366_v4, 0.0  ;;  %v628_v12 = vadd.f32 %v2200_v10, %v627_v7  ;;  %v629_v13 = vpop.f32.mrb[25].mxu0  ;;  %v756_v14 = vadd.f32 %v2200_v10, %v755_v9  ;;  %v757_v15 = vpop.f32.mrb[25].mxu1 }
 0x12a   :  { %v1441_v16 = vadd.f32 %v1440_v11, %v1439_v5  ;;  %v630_v18 = vpop.f32.mrb[26].mxu0  ;;  %v758_v21 = vpop.f32.mrb[26].mxu1  ;;  %1198 = vst.msk [vmem:[%s2883_s3 + $0xac] sm:$0xf] %vm1154_vm1, %v1774_v20 }
 0x12b   :  { %v846_v23 = vmax.f32 %v628_v12, 0.0  ;;  %v631_v24 = vadd.f32 %v2200_v10, %v630_v18  ;;  %v632_v25 = vpop.f32.mrb[27].mxu0  ;;  %v2393_v26 = vmax.f32 %v756_v14, 0.0  ;;  %v760_v27 = vpop.f32.mrb[27].mxu1  ;;  %v759_v28 = vadd.f32 %v2200_v10, %v758_v21 }
 0x12d   :  { %v1743_v30 = vpack.c.bf16 %v846_v23, %v846_v23  ;;  %v1243_v31 = vsel %vm1219_vm2, %v846_v23, 0.0  ;;  %v1367_v32 = vmul.f32 %v846_v23, %v846_v23  ;;  %v847_v33 = vmax.f32 %v631_v24, 0.0 }
 0x12e   :  { %v1244_v34 = vadd.f32 %v1243_v31, %v1242_v6  ;;  %v1775_v36 = vpack.c.bf16 %v2393_v26, %v2393_v26  ;;  %v2413_v45 = vmax.f32 %v759_v28, 0.0 }
 0x12f   :  { %1167 = vst.msk [vmem:[%s2883_s3 + $0x30] sm:$0xf] %vm1154_vm1, %v1743_v30  ;;  %v1442_v37 = vsel %vm1219_vm2, %v1367_v32, 0.0  ;;  %v1744_v39 = vpack.c.bf16 %v847_v33, %v847_v33  ;;  %v1245_v40 = vsel %vm1219_vm2, %v847_v33, 0.0  ;;  %v1368_v41 = vmul.f32 %v847_v33, %v847_v33 }
 0x130   :  { %v1443_v42 = vadd.f32 %v1442_v37, %v1441_v16  ;;  %v1246_v43 = vadd.f32 %v1245_v40, %v1244_v34  ;;  %v635_v44 = vpop.f32.mrb[28].mxu0  ;;  %1199 = vst.msk [vmem:[%s2883_s3 + $0xb0] sm:$0xf] %vm1154_vm1, %v1775_v36  ;;  %v763_v46 = vpop.f32.mrb[28].mxu1  ;;  %v1776_v57 = vpack.c.bf16 %v2413_v45, %v2413_v45 }
 0x131   :  { %1168 = vst.msk [vmem:[%s2883_s3 + $0x34] sm:$0xf] %vm1154_vm1, %v1744_v39  ;;  %v1444_v47 = vsel %vm1219_vm2, %v1368_v41, 0.0  ;;  %v636_v48 = vadd.f32 %v2200_v10, %v635_v44  ;;  %v637_v51 = vpop.f32.mrb[29].mxu0  ;;  %v764_v52 = vadd.f32 %v2200_v10, %v763_v46  ;;  %v765_v53 = vpop.f32.mrb[29].mxu1 }
 0x132   :  { %v1445_v55 = vadd.f32 %v1444_v47, %v1443_v42  ;;  %v638_v56 = vpop.f32.mrb[30].mxu0  ;;  %v766_v58 = vpop.f32.mrb[30].mxu1  ;;  %1200 = vst.msk [vmem:[%s2883_s3 + $0xb4] sm:$0xf] %vm1154_vm1, %v1776_v57 }
 0x133   :  { %v848_v59 = vmax.f32 %v636_v48, 0.0  ;;  %v639_v60 = vadd.f32 %v2200_v10, %v638_v56  ;;  %v640_v61 = vpop.f32.mrb[31].mxu0  ;;  %v2425_v62 = vmax.f32 %v764_v52, 0.0  ;;  %v768_v63 = vpop.f32.mrb[31].mxu1  ;;  %v767_v0 = vadd.f32 %v2200_v10, %v766_v58 }
 0x135   :  { %v1745_v1 = vpack.c.bf16 %v848_v59, %v848_v59  ;;  %v1247_v4 = vsel %vm1219_vm2, %v848_v59, 0.0  ;;  %v1369_v5 = vmul.f32 %v848_v59, %v848_v59  ;;  %v849_v6 = vmax.f32 %v639_v60, 0.0 }
 0x136   :  { %v1248_v7 = vadd.f32 %v1247_v4, %v1246_v43  ;;  %v1777_v9 = vpack.c.bf16 %v2425_v62, %v2425_v62  ;;  %v2445_v20 = vmax.f32 %v767_v0, 0.0 }
 0x137   :  { %1169 = vst.msk [vmem:[%s2883_s3 + $0x38] sm:$0xf] %vm1154_vm1, %v1745_v1  ;;  %v1446_v11 = vsel %vm1219_vm2, %v1369_v5, 0.0  ;;  %v1746_v12 = vpack.c.bf16 %v849_v6, %v849_v6  ;;  %v1249_v13 = vsel %vm1219_vm2, %v849_v6, 0.0  ;;  %v1370_v14 = vmul.f32 %v849_v6, %v849_v6 }
 0x138   :  { %v1447_v15 = vadd.f32 %v1446_v11, %v1445_v55  ;;  %v1250_v16 = vadd.f32 %v1249_v13, %v1248_v7  ;;  %v643_v18 = vpop.f32.mrb[32].mxu0  ;;  %1201 = vst.msk [vmem:[%s2883_s3 + $0xb8] sm:$0xf] %vm1154_vm1, %v1777_v9  ;;  %v771_v21 = vpop.f32.mrb[32].mxu1  ;;  %v1778_v32 = vpack.c.bf16 %v2445_v20, %v2445_v20 }
 0x139   :  { %1170 = vst.msk [vmem:[%s2883_s3 + $0x3c] sm:$0xf] %vm1154_vm1, %v1746_v12  ;;  %v1448_v23 = vsel %vm1219_vm2, %v1370_v14, 0.0  ;;  %v644_v24 = vadd.f32 %v2200_v10, %v643_v18  ;;  %v645_v25 = vpop.f32.mrb[33].mxu0  ;;  %v772_v27 = vadd.f32 %v2200_v10, %v771_v21  ;;  %v773_v28 = vpop.f32.mrb[33].mxu1 }
 0x13a   :  { %v1449_v30 = vadd.f32 %v1448_v23, %v1447_v15  ;;  %v646_v31 = vpop.f32.mrb[34].mxu0  ;;  %v774_v33 = vpop.f32.mrb[34].mxu1  ;;  %1202 = vst.msk [vmem:[%s2883_s3 + $0xbc] sm:$0xf] %vm1154_vm1, %v1778_v32 }
 0x13b   :  { %v850_v34 = vmax.f32 %v644_v24, 0.0  ;;  %v647_v36 = vadd.f32 %v2200_v10, %v646_v31  ;;  %v648_v37 = vpop.f32.mrb[35].mxu0  ;;  %v2457_v39 = vmax.f32 %v772_v27, 0.0  ;;  %v776_v40 = vpop.f32.mrb[35].mxu1  ;;  %v775_v41 = vadd.f32 %v2200_v10, %v774_v33 }
 0x13d   :  { %v1747_v42 = vpack.c.bf16 %v850_v34, %v850_v34  ;;  %v1251_v43 = vsel %vm1219_vm2, %v850_v34, 0.0  ;;  %v1371_v44 = vmul.f32 %v850_v34, %v850_v34  ;;  %v851_v46 = vmax.f32 %v647_v36, 0.0 }
 0x13e   :  { %v1252_v47 = vadd.f32 %v1251_v43, %v1250_v16  ;;  %v1779_v48 = vpack.c.bf16 %v2457_v39, %v2457_v39  ;;  %v2477_v59 = vmax.f32 %v775_v41, 0.0 }
 0x13f   :  { %1171 = vst.msk [vmem:[%s2883_s3 + $0x40] sm:$0xf] %vm1154_vm1, %v1747_v42  ;;  %v1450_v51 = vsel %vm1219_vm2, %v1371_v44, 0.0  ;;  %v1748_v52 = vpack.c.bf16 %v851_v46, %v851_v46  ;;  %v1253_v53 = vsel %vm1219_vm2, %v851_v46, 0.0  ;;  %v1372_v55 = vmul.f32 %v851_v46, %v851_v46 }
 0x140   :  { %v1451_v56 = vadd.f32 %v1450_v51, %v1449_v30  ;;  %v1254_v57 = vadd.f32 %v1253_v53, %v1252_v47  ;;  %v651_v58 = vpop.f32.mrb[36].mxu0  ;;  %1203 = vst.msk [vmem:[%s2883_s3 + $0xc0] sm:$0xf] %vm1154_vm1, %v1779_v48  ;;  %v779_v60 = vpop.f32.mrb[36].mxu1  ;;  %v1780_v7 = vpack.c.bf16 %v2477_v59, %v2477_v59 }
 0x141   :  { %1172 = vst.msk [vmem:[%s2883_s3 + $0x44] sm:$0xf] %vm1154_vm1, %v1748_v52  ;;  %v1452_v61 = vsel %vm1219_vm2, %v1372_v55, 0.0  ;;  %v652_v63 = vadd.f32 %v2200_v10, %v651_v58  ;;  %v653_v0 = vpop.f32.mrb[37].mxu0  ;;  %v780_v1 = vadd.f32 %v2200_v10, %v779_v60  ;;  %v781_v4 = vpop.f32.mrb[37].mxu1 }
 0x142   :  { %v1453_v5 = vadd.f32 %v1452_v61, %v1451_v56  ;;  %v654_v6 = vpop.f32.mrb[38].mxu0  ;;  %v782_v9 = vpop.f32.mrb[38].mxu1  ;;  %1204 = vst.msk [vmem:[%s2883_s3 + $0xc4] sm:$0xf] %vm1154_vm1, %v1780_v7 }
 0x143   :  { %v852_v11 = vmax.f32 %v652_v63, 0.0  ;;  %v655_v12 = vadd.f32 %v2200_v10, %v654_v6  ;;  %v656_v13 = vpop.f32.mrb[39].mxu0  ;;  %v2489_v14 = vmax.f32 %v780_v1, 0.0  ;;  %v784_v15 = vpop.f32.mrb[39].mxu1  ;;  %v783_v16 = vadd.f32 %v2200_v10, %v782_v9 }
 0x145   :  { %v1749_v18 = vpack.c.bf16 %v852_v11, %v852_v11  ;;  %v1255_v21 = vsel %vm1219_vm2, %v852_v11, 0.0  ;;  %v1373_v23 = vmul.f32 %v852_v11, %v852_v11  ;;  %v853_v24 = vmax.f32 %v655_v12, 0.0 }
 0x146   :  { %v1256_v25 = vadd.f32 %v1255_v21, %v1254_v57  ;;  %v1781_v27 = vpack.c.bf16 %v2489_v14, %v2489_v14  ;;  %v2509_v37 = vmax.f32 %v783_v16, 0.0 }
 0x147   :  { %1173 = vst.msk [vmem:[%s2883_s3 + $0x48] sm:$0xf] %vm1154_vm1, %v1749_v18  ;;  %v1454_v28 = vsel %vm1219_vm2, %v1373_v23, 0.0  ;;  %v1750_v30 = vpack.c.bf16 %v853_v24, %v853_v24  ;;  %v1257_v31 = vsel %vm1219_vm2, %v853_v24, 0.0  ;;  %v1374_v32 = vmul.f32 %v853_v24, %v853_v24 }
 0x148   :  { %v1455_v33 = vadd.f32 %v1454_v28, %v1453_v5  ;;  %v1258_v34 = vadd.f32 %v1257_v31, %v1256_v25  ;;  %v659_v36 = vpop.f32.mrb[40].mxu0  ;;  %1205 = vst.msk [vmem:[%s2883_s3 + $0xc8] sm:$0xf] %vm1154_vm1, %v1781_v27  ;;  %v787_v40 = vpop.f32.mrb[40].mxu1  ;;  %v1782_v51 = vpack.c.bf16 %v2509_v37, %v2509_v37 }
 0x149   :  { %1174 = vst.msk [vmem:[%s2883_s3 + $0x4c] sm:$0xf] %vm1154_vm1, %v1750_v30  ;;  %v1456_v41 = vsel %vm1219_vm2, %v1374_v32, 0.0  ;;  %v660_v42 = vadd.f32 %v2200_v10, %v659_v36  ;;  %v661_v43 = vpop.f32.mrb[41].mxu0  ;;  %v788_v44 = vadd.f32 %v2200_v10, %v787_v40  ;;  %v789_v46 = vpop.f32.mrb[41].mxu1 }
 0x14a   :  { %v1457_v47 = vadd.f32 %v1456_v41, %v1455_v33  ;;  %v662_v48 = vpop.f32.mrb[42].mxu0  ;;  %v790_v52 = vpop.f32.mrb[42].mxu1  ;;  %1206 = vst.msk [vmem:[%s2883_s3 + $0xcc] sm:$0xf] %vm1154_vm1, %v1782_v51 }
 0x14b   :  { %v854_v53 = vmax.f32 %v660_v42, 0.0  ;;  %v663_v55 = vadd.f32 %v2200_v10, %v662_v48  ;;  %v664_v56 = vpop.f32.mrb[43].mxu0  ;;  %v2521_v57 = vmax.f32 %v788_v44, 0.0  ;;  %v792_v58 = vpop.f32.mrb[43].mxu1  ;;  %v791_v60 = vadd.f32 %v2200_v10, %v790_v52 }
 0x14d   :  { %v1751_v61 = vpack.c.bf16 %v854_v53, %v854_v53  ;;  %v1259_v63 = vsel %vm1219_vm2, %v854_v53, 0.0  ;;  %v1375_v0 = vmul.f32 %v854_v53, %v854_v53  ;;  %v855_v1 = vmax.f32 %v663_v55, 0.0 }
 0x14e   :  { %v1260_v4 = vadd.f32 %v1259_v63, %v1258_v34  ;;  %v1783_v5 = vpack.c.bf16 %v2521_v57, %v2521_v57  ;;  %v2541_v16 = vmax.f32 %v791_v60, 0.0 }
 0x14f   :  { %1175 = vst.msk [vmem:[%s2883_s3 + $0x50] sm:$0xf] %vm1154_vm1, %v1751_v61  ;;  %v1458_v6 = vsel %vm1219_vm2, %v1375_v0, 0.0  ;;  %v1752_v7 = vpack.c.bf16 %v855_v1, %v855_v1  ;;  %v1261_v9 = vsel %vm1219_vm2, %v855_v1, 0.0  ;;  %v1376_v11 = vmul.f32 %v855_v1, %v855_v1 }
 0x150   :  { %v1459_v12 = vadd.f32 %v1458_v6, %v1457_v47  ;;  %v1262_v13 = vadd.f32 %v1261_v9, %v1260_v4  ;;  %v667_v15 = vpop.f32.mrb[44].mxu0  ;;  %1207 = vst.msk [vmem:[%s2883_s3 + $0xd0] sm:$0xf] %vm1154_vm1, %v1783_v5  ;;  %v795_v18 = vpop.f32.mrb[44].mxu1  ;;  %v1784_v31 = vpack.c.bf16 %v2541_v16, %v2541_v16 }
 0x151   :  { %1176 = vst.msk [vmem:[%s2883_s3 + $0x54] sm:$0xf] %vm1154_vm1, %v1752_v7  ;;  %v1460_v21 = vsel %vm1219_vm2, %v1376_v11, 0.0  ;;  %v668_v23 = vadd.f32 %v2200_v10, %v667_v15  ;;  %v669_v24 = vpop.f32.mrb[45].mxu0  ;;  %v796_v25 = vadd.f32 %v2200_v10, %v795_v18  ;;  %v797_v27 = vpop.f32.mrb[45].mxu1 }
 0x152   :  { %v1461_v28 = vadd.f32 %v1460_v21, %v1459_v12  ;;  %v670_v30 = vpop.f32.mrb[46].mxu0  ;;  %v798_v32 = vpop.f32.mrb[46].mxu1  ;;  %1208 = vst.msk [vmem:[%s2883_s3 + $0xd4] sm:$0xf] %vm1154_vm1, %v1784_v31 }
 0x153   :  { %v856_v33 = vmax.f32 %v668_v23, 0.0  ;;  %v671_v34 = vadd.f32 %v2200_v10, %v670_v30  ;;  %v672_v36 = vpop.f32.mrb[47].mxu0  ;;  %v2553_v40 = vmax.f32 %v796_v25, 0.0  ;;  %v800_v41 = vpop.f32.mrb[47].mxu1  ;;  %v799_v42 = vadd.f32 %v2200_v10, %v798_v32 }
 0x155   :  { %v1753_v43 = vpack.c.bf16 %v856_v33, %v856_v33  ;;  %v1263_v44 = vsel %vm1219_vm2, %v856_v33, 0.0  ;;  %v1377_v46 = vmul.f32 %v856_v33, %v856_v33  ;;  %v857_v47 = vmax.f32 %v671_v34, 0.0 }
 0x156   :  { %v1264_v48 = vadd.f32 %v1263_v44, %v1262_v13  ;;  %v1785_v51 = vpack.c.bf16 %v2553_v40, %v2553_v40  ;;  %v2573_v63 = vmax.f32 %v799_v42, 0.0 }
 0x157   :  { %1177 = vst.msk [vmem:[%s2883_s3 + $0x58] sm:$0xf] %vm1154_vm1, %v1753_v43  ;;  %v1462_v52 = vsel %vm1219_vm2, %v1377_v46, 0.0  ;;  %v1754_v53 = vpack.c.bf16 %v857_v47, %v857_v47  ;;  %v1265_v55 = vsel %vm1219_vm2, %v857_v47, 0.0  ;;  %v1378_v56 = vmul.f32 %v857_v47, %v857_v47 }
 0x158   :  { %v1463_v58 = vadd.f32 %v1462_v52, %v1461_v28  ;;  %v1266_v60 = vadd.f32 %v1265_v55, %v1264_v48  ;;  %v675_v61 = vpop.f32.mrb[48].mxu0  ;;  %1209 = vst.msk [vmem:[%s2883_s3 + $0xd8] sm:$0xf] %vm1154_vm1, %v1785_v51  ;;  %v803_v0 = vpop.f32.mrb[48].mxu1  ;;  %v1786_v12 = vpack.c.bf16 %v2573_v63, %v2573_v63 }
 0x159   :  { %1178 = vst.msk [vmem:[%s2883_s3 + $0x5c] sm:$0xf] %vm1154_vm1, %v1754_v53  ;;  %v1464_v1 = vsel %vm1219_vm2, %v1378_v56, 0.0  ;;  %v676_v4 = vadd.f32 %v2200_v10, %v675_v61  ;;  %v677_v5 = vpop.f32.mrb[49].mxu0  ;;  %v804_v6 = vadd.f32 %v2200_v10, %v803_v0  ;;  %v805_v7 = vpop.f32.mrb[49].mxu1 }
 0x15a   :  { %v1465_v9 = vadd.f32 %v1464_v1, %v1463_v58  ;;  %v678_v11 = vpop.f32.mrb[50].mxu0  ;;  %v806_v13 = vpop.f32.mrb[50].mxu1  ;;  %1210 = vst.msk [vmem:[%s2883_s3 + $0xdc] sm:$0xf] %vm1154_vm1, %v1786_v12 }
 0x15b   :  { %v858_v15 = vmax.f32 %v676_v4, 0.0  ;;  %v679_v18 = vadd.f32 %v2200_v10, %v678_v11  ;;  %v680_v21 = vpop.f32.mrb[51].mxu0  ;;  %v2585_v23 = vmax.f32 %v804_v6, 0.0  ;;  %v808_v24 = vpop.f32.mrb[51].mxu1  ;;  %v807_v25 = vadd.f32 %v2200_v10, %v806_v13 }
 0x15d   :  { %v1755_v27 = vpack.c.bf16 %v858_v15, %v858_v15  ;;  %v1267_v28 = vsel %vm1219_vm2, %v858_v15, 0.0  ;;  %v1379_v30 = vmul.f32 %v858_v15, %v858_v15  ;;  %v859_v31 = vmax.f32 %v679_v18, 0.0 }
 0x15e   :  { %v1268_v32 = vadd.f32 %v1267_v28, %v1266_v60  ;;  %v1787_v33 = vpack.c.bf16 %v2585_v23, %v2585_v23  ;;  %v2605_v47 = vmax.f32 %v807_v25, 0.0 }
 0x15f   :  { %1179 = vst.msk [vmem:[%s2883_s3 + $0x60] sm:$0xf] %vm1154_vm1, %v1755_v27  ;;  %v1466_v34 = vsel %vm1219_vm2, %v1379_v30, 0.0  ;;  %v1756_v36 = vpack.c.bf16 %v859_v31, %v859_v31  ;;  %v1269_v41 = vsel %vm1219_vm2, %v859_v31, 0.0  ;;  %v1380_v42 = vmul.f32 %v859_v31, %v859_v31 }
 0x160   :  { %v1467_v43 = vadd.f32 %v1466_v34, %v1465_v9  ;;  %v1270_v44 = vadd.f32 %v1269_v41, %v1268_v32  ;;  %v683_v46 = vpop.f32.mrb[52].mxu0  ;;  %1211 = vst.msk [vmem:[%s2883_s3 + $0xe0] sm:$0xf] %vm1154_vm1, %v1787_v33  ;;  %v811_v48 = vpop.f32.mrb[52].mxu1  ;;  %v1788_v61 = vpack.c.bf16 %v2605_v47, %v2605_v47 }
 0x161   :  { %1180 = vst.msk [vmem:[%s2883_s3 + $0x64] sm:$0xf] %vm1154_vm1, %v1756_v36  ;;  %v1468_v51 = vsel %vm1219_vm2, %v1380_v42, 0.0  ;;  %v684_v52 = vadd.f32 %v2200_v10, %v683_v46  ;;  %v685_v53 = vpop.f32.mrb[53].mxu0  ;;  %v812_v55 = vadd.f32 %v2200_v10, %v811_v48  ;;  %v813_v56 = vpop.f32.mrb[53].mxu1 }
 0x162   :  { %v1469_v58 = vadd.f32 %v1468_v51, %v1467_v43  ;;  %v686_v60 = vpop.f32.mrb[54].mxu0  ;;  %v814_v0 = vpop.f32.mrb[54].mxu1  ;;  %1212 = vst.msk [vmem:[%s2883_s3 + $0xe4] sm:$0xf] %vm1154_vm1, %v1788_v61 }
 0x163   :  { %v860_v1 = vmax.f32 %v684_v52, 0.0  ;;  %v687_v4 = vadd.f32 %v2200_v10, %v686_v60  ;;  %v688_v5 = vpop.f32.mrb[55].mxu0  ;;  %v2617_v6 = vmax.f32 %v812_v55, 0.0  ;;  %v816_v7 = vpop.f32.mrb[55].mxu1  ;;  %v815_v9 = vadd.f32 %v2200_v10, %v814_v0 }
 0x165   :  { %v1757_v11 = vpack.c.bf16 %v860_v1, %v860_v1  ;;  %v1271_v12 = vsel %vm1219_vm2, %v860_v1, 0.0  ;;  %v1381_v13 = vmul.f32 %v860_v1, %v860_v1  ;;  %v861_v15 = vmax.f32 %v687_v4, 0.0 }
 0x166   :  { %v1272_v18 = vadd.f32 %v1271_v12, %v1270_v44  ;;  %v1789_v21 = vpack.c.bf16 %v2617_v6, %v2617_v6  ;;  %v2637_v33 = vmax.f32 %v815_v9, 0.0 }
 0x167   :  { %1181 = vst.msk [vmem:[%s2883_s3 + $0x68] sm:$0xf] %vm1154_vm1, %v1757_v11  ;;  %v1470_v24 = vsel %vm1219_vm2, %v1381_v13, 0.0  ;;  %v1758_v25 = vpack.c.bf16 %v861_v15, %v861_v15  ;;  %v1273_v27 = vsel %vm1219_vm2, %v861_v15, 0.0  ;;  %v1382_v28 = vmul.f32 %v861_v15, %v861_v15 }
 0x168   :  { %v1471_v30 = vadd.f32 %v1470_v24, %v1469_v58  ;;  %v1274_v31 = vadd.f32 %v1273_v27, %v1272_v18  ;;  %v691_v32 = vpop.f32.mrb[56].mxu0  ;;  %1213 = vst.msk [vmem:[%s2883_s3 + $0xe8] sm:$0xf] %vm1154_vm1, %v1789_v21  ;;  %v819_v34 = vpop.f32.mrb[56].mxu1  ;;  %v1790_v51 = vpack.c.bf16 %v2637_v33, %v2637_v33 }
 0x169   :  { %1182 = vst.msk [vmem:[%s2883_s3 + $0x6c] sm:$0xf] %vm1154_vm1, %v1758_v25  ;;  %v1472_v36 = vsel %vm1219_vm2, %v1382_v28, 0.0  ;;  %v692_v41 = vadd.f32 %v2200_v10, %v691_v32  ;;  %v693_v42 = vpop.f32.mrb[57].mxu0  ;;  %v820_v43 = vadd.f32 %v2200_v10, %v819_v34  ;;  %v821_v44 = vpop.f32.mrb[57].mxu1 }
 0x16a   :  { %v1473_v46 = vadd.f32 %v1472_v36, %v1471_v30  ;;  %v694_v48 = vpop.f32.mrb[58].mxu0  ;;  %v822_v52 = vpop.f32.mrb[58].mxu1  ;;  %1214 = vst.msk [vmem:[%s2883_s3 + $0xec] sm:$0xf] %vm1154_vm1, %v1790_v51  ;;  %v1919_v32 = vld [vmem:[%s2882_s2] ss:$0 sm:$0xff] }
 0x16b   :  { %v862_v53 = vmax.f32 %v692_v41, 0.0  ;;  %v695_v55 = vadd.f32 %v2200_v10, %v694_v48  ;;  %v696_v56 = vpop.f32.mrb[59].mxu0  ;;  %v2649_v58 = vmax.f32 %v820_v43, 0.0  ;;  %v824_v60 = vpop.f32.mrb[59].mxu1  ;;  %v823_v61 = vadd.f32 %v2200_v10, %v822_v52 }
 0x16d   :  { %v1759_v0 = vpack.c.bf16 %v862_v53, %v862_v53  ;;  %v1275_v1 = vsel %vm1219_vm2, %v862_v53, 0.0  ;;  %v1383_v4 = vmul.f32 %v862_v53, %v862_v53  ;;  %v863_v5 = vmax.f32 %v695_v55, 0.0 }
 0x16e   :  { %v1276_v7 = vadd.f32 %v1275_v1, %v1274_v31  ;;  %v1791_v9 = vpack.c.bf16 %v2649_v58, %v2649_v58  ;;  %v2669_v25 = vmax.f32 %v823_v61, 0.0 }
 0x16f   :  { %1183 = vst.msk [vmem:[%s2883_s3 + $0x70] sm:$0xf] %vm1154_vm1, %v1759_v0  ;;  %v1474_v11 = vsel %vm1219_vm2, %v1383_v4, 0.0  ;;  %v1760_v12 = vpack.c.bf16 %v863_v5, %v863_v5  ;;  %v1277_v13 = vsel %vm1219_vm2, %v863_v5, 0.0  ;;  %v1384_v15 = vmul.f32 %v863_v5, %v863_v5 }
 0x170   :  { %v1475_v18 = vadd.f32 %v1474_v11, %v1473_v46  ;;  %v1278_v21 = vadd.f32 %v1277_v13, %v1276_v7  ;;  %v699_v24 = vpop.f32.mrb[60].mxu0  ;;  %1215 = vst.msk [vmem:[%s2883_s3 + $0xf0] sm:$0xf] %vm1154_vm1, %v1791_v9  ;;  %v827_v27 = vpop.f32.mrb[60].mxu1  ;;  %v1792_v43 = vpack.c.bf16 %v2669_v25, %v2669_v25  ;;  %v1387_v0 = vmul.f32 %v2205_v22, %v2205_v22 }
 0x171   :  { %1184 = vst.msk [vmem:[%s2883_s3 + $0x74] sm:$0xf] %vm1154_vm1, %v1760_v12  ;;  %v1476_v28 = vsel %vm1219_vm2, %v1384_v15, 0.0  ;;  %v700_v30 = vadd.f32 %v2200_v10, %v699_v24  ;;  %v701_v31 = vpop.f32.mrb[61].mxu0  ;;  %v828_v34 = vadd.f32 %v1919_v32, %v827_v27  ;;  %v829_v36 = vpop.f32.mrb[61].mxu1 }
 0x172   :  { %v1477_v41 = vadd.f32 %v1476_v28, %v1475_v18  ;;  %v702_v42 = vpop.f32.mrb[62].mxu0  ;;  %v830_v44 = vpop.f32.mrb[62].mxu1  ;;  %1216 = vst.msk [vmem:[%s2883_s3 + $0xf4] sm:$0xf] %vm1154_vm1, %v1792_v43  ;;  %v1283_v18 = vsel %vm1219_vm2, %v2205_v22, 0.0  ;;  %v1482_v31 = vsel %vm1219_vm2, %v1387_v0, 0.0  ;;  %v1390_v43 = vmul.f32 %v2253_v2, %v2253_v2 }
 0x173   :  { %v864_v46 = vmax.f32 %v700_v30, 0.0  ;;  %v703_v48 = vadd.f32 %v1919_v32, %v702_v42  ;;  %v704_v51 = vpop.f32.mrb[63].mxu0  ;;  %v2682_v52 = vmax.f32 %v828_v34, 0.0  ;;  %v832_v53 = vpop.f32.mrb[63].mxu1  ;;  %v831_v10 = vadd.f32 %v1919_v32, %v830_v44 }
 0x174   :  { %v1285_v22 = vsel %vm1219_vm2, %v2210_v29, 0.0  ;;  %v1389_v32 = vmul.f32 %v2237_v50, %v2237_v50  ;;  %v1287_v42 = vsel %vm1219_vm2, %v2237_v50, 0.0  ;;  %v1391_v51 = vmul.f32 %v2265_v17, %v2265_v17 }
 0x175   :  { %v1761_v55 = vpack.c.bf16 %v864_v46, %v864_v46  ;;  %v1279_v56 = vsel %vm1219_vm2, %v864_v46, 0.0  ;;  %v1385_v60 = vmul.f32 %v864_v46, %v864_v46  ;;  %v865_v61 = vmax.f32 %v703_v48, 0.0 }
 0x176   :  { %v1280_v1 = vadd.f32 %v1279_v56, %v1278_v21  ;;  %v1793_v4 = vpack.c.bf16 %v2682_v52, %v2682_v52  ;;  %v2703_v15 = vmax.f32 %v831_v10, 0.0  ;;  %v1388_v21 = vmul.f32 %v2210_v29, %v2210_v29 }
 0x177   :  { %1185 = vst.msk [vmem:[%s2883_s3 + $0x78] sm:$0xf] %vm1154_vm1, %v1761_v55  ;;  %v1478_v5 = vsel %vm1219_vm2, %v1385_v60, 0.0  ;;  %v1762_v7 = vpack.c.bf16 %v865_v61, %v865_v61  ;;  %v1281_v9 = vsel %vm1219_vm2, %v865_v61, 0.0  ;;  %v1386_v11 = vmul.f32 %v865_v61, %v865_v61 }
 0x178   :  { %v1479_v12 = vadd.f32 %v1478_v5, %v1477_v41  ;;  %v1282_v13 = vadd.f32 %v1281_v9, %v1280_v1  ;;  %1217 = vst.msk [vmem:[%s2883_s3 + $0xf8] sm:$0xf] %vm1154_vm1, %v1793_v4  ;;  %v1794_v30 = vpack.c.bf16 %v2703_v15, %v2703_v15  ;;  %v1484_v41 = vsel %vm1219_vm2, %v1388_v21, 0.0 }
 0x179   :  { %1186 = vst.msk [vmem:[%s2883_s3 + $0x7c] sm:$0xf] %vm1154_vm1, %v1762_v7  ;;  %v1480_v24 = vsel %vm1219_vm2, %v1386_v11, 0.0  ;;  %v1486_v46 = vsel %vm1219_vm2, %v1389_v32, 0.0  ;;  %v1289_v48 = vsel %vm1219_vm2, %v2253_v2, 0.0  ;;  %v1488_v55 = vsel %vm1219_vm2, %v1390_v43, 0.0 }
 0x17a   :  { %v1284_v27 = vadd.f32 %v1283_v18, %v1282_v13  ;;  %v1481_v28 = vadd.f32 %v1480_v24, %v1479_v12  ;;  %1218 = vst.msk [vmem:[%s2883_s3 + $0xfc] sm:$0xf] %vm1154_vm1, %v1794_v30  ;;  %v1291_v50 = vsel %vm1219_vm2, %v2265_v17, 0.0  ;;  %v1392_v56 = vmul.f32 %v2285_v35, %v2285_v35 }
 0x17b   :  { %v1490_v0 = vsel %vm1219_vm2, %v1391_v51, 0.0  ;;  %v1293_v2 = vsel %vm1219_vm2, %v2285_v35, 0.0  ;;  %v1393_v1 = vmul.f32 %v2297_v49, %v2297_v49  ;;  %v1295_v17 = vsel %vm1219_vm2, %v2297_v49, 0.0 }
 0x17c   :  { %v1286_v34 = vadd.f32 %v1285_v22, %v1284_v27  ;;  %v1483_v36 = vadd.f32 %v1482_v31, %v1481_v28  ;;  %v1492_v7 = vsel %vm1219_vm2, %v1392_v56, 0.0  ;;  %v1394_v9 = vmul.f32 %v2317_v3, %v2317_v3 }
 0x17d   :  { %v1494_v13 = vsel %vm1219_vm2, %v1393_v1, 0.0  ;;  %v1297_v35 = vsel %vm1219_vm2, %v2317_v3, 0.0  ;;  %v1395_v18 = vmul.f32 %v2329_v19, %v2329_v19  ;;  %v1299_v49 = vsel %vm1219_vm2, %v2329_v19, 0.0 }
 0x17e   :  { %v1288_v44 = vadd.f32 %v1287_v42, %v1286_v34  ;;  %v1485_v29 = vadd.f32 %v1484_v41, %v1483_v36  ;;  %v1496_v27 = vsel %vm1219_vm2, %v1394_v9, 0.0  ;;  %v1396_v28 = vmul.f32 %v2349_v38, %v2349_v38 }
 0x17f   :  { %v1498_v22 = vsel %vm1219_vm2, %v1395_v18, 0.0  ;;  %v1301_v3 = vsel %vm1219_vm2, %v2349_v38, 0.0  ;;  %v1397_v32 = vmul.f32 %v2361_v54, %v2361_v54  ;;  %v1303_v19 = vsel %vm1219_vm2, %v2361_v54, 0.0 }
 0x180   :  { %v1290_v53 = vadd.f32 %v1289_v48, %v1288_v44  ;;  %v1487_v10 = vadd.f32 %v1486_v46, %v1485_v29  ;;  %v1500_v41 = vsel %vm1219_vm2, %v1396_v28, 0.0  ;;  %v1398_v42 = vmul.f32 %v2381_v8, %v2381_v8 }
 0x181   :  { %v1502_v29 = vsel %vm1219_vm2, %v1397_v32, 0.0  ;;  %v1305_v38 = vsel %vm1219_vm2, %v2381_v8, 0.0  ;;  %v1399_v46 = vmul.f32 %v2393_v26, %v2393_v26  ;;  %v1307_v54 = vsel %vm1219_vm2, %v2393_v26, 0.0 }
 0x182   :  { %v1292_v60 = vadd.f32 %v1291_v50, %v1290_v53  ;;  %v1489_v61 = vadd.f32 %v1488_v55, %v1487_v10  ;;  %v1504_v53 = vsel %vm1219_vm2, %v1398_v42, 0.0  ;;  %v1400_v10 = vmul.f32 %v2413_v45, %v2413_v45 }
 0x183   :  { %v1506_v56 = vsel %vm1219_vm2, %v1399_v46, 0.0  ;;  %v1309_v8 = vsel %vm1219_vm2, %v2413_v45, 0.0  ;;  %v1311_v26 = vsel %vm1219_vm2, %v2425_v62, 0.0  ;;  %v1402_v1 = vmul.f32 %v2445_v20, %v2445_v20 }
 0x184   :  { %v1294_v4 = vadd.f32 %v1293_v2, %v1292_v60  ;;  %v1491_v5 = vadd.f32 %v1490_v0, %v1489_v61  ;;  %v1401_v60 = vmul.f32 %v2425_v62, %v2425_v62  ;;  %v1508_v2 = vsel %vm1219_vm2, %v1400_v10, 0.0 }
 0x185   :  { %v1313_v45 = vsel %vm1219_vm2, %v2445_v20, 0.0  ;;  %v1315_v62 = vsel %vm1219_vm2, %v2457_v39, 0.0  ;;  %v1317_v20 = vsel %vm1219_vm2, %v2477_v59, 0.0  ;;  %v1407_v32 = vmul.f32 %v2521_v57, %v2521_v57 }
 0x186   :  { %v1296_v11 = vadd.f32 %v1295_v17, %v1294_v4  ;;  %v1493_v12 = vadd.f32 %v1492_v7, %v1491_v5  ;;  %v1510_v7 = vsel %vm1219_vm2, %v1401_v60, 0.0  ;;  %v1403_v17 = vmul.f32 %v2457_v39, %v2457_v39 }
 0x187   :  { %v1319_v39 = vsel %vm1219_vm2, %v2489_v14, 0.0  ;;  %v1412_v60 = vmul.f32 %v2605_v47, %v2605_v47 }
 0x188   :  { %v1298_v21 = vadd.f32 %v1297_v35, %v1296_v11  ;;  %v1495_v24 = vadd.f32 %v1494_v13, %v1493_v12  ;;  %v1512_v12 = vsel %vm1219_vm2, %v1402_v1, 0.0  ;;  %v1404_v13 = vmul.f32 %v2477_v59, %v2477_v59 }
 0x189   :  { %v1321_v59 = vsel %vm1219_vm2, %v2509_v37, 0.0 }
 0x18a   :  { %v1497_v30 = vadd.f32 %v1496_v27, %v1495_v24  ;;  %v1300_v31 = vadd.f32 %v1299_v49, %v1298_v21  ;;  %v1514_v21 = vsel %vm1219_vm2, %v1403_v17, 0.0  ;;  %v1405_v24 = vmul.f32 %v2489_v14, %v2489_v14 }
 0x18b   :  { %v1516_v28 = vsel %vm1219_vm2, %v1404_v13, 0.0  ;;  %v1323_v14 = vsel %vm1219_vm2, %v2521_v57, 0.0  ;;  %v1327_v57 = vsel %vm1219_vm2, %v2553_v40, 0.0 }
 0x18c   :  { %v1302_v34 = vadd.f32 %v1301_v3, %v1300_v31  ;;  %v1499_v36 = vadd.f32 %v1498_v22, %v1497_v30  ;;  %v1406_v30 = vmul.f32 %v2509_v37, %v2509_v37  ;;  %v1518_v3 = vsel %vm1219_vm2, %v1405_v24, 0.0 }
 0x18d   :  { %v1325_v37 = vsel %vm1219_vm2, %v2541_v16, 0.0  ;;  %v1341_v24 = vsel %vm1219_vm2, %v2669_v25, 0.0 }
 0x18e   :  { %v1304_v43 = vadd.f32 %v1303_v19, %v1302_v34  ;;  %v1501_v44 = vadd.f32 %v1500_v41, %v1499_v36  ;;  %v1520_v41 = vsel %vm1219_vm2, %v1406_v30, 0.0  ;;  %v1408_v19 = vmul.f32 %v2541_v16, %v2541_v16 }
 0x18f   :  { %v1329_v16 = vsel %vm1219_vm2, %v2573_v63, 0.0  ;;  %v1418_v30 = vmul.f32 %v2703_v15, %v2703_v15 }
 0x190   :  { %v1306_v48 = vadd.f32 %v1305_v38, %v1304_v43  ;;  %v1503_v51 = vadd.f32 %v1502_v29, %v1501_v44  ;;  %v1522_v44 = vsel %vm1219_vm2, %v1407_v32, 0.0  ;;  %v1409_v29 = vmul.f32 %v2553_v40, %v2553_v40 }
 0x191   :  { %v1331_v40 = vsel %vm1219_vm2, %v2585_v23, 0.0 }
 0x192   :  { %v1308_v55 = vadd.f32 %v1307_v54, %v1306_v48  ;;  %v1505_v50 = vadd.f32 %v1504_v53, %v1503_v51  ;;  %v1524_v48 = vsel %vm1219_vm2, %v1408_v19, 0.0  ;;  %v1410_v51 = vmul.f32 %v2573_v63, %v2573_v63 }
 0x193   :  { %v1526_v10 = vsel %vm1219_vm2, %v1409_v29, 0.0  ;;  %v1333_v63 = vsel %vm1219_vm2, %v2605_v47, 0.0  ;;  %v1337_v47 = vsel %vm1219_vm2, %v2637_v33, 0.0 }
 0x194   :  { %v1310_v61 = vadd.f32 %v1309_v8, %v1308_v55  ;;  %v1507_v0 = vadd.f32 %v1506_v56, %v1505_v50  ;;  %v1411_v55 = vmul.f32 %v2585_v23, %v2585_v23  ;;  %v1528_v8 = vsel %vm1219_vm2, %v1410_v51, 0.0 }
 0x195   :  { %v1335_v23 = vsel %vm1219_vm2, %v2617_v6, 0.0 }
 0x196   :  { %v1312_v4 = vadd.f32 %v1311_v26, %v1310_v61  ;;  %v1509_v5 = vadd.f32 %v1508_v2, %v1507_v0  ;;  %v1530_v2 = vsel %vm1219_vm2, %v1411_v55, 0.0  ;;  %v1413_v26 = vmul.f32 %v2617_v6, %v2617_v6 }
 0x197   :  { %v1339_v6 = vsel %vm1219_vm2, %v2649_v58, 0.0 }
 0x198   :  { %v1314_v9 = vadd.f32 %v1313_v45, %v1312_v4  ;;  %v1511_v11 = vadd.f32 %v1510_v7, %v1509_v5  ;;  %v1532_v5 = vsel %vm1219_vm2, %v1412_v60, 0.0  ;;  %v1414_v7 = vmul.f32 %v2637_v33, %v2637_v33 }
 0x19a   :  { %v1316_v35 = vadd.f32 %v1315_v62, %v1314_v9  ;;  %v1513_v18 = vadd.f32 %v1512_v12, %v1511_v11  ;;  %v1534_v9 = vsel %vm1219_vm2, %v1413_v26, 0.0  ;;  %v1415_v11 = vmul.f32 %v2649_v58, %v2649_v58 }
 0x19b   :  { %v1536_v13 = vsel %vm1219_vm2, %v1414_v7, 0.0 }
 0x19c   :  { %v1515_v27 = vadd.f32 %v1514_v21, %v1513_v18  ;;  %v1318_v49 = vadd.f32 %v1317_v20, %v1316_v35  ;;  %v1416_v35 = vmul.f32 %v2669_v25, %v2669_v25  ;;  %v1417_v18 = vmul.f32 %v2682_v52, %v2682_v52 }
 0x19d   :  { %v1538_v33 = vsel %vm1219_vm2, %v1415_v11, 0.0  ;;  %v1544_v25 = vsel %vm1219_vm2, %v1418_v30, 0.0 }
 0x19e   :  { %v1517_v31 = vadd.f32 %v1516_v28, %v1515_v27  ;;  %v1320_v22 = vadd.f32 %v1319_v39, %v1318_v49  ;;  %v1343_v27 = vsel %vm1219_vm2, %v2682_v52, 0.0  ;;  %v1540_v58 = vsel %vm1219_vm2, %v1416_v35, 0.0 }
 0x19f   :  { %v1542_v39 = vsel %vm1219_vm2, %v1417_v18, 0.0 }
 0x1a0   :  { %v1519_v34 = vadd.f32 %v1518_v3, %v1517_v31  ;;  %v1322_v36 = vadd.f32 %v1321_v59, %v1320_v22  ;;  %v1345_v3 = vsel %vm1219_vm2, %v2703_v15, 0.0 }
 0x1a2   :  { %v1521_v42 = vadd.f32 %v1520_v41, %v1519_v34  ;;  %v1324_v43 = vadd.f32 %v1323_v14, %v1322_v36 }
 0x1a4   :  { %v1523_v38 = vadd.f32 %v1522_v44, %v1521_v42  ;;  %v1326_v46 = vadd.f32 %v1325_v37, %v1324_v43 }
 0x1a6   :  { %v1525_v53 = vadd.f32 %v1524_v48, %v1523_v38  ;;  %v1328_v54 = vadd.f32 %v1327_v57, %v1326_v46 }
 0x1a8   :  { %v1527_v50 = vadd.f32 %v1526_v10, %v1525_v53  ;;  %v1330_v56 = vadd.f32 %v1329_v16, %v1328_v54 }
 0x1aa   :  { %v1529_v61 = vadd.f32 %v1528_v8, %v1527_v50  ;;  %v1332_v0 = vadd.f32 %v1331_v40, %v1330_v56 }
 0x1ac   :  { %v1531_v1 = vadd.f32 %v1530_v2, %v1529_v61  ;;  %v1334_v4 = vadd.f32 %v1333_v63, %v1332_v0 }
 0x1ae   :  { %v1533_v45 = vadd.f32 %v1532_v5, %v1531_v1  ;;  %v1336_v17 = vadd.f32 %v1335_v23, %v1334_v4 }
 0x1b0   :  { %v1535_v12 = vadd.f32 %v1534_v9, %v1533_v45  ;;  %v1338_v62 = vadd.f32 %v1337_v47, %v1336_v17 }
 0x1b2   :  { %v1537_v21 = vadd.f32 %v1536_v13, %v1535_v12  ;;  %v1340_v20 = vadd.f32 %v1339_v6, %v1338_v62 }
 0x1b4   :  { %v1539_v49 = vadd.f32 %v1538_v33, %v1537_v21  ;;  %v1342_v28 = vadd.f32 %v1341_v24, %v1340_v20 }
 0x1b6   :  { %v1541_v31 = vadd.f32 %v1540_v58, %v1539_v49  ;;  %v1344_v22 = vadd.f32 %v1343_v27, %v1342_v28 }
 0x1b8   :  { %v1543_v59 = vadd.f32 %v1542_v39, %v1541_v31  ;;  %v1346_v32 = vadd.f32 %v1345_v3, %v1344_v22 }
 0x1ba   :  { %v1347_v34 = vrot.slane %v1346_v32, 4  ;;  %v1545_v52 = vadd.f32 %v1544_v25, %v1543_v59 }
 0x1bc   :  { %v1348_v36 = vadd.f32 %v1347_v34, %v1346_v32  ;;  %v1546_v41 = vrot.slane %v1545_v52, 4 }
 0x1be   :  { %v1349_v14 = vrot.slane %v1348_v36, 2  ;;  %v1547_v19 = vadd.f32 %v1546_v41, %v1545_v52 }
 0x1c0   :  { %v1350_v42 = vadd.f32 %v1349_v14, %v1348_v36  ;;  %v1548_v43 = vrot.slane %v1547_v19, 2 }
 0x1c2   :  { %v1351_v44 = vrot.slane %v1350_v42, 1  ;;  %v1549_v37 = vadd.f32 %v1548_v43, %v1547_v19 }
 0x1c4   :  { %v1352_v29 = vadd.f32 %v1351_v44, %v1350_v42  ;;  %v1550_v38 = vrot.slane %v1549_v37, 1 }
 0x1c6   :  { %1354 = vst.msk [vmem:[%s2884_s4] sm:$0x1] %vm1353_vm3, %v1352_v29  ;;  %v1551_v15 = vadd.f32 %v1550_v38, %v1549_v37 }
 0x1c8   :  { %1552 = vst.msk [vmem:[%s2884_s4 + $0x1] sm:$0x1] %vm1353_vm3, %v1551_v15 }

</bundles_post_ra>
